<compile_context>
chip_gen: v6e
topology: v6e:2x2x1
jax: 0.10.0
libtpu: 0.0.40
codegen_flags: <defaults>
</compile_context>

<pallas_src>
import functools

import numpy as np

import jax
import jax.numpy as jnp
from jax.experimental import pallas as pl
from jax.experimental.pallas import tpu as pltpu

# ----------------------------- model hyper-params -----------------------------
IN_CHANNELS = 1
OUT_CLASSES = 2
FIRST = 8          # out_channels_first_layer
DEPTH = 2          # num_encoding_blocks - 1
H_IN = W_IN = 16   # input spatial size
SLAB_W = 256       # lane width of the bf16 weight slab (multiple of 128)


def _make_plan():
    """Static layer-name / geometry plan shared by packing and the kernel."""
    enc, dec = [], []
    h, w = H_IN, W_IN
    for d in range(DEPTH):
        enc.append(("enc%d_c1" % d, "enc%d_c2" % d, "pool%d" % d, h, w))
        h, w = h // 2, w // 2
    bottom = ("bot_c1", "bot_c2", h, w)
    for d in range(DEPTH):
        dec.append(("up%d" % d, "dec%d_c1" % d, "dec%d_c2" % d, h, w))
        h, w = 2 * h, 2 * w
    return dict(enc=tuple(enc), bottom=bottom, dec=tuple(dec), cls="cls")


# ------------------------------- fused UNet kernel ------------------------------
def _unet_kernel(x_ref, w_ref, b_ref, o_ref, *, plan, wlay, blay):
    f32, bf16 = jnp.float32, jnp.bfloat16

    def load_w(name):
        r, rows, cols = wlay[name]
        return w_ref[r:r + rows, 0:cols]          # bf16 (rows, cols)

    def load_b(name, cout):
        r = blay[name]
        return b_ref[r:r + cout, :]               # f32 (cout, 1)

    mask_cache = {}

    def col_masks(h, w):
        """(not_first_col, not_last_col) masks, built once per (h, w)."""
        if (h, w) not in mask_cache:
            hw = h * w
            p = jax.lax.broadcasted_iota(jnp.int32, (1, hw), 1)
            col = jnp.bitwise_and(p, w - 1) if (w & (w - 1)) == 0 else jax.lax.rem(p, w)
            mask_cache[(h, w)] = ((col != 0).astype(f32),
                                  (col != w - 1).astype(f32))
        return mask_cache[(h, w)]

    def conv3x3(x, name, h, w, relu=True):
        """3x3 'same' conv + bias + ReLU as 9 accumulated bf16 MXU matmuls.

        Row boundaries are handled by the (w+1)-wide zero extension; column
        boundaries by two pre-masked copies of x (left / right column zeroed),
        so there are no per-tap masks and no (9*Cin, HW) patches tensor.
        """
        hw = h * w
        cin = x.shape[0]
        _, rows, _ = wlay[name]
        cout = rows // 9
        not_c0, not_cl = col_masks(h, w)
        pad = w + 1
        z = jnp.zeros((cin, pad), f32)
        ext = {
            0: jnp.concatenate([z, x, z], axis=1),            # dx == 0 taps
            1: jnp.concatenate([z, x * not_c0, z], axis=1),   # dx == +1 taps
            -1: jnp.concatenate([z, x * not_cl, z], axis=1),  # dx == -1 taps
        }
        wall = load_w(name)                                   # (9*cout, cin) bf16
        acc = jnp.zeros((cout, hw), f32)
        for ky in range(3):
            for kx in range(3):
                t = 3 * ky + kx
                off = (ky - 1) * w + (kx - 1)
                tap = ext[kx - 1][:, pad + off:pad + off + hw]
                wt = wall[t * cout:(t + 1) * cout, :]
                if cin == 1:
                    # degenerate K=1 matmul -> do it on the VPU (bf16-rounded
                    # operands so it matches the MXU path numerically).
                    acc = acc + wt.astype(f32) * tap.astype(bf16).astype(f32)
                else:
                    acc = acc + jnp.dot(wt, tap.astype(bf16),
                                        preferred_element_type=f32)
        acc = acc + load_b(name, cout)
        return jnp.maximum(acc, 0.0) if relu else acc

    def maxpool2x2(x, name, h, w):
        """MaxPool 2x2/2: two shifted maxima + one 0/1 MXU gather matmul."""
        c, _ = x.shape
        right = jnp.concatenate([x[:, 1:], jnp.zeros((c, 1), x.dtype)], axis=1)
        m = jnp.maximum(x, right)                 # max over column pairs
        below = jnp.concatenate([m[:, w:], jnp.zeros((c, w), m.dtype)], axis=1)
        m = jnp.maximum(m, below)                 # max over row pairs
        gather = load_w(name)                     # (hw, hw//4) 0/1 bf16
        return jnp.dot(m.astype(bf16), gather, preferred_element_type=f32)

    def upsample2x2(x, name, h, w):
        """ConvTranspose2d(k=2,s=2): one fused (4*Cout,Cin) weight matmul plus
        four 0/1 scatter matmuls that interleave the phases on the MXU."""
        hw = h * w
        _, rows, _ = wlay[name + "_w"]
        cout = rows // 4
        wf = load_w(name + "_w")                  # (4*cout, cin) bf16
        y = jnp.dot(wf, x.astype(bf16), preferred_element_type=f32)
        out = jnp.zeros((cout, 4 * hw), f32)
        for ph in range(4):
            scat = load_w(name + "_P%d" % ph)     # (hw, 4*hw) 0/1 bf16
            yp = y[ph * cout:(ph + 1) * cout, :].astype(bf16)
            out = out + jnp.dot(yp, scat, preferred_element_type=f32)
        return out + load_b(name, cout)

    x = x_ref[0].astype(f32)                      # (Cin, H*W)

    # ------------------------------- encoder ----------------------------------
    skips = []
    for c1, c2, pool, h, w in plan["enc"]:
        x = conv3x3(x, c1, h, w)
        x = conv3x3(x, c2, h, w)
        skips.append(x)                           # skip taken before pooling
        x = maxpool2x2(x, pool, h, w)

    # ------------------------------ bottom block ------------------------------
    c1, c2, h, w = plan["bottom"]
    x = conv3x3(x, c1, h, w)
    x = conv3x3(x, c2, h, w)

    # ------------------------------- decoder ----------------------------------
    for (up, c1, c2, h, w), skip in zip(plan["dec"], reversed(skips)):
        x = upsample2x2(x, up, h, w)
        h, w = 2 * h, 2 * w
        # center_crop is an identity here (padding=1, even spatial sizes).
        x = jnp.concatenate([skip, x], axis=0)    # torch.cat((skip, x), dim=1)
        x = conv3x3(x, c1, h, w)
        x = conv3x3(x, c2, h, w)

    # monte_carlo_dropout = 0 -> identity
    # ------------------------ classifier (1x1 conv) ---------------------------
    wc = load_w(plan["cls"])                      # (out_classes, FIRST)
    bc = load_b(plan["cls"], OUT_CLASSES)
    o_ref[0] = jnp.dot(wc, x.astype(bf16), preferred_element_type=f32) + bc


# ------------------------------- parameter init --------------------------------
def init_params(key):
    keys = iter(jax.random.split(key, 64))

    def conv_p(cout, cin, k):
        k1, k2 = next(keys), next(keys)
        bound = 1.0 / float(cin * k * k) ** 0.5
        w = jax.random.uniform(k1, (cout, cin, k, k), jnp.float32, -bound, bound)
        b = jax.random.uniform(k2, (cout,), jnp.float32, -bound, bound)
        return w, b

    def convT_p(cin, cout, k):
        k1, k2 = next(keys), next(keys)
        bound = 1.0 / float(cout * k * k) ** 0.5
        w = jax.random.uniform(k1, (cin, cout, k, k), jnp.float32, -bound, bound)
        b = jax.random.uniform(k2, (cout,), jnp.float32, -bound, bound)
        return w, b

    params = {}
    enc, in_c, out_first = [], IN_CHANNELS, FIRST
    for _ in range(DEPTH):
        w1, b1 = conv_p(out_first, in_c, 3)
        w2, b2 = conv_p(out_first, out_first, 3)
        enc.append(dict(w1=w1, b1=b1, w2=w2, b2=b2))
        in_c, out_first = out_first, out_first * 2
    params["encoder"] = enc
    bot_in, bot_out = in_c, 2 * in_c              # dimensions == 2
    w1, b1 = conv_p(bot_out, bot_in, 3)
    w2, b2 = conv_p(bot_out, bot_out, 3)
    params["bottom"] = dict(w1=w1, b1=b1, w2=w2, b2=b2)
    dec, skip_c = [], FIRST * 2 ** (DEPTH - 1)
    for _ in range(DEPTH):
        wu, bu = convT_p(2 * skip_c, 2 * skip_c, 2)   # ConvTranspose2d upsample
        w1, b1 = conv_p(skip_c, 3 * skip_c, 3)        # after concat: 3*skip ch
        w2, b2 = conv_p(skip_c, skip_c, 3)
        dec.append(dict(wu=wu, bu=bu, w1=w1, b1=b1, w2=w2, b2=b2))
        skip_c //= 2
    params["decoder"] = dec
    wc, bc = conv_p(OUT_CLASSES, FIRST, 1)
    params["classifier"] = dict(w=wc, b=bc)
    return params


# ------------------------------ parameter packing -------------------------------
def pack_params(params):
    """Pack every MXU operand into one bf16 slab (plus constant pool-gather and
    upsample-scatter matrices) and every bias into one f32 column slab.
    Returns (w_slab, b_slab, wlay, blay) with static row-offset layouts."""
    plan = _make_plan()
    w_entries, b_entries = [], []

    def conv_entry(name, w, b):
        w = np.asarray(w, np.float32)
        co, ci = w.shape[0], w.shape[1]
        # (Cout,Cin,3,3) -> (9*Cout, Cin), tap-major row blocks.
        w_entries.append((name, np.transpose(w, (2, 3, 0, 1)).reshape(9 * co, ci)))
        b_entries.append((name, np.asarray(b, np.float32)))

    def convt_entry(name, w, b, h, wd):
        w = np.asarray(w, np.float32)
        ci, co = w.shape[0], w.shape[1]
        # (Cin,Cout,2,2) -> (4*Cout, Cin), phase-major row blocks.
        w_entries.append((name + "_w",
                          np.transpose(w, (2, 3, 1, 0)).reshape(4 * co, ci)))
        b_entries.append((name, np.asarray(b, np.float32)))
        # 0/1 scatter matrices that place phase (dy,dx) at (2r+dy, 2c+dx).
        H2, W2 = 2 * h, 2 * wd
        for ph, (dy, dx) in enumerate(((0, 0), (0, 1), (1, 0), (1, 1))):
            P = np.zeros((h * wd, H2 * W2), np.float32)
            j = np.arange(h * wd)
            P[j, (2 * (j // wd) + dy) * W2 + 2 * (j % wd) + dx] = 1.0
            w_entries.append((name + "_P%d" % ph, P))

    def pool_entry(name, h, wd):
        ho, wo = h // 2, wd // 2
        S = np.zeros((h * wd, ho * wo), np.float32)
        j = np.arange(ho * wo)
        S[(2 * (j // wo)) * wd + 2 * (j % wo), j] = 1.0
        w_entries.append((name, S))

    for d, (c1, c2, pool, h, wd) in enumerate(plan["enc"]):
        blk = params["encoder"][d]
        conv_entry(c1, blk["w1"], blk["b1"])
        conv_entry(c2, blk["w2"], blk["b2"])
        pool_entry(pool, h, wd)
    c1, c2, h, wd = plan["bottom"]
    conv_entry(c1, params["bottom"]["w1"], params["bottom"]["b1"])
    conv_entry(c2, params["bottom"]["w2"], params["bottom"]["b2"])
    for d, (up, c1, c2, h, wd) in enumerate(plan["dec"]):
        blk = params["decoder"][d]
        convt_entry(up, blk["wu"], blk["bu"], h, wd)
        conv_entry(c1, blk["w1"], blk["b1"])
        conv_entry(c2, blk["w2"], blk["b2"])
    w_entries.append(("cls", np.asarray(params["classifier"]["w"],
                                        np.float32)[:, :, 0, 0]))
    b_entries.append(("cls", np.asarray(params["classifier"]["b"], np.float32)))

    # ------------------------------ build slabs ------------------------------
    wlay, wblocks, roff = {}, [], 0
    for name, mat in w_entries:
        rows, cols = mat.shape
        assert cols <= SLAB_W, (name, mat.shape)
        wlay[name] = (roff, rows, cols)
        pad_r = (-rows) % 16                    # keep bf16 sublane tiles aligned
        wblocks.append(np.pad(mat, ((0, pad_r), (0, SLAB_W - cols))))
        roff += rows + pad_r
    w_slab = jnp.asarray(np.concatenate(wblocks, axis=0), jnp.bfloat16)

    blay, bblocks, boff = {}, [], 0
    for name, vec in b_entries:
        n = vec.shape[0]
        blay[name] = boff
        pad_r = (-n) % 8
        bblocks.append(np.pad(vec.reshape(-1, 1), ((0, pad_r), (0, 0))))
        boff += n + pad_r
    b_slab = jnp.asarray(np.concatenate(bblocks, axis=0), jnp.float32)
    return w_slab, b_slab, wlay, blay


# --------------------------------- forward pass ---------------------------------
def make_forward(wlay, blay, w_shape, b_shape, n):
    hw = H_IN * W_IN
    kernel = functools.partial(_unet_kernel, plan=_make_plan(),
                               wlay=wlay, blay=blay)
    call = pl.pallas_call(
        kernel,
        grid=(n,),
        in_specs=[
            pl.BlockSpec((1, IN_CHANNELS, hw), lambda i: (i, 0, 0)),
            pl.BlockSpec(w_shape, lambda i: (0, 0)),   # resident bf16 MXU slab
            pl.BlockSpec(b_shape, lambda i: (0, 0)),   # resident f32 bias slab
        ],
        out_specs=pl.BlockSpec((1, OUT_CLASSES, hw), lambda i: (i, 0, 0)),
        out_shape=jax.ShapeDtypeStruct((n, OUT_CLASSES, hw), jnp.float32),
        compiler_params=pltpu.CompilerParams(
            dimension_semantics=("parallel",)),        # batch across TCs on v7x
    )

    @jax.jit
    def forward(w_slab, b_slab, x_nchw):
        x_flat = x_nchw.reshape(n, IN_CHANNELS, hw)    # free reshape (NCHW order)
        out = call(x_flat, w_slab, b_slab)
        return out.reshape(n, OUT_CLASSES, H_IN, W_IN)

    return forward


# ----------------------------- NumPy reference (check) ---------------------------
def _bf16_round(a):
    """float32 -> bfloat16 -> float32 (matches the kernel's MXU-input casts)."""
    return np.asarray(jnp.asarray(np.asarray(a, np.float32),
                                  jnp.bfloat16).astype(jnp.float32))


def _reference_forward(params, x):
    """NumPy NCHW reference mirroring the PyTorch module.  The same bf16
    rounding points as the kernel (weights and activations entering the MXU,
    ConvTranspose phase outputs) are emulated, so the only residual difference
    is f32 accumulation order."""
    r = _bf16_round
    x = np.asarray(x, np.float32)

    def conv3(x, w, b, relu=True):
        xq, wq = r(x), r(w)
        n, c, h, wd = xq.shape
        xp = np.pad(xq, ((0, 0), (0, 0), (1, 1), (1, 1)))
        out = np.zeros((n, w.shape[0], h, wd), np.float32)
        for ky in range(3):
            for kx in range(3):
                out += np.einsum("nchw,oc->nohw",
                                 xp[:, :, ky:ky + h, kx:kx + wd], wq[:, :, ky, kx])
        out += np.asarray(b, np.float32)[None, :, None, None]
        return np.maximum(out, 0.0) if relu else out

    def pool(x):
        n, c, h, wd = x.shape
        return x.reshape(n, c, h // 2, 2, wd // 2, 2).max(axis=(3, 5))

    def convT(x, w, b):
        xq, wq = r(x), r(w)
        n, ci, h, wd = xq.shape
        co = w.shape[1]
        out = np.zeros((n, co, 2 * h, 2 * wd), np.float32)
        for dy in range(2):
            for dx in range(2):
                phase = np.einsum("nchw,co->nohw", xq, wq[:, :, dy, dx])
                out[:, :, dy::2, dx::2] = r(phase)
        return out + np.asarray(b, np.float32)[None, :, None, None]

    skips, y = [], x
    for blk in params["encoder"]:
        y = conv3(y, blk["w1"], blk["b1"])
        y = conv3(y, blk["w2"], blk["b2"])
        skips.append(y)
        y = pool(y)
    y = conv3(y, params["bottom"]["w1"], params["bottom"]["b1"])
    y = conv3(y, params["bottom"]["w2"], params["bottom"]["b2"])
    for skip, blk in zip(reversed(skips), params["decoder"]):
        y = convT(y, blk["wu"], blk["bu"])
        y = np.concatenate([skip, y], axis=1)
        y = conv3(y, blk["w1"], blk["b1"])
        y = conv3(y, blk["w2"], blk["b2"])
    wc = r(np.asarray(params["classifier"]["w"], np.float32)[:, :, 0, 0])
    bc = np.asarray(params["classifier"]["b"], np.float32)
    return np.einsum("nchw,oc->nohw", r(y), wc) + bc[None, :, None, None]


# -------------------------------------- main -------------------------------------
if __name__ == "__main__":
    key = jax.random.PRNGKey(0)
    pkey, xkey = jax.random.split(key)
    params = init_params(pkey)
    x = jax.random.normal(xkey, (2, IN_CHANNELS, H_IN, W_IN), jnp.float32)  # NCHW

    w_slab, b_slab, wlay, blay = pack_params(params)
    forward = make_forward(wlay, blay, w_slab.shape, b_slab.shape, n=x.shape[0])

    out = forward(w_slab, b_slab, x)
    jax.block_until_ready(out)
    assert out.shape == (2, OUT_CLASSES, H_IN, W_IN), out.shape
    assert out.dtype == jnp.float32

    # Correctness check.  The reference mirrors the kernel's bf16 rounding
    # points, so the residual is f32 accumulation-order noise (plus rare
    # one-ULP bf16 flips on values near a rounding boundary).  5e-3 of
    # max|ref| is ~20x tighter than before and far below the O(1) error a
    # wrong boundary tap or mis-interleaved ConvTranspose phase would cause.
    ref = _reference_forward(params, np.asarray(x))
    ref_max = float(np.max(np.abs(ref))) + 1e-6
    err = float(jnp.max(jnp.abs(out - jnp.asarray(ref))))
    assert err <= 5e-3 * ref_max + 1e-5, \
        f"mismatch vs reference: {err} (max|ref|={ref_max})"
    print("KERNEL_OK")
</pallas_src>

<mosaic_0001>
module attributes {stable_mosaic.version = 11 : i64} {
  func.func @_unet_kernel(%arg0: i32, %arg1: memref<1x1x256xf32, #tpu.memory_space<vmem>>, %arg2: memref<2320x256xbf16, #tpu.memory_space<vmem>>, %arg3: memref<216x1xf32, #tpu.memory_space<vmem>>, %arg4: memref<1x2x256xf32, #tpu.memory_space<vmem>>) attributes {dimension_semantics = [#tpu.dimension_semantics<parallel>], iteration_bounds = array<i64: 2>, scalar_prefetch = 0 : i64, scratch_operands = 0 : i64, tpu.core_type = #tpu.core_type<tc>, window_params = [{transform_indices = @transform_0, window_bounds = array<i64: 1, 1, 256>}, {pipeline_mode = #tpu.pipeline_mode<synchronous>, transform_indices = @transform_1, window_bounds = array<i64: 2320, 256>}, {pipeline_mode = #tpu.pipeline_mode<synchronous>, transform_indices = @transform_2, window_bounds = array<i64: 216, 1>}, {transform_indices = @transform_3, window_bounds = array<i64: 1, 2, 256>}]} {
    %c0 = arith.constant 0 : index
    %c0_0 = arith.constant 0 : index
    %c0_1 = arith.constant 0 : index
    %0 = vector.load %arg1[%c0, %c0_0, %c0_1] : memref<1x1x256xf32, #tpu.memory_space<vmem>>, vector<1x1x256xf32>
    %1 = vector.shape_cast %0 : vector<1x1x256xf32> to vector<1x256xf32>
    %2 = tpu.iota {dimensions = array<i32: 1>} : vector<1x256xi32>
    %c15_i32 = arith.constant 15 : i32
    %3 = vector.broadcast %c15_i32 : i32 to vector<1x256xi32>
    %4 = arith.andi %2, %3 : vector<1x256xi32>
    %c0_i32 = arith.constant 0 : i32
    %5 = vector.broadcast %c0_i32 : i32 to vector<1x256xi32>
    %6 = arith.cmpi ne, %4, %5 : vector<1x256xi32>
    %7 = arith.extui %6 : vector<1x256xi1> to vector<1x256xi32>
    %8 = arith.sitofp %7 : vector<1x256xi32> to vector<1x256xf32>
    %c15_i32_2 = arith.constant 15 : i32
    %9 = vector.broadcast %c15_i32_2 : i32 to vector<1x256xi32>
    %10 = arith.cmpi ne, %4, %9 : vector<1x256xi32>
    %11 = arith.extui %10 : vector<1x256xi1> to vector<1x256xi32>
    %12 = arith.sitofp %11 : vector<1x256xi32> to vector<1x256xf32>
    %cst = arith.constant 0.000000e+00 : f32
    %13 = vector.broadcast %cst : f32 to vector<1x17xf32>
    %14 = tpu.concatenate %13, %1, %13 in 1 : vector<1x17xf32>, vector<1x256xf32>, vector<1x17xf32> -> vector<1x290xf32>
    %15 = arith.mulf %1, %8 : vector<1x256xf32>
    %16 = tpu.concatenate %13, %15, %13 in 1 : vector<1x17xf32>, vector<1x256xf32>, vector<1x17xf32> -> vector<1x290xf32>
    %17 = arith.mulf %1, %12 : vector<1x256xf32>
    %18 = tpu.concatenate %13, %17, %13 in 1 : vector<1x17xf32>, vector<1x256xf32>, vector<1x17xf32> -> vector<1x290xf32>
    %c0_3 = arith.constant 0 : index
    %c0_4 = arith.constant 0 : index
    %19 = vector.load %arg2[%c0_3, %c0_4] : memref<2320x256xbf16, #tpu.memory_space<vmem>>, vector<72x1xbf16>
    %cst_5 = arith.constant 0.000000e+00 : f32
    %20 = vector.broadcast %cst_5 : f32 to vector<8x256xf32>
    %21 = vector.extract_strided_slice %18 {offsets = [0, 0], sizes = [1, 256], strides = [1, 1]} : vector<1x290xf32> to vector<1x256xf32>
    %22 = vector.extract_strided_slice %19 {offsets = [0, 0], sizes = [8, 1], strides = [1, 1]} : vector<72x1xbf16> to vector<8x1xbf16>
    %23 = arith.extf %22 : vector<8x1xbf16> to vector<8x1xf32>
    %24 = arith.truncf %21 : vector<1x256xf32> to vector<1x256xbf16>
    %25 = arith.extf %24 : vector<1x256xbf16> to vector<1x256xf32>
    %26 = vector.broadcast %23 : vector<8x1xf32> to vector<8x256xf32>
    %27 = vector.broadcast %25 : vector<1x256xf32> to vector<8x256xf32>
    %28 = arith.mulf %26, %27 : vector<8x256xf32>
    %29 = arith.addf %20, %28 : vector<8x256xf32>
    %30 = vector.extract_strided_slice %14 {offsets = [0, 1], sizes = [1, 256], strides = [1, 1]} : vector<1x290xf32> to vector<1x256xf32>
    %31 = vector.extract_strided_slice %19 {offsets = [8, 0], sizes = [8, 1], strides = [1, 1]} : vector<72x1xbf16> to vector<8x1xbf16>
    %32 = arith.extf %31 : vector<8x1xbf16> to vector<8x1xf32>
    %33 = arith.truncf %30 : vector<1x256xf32> to vector<1x256xbf16>
    %34 = arith.extf %33 : vector<1x256xbf16> to vector<1x256xf32>
    %35 = vector.broadcast %32 : vector<8x1xf32> to vector<8x256xf32>
    %36 = vector.broadcast %34 : vector<1x256xf32> to vector<8x256xf32>
    %37 = arith.mulf %35, %36 : vector<8x256xf32>
    %38 = arith.addf %29, %37 : vector<8x256xf32>
    %39 = vector.extract_strided_slice %16 {offsets = [0, 2], sizes = [1, 256], strides = [1, 1]} : vector<1x290xf32> to vector<1x256xf32>
    %40 = vector.extract_strided_slice %19 {offsets = [16, 0], sizes = [8, 1], strides = [1, 1]} : vector<72x1xbf16> to vector<8x1xbf16>
    %41 = arith.extf %40 : vector<8x1xbf16> to vector<8x1xf32>
    %42 = arith.truncf %39 : vector<1x256xf32> to vector<1x256xbf16>
    %43 = arith.extf %42 : vector<1x256xbf16> to vector<1x256xf32>
    %44 = vector.broadcast %41 : vector<8x1xf32> to vector<8x256xf32>
    %45 = vector.broadcast %43 : vector<1x256xf32> to vector<8x256xf32>
    %46 = arith.mulf %44, %45 : vector<8x256xf32>
    %47 = arith.addf %38, %46 : vector<8x256xf32>
    %48 = vector.extract_strided_slice %18 {offsets = [0, 16], sizes = [1, 256], strides = [1, 1]} : vector<1x290xf32> to vector<1x256xf32>
    %49 = vector.extract_strided_slice %19 {offsets = [24, 0], sizes = [8, 1], strides = [1, 1]} : vector<72x1xbf16> to vector<8x1xbf16>
    %50 = arith.extf %49 : vector<8x1xbf16> to vector<8x1xf32>
    %51 = arith.truncf %48 : vector<1x256xf32> to vector<1x256xbf16>
    %52 = arith.extf %51 : vector<1x256xbf16> to vector<1x256xf32>
    %53 = vector.broadcast %50 : vector<8x1xf32> to vector<8x256xf32>
    %54 = vector.broadcast %52 : vector<1x256xf32> to vector<8x256xf32>
    %55 = arith.mulf %53, %54 : vector<8x256xf32>
    %56 = arith.addf %47, %55 : vector<8x256xf32>
    %57 = vector.extract_strided_slice %14 {offsets = [0, 17], sizes = [1, 256], strides = [1, 1]} : vector<1x290xf32> to vector<1x256xf32>
    %58 = vector.extract_strided_slice %19 {offsets = [32, 0], sizes = [8, 1], strides = [1, 1]} : vector<72x1xbf16> to vector<8x1xbf16>
    %59 = arith.extf %58 : vector<8x1xbf16> to vector<8x1xf32>
    %60 = arith.truncf %57 : vector<1x256xf32> to vector<1x256xbf16>
    %61 = arith.extf %60 : vector<1x256xbf16> to vector<1x256xf32>
    %62 = vector.broadcast %59 : vector<8x1xf32> to vector<8x256xf32>
    %63 = vector.broadcast %61 : vector<1x256xf32> to vector<8x256xf32>
    %64 = arith.mulf %62, %63 : vector<8x256xf32>
    %65 = arith.addf %56, %64 : vector<8x256xf32>
    %66 = vector.extract_strided_slice %16 {offsets = [0, 18], sizes = [1, 256], strides = [1, 1]} : vector<1x290xf32> to vector<1x256xf32>
    %67 = vector.extract_strided_slice %19 {offsets = [40, 0], sizes = [8, 1], strides = [1, 1]} : vector<72x1xbf16> to vector<8x1xbf16>
    %68 = arith.extf %67 : vector<8x1xbf16> to vector<8x1xf32>
    %69 = arith.truncf %66 : vector<1x256xf32> to vector<1x256xbf16>
    %70 = arith.extf %69 : vector<1x256xbf16> to vector<1x256xf32>
    %71 = vector.broadcast %68 : vector<8x1xf32> to vector<8x256xf32>
    %72 = vector.broadcast %70 : vector<1x256xf32> to vector<8x256xf32>
    %73 = arith.mulf %71, %72 : vector<8x256xf32>
    %74 = arith.addf %65, %73 : vector<8x256xf32>
    %75 = vector.extract_strided_slice %18 {offsets = [0, 32], sizes = [1, 256], strides = [1, 1]} : vector<1x290xf32> to vector<1x256xf32>
    %76 = vector.extract_strided_slice %19 {offsets = [48, 0], sizes = [8, 1], strides = [1, 1]} : vector<72x1xbf16> to vector<8x1xbf16>
    %77 = arith.extf %76 : vector<8x1xbf16> to vector<8x1xf32>
    %78 = arith.truncf %75 : vector<1x256xf32> to vector<1x256xbf16>
    %79 = arith.extf %78 : vector<1x256xbf16> to vector<1x256xf32>
    %80 = vector.broadcast %77 : vector<8x1xf32> to vector<8x256xf32>
    %81 = vector.broadcast %79 : vector<1x256xf32> to vector<8x256xf32>
    %82 = arith.mulf %80, %81 : vector<8x256xf32>
    %83 = arith.addf %74, %82 : vector<8x256xf32>
    %84 = vector.extract_strided_slice %14 {offsets = [0, 33], sizes = [1, 256], strides = [1, 1]} : vector<1x290xf32> to vector<1x256xf32>
    %85 = vector.extract_strided_slice %19 {offsets = [56, 0], sizes = [8, 1], strides = [1, 1]} : vector<72x1xbf16> to vector<8x1xbf16>
    %86 = arith.extf %85 : vector<8x1xbf16> to vector<8x1xf32>
    %87 = arith.truncf %84 : vector<1x256xf32> to vector<1x256xbf16>
    %88 = arith.extf %87 : vector<1x256xbf16> to vector<1x256xf32>
    %89 = vector.broadcast %86 : vector<8x1xf32> to vector<8x256xf32>
    %90 = vector.broadcast %88 : vector<1x256xf32> to vector<8x256xf32>
    %91 = arith.mulf %89, %90 : vector<8x256xf32>
    %92 = arith.addf %83, %91 : vector<8x256xf32>
    %93 = vector.extract_strided_slice %16 {offsets = [0, 34], sizes = [1, 256], strides = [1, 1]} : vector<1x290xf32> to vector<1x256xf32>
    %94 = vector.extract_strided_slice %19 {offsets = [64, 0], sizes = [8, 1], strides = [1, 1]} : vector<72x1xbf16> to vector<8x1xbf16>
    %95 = arith.extf %94 : vector<8x1xbf16> to vector<8x1xf32>
    %96 = arith.truncf %93 : vector<1x256xf32> to vector<1x256xbf16>
    %97 = arith.extf %96 : vector<1x256xbf16> to vector<1x256xf32>
    %98 = vector.broadcast %95 : vector<8x1xf32> to vector<8x256xf32>
    %99 = vector.broadcast %97 : vector<1x256xf32> to vector<8x256xf32>
    %100 = arith.mulf %98, %99 : vector<8x256xf32>
    %101 = arith.addf %92, %100 : vector<8x256xf32>
    %c0_6 = arith.constant 0 : index
    %c0_7 = arith.constant 0 : index
    %102 = vector.load %arg3[%c0_6, %c0_7] : memref<216x1xf32, #tpu.memory_space<vmem>>, vector<8x1xf32>
    %103 = vector.broadcast %102 : vector<8x1xf32> to vector<8x256xf32>
    %104 = arith.addf %101, %103 : vector<8x256xf32>
    %cst_8 = arith.constant 0.000000e+00 : f32
    %105 = vector.broadcast %cst_8 : f32 to vector<8x256xf32>
    %106 = arith.maximumf %104, %105 : vector<8x256xf32>
    %cst_9 = arith.constant 0.000000e+00 : f32
    %107 = vector.broadcast %cst_9 : f32 to vector<8x17xf32>
    %108 = tpu.concatenate %107, %106, %107 in 1 : vector<8x17xf32>, vector<8x256xf32>, vector<8x17xf32> -> vector<8x290xf32>
    %109 = vector.broadcast %8 : vector<1x256xf32> to vector<8x256xf32>
    %110 = arith.mulf %106, %109 : vector<8x256xf32>
    %111 = tpu.concatenate %107, %110, %107 in 1 : vector<8x17xf32>, vector<8x256xf32>, vector<8x17xf32> -> vector<8x290xf32>
    %112 = vector.broadcast %12 : vector<1x256xf32> to vector<8x256xf32>
    %113 = arith.mulf %106, %112 : vector<8x256xf32>
    %114 = tpu.concatenate %107, %113, %107 in 1 : vector<8x17xf32>, vector<8x256xf32>, vector<8x17xf32> -> vector<8x290xf32>
    %c80 = arith.constant 80 : index
    %c0_10 = arith.constant 0 : index
    %115 = vector.load %arg2[%c80, %c0_10] : memref<2320x256xbf16, #tpu.memory_space<vmem>>, vector<72x8xbf16>
    %cst_11 = arith.constant 0.000000e+00 : f32
    %116 = vector.broadcast %cst_11 : f32 to vector<8x256xf32>
    %117 = vector.extract_strided_slice %114 {offsets = [0, 0], sizes = [8, 256], strides = [1, 1]} : vector<8x290xf32> to vector<8x256xf32>
    %118 = vector.extract_strided_slice %115 {offsets = [0, 0], sizes = [8, 8], strides = [1, 1]} : vector<72x8xbf16> to vector<8x8xbf16>
    %119 = arith.truncf %117 : vector<8x256xf32> to vector<8x256xbf16>
    %cst_12 = arith.constant dense<0.000000e+00> : vector<8x256xf32>
    %120 = tpu.matmul %118, %119, %cst_12 {dimension_numbers = #tpu.dot_dimension_numbers<[1], [0], [0], [1], [0, 0, 1, 1], [], []>} : vector<8x8xbf16>, vector<8x256xbf16>, vector<8x256xf32> -> vector<8x256xf32>
    %121 = arith.addf %116, %120 : vector<8x256xf32>
    %122 = vector.extract_strided_slice %108 {offsets = [0, 1], sizes = [8, 256], strides = [1, 1]} : vector<8x290xf32> to vector<8x256xf32>
    %123 = vector.extract_strided_slice %115 {offsets = [8, 0], sizes = [8, 8], strides = [1, 1]} : vector<72x8xbf16> to vector<8x8xbf16>
    %124 = arith.truncf %122 : vector<8x256xf32> to vector<8x256xbf16>
    %cst_13 = arith.constant dense<0.000000e+00> : vector<8x256xf32>
    %125 = tpu.matmul %123, %124, %cst_13 {dimension_numbers = #tpu.dot_dimension_numbers<[1], [0], [0], [1], [0, 0, 1, 1], [], []>} : vector<8x8xbf16>, vector<8x256xbf16>, vector<8x256xf32> -> vector<8x256xf32>
    %126 = arith.addf %121, %125 : vector<8x256xf32>
    %127 = vector.extract_strided_slice %111 {offsets = [0, 2], sizes = [8, 256], strides = [1, 1]} : vector<8x290xf32> to vector<8x256xf32>
    %128 = vector.extract_strided_slice %115 {offsets = [16, 0], sizes = [8, 8], strides = [1, 1]} : vector<72x8xbf16> to vector<8x8xbf16>
    %129 = arith.truncf %127 : vector<8x256xf32> to vector<8x256xbf16>
    %cst_14 = arith.constant dense<0.000000e+00> : vector<8x256xf32>
    %130 = tpu.matmul %128, %129, %cst_14 {dimension_numbers = #tpu.dot_dimension_numbers<[1], [0], [0], [1], [0, 0, 1, 1], [], []>} : vector<8x8xbf16>, vector<8x256xbf16>, vector<8x256xf32> -> vector<8x256xf32>
    %131 = arith.addf %126, %130 : vector<8x256xf32>
    %132 = vector.extract_strided_slice %114 {offsets = [0, 16], sizes = [8, 256], strides = [1, 1]} : vector<8x290xf32> to vector<8x256xf32>
    %133 = vector.extract_strided_slice %115 {offsets = [24, 0], sizes = [8, 8], strides = [1, 1]} : vector<72x8xbf16> to vector<8x8xbf16>
    %134 = arith.truncf %132 : vector<8x256xf32> to vector<8x256xbf16>
    %cst_15 = arith.constant dense<0.000000e+00> : vector<8x256xf32>
    %135 = tpu.matmul %133, %134, %cst_15 {dimension_numbers = #tpu.dot_dimension_numbers<[1], [0], [0], [1], [0, 0, 1, 1], [], []>} : vector<8x8xbf16>, vector<8x256xbf16>, vector<8x256xf32> -> vector<8x256xf32>
    %136 = arith.addf %131, %135 : vector<8x256xf32>
    %137 = vector.extract_strided_slice %108 {offsets = [0, 17], sizes = [8, 256], strides = [1, 1]} : vector<8x290xf32> to vector<8x256xf32>
    %138 = vector.extract_strided_slice %115 {offsets = [32, 0], sizes = [8, 8], strides = [1, 1]} : vector<72x8xbf16> to vector<8x8xbf16>
    %139 = arith.truncf %137 : vector<8x256xf32> to vector<8x256xbf16>
    %cst_16 = arith.constant dense<0.000000e+00> : vector<8x256xf32>
    %140 = tpu.matmul %138, %139, %cst_16 {dimension_numbers = #tpu.dot_dimension_numbers<[1], [0], [0], [1], [0, 0, 1, 1], [], []>} : vector<8x8xbf16>, vector<8x256xbf16>, vector<8x256xf32> -> vector<8x256xf32>
    %141 = arith.addf %136, %140 : vector<8x256xf32>
    %142 = vector.extract_strided_slice %111 {offsets = [0, 18], sizes = [8, 256], strides = [1, 1]} : vector<8x290xf32> to vector<8x256xf32>
    %143 = vector.extract_strided_slice %115 {offsets = [40, 0], sizes = [8, 8], strides = [1, 1]} : vector<72x8xbf16> to vector<8x8xbf16>
    %144 = arith.truncf %142 : vector<8x256xf32> to vector<8x256xbf16>
    %cst_17 = arith.constant dense<0.000000e+00> : vector<8x256xf32>
    %145 = tpu.matmul %143, %144, %cst_17 {dimension_numbers = #tpu.dot_dimension_numbers<[1], [0], [0], [1], [0, 0, 1, 1], [], []>} : vector<8x8xbf16>, vector<8x256xbf16>, vector<8x256xf32> -> vector<8x256xf32>
    %146 = arith.addf %141, %145 : vector<8x256xf32>
    %147 = vector.extract_strided_slice %114 {offsets = [0, 32], sizes = [8, 256], strides = [1, 1]} : vector<8x290xf32> to vector<8x256xf32>
    %148 = vector.extract_strided_slice %115 {offsets = [48, 0], sizes = [8, 8], strides = [1, 1]} : vector<72x8xbf16> to vector<8x8xbf16>
    %149 = arith.truncf %147 : vector<8x256xf32> to vector<8x256xbf16>
    %cst_18 = arith.constant dense<0.000000e+00> : vector<8x256xf32>
    %150 = tpu.matmul %148, %149, %cst_18 {dimension_numbers = #tpu.dot_dimension_numbers<[1], [0], [0], [1], [0, 0, 1, 1], [], []>} : vector<8x8xbf16>, vector<8x256xbf16>, vector<8x256xf32> -> vector<8x256xf32>
    %151 = arith.addf %146, %150 : vector<8x256xf32>
    %152 = vector.extract_strided_slice %108 {offsets = [0, 33], sizes = [8, 256], strides = [1, 1]} : vector<8x290xf32> to vector<8x256xf32>
    %153 = vector.extract_strided_slice %115 {offsets = [56, 0], sizes = [8, 8], strides = [1, 1]} : vector<72x8xbf16> to vector<8x8xbf16>
    %154 = arith.truncf %152 : vector<8x256xf32> to vector<8x256xbf16>
    %cst_19 = arith.constant dense<0.000000e+00> : vector<8x256xf32>
    %155 = tpu.matmul %153, %154, %cst_19 {dimension_numbers = #tpu.dot_dimension_numbers<[1], [0], [0], [1], [0, 0, 1, 1], [], []>} : vector<8x8xbf16>, vector<8x256xbf16>, vector<8x256xf32> -> vector<8x256xf32>
    %156 = arith.addf %151, %155 : vector<8x256xf32>
    %157 = vector.extract_strided_slice %111 {offsets = [0, 34], sizes = [8, 256], strides = [1, 1]} : vector<8x290xf32> to vector<8x256xf32>
    %158 = vector.extract_strided_slice %115 {offsets = [64, 0], sizes = [8, 8], strides = [1, 1]} : vector<72x8xbf16> to vector<8x8xbf16>
    %159 = arith.truncf %157 : vector<8x256xf32> to vector<8x256xbf16>
    %cst_20 = arith.constant dense<0.000000e+00> : vector<8x256xf32>
    %160 = tpu.matmul %158, %159, %cst_20 {dimension_numbers = #tpu.dot_dimension_numbers<[1], [0], [0], [1], [0, 0, 1, 1], [], []>} : vector<8x8xbf16>, vector<8x256xbf16>, vector<8x256xf32> -> vector<8x256xf32>
    %161 = arith.addf %156, %160 : vector<8x256xf32>
    %c8 = arith.constant 8 : index
    %c0_21 = arith.constant 0 : index
    %162 = vector.load %arg3[%c8, %c0_21] : memref<216x1xf32, #tpu.memory_space<vmem>>, vector<8x1xf32>
    %163 = vector.broadcast %162 : vector<8x1xf32> to vector<8x256xf32>
    %164 = arith.addf %161, %163 : vector<8x256xf32>
    %cst_22 = arith.constant 0.000000e+00 : f32
    %165 = vector.broadcast %cst_22 : f32 to vector<8x256xf32>
    %166 = arith.maximumf %164, %165 : vector<8x256xf32>
    %167 = vector.extract_strided_slice %166 {offsets = [0, 1], sizes = [8, 255], strides = [1, 1]} : vector<8x256xf32> to vector<8x255xf32>
    %cst_23 = arith.constant 0.000000e+00 : f32
    %168 = vector.broadcast %cst_23 : f32 to vector<8x1xf32>
    %169 = tpu.concatenate %167, %168 in 1 : vector<8x255xf32>, vector<8x1xf32> -> vector<8x256xf32>
    %170 = arith.maximumf %166, %169 : vector<8x256xf32>
    %171 = vector.extract_strided_slice %170 {offsets = [0, 16], sizes = [8, 240], strides = [1, 1]} : vector<8x256xf32> to vector<8x240xf32>
    %cst_24 = arith.constant 0.000000e+00 : f32
    %172 = vector.broadcast %cst_24 : f32 to vector<8x16xf32>
    %173 = tpu.concatenate %171, %172 in 1 : vector<8x240xf32>, vector<8x16xf32> -> vector<8x256xf32>
    %174 = arith.maximumf %170, %173 : vector<8x256xf32>
    %c160 = arith.constant 160 : index
    %c0_25 = arith.constant 0 : index
    %175 = vector.load %arg2[%c160, %c0_25] : memref<2320x256xbf16, #tpu.memory_space<vmem>>, vector<256x64xbf16>
    %176 = arith.truncf %174 : vector<8x256xf32> to vector<8x256xbf16>
    %cst_26 = arith.constant dense<0.000000e+00> : vector<8x64xf32>
    %177 = tpu.matmul %176, %175, %cst_26 {dimension_numbers = #tpu.dot_dimension_numbers<[1], [0], [0], [1], [0, 0, 1, 1], [], []>} : vector<8x256xbf16>, vector<256x64xbf16>, vector<8x64xf32> -> vector<8x64xf32>
    %178 = tpu.iota {dimensions = array<i32: 1>} : vector<1x64xi32>
    %c7_i32 = arith.constant 7 : i32
    %179 = vector.broadcast %c7_i32 : i32 to vector<1x64xi32>
    %180 = arith.andi %178, %179 : vector<1x64xi32>
    %c0_i32_27 = arith.constant 0 : i32
    %181 = vector.broadcast %c0_i32_27 : i32 to vector<1x64xi32>
    %182 = arith.cmpi ne, %180, %181 : vector<1x64xi32>
    %183 = arith.extui %182 : vector<1x64xi1> to vector<1x64xi32>
    %184 = arith.sitofp %183 : vector<1x64xi32> to vector<1x64xf32>
    %c7_i32_28 = arith.constant 7 : i32
    %185 = vector.broadcast %c7_i32_28 : i32 to vector<1x64xi32>
    %186 = arith.cmpi ne, %180, %185 : vector<1x64xi32>
    %187 = arith.extui %186 : vector<1x64xi1> to vector<1x64xi32>
    %188 = arith.sitofp %187 : vector<1x64xi32> to vector<1x64xf32>
    %cst_29 = arith.constant 0.000000e+00 : f32
    %189 = vector.broadcast %cst_29 : f32 to vector<8x9xf32>
    %190 = tpu.concatenate %189, %177, %189 in 1 : vector<8x9xf32>, vector<8x64xf32>, vector<8x9xf32> -> vector<8x82xf32>
    %191 = vector.broadcast %184 : vector<1x64xf32> to vector<8x64xf32>
    %192 = arith.mulf %177, %191 : vector<8x64xf32>
    %193 = tpu.concatenate %189, %192, %189 in 1 : vector<8x9xf32>, vector<8x64xf32>, vector<8x9xf32> -> vector<8x82xf32>
    %194 = vector.broadcast %188 : vector<1x64xf32> to vector<8x64xf32>
    %195 = arith.mulf %177, %194 : vector<8x64xf32>
    %196 = tpu.concatenate %189, %195, %189 in 1 : vector<8x9xf32>, vector<8x64xf32>, vector<8x9xf32> -> vector<8x82xf32>
    %c416 = arith.constant 416 : index
    %c0_30 = arith.constant 0 : index
    %197 = vector.load %arg2[%c416, %c0_30] : memref<2320x256xbf16, #tpu.memory_space<vmem>>, vector<144x8xbf16>
    %cst_31 = arith.constant 0.000000e+00 : f32
    %198 = vector.broadcast %cst_31 : f32 to vector<16x64xf32>
    %199 = vector.extract_strided_slice %196 {offsets = [0, 0], sizes = [8, 64], strides = [1, 1]} : vector<8x82xf32> to vector<8x64xf32>
    %200 = vector.extract_strided_slice %197 {offsets = [0, 0], sizes = [16, 8], strides = [1, 1]} : vector<144x8xbf16> to vector<16x8xbf16>
    %201 = arith.truncf %199 : vector<8x64xf32> to vector<8x64xbf16>
    %cst_32 = arith.constant dense<0.000000e+00> : vector<16x64xf32>
    %202 = tpu.matmul %200, %201, %cst_32 {dimension_numbers = #tpu.dot_dimension_numbers<[1], [0], [0], [1], [0, 0, 1, 1], [], []>} : vector<16x8xbf16>, vector<8x64xbf16>, vector<16x64xf32> -> vector<16x64xf32>
    %203 = arith.addf %198, %202 : vector<16x64xf32>
    %204 = vector.extract_strided_slice %190 {offsets = [0, 1], sizes = [8, 64], strides = [1, 1]} : vector<8x82xf32> to vector<8x64xf32>
    %205 = vector.extract_strided_slice %197 {offsets = [16, 0], sizes = [16, 8], strides = [1, 1]} : vector<144x8xbf16> to vector<16x8xbf16>
    %206 = arith.truncf %204 : vector<8x64xf32> to vector<8x64xbf16>
    %cst_33 = arith.constant dense<0.000000e+00> : vector<16x64xf32>
    %207 = tpu.matmul %205, %206, %cst_33 {dimension_numbers = #tpu.dot_dimension_numbers<[1], [0], [0], [1], [0, 0, 1, 1], [], []>} : vector<16x8xbf16>, vector<8x64xbf16>, vector<16x64xf32> -> vector<16x64xf32>
    %208 = arith.addf %203, %207 : vector<16x64xf32>
    %209 = vector.extract_strided_slice %193 {offsets = [0, 2], sizes = [8, 64], strides = [1, 1]} : vector<8x82xf32> to vector<8x64xf32>
    %210 = vector.extract_strided_slice %197 {offsets = [32, 0], sizes = [16, 8], strides = [1, 1]} : vector<144x8xbf16> to vector<16x8xbf16>
    %211 = arith.truncf %209 : vector<8x64xf32> to vector<8x64xbf16>
    %cst_34 = arith.constant dense<0.000000e+00> : vector<16x64xf32>
    %212 = tpu.matmul %210, %211, %cst_34 {dimension_numbers = #tpu.dot_dimension_numbers<[1], [0], [0], [1], [0, 0, 1, 1], [], []>} : vector<16x8xbf16>, vector<8x64xbf16>, vector<16x64xf32> -> vector<16x64xf32>
    %213 = arith.addf %208, %212 : vector<16x64xf32>
    %214 = vector.extract_strided_slice %196 {offsets = [0, 8], sizes = [8, 64], strides = [1, 1]} : vector<8x82xf32> to vector<8x64xf32>
    %215 = vector.extract_strided_slice %197 {offsets = [48, 0], sizes = [16, 8], strides = [1, 1]} : vector<144x8xbf16> to vector<16x8xbf16>
    %216 = arith.truncf %214 : vector<8x64xf32> to vector<8x64xbf16>
    %cst_35 = arith.constant dense<0.000000e+00> : vector<16x64xf32>
    %217 = tpu.matmul %215, %216, %cst_35 {dimension_numbers = #tpu.dot_dimension_numbers<[1], [0], [0], [1], [0, 0, 1, 1], [], []>} : vector<16x8xbf16>, vector<8x64xbf16>, vector<16x64xf32> -> vector<16x64xf32>
    %218 = arith.addf %213, %217 : vector<16x64xf32>
    %219 = vector.extract_strided_slice %190 {offsets = [0, 9], sizes = [8, 64], strides = [1, 1]} : vector<8x82xf32> to vector<8x64xf32>
    %220 = vector.extract_strided_slice %197 {offsets = [64, 0], sizes = [16, 8], strides = [1, 1]} : vector<144x8xbf16> to vector<16x8xbf16>
    %221 = arith.truncf %219 : vector<8x64xf32> to vector<8x64xbf16>
    %cst_36 = arith.constant dense<0.000000e+00> : vector<16x64xf32>
    %222 = tpu.matmul %220, %221, %cst_36 {dimension_numbers = #tpu.dot_dimension_numbers<[1], [0], [0], [1], [0, 0, 1, 1], [], []>} : vector<16x8xbf16>, vector<8x64xbf16>, vector<16x64xf32> -> vector<16x64xf32>
    %223 = arith.addf %218, %222 : vector<16x64xf32>
    %224 = vector.extract_strided_slice %193 {offsets = [0, 10], sizes = [8, 64], strides = [1, 1]} : vector<8x82xf32> to vector<8x64xf32>
    %225 = vector.extract_strided_slice %197 {offsets = [80, 0], sizes = [16, 8], strides = [1, 1]} : vector<144x8xbf16> to vector<16x8xbf16>
    %226 = arith.truncf %224 : vector<8x64xf32> to vector<8x64xbf16>
    %cst_37 = arith.constant dense<0.000000e+00> : vector<16x64xf32>
    %227 = tpu.matmul %225, %226, %cst_37 {dimension_numbers = #tpu.dot_dimension_numbers<[1], [0], [0], [1], [0, 0, 1, 1], [], []>} : vector<16x8xbf16>, vector<8x64xbf16>, vector<16x64xf32> -> vector<16x64xf32>
    %228 = arith.addf %223, %227 : vector<16x64xf32>
    %229 = vector.extract_strided_slice %196 {offsets = [0, 16], sizes = [8, 64], strides = [1, 1]} : vector<8x82xf32> to vector<8x64xf32>
    %230 = vector.extract_strided_slice %197 {offsets = [96, 0], sizes = [16, 8], strides = [1, 1]} : vector<144x8xbf16> to vector<16x8xbf16>
    %231 = arith.truncf %229 : vector<8x64xf32> to vector<8x64xbf16>
    %cst_38 = arith.constant dense<0.000000e+00> : vector<16x64xf32>
    %232 = tpu.matmul %230, %231, %cst_38 {dimension_numbers = #tpu.dot_dimension_numbers<[1], [0], [0], [1], [0, 0, 1, 1], [], []>} : vector<16x8xbf16>, vector<8x64xbf16>, vector<16x64xf32> -> vector<16x64xf32>
    %233 = arith.addf %228, %232 : vector<16x64xf32>
    %234 = vector.extract_strided_slice %190 {offsets = [0, 17], sizes = [8, 64], strides = [1, 1]} : vector<8x82xf32> to vector<8x64xf32>
    %235 = vector.extract_strided_slice %197 {offsets = [112, 0], sizes = [16, 8], strides = [1, 1]} : vector<144x8xbf16> to vector<16x8xbf16>
    %236 = arith.truncf %234 : vector<8x64xf32> to vector<8x64xbf16>
    %cst_39 = arith.constant dense<0.000000e+00> : vector<16x64xf32>
    %237 = tpu.matmul %235, %236, %cst_39 {dimension_numbers = #tpu.dot_dimension_numbers<[1], [0], [0], [1], [0, 0, 1, 1], [], []>} : vector<16x8xbf16>, vector<8x64xbf16>, vector<16x64xf32> -> vector<16x64xf32>
    %238 = arith.addf %233, %237 : vector<16x64xf32>
    %239 = vector.extract_strided_slice %193 {offsets = [0, 18], sizes = [8, 64], strides = [1, 1]} : vector<8x82xf32> to vector<8x64xf32>
    %240 = vector.extract_strided_slice %197 {offsets = [128, 0], sizes = [16, 8], strides = [1, 1]} : vector<144x8xbf16> to vector<16x8xbf16>
    %241 = arith.truncf %239 : vector<8x64xf32> to vector<8x64xbf16>
    %cst_40 = arith.constant dense<0.000000e+00> : vector<16x64xf32>
    %242 = tpu.matmul %240, %241, %cst_40 {dimension_numbers = #tpu.dot_dimension_numbers<[1], [0], [0], [1], [0, 0, 1, 1], [], []>} : vector<16x8xbf16>, vector<8x64xbf16>, vector<16x64xf32> -> vector<16x64xf32>
    %243 = arith.addf %238, %242 : vector<16x64xf32>
    %c16 = arith.constant 16 : index
    %c0_41 = arith.constant 0 : index
    %244 = vector.load %arg3[%c16, %c0_41] : memref<216x1xf32, #tpu.memory_space<vmem>>, vector<16x1xf32>
    %245 = vector.broadcast %244 : vector<16x1xf32> to vector<16x64xf32>
    %246 = arith.addf %243, %245 : vector<16x64xf32>
    %cst_42 = arith.constant 0.000000e+00 : f32
    %247 = vector.broadcast %cst_42 : f32 to vector<16x64xf32>
    %248 = arith.maximumf %246, %247 : vector<16x64xf32>
    %cst_43 = arith.constant 0.000000e+00 : f32
    %249 = vector.broadcast %cst_43 : f32 to vector<16x9xf32>
    %250 = tpu.concatenate %249, %248, %249 in 1 : vector<16x9xf32>, vector<16x64xf32>, vector<16x9xf32> -> vector<16x82xf32>
    %251 = vector.broadcast %184 : vector<1x64xf32> to vector<16x64xf32>
    %252 = arith.mulf %248, %251 : vector<16x64xf32>
    %253 = tpu.concatenate %249, %252, %249 in 1 : vector<16x9xf32>, vector<16x64xf32>, vector<16x9xf32> -> vector<16x82xf32>
    %254 = vector.broadcast %188 : vector<1x64xf32> to vector<16x64xf32>
    %255 = arith.mulf %248, %254 : vector<16x64xf32>
    %256 = tpu.concatenate %249, %255, %249 in 1 : vector<16x9xf32>, vector<16x64xf32>, vector<16x9xf32> -> vector<16x82xf32>
    %c560 = arith.constant 560 : index
    %c0_44 = arith.constant 0 : index
    %257 = vector.load %arg2[%c560, %c0_44] : memref<2320x256xbf16, #tpu.memory_space<vmem>>, vector<144x16xbf16>
    %cst_45 = arith.constant 0.000000e+00 : f32
    %258 = vector.broadcast %cst_45 : f32 to vector<16x64xf32>
    %259 = vector.extract_strided_slice %256 {offsets = [0, 0], sizes = [16, 64], strides = [1, 1]} : vector<16x82xf32> to vector<16x64xf32>
    %260 = vector.extract_strided_slice %257 {offsets = [0, 0], sizes = [16, 16], strides = [1, 1]} : vector<144x16xbf16> to vector<16x16xbf16>
    %261 = arith.truncf %259 : vector<16x64xf32> to vector<16x64xbf16>
    %cst_46 = arith.constant dense<0.000000e+00> : vector<16x64xf32>
    %262 = tpu.matmul %260, %261, %cst_46 {dimension_numbers = #tpu.dot_dimension_numbers<[1], [0], [0], [1], [0, 0, 1, 1], [], []>} : vector<16x16xbf16>, vector<16x64xbf16>, vector<16x64xf32> -> vector<16x64xf32>
    %263 = arith.addf %258, %262 : vector<16x64xf32>
    %264 = vector.extract_strided_slice %250 {offsets = [0, 1], sizes = [16, 64], strides = [1, 1]} : vector<16x82xf32> to vector<16x64xf32>
    %265 = vector.extract_strided_slice %257 {offsets = [16, 0], sizes = [16, 16], strides = [1, 1]} : vector<144x16xbf16> to vector<16x16xbf16>
    %266 = arith.truncf %264 : vector<16x64xf32> to vector<16x64xbf16>
    %cst_47 = arith.constant dense<0.000000e+00> : vector<16x64xf32>
    %267 = tpu.matmul %265, %266, %cst_47 {dimension_numbers = #tpu.dot_dimension_numbers<[1], [0], [0], [1], [0, 0, 1, 1], [], []>} : vector<16x16xbf16>, vector<16x64xbf16>, vector<16x64xf32> -> vector<16x64xf32>
    %268 = arith.addf %263, %267 : vector<16x64xf32>
    %269 = vector.extract_strided_slice %253 {offsets = [0, 2], sizes = [16, 64], strides = [1, 1]} : vector<16x82xf32> to vector<16x64xf32>
    %270 = vector.extract_strided_slice %257 {offsets = [32, 0], sizes = [16, 16], strides = [1, 1]} : vector<144x16xbf16> to vector<16x16xbf16>
    %271 = arith.truncf %269 : vector<16x64xf32> to vector<16x64xbf16>
    %cst_48 = arith.constant dense<0.000000e+00> : vector<16x64xf32>
    %272 = tpu.matmul %270, %271, %cst_48 {dimension_numbers = #tpu.dot_dimension_numbers<[1], [0], [0], [1], [0, 0, 1, 1], [], []>} : vector<16x16xbf16>, vector<16x64xbf16>, vector<16x64xf32> -> vector<16x64xf32>
    %273 = arith.addf %268, %272 : vector<16x64xf32>
    %274 = vector.extract_strided_slice %256 {offsets = [0, 8], sizes = [16, 64], strides = [1, 1]} : vector<16x82xf32> to vector<16x64xf32>
    %275 = vector.extract_strided_slice %257 {offsets = [48, 0], sizes = [16, 16], strides = [1, 1]} : vector<144x16xbf16> to vector<16x16xbf16>
    %276 = arith.truncf %274 : vector<16x64xf32> to vector<16x64xbf16>
    %cst_49 = arith.constant dense<0.000000e+00> : vector<16x64xf32>
    %277 = tpu.matmul %275, %276, %cst_49 {dimension_numbers = #tpu.dot_dimension_numbers<[1], [0], [0], [1], [0, 0, 1, 1], [], []>} : vector<16x16xbf16>, vector<16x64xbf16>, vector<16x64xf32> -> vector<16x64xf32>
    %278 = arith.addf %273, %277 : vector<16x64xf32>
    %279 = vector.extract_strided_slice %250 {offsets = [0, 9], sizes = [16, 64], strides = [1, 1]} : vector<16x82xf32> to vector<16x64xf32>
    %280 = vector.extract_strided_slice %257 {offsets = [64, 0], sizes = [16, 16], strides = [1, 1]} : vector<144x16xbf16> to vector<16x16xbf16>
    %281 = arith.truncf %279 : vector<16x64xf32> to vector<16x64xbf16>
    %cst_50 = arith.constant dense<0.000000e+00> : vector<16x64xf32>
    %282 = tpu.matmul %280, %281, %cst_50 {dimension_numbers = #tpu.dot_dimension_numbers<[1], [0], [0], [1], [0, 0, 1, 1], [], []>} : vector<16x16xbf16>, vector<16x64xbf16>, vector<16x64xf32> -> vector<16x64xf32>
    %283 = arith.addf %278, %282 : vector<16x64xf32>
    %284 = vector.extract_strided_slice %253 {offsets = [0, 10], sizes = [16, 64], strides = [1, 1]} : vector<16x82xf32> to vector<16x64xf32>
    %285 = vector.extract_strided_slice %257 {offsets = [80, 0], sizes = [16, 16], strides = [1, 1]} : vector<144x16xbf16> to vector<16x16xbf16>
    %286 = arith.truncf %284 : vector<16x64xf32> to vector<16x64xbf16>
    %cst_51 = arith.constant dense<0.000000e+00> : vector<16x64xf32>
    %287 = tpu.matmul %285, %286, %cst_51 {dimension_numbers = #tpu.dot_dimension_numbers<[1], [0], [0], [1], [0, 0, 1, 1], [], []>} : vector<16x16xbf16>, vector<16x64xbf16>, vector<16x64xf32> -> vector<16x64xf32>
    %288 = arith.addf %283, %287 : vector<16x64xf32>
    %289 = vector.extract_strided_slice %256 {offsets = [0, 16], sizes = [16, 64], strides = [1, 1]} : vector<16x82xf32> to vector<16x64xf32>
    %290 = vector.extract_strided_slice %257 {offsets = [96, 0], sizes = [16, 16], strides = [1, 1]} : vector<144x16xbf16> to vector<16x16xbf16>
    %291 = arith.truncf %289 : vector<16x64xf32> to vector<16x64xbf16>
    %cst_52 = arith.constant dense<0.000000e+00> : vector<16x64xf32>
    %292 = tpu.matmul %290, %291, %cst_52 {dimension_numbers = #tpu.dot_dimension_numbers<[1], [0], [0], [1], [0, 0, 1, 1], [], []>} : vector<16x16xbf16>, vector<16x64xbf16>, vector<16x64xf32> -> vector<16x64xf32>
    %293 = arith.addf %288, %292 : vector<16x64xf32>
    %294 = vector.extract_strided_slice %250 {offsets = [0, 17], sizes = [16, 64], strides = [1, 1]} : vector<16x82xf32> to vector<16x64xf32>
    %295 = vector.extract_strided_slice %257 {offsets = [112, 0], sizes = [16, 16], strides = [1, 1]} : vector<144x16xbf16> to vector<16x16xbf16>
    %296 = arith.truncf %294 : vector<16x64xf32> to vector<16x64xbf16>
    %cst_53 = arith.constant dense<0.000000e+00> : vector<16x64xf32>
    %297 = tpu.matmul %295, %296, %cst_53 {dimension_numbers = #tpu.dot_dimension_numbers<[1], [0], [0], [1], [0, 0, 1, 1], [], []>} : vector<16x16xbf16>, vector<16x64xbf16>, vector<16x64xf32> -> vector<16x64xf32>
    %298 = arith.addf %293, %297 : vector<16x64xf32>
    %299 = vector.extract_strided_slice %253 {offsets = [0, 18], sizes = [16, 64], strides = [1, 1]} : vector<16x82xf32> to vector<16x64xf32>
    %300 = vector.extract_strided_slice %257 {offsets = [128, 0], sizes = [16, 16], strides = [1, 1]} : vector<144x16xbf16> to vector<16x16xbf16>
    %301 = arith.truncf %299 : vector<16x64xf32> to vector<16x64xbf16>
    %cst_54 = arith.constant dense<0.000000e+00> : vector<16x64xf32>
    %302 = tpu.matmul %300, %301, %cst_54 {dimension_numbers = #tpu.dot_dimension_numbers<[1], [0], [0], [1], [0, 0, 1, 1], [], []>} : vector<16x16xbf16>, vector<16x64xbf16>, vector<16x64xf32> -> vector<16x64xf32>
    %303 = arith.addf %298, %302 : vector<16x64xf32>
    %c32 = arith.constant 32 : index
    %c0_55 = arith.constant 0 : index
    %304 = vector.load %arg3[%c32, %c0_55] : memref<216x1xf32, #tpu.memory_space<vmem>>, vector<16x1xf32>
    %305 = vector.broadcast %304 : vector<16x1xf32> to vector<16x64xf32>
    %306 = arith.addf %303, %305 : vector<16x64xf32>
    %cst_56 = arith.constant 0.000000e+00 : f32
    %307 = vector.broadcast %cst_56 : f32 to vector<16x64xf32>
    %308 = arith.maximumf %306, %307 : vector<16x64xf32>
    %309 = vector.extract_strided_slice %308 {offsets = [0, 1], sizes = [16, 63], strides = [1, 1]} : vector<16x64xf32> to vector<16x63xf32>
    %cst_57 = arith.constant 0.000000e+00 : f32
    %310 = vector.broadcast %cst_57 : f32 to vector<16x1xf32>
    %311 = tpu.concatenate %309, %310 in 1 : vector<16x63xf32>, vector<16x1xf32> -> vector<16x64xf32>
    %312 = arith.maximumf %308, %311 : vector<16x64xf32>
    %313 = vector.extract_strided_slice %312 {offsets = [0, 8], sizes = [16, 56], strides = [1, 1]} : vector<16x64xf32> to vector<16x56xf32>
    %cst_58 = arith.constant 0.000000e+00 : f32
    %314 = vector.broadcast %cst_58 : f32 to vector<16x8xf32>
    %315 = tpu.concatenate %313, %314 in 1 : vector<16x56xf32>, vector<16x8xf32> -> vector<16x64xf32>
    %316 = arith.maximumf %312, %315 : vector<16x64xf32>
    %c704 = arith.constant 704 : index
    %c0_59 = arith.constant 0 : index
    %317 = vector.load %arg2[%c704, %c0_59] : memref<2320x256xbf16, #tpu.memory_space<vmem>>, vector<64x16xbf16>
    %318 = arith.truncf %316 : vector<16x64xf32> to vector<16x64xbf16>
    %cst_60 = arith.constant dense<0.000000e+00> : vector<16x16xf32>
    %319 = tpu.matmul %318, %317, %cst_60 {dimension_numbers = #tpu.dot_dimension_numbers<[1], [0], [0], [1], [0, 0, 1, 1], [], []>} : vector<16x64xbf16>, vector<64x16xbf16>, vector<16x16xf32> -> vector<16x16xf32>
    %320 = tpu.iota {dimensions = array<i32: 1>} : vector<1x16xi32>
    %c3_i32 = arith.constant 3 : i32
    %321 = vector.broadcast %c3_i32 : i32 to vector<1x16xi32>
    %322 = arith.andi %320, %321 : vector<1x16xi32>
    %c0_i32_61 = arith.constant 0 : i32
    %323 = vector.broadcast %c0_i32_61 : i32 to vector<1x16xi32>
    %324 = arith.cmpi ne, %322, %323 : vector<1x16xi32>
    %325 = arith.extui %324 : vector<1x16xi1> to vector<1x16xi32>
    %326 = arith.sitofp %325 : vector<1x16xi32> to vector<1x16xf32>
    %c3_i32_62 = arith.constant 3 : i32
    %327 = vector.broadcast %c3_i32_62 : i32 to vector<1x16xi32>
    %328 = arith.cmpi ne, %322, %327 : vector<1x16xi32>
    %329 = arith.extui %328 : vector<1x16xi1> to vector<1x16xi32>
    %330 = arith.sitofp %329 : vector<1x16xi32> to vector<1x16xf32>
    %cst_63 = arith.constant 0.000000e+00 : f32
    %331 = vector.broadcast %cst_63 : f32 to vector<16x5xf32>
    %332 = tpu.concatenate %331, %319, %331 in 1 : vector<16x5xf32>, vector<16x16xf32>, vector<16x5xf32> -> vector<16x26xf32>
    %333 = vector.broadcast %326 : vector<1x16xf32> to vector<16x16xf32>
    %334 = arith.mulf %319, %333 : vector<16x16xf32>
    %335 = tpu.concatenate %331, %334, %331 in 1 : vector<16x5xf32>, vector<16x16xf32>, vector<16x5xf32> -> vector<16x26xf32>
    %336 = vector.broadcast %330 : vector<1x16xf32> to vector<16x16xf32>
    %337 = arith.mulf %319, %336 : vector<16x16xf32>
    %338 = tpu.concatenate %331, %337, %331 in 1 : vector<16x5xf32>, vector<16x16xf32>, vector<16x5xf32> -> vector<16x26xf32>
    %c768 = arith.constant 768 : index
    %c0_64 = arith.constant 0 : index
    %339 = vector.load %arg2[%c768, %c0_64] : memref<2320x256xbf16, #tpu.memory_space<vmem>>, vector<288x16xbf16>
    %cst_65 = arith.constant 0.000000e+00 : f32
    %340 = vector.broadcast %cst_65 : f32 to vector<32x16xf32>
    %341 = vector.extract_strided_slice %338 {offsets = [0, 0], sizes = [16, 16], strides = [1, 1]} : vector<16x26xf32> to vector<16x16xf32>
    %342 = vector.extract_strided_slice %339 {offsets = [0, 0], sizes = [32, 16], strides = [1, 1]} : vector<288x16xbf16> to vector<32x16xbf16>
    %343 = arith.truncf %341 : vector<16x16xf32> to vector<16x16xbf16>
    %cst_66 = arith.constant dense<0.000000e+00> : vector<32x16xf32>
    %344 = tpu.matmul %342, %343, %cst_66 {dimension_numbers = #tpu.dot_dimension_numbers<[1], [0], [0], [1], [0, 0, 1, 1], [], []>} : vector<32x16xbf16>, vector<16x16xbf16>, vector<32x16xf32> -> vector<32x16xf32>
    %345 = arith.addf %340, %344 : vector<32x16xf32>
    %346 = vector.extract_strided_slice %332 {offsets = [0, 1], sizes = [16, 16], strides = [1, 1]} : vector<16x26xf32> to vector<16x16xf32>
    %347 = vector.extract_strided_slice %339 {offsets = [32, 0], sizes = [32, 16], strides = [1, 1]} : vector<288x16xbf16> to vector<32x16xbf16>
    %348 = arith.truncf %346 : vector<16x16xf32> to vector<16x16xbf16>
    %cst_67 = arith.constant dense<0.000000e+00> : vector<32x16xf32>
    %349 = tpu.matmul %347, %348, %cst_67 {dimension_numbers = #tpu.dot_dimension_numbers<[1], [0], [0], [1], [0, 0, 1, 1], [], []>} : vector<32x16xbf16>, vector<16x16xbf16>, vector<32x16xf32> -> vector<32x16xf32>
    %350 = arith.addf %345, %349 : vector<32x16xf32>
    %351 = vector.extract_strided_slice %335 {offsets = [0, 2], sizes = [16, 16], strides = [1, 1]} : vector<16x26xf32> to vector<16x16xf32>
    %352 = vector.extract_strided_slice %339 {offsets = [64, 0], sizes = [32, 16], strides = [1, 1]} : vector<288x16xbf16> to vector<32x16xbf16>
    %353 = arith.truncf %351 : vector<16x16xf32> to vector<16x16xbf16>
    %cst_68 = arith.constant dense<0.000000e+00> : vector<32x16xf32>
    %354 = tpu.matmul %352, %353, %cst_68 {dimension_numbers = #tpu.dot_dimension_numbers<[1], [0], [0], [1], [0, 0, 1, 1], [], []>} : vector<32x16xbf16>, vector<16x16xbf16>, vector<32x16xf32> -> vector<32x16xf32>
    %355 = arith.addf %350, %354 : vector<32x16xf32>
    %356 = vector.extract_strided_slice %338 {offsets = [0, 4], sizes = [16, 16], strides = [1, 1]} : vector<16x26xf32> to vector<16x16xf32>
    %357 = vector.extract_strided_slice %339 {offsets = [96, 0], sizes = [32, 16], strides = [1, 1]} : vector<288x16xbf16> to vector<32x16xbf16>
    %358 = arith.truncf %356 : vector<16x16xf32> to vector<16x16xbf16>
    %cst_69 = arith.constant dense<0.000000e+00> : vector<32x16xf32>
    %359 = tpu.matmul %357, %358, %cst_69 {dimension_numbers = #tpu.dot_dimension_numbers<[1], [0], [0], [1], [0, 0, 1, 1], [], []>} : vector<32x16xbf16>, vector<16x16xbf16>, vector<32x16xf32> -> vector<32x16xf32>
    %360 = arith.addf %355, %359 : vector<32x16xf32>
    %361 = vector.extract_strided_slice %332 {offsets = [0, 5], sizes = [16, 16], strides = [1, 1]} : vector<16x26xf32> to vector<16x16xf32>
    %362 = vector.extract_strided_slice %339 {offsets = [128, 0], sizes = [32, 16], strides = [1, 1]} : vector<288x16xbf16> to vector<32x16xbf16>
    %363 = arith.truncf %361 : vector<16x16xf32> to vector<16x16xbf16>
    %cst_70 = arith.constant dense<0.000000e+00> : vector<32x16xf32>
    %364 = tpu.matmul %362, %363, %cst_70 {dimension_numbers = #tpu.dot_dimension_numbers<[1], [0], [0], [1], [0, 0, 1, 1], [], []>} : vector<32x16xbf16>, vector<16x16xbf16>, vector<32x16xf32> -> vector<32x16xf32>
    %365 = arith.addf %360, %364 : vector<32x16xf32>
    %366 = vector.extract_strided_slice %335 {offsets = [0, 6], sizes = [16, 16], strides = [1, 1]} : vector<16x26xf32> to vector<16x16xf32>
    %367 = vector.extract_strided_slice %339 {offsets = [160, 0], sizes = [32, 16], strides = [1, 1]} : vector<288x16xbf16> to vector<32x16xbf16>
    %368 = arith.truncf %366 : vector<16x16xf32> to vector<16x16xbf16>
    %cst_71 = arith.constant dense<0.000000e+00> : vector<32x16xf32>
    %369 = tpu.matmul %367, %368, %cst_71 {dimension_numbers = #tpu.dot_dimension_numbers<[1], [0], [0], [1], [0, 0, 1, 1], [], []>} : vector<32x16xbf16>, vector<16x16xbf16>, vector<32x16xf32> -> vector<32x16xf32>
    %370 = arith.addf %365, %369 : vector<32x16xf32>
    %371 = vector.extract_strided_slice %338 {offsets = [0, 8], sizes = [16, 16], strides = [1, 1]} : vector<16x26xf32> to vector<16x16xf32>
    %372 = vector.extract_strided_slice %339 {offsets = [192, 0], sizes = [32, 16], strides = [1, 1]} : vector<288x16xbf16> to vector<32x16xbf16>
    %373 = arith.truncf %371 : vector<16x16xf32> to vector<16x16xbf16>
    %cst_72 = arith.constant dense<0.000000e+00> : vector<32x16xf32>
    %374 = tpu.matmul %372, %373, %cst_72 {dimension_numbers = #tpu.dot_dimension_numbers<[1], [0], [0], [1], [0, 0, 1, 1], [], []>} : vector<32x16xbf16>, vector<16x16xbf16>, vector<32x16xf32> -> vector<32x16xf32>
    %375 = arith.addf %370, %374 : vector<32x16xf32>
    %376 = vector.extract_strided_slice %332 {offsets = [0, 9], sizes = [16, 16], strides = [1, 1]} : vector<16x26xf32> to vector<16x16xf32>
    %377 = vector.extract_strided_slice %339 {offsets = [224, 0], sizes = [32, 16], strides = [1, 1]} : vector<288x16xbf16> to vector<32x16xbf16>
    %378 = arith.truncf %376 : vector<16x16xf32> to vector<16x16xbf16>
    %cst_73 = arith.constant dense<0.000000e+00> : vector<32x16xf32>
    %379 = tpu.matmul %377, %378, %cst_73 {dimension_numbers = #tpu.dot_dimension_numbers<[1], [0], [0], [1], [0, 0, 1, 1], [], []>} : vector<32x16xbf16>, vector<16x16xbf16>, vector<32x16xf32> -> vector<32x16xf32>
    %380 = arith.addf %375, %379 : vector<32x16xf32>
    %381 = vector.extract_strided_slice %335 {offsets = [0, 10], sizes = [16, 16], strides = [1, 1]} : vector<16x26xf32> to vector<16x16xf32>
    %382 = vector.extract_strided_slice %339 {offsets = [256, 0], sizes = [32, 16], strides = [1, 1]} : vector<288x16xbf16> to vector<32x16xbf16>
    %383 = arith.truncf %381 : vector<16x16xf32> to vector<16x16xbf16>
    %cst_74 = arith.constant dense<0.000000e+00> : vector<32x16xf32>
    %384 = tpu.matmul %382, %383, %cst_74 {dimension_numbers = #tpu.dot_dimension_numbers<[1], [0], [0], [1], [0, 0, 1, 1], [], []>} : vector<32x16xbf16>, vector<16x16xbf16>, vector<32x16xf32> -> vector<32x16xf32>
    %385 = arith.addf %380, %384 : vector<32x16xf32>
    %c48 = arith.constant 48 : index
    %c0_75 = arith.constant 0 : index
    %386 = vector.load %arg3[%c48, %c0_75] : memref<216x1xf32, #tpu.memory_space<vmem>>, vector<32x1xf32>
    %387 = vector.broadcast %386 : vector<32x1xf32> to vector<32x16xf32>
    %388 = arith.addf %385, %387 : vector<32x16xf32>
    %cst_76 = arith.constant 0.000000e+00 : f32
    %389 = vector.broadcast %cst_76 : f32 to vector<32x16xf32>
    %390 = arith.maximumf %388, %389 : vector<32x16xf32>
    %cst_77 = arith.constant 0.000000e+00 : f32
    %391 = vector.broadcast %cst_77 : f32 to vector<32x5xf32>
    %392 = tpu.concatenate %391, %390, %391 in 1 : vector<32x5xf32>, vector<32x16xf32>, vector<32x5xf32> -> vector<32x26xf32>
    %393 = vector.broadcast %326 : vector<1x16xf32> to vector<32x16xf32>
    %394 = arith.mulf %390, %393 : vector<32x16xf32>
    %395 = tpu.concatenate %391, %394, %391 in 1 : vector<32x5xf32>, vector<32x16xf32>, vector<32x5xf32> -> vector<32x26xf32>
    %396 = vector.broadcast %330 : vector<1x16xf32> to vector<32x16xf32>
    %397 = arith.mulf %390, %396 : vector<32x16xf32>
    %398 = tpu.concatenate %391, %397, %391 in 1 : vector<32x5xf32>, vector<32x16xf32>, vector<32x5xf32> -> vector<32x26xf32>
    %c1056 = arith.constant 1056 : index
    %c0_78 = arith.constant 0 : index
    %399 = vector.load %arg2[%c1056, %c0_78] : memref<2320x256xbf16, #tpu.memory_space<vmem>>, vector<288x32xbf16>
    %cst_79 = arith.constant 0.000000e+00 : f32
    %400 = vector.broadcast %cst_79 : f32 to vector<32x16xf32>
    %401 = vector.extract_strided_slice %398 {offsets = [0, 0], sizes = [32, 16], strides = [1, 1]} : vector<32x26xf32> to vector<32x16xf32>
    %402 = vector.extract_strided_slice %399 {offsets = [0, 0], sizes = [32, 32], strides = [1, 1]} : vector<288x32xbf16> to vector<32x32xbf16>
    %403 = arith.truncf %401 : vector<32x16xf32> to vector<32x16xbf16>
    %cst_80 = arith.constant dense<0.000000e+00> : vector<32x16xf32>
    %404 = tpu.matmul %402, %403, %cst_80 {dimension_numbers = #tpu.dot_dimension_numbers<[1], [0], [0], [1], [0, 0, 1, 1], [], []>} : vector<32x32xbf16>, vector<32x16xbf16>, vector<32x16xf32> -> vector<32x16xf32>
    %405 = arith.addf %400, %404 : vector<32x16xf32>
    %406 = vector.extract_strided_slice %392 {offsets = [0, 1], sizes = [32, 16], strides = [1, 1]} : vector<32x26xf32> to vector<32x16xf32>
    %407 = vector.extract_strided_slice %399 {offsets = [32, 0], sizes = [32, 32], strides = [1, 1]} : vector<288x32xbf16> to vector<32x32xbf16>
    %408 = arith.truncf %406 : vector<32x16xf32> to vector<32x16xbf16>
    %cst_81 = arith.constant dense<0.000000e+00> : vector<32x16xf32>
    %409 = tpu.matmul %407, %408, %cst_81 {dimension_numbers = #tpu.dot_dimension_numbers<[1], [0], [0], [1], [0, 0, 1, 1], [], []>} : vector<32x32xbf16>, vector<32x16xbf16>, vector<32x16xf32> -> vector<32x16xf32>
    %410 = arith.addf %405, %409 : vector<32x16xf32>
    %411 = vector.extract_strided_slice %395 {offsets = [0, 2], sizes = [32, 16], strides = [1, 1]} : vector<32x26xf32> to vector<32x16xf32>
    %412 = vector.extract_strided_slice %399 {offsets = [64, 0], sizes = [32, 32], strides = [1, 1]} : vector<288x32xbf16> to vector<32x32xbf16>
    %413 = arith.truncf %411 : vector<32x16xf32> to vector<32x16xbf16>
    %cst_82 = arith.constant dense<0.000000e+00> : vector<32x16xf32>
    %414 = tpu.matmul %412, %413, %cst_82 {dimension_numbers = #tpu.dot_dimension_numbers<[1], [0], [0], [1], [0, 0, 1, 1], [], []>} : vector<32x32xbf16>, vector<32x16xbf16>, vector<32x16xf32> -> vector<32x16xf32>
    %415 = arith.addf %410, %414 : vector<32x16xf32>
    %416 = vector.extract_strided_slice %398 {offsets = [0, 4], sizes = [32, 16], strides = [1, 1]} : vector<32x26xf32> to vector<32x16xf32>
    %417 = vector.extract_strided_slice %399 {offsets = [96, 0], sizes = [32, 32], strides = [1, 1]} : vector<288x32xbf16> to vector<32x32xbf16>
    %418 = arith.truncf %416 : vector<32x16xf32> to vector<32x16xbf16>
    %cst_83 = arith.constant dense<0.000000e+00> : vector<32x16xf32>
    %419 = tpu.matmul %417, %418, %cst_83 {dimension_numbers = #tpu.dot_dimension_numbers<[1], [0], [0], [1], [0, 0, 1, 1], [], []>} : vector<32x32xbf16>, vector<32x16xbf16>, vector<32x16xf32> -> vector<32x16xf32>
    %420 = arith.addf %415, %419 : vector<32x16xf32>
    %421 = vector.extract_strided_slice %392 {offsets = [0, 5], sizes = [32, 16], strides = [1, 1]} : vector<32x26xf32> to vector<32x16xf32>
    %422 = vector.extract_strided_slice %399 {offsets = [128, 0], sizes = [32, 32], strides = [1, 1]} : vector<288x32xbf16> to vector<32x32xbf16>
    %423 = arith.truncf %421 : vector<32x16xf32> to vector<32x16xbf16>
    %cst_84 = arith.constant dense<0.000000e+00> : vector<32x16xf32>
    %424 = tpu.matmul %422, %423, %cst_84 {dimension_numbers = #tpu.dot_dimension_numbers<[1], [0], [0], [1], [0, 0, 1, 1], [], []>} : vector<32x32xbf16>, vector<32x16xbf16>, vector<32x16xf32> -> vector<32x16xf32>
    %425 = arith.addf %420, %424 : vector<32x16xf32>
    %426 = vector.extract_strided_slice %395 {offsets = [0, 6], sizes = [32, 16], strides = [1, 1]} : vector<32x26xf32> to vector<32x16xf32>
    %427 = vector.extract_strided_slice %399 {offsets = [160, 0], sizes = [32, 32], strides = [1, 1]} : vector<288x32xbf16> to vector<32x32xbf16>
    %428 = arith.truncf %426 : vector<32x16xf32> to vector<32x16xbf16>
    %cst_85 = arith.constant dense<0.000000e+00> : vector<32x16xf32>
    %429 = tpu.matmul %427, %428, %cst_85 {dimension_numbers = #tpu.dot_dimension_numbers<[1], [0], [0], [1], [0, 0, 1, 1], [], []>} : vector<32x32xbf16>, vector<32x16xbf16>, vector<32x16xf32> -> vector<32x16xf32>
    %430 = arith.addf %425, %429 : vector<32x16xf32>
    %431 = vector.extract_strided_slice %398 {offsets = [0, 8], sizes = [32, 16], strides = [1, 1]} : vector<32x26xf32> to vector<32x16xf32>
    %432 = vector.extract_strided_slice %399 {offsets = [192, 0], sizes = [32, 32], strides = [1, 1]} : vector<288x32xbf16> to vector<32x32xbf16>
    %433 = arith.truncf %431 : vector<32x16xf32> to vector<32x16xbf16>
    %cst_86 = arith.constant dense<0.000000e+00> : vector<32x16xf32>
    %434 = tpu.matmul %432, %433, %cst_86 {dimension_numbers = #tpu.dot_dimension_numbers<[1], [0], [0], [1], [0, 0, 1, 1], [], []>} : vector<32x32xbf16>, vector<32x16xbf16>, vector<32x16xf32> -> vector<32x16xf32>
    %435 = arith.addf %430, %434 : vector<32x16xf32>
    %436 = vector.extract_strided_slice %392 {offsets = [0, 9], sizes = [32, 16], strides = [1, 1]} : vector<32x26xf32> to vector<32x16xf32>
    %437 = vector.extract_strided_slice %399 {offsets = [224, 0], sizes = [32, 32], strides = [1, 1]} : vector<288x32xbf16> to vector<32x32xbf16>
    %438 = arith.truncf %436 : vector<32x16xf32> to vector<32x16xbf16>
    %cst_87 = arith.constant dense<0.000000e+00> : vector<32x16xf32>
    %439 = tpu.matmul %437, %438, %cst_87 {dimension_numbers = #tpu.dot_dimension_numbers<[1], [0], [0], [1], [0, 0, 1, 1], [], []>} : vector<32x32xbf16>, vector<32x16xbf16>, vector<32x16xf32> -> vector<32x16xf32>
    %440 = arith.addf %435, %439 : vector<32x16xf32>
    %441 = vector.extract_strided_slice %395 {offsets = [0, 10], sizes = [32, 16], strides = [1, 1]} : vector<32x26xf32> to vector<32x16xf32>
    %442 = vector.extract_strided_slice %399 {offsets = [256, 0], sizes = [32, 32], strides = [1, 1]} : vector<288x32xbf16> to vector<32x32xbf16>
    %443 = arith.truncf %441 : vector<32x16xf32> to vector<32x16xbf16>
    %cst_88 = arith.constant dense<0.000000e+00> : vector<32x16xf32>
    %444 = tpu.matmul %442, %443, %cst_88 {dimension_numbers = #tpu.dot_dimension_numbers<[1], [0], [0], [1], [0, 0, 1, 1], [], []>} : vector<32x32xbf16>, vector<32x16xbf16>, vector<32x16xf32> -> vector<32x16xf32>
    %445 = arith.addf %440, %444 : vector<32x16xf32>
    %c80_89 = arith.constant 80 : index
    %c0_90 = arith.constant 0 : index
    %446 = vector.load %arg3[%c80_89, %c0_90] : memref<216x1xf32, #tpu.memory_space<vmem>>, vector<32x1xf32>
    %447 = vector.broadcast %446 : vector<32x1xf32> to vector<32x16xf32>
    %448 = arith.addf %445, %447 : vector<32x16xf32>
    %cst_91 = arith.constant 0.000000e+00 : f32
    %449 = vector.broadcast %cst_91 : f32 to vector<32x16xf32>
    %450 = arith.maximumf %448, %449 : vector<32x16xf32>
    %c1344 = arith.constant 1344 : index
    %c0_92 = arith.constant 0 : index
    %451 = vector.load %arg2[%c1344, %c0_92] : memref<2320x256xbf16, #tpu.memory_space<vmem>>, vector<128x32xbf16>
    %452 = arith.truncf %450 : vector<32x16xf32> to vector<32x16xbf16>
    %cst_93 = arith.constant dense<0.000000e+00> : vector<128x16xf32>
    %453 = tpu.matmul %451, %452, %cst_93 {dimension_numbers = #tpu.dot_dimension_numbers<[1], [0], [0], [1], [0, 0, 1, 1], [], []>} : vector<128x32xbf16>, vector<32x16xbf16>, vector<128x16xf32> -> vector<128x16xf32>
    %cst_94 = arith.constant 0.000000e+00 : f32
    %454 = vector.broadcast %cst_94 : f32 to vector<32x64xf32>
    %c1472 = arith.constant 1472 : index
    %c0_95 = arith.constant 0 : index
    %455 = vector.load %arg2[%c1472, %c0_95] : memref<2320x256xbf16, #tpu.memory_space<vmem>>, vector<16x64xbf16>
    %456 = vector.extract_strided_slice %453 {offsets = [0, 0], sizes = [32, 16], strides = [1, 1]} : vector<128x16xf32> to vector<32x16xf32>
    %457 = arith.truncf %456 : vector<32x16xf32> to vector<32x16xbf16>
    %cst_96 = arith.constant dense<0.000000e+00> : vector<32x64xf32>
    %458 = tpu.matmul %457, %455, %cst_96 {dimension_numbers = #tpu.dot_dimension_numbers<[1], [0], [0], [1], [0, 0, 1, 1], [], []>} : vector<32x16xbf16>, vector<16x64xbf16>, vector<32x64xf32> -> vector<32x64xf32>
    %459 = arith.addf %454, %458 : vector<32x64xf32>
    %c1488 = arith.constant 1488 : index
    %c0_97 = arith.constant 0 : index
    %460 = vector.load %arg2[%c1488, %c0_97] : memref<2320x256xbf16, #tpu.memory_space<vmem>>, vector<16x64xbf16>
    %461 = vector.extract_strided_slice %453 {offsets = [32, 0], sizes = [32, 16], strides = [1, 1]} : vector<128x16xf32> to vector<32x16xf32>
    %462 = arith.truncf %461 : vector<32x16xf32> to vector<32x16xbf16>
    %cst_98 = arith.constant dense<0.000000e+00> : vector<32x64xf32>
    %463 = tpu.matmul %462, %460, %cst_98 {dimension_numbers = #tpu.dot_dimension_numbers<[1], [0], [0], [1], [0, 0, 1, 1], [], []>} : vector<32x16xbf16>, vector<16x64xbf16>, vector<32x64xf32> -> vector<32x64xf32>
    %464 = arith.addf %459, %463 : vector<32x64xf32>
    %c1504 = arith.constant 1504 : index
    %c0_99 = arith.constant 0 : index
    %465 = vector.load %arg2[%c1504, %c0_99] : memref<2320x256xbf16, #tpu.memory_space<vmem>>, vector<16x64xbf16>
    %466 = vector.extract_strided_slice %453 {offsets = [64, 0], sizes = [32, 16], strides = [1, 1]} : vector<128x16xf32> to vector<32x16xf32>
    %467 = arith.truncf %466 : vector<32x16xf32> to vector<32x16xbf16>
    %cst_100 = arith.constant dense<0.000000e+00> : vector<32x64xf32>
    %468 = tpu.matmul %467, %465, %cst_100 {dimension_numbers = #tpu.dot_dimension_numbers<[1], [0], [0], [1], [0, 0, 1, 1], [], []>} : vector<32x16xbf16>, vector<16x64xbf16>, vector<32x64xf32> -> vector<32x64xf32>
    %469 = arith.addf %464, %468 : vector<32x64xf32>
    %c1520 = arith.constant 1520 : index
    %c0_101 = arith.constant 0 : index
    %470 = vector.load %arg2[%c1520, %c0_101] : memref<2320x256xbf16, #tpu.memory_space<vmem>>, vector<16x64xbf16>
    %471 = vector.extract_strided_slice %453 {offsets = [96, 0], sizes = [32, 16], strides = [1, 1]} : vector<128x16xf32> to vector<32x16xf32>
    %472 = arith.truncf %471 : vector<32x16xf32> to vector<32x16xbf16>
    %cst_102 = arith.constant dense<0.000000e+00> : vector<32x64xf32>
    %473 = tpu.matmul %472, %470, %cst_102 {dimension_numbers = #tpu.dot_dimension_numbers<[1], [0], [0], [1], [0, 0, 1, 1], [], []>} : vector<32x16xbf16>, vector<16x64xbf16>, vector<32x64xf32> -> vector<32x64xf32>
    %474 = arith.addf %469, %473 : vector<32x64xf32>
    %c112 = arith.constant 112 : index
    %c0_103 = arith.constant 0 : index
    %475 = vector.load %arg3[%c112, %c0_103] : memref<216x1xf32, #tpu.memory_space<vmem>>, vector<32x1xf32>
    %476 = vector.broadcast %475 : vector<32x1xf32> to vector<32x64xf32>
    %477 = arith.addf %474, %476 : vector<32x64xf32>
    %478 = tpu.concatenate %308, %477 in 0 : vector<16x64xf32>, vector<32x64xf32> -> vector<48x64xf32>
    %cst_104 = arith.constant 0.000000e+00 : f32
    %479 = vector.broadcast %cst_104 : f32 to vector<48x9xf32>
    %480 = tpu.concatenate %479, %478, %479 in 1 : vector<48x9xf32>, vector<48x64xf32>, vector<48x9xf32> -> vector<48x82xf32>
    %481 = vector.broadcast %184 : vector<1x64xf32> to vector<48x64xf32>
    %482 = arith.mulf %478, %481 : vector<48x64xf32>
    %483 = tpu.concatenate %479, %482, %479 in 1 : vector<48x9xf32>, vector<48x64xf32>, vector<48x9xf32> -> vector<48x82xf32>
    %484 = vector.broadcast %188 : vector<1x64xf32> to vector<48x64xf32>
    %485 = arith.mulf %478, %484 : vector<48x64xf32>
    %486 = tpu.concatenate %479, %485, %479 in 1 : vector<48x9xf32>, vector<48x64xf32>, vector<48x9xf32> -> vector<48x82xf32>
    %c1536 = arith.constant 1536 : index
    %c0_105 = arith.constant 0 : index
    %487 = vector.load %arg2[%c1536, %c0_105] : memref<2320x256xbf16, #tpu.memory_space<vmem>>, vector<144x48xbf16>
    %cst_106 = arith.constant 0.000000e+00 : f32
    %488 = vector.broadcast %cst_106 : f32 to vector<16x64xf32>
    %489 = vector.extract_strided_slice %486 {offsets = [0, 0], sizes = [48, 64], strides = [1, 1]} : vector<48x82xf32> to vector<48x64xf32>
    %490 = vector.extract_strided_slice %487 {offsets = [0, 0], sizes = [16, 48], strides = [1, 1]} : vector<144x48xbf16> to vector<16x48xbf16>
    %491 = arith.truncf %489 : vector<48x64xf32> to vector<48x64xbf16>
    %cst_107 = arith.constant dense<0.000000e+00> : vector<16x64xf32>
    %492 = tpu.matmul %490, %491, %cst_107 {dimension_numbers = #tpu.dot_dimension_numbers<[1], [0], [0], [1], [0, 0, 1, 1], [], []>} : vector<16x48xbf16>, vector<48x64xbf16>, vector<16x64xf32> -> vector<16x64xf32>
    %493 = arith.addf %488, %492 : vector<16x64xf32>
    %494 = vector.extract_strided_slice %480 {offsets = [0, 1], sizes = [48, 64], strides = [1, 1]} : vector<48x82xf32> to vector<48x64xf32>
    %495 = vector.extract_strided_slice %487 {offsets = [16, 0], sizes = [16, 48], strides = [1, 1]} : vector<144x48xbf16> to vector<16x48xbf16>
    %496 = arith.truncf %494 : vector<48x64xf32> to vector<48x64xbf16>
    %cst_108 = arith.constant dense<0.000000e+00> : vector<16x64xf32>
    %497 = tpu.matmul %495, %496, %cst_108 {dimension_numbers = #tpu.dot_dimension_numbers<[1], [0], [0], [1], [0, 0, 1, 1], [], []>} : vector<16x48xbf16>, vector<48x64xbf16>, vector<16x64xf32> -> vector<16x64xf32>
    %498 = arith.addf %493, %497 : vector<16x64xf32>
    %499 = vector.extract_strided_slice %483 {offsets = [0, 2], sizes = [48, 64], strides = [1, 1]} : vector<48x82xf32> to vector<48x64xf32>
    %500 = vector.extract_strided_slice %487 {offsets = [32, 0], sizes = [16, 48], strides = [1, 1]} : vector<144x48xbf16> to vector<16x48xbf16>
    %501 = arith.truncf %499 : vector<48x64xf32> to vector<48x64xbf16>
    %cst_109 = arith.constant dense<0.000000e+00> : vector<16x64xf32>
    %502 = tpu.matmul %500, %501, %cst_109 {dimension_numbers = #tpu.dot_dimension_numbers<[1], [0], [0], [1], [0, 0, 1, 1], [], []>} : vector<16x48xbf16>, vector<48x64xbf16>, vector<16x64xf32> -> vector<16x64xf32>
    %503 = arith.addf %498, %502 : vector<16x64xf32>
    %504 = vector.extract_strided_slice %486 {offsets = [0, 8], sizes = [48, 64], strides = [1, 1]} : vector<48x82xf32> to vector<48x64xf32>
    %505 = vector.extract_strided_slice %487 {offsets = [48, 0], sizes = [16, 48], strides = [1, 1]} : vector<144x48xbf16> to vector<16x48xbf16>
    %506 = arith.truncf %504 : vector<48x64xf32> to vector<48x64xbf16>
    %cst_110 = arith.constant dense<0.000000e+00> : vector<16x64xf32>
    %507 = tpu.matmul %505, %506, %cst_110 {dimension_numbers = #tpu.dot_dimension_numbers<[1], [0], [0], [1], [0, 0, 1, 1], [], []>} : vector<16x48xbf16>, vector<48x64xbf16>, vector<16x64xf32> -> vector<16x64xf32>
    %508 = arith.addf %503, %507 : vector<16x64xf32>
    %509 = vector.extract_strided_slice %480 {offsets = [0, 9], sizes = [48, 64], strides = [1, 1]} : vector<48x82xf32> to vector<48x64xf32>
    %510 = vector.extract_strided_slice %487 {offsets = [64, 0], sizes = [16, 48], strides = [1, 1]} : vector<144x48xbf16> to vector<16x48xbf16>
    %511 = arith.truncf %509 : vector<48x64xf32> to vector<48x64xbf16>
    %cst_111 = arith.constant dense<0.000000e+00> : vector<16x64xf32>
    %512 = tpu.matmul %510, %511, %cst_111 {dimension_numbers = #tpu.dot_dimension_numbers<[1], [0], [0], [1], [0, 0, 1, 1], [], []>} : vector<16x48xbf16>, vector<48x64xbf16>, vector<16x64xf32> -> vector<16x64xf32>
    %513 = arith.addf %508, %512 : vector<16x64xf32>
    %514 = vector.extract_strided_slice %483 {offsets = [0, 10], sizes = [48, 64], strides = [1, 1]} : vector<48x82xf32> to vector<48x64xf32>
    %515 = vector.extract_strided_slice %487 {offsets = [80, 0], sizes = [16, 48], strides = [1, 1]} : vector<144x48xbf16> to vector<16x48xbf16>
    %516 = arith.truncf %514 : vector<48x64xf32> to vector<48x64xbf16>
    %cst_112 = arith.constant dense<0.000000e+00> : vector<16x64xf32>
    %517 = tpu.matmul %515, %516, %cst_112 {dimension_numbers = #tpu.dot_dimension_numbers<[1], [0], [0], [1], [0, 0, 1, 1], [], []>} : vector<16x48xbf16>, vector<48x64xbf16>, vector<16x64xf32> -> vector<16x64xf32>
    %518 = arith.addf %513, %517 : vector<16x64xf32>
    %519 = vector.extract_strided_slice %486 {offsets = [0, 16], sizes = [48, 64], strides = [1, 1]} : vector<48x82xf32> to vector<48x64xf32>
    %520 = vector.extract_strided_slice %487 {offsets = [96, 0], sizes = [16, 48], strides = [1, 1]} : vector<144x48xbf16> to vector<16x48xbf16>
    %521 = arith.truncf %519 : vector<48x64xf32> to vector<48x64xbf16>
    %cst_113 = arith.constant dense<0.000000e+00> : vector<16x64xf32>
    %522 = tpu.matmul %520, %521, %cst_113 {dimension_numbers = #tpu.dot_dimension_numbers<[1], [0], [0], [1], [0, 0, 1, 1], [], []>} : vector<16x48xbf16>, vector<48x64xbf16>, vector<16x64xf32> -> vector<16x64xf32>
    %523 = arith.addf %518, %522 : vector<16x64xf32>
    %524 = vector.extract_strided_slice %480 {offsets = [0, 17], sizes = [48, 64], strides = [1, 1]} : vector<48x82xf32> to vector<48x64xf32>
    %525 = vector.extract_strided_slice %487 {offsets = [112, 0], sizes = [16, 48], strides = [1, 1]} : vector<144x48xbf16> to vector<16x48xbf16>
    %526 = arith.truncf %524 : vector<48x64xf32> to vector<48x64xbf16>
    %cst_114 = arith.constant dense<0.000000e+00> : vector<16x64xf32>
    %527 = tpu.matmul %525, %526, %cst_114 {dimension_numbers = #tpu.dot_dimension_numbers<[1], [0], [0], [1], [0, 0, 1, 1], [], []>} : vector<16x48xbf16>, vector<48x64xbf16>, vector<16x64xf32> -> vector<16x64xf32>
    %528 = arith.addf %523, %527 : vector<16x64xf32>
    %529 = vector.extract_strided_slice %483 {offsets = [0, 18], sizes = [48, 64], strides = [1, 1]} : vector<48x82xf32> to vector<48x64xf32>
    %530 = vector.extract_strided_slice %487 {offsets = [128, 0], sizes = [16, 48], strides = [1, 1]} : vector<144x48xbf16> to vector<16x48xbf16>
    %531 = arith.truncf %529 : vector<48x64xf32> to vector<48x64xbf16>
    %cst_115 = arith.constant dense<0.000000e+00> : vector<16x64xf32>
    %532 = tpu.matmul %530, %531, %cst_115 {dimension_numbers = #tpu.dot_dimension_numbers<[1], [0], [0], [1], [0, 0, 1, 1], [], []>} : vector<16x48xbf16>, vector<48x64xbf16>, vector<16x64xf32> -> vector<16x64xf32>
    %533 = arith.addf %528, %532 : vector<16x64xf32>
    %c144 = arith.constant 144 : index
    %c0_116 = arith.constant 0 : index
    %534 = vector.load %arg3[%c144, %c0_116] : memref<216x1xf32, #tpu.memory_space<vmem>>, vector<16x1xf32>
    %535 = vector.broadcast %534 : vector<16x1xf32> to vector<16x64xf32>
    %536 = arith.addf %533, %535 : vector<16x64xf32>
    %cst_117 = arith.constant 0.000000e+00 : f32
    %537 = vector.broadcast %cst_117 : f32 to vector<16x64xf32>
    %538 = arith.maximumf %536, %537 : vector<16x64xf32>
    %cst_118 = arith.constant 0.000000e+00 : f32
    %539 = vector.broadcast %cst_118 : f32 to vector<16x9xf32>
    %540 = tpu.concatenate %539, %538, %539 in 1 : vector<16x9xf32>, vector<16x64xf32>, vector<16x9xf32> -> vector<16x82xf32>
    %541 = vector.broadcast %184 : vector<1x64xf32> to vector<16x64xf32>
    %542 = arith.mulf %538, %541 : vector<16x64xf32>
    %543 = tpu.concatenate %539, %542, %539 in 1 : vector<16x9xf32>, vector<16x64xf32>, vector<16x9xf32> -> vector<16x82xf32>
    %544 = vector.broadcast %188 : vector<1x64xf32> to vector<16x64xf32>
    %545 = arith.mulf %538, %544 : vector<16x64xf32>
    %546 = tpu.concatenate %539, %545, %539 in 1 : vector<16x9xf32>, vector<16x64xf32>, vector<16x9xf32> -> vector<16x82xf32>
    %c1680 = arith.constant 1680 : index
    %c0_119 = arith.constant 0 : index
    %547 = vector.load %arg2[%c1680, %c0_119] : memref<2320x256xbf16, #tpu.memory_space<vmem>>, vector<144x16xbf16>
    %cst_120 = arith.constant 0.000000e+00 : f32
    %548 = vector.broadcast %cst_120 : f32 to vector<16x64xf32>
    %549 = vector.extract_strided_slice %546 {offsets = [0, 0], sizes = [16, 64], strides = [1, 1]} : vector<16x82xf32> to vector<16x64xf32>
    %550 = vector.extract_strided_slice %547 {offsets = [0, 0], sizes = [16, 16], strides = [1, 1]} : vector<144x16xbf16> to vector<16x16xbf16>
    %551 = arith.truncf %549 : vector<16x64xf32> to vector<16x64xbf16>
    %cst_121 = arith.constant dense<0.000000e+00> : vector<16x64xf32>
    %552 = tpu.matmul %550, %551, %cst_121 {dimension_numbers = #tpu.dot_dimension_numbers<[1], [0], [0], [1], [0, 0, 1, 1], [], []>} : vector<16x16xbf16>, vector<16x64xbf16>, vector<16x64xf32> -> vector<16x64xf32>
    %553 = arith.addf %548, %552 : vector<16x64xf32>
    %554 = vector.extract_strided_slice %540 {offsets = [0, 1], sizes = [16, 64], strides = [1, 1]} : vector<16x82xf32> to vector<16x64xf32>
    %555 = vector.extract_strided_slice %547 {offsets = [16, 0], sizes = [16, 16], strides = [1, 1]} : vector<144x16xbf16> to vector<16x16xbf16>
    %556 = arith.truncf %554 : vector<16x64xf32> to vector<16x64xbf16>
    %cst_122 = arith.constant dense<0.000000e+00> : vector<16x64xf32>
    %557 = tpu.matmul %555, %556, %cst_122 {dimension_numbers = #tpu.dot_dimension_numbers<[1], [0], [0], [1], [0, 0, 1, 1], [], []>} : vector<16x16xbf16>, vector<16x64xbf16>, vector<16x64xf32> -> vector<16x64xf32>
    %558 = arith.addf %553, %557 : vector<16x64xf32>
    %559 = vector.extract_strided_slice %543 {offsets = [0, 2], sizes = [16, 64], strides = [1, 1]} : vector<16x82xf32> to vector<16x64xf32>
    %560 = vector.extract_strided_slice %547 {offsets = [32, 0], sizes = [16, 16], strides = [1, 1]} : vector<144x16xbf16> to vector<16x16xbf16>
    %561 = arith.truncf %559 : vector<16x64xf32> to vector<16x64xbf16>
    %cst_123 = arith.constant dense<0.000000e+00> : vector<16x64xf32>
    %562 = tpu.matmul %560, %561, %cst_123 {dimension_numbers = #tpu.dot_dimension_numbers<[1], [0], [0], [1], [0, 0, 1, 1], [], []>} : vector<16x16xbf16>, vector<16x64xbf16>, vector<16x64xf32> -> vector<16x64xf32>
    %563 = arith.addf %558, %562 : vector<16x64xf32>
    %564 = vector.extract_strided_slice %546 {offsets = [0, 8], sizes = [16, 64], strides = [1, 1]} : vector<16x82xf32> to vector<16x64xf32>
    %565 = vector.extract_strided_slice %547 {offsets = [48, 0], sizes = [16, 16], strides = [1, 1]} : vector<144x16xbf16> to vector<16x16xbf16>
    %566 = arith.truncf %564 : vector<16x64xf32> to vector<16x64xbf16>
    %cst_124 = arith.constant dense<0.000000e+00> : vector<16x64xf32>
    %567 = tpu.matmul %565, %566, %cst_124 {dimension_numbers = #tpu.dot_dimension_numbers<[1], [0], [0], [1], [0, 0, 1, 1], [], []>} : vector<16x16xbf16>, vector<16x64xbf16>, vector<16x64xf32> -> vector<16x64xf32>
    %568 = arith.addf %563, %567 : vector<16x64xf32>
    %569 = vector.extract_strided_slice %540 {offsets = [0, 9], sizes = [16, 64], strides = [1, 1]} : vector<16x82xf32> to vector<16x64xf32>
    %570 = vector.extract_strided_slice %547 {offsets = [64, 0], sizes = [16, 16], strides = [1, 1]} : vector<144x16xbf16> to vector<16x16xbf16>
    %571 = arith.truncf %569 : vector<16x64xf32> to vector<16x64xbf16>
    %cst_125 = arith.constant dense<0.000000e+00> : vector<16x64xf32>
    %572 = tpu.matmul %570, %571, %cst_125 {dimension_numbers = #tpu.dot_dimension_numbers<[1], [0], [0], [1], [0, 0, 1, 1], [], []>} : vector<16x16xbf16>, vector<16x64xbf16>, vector<16x64xf32> -> vector<16x64xf32>
    %573 = arith.addf %568, %572 : vector<16x64xf32>
    %574 = vector.extract_strided_slice %543 {offsets = [0, 10], sizes = [16, 64], strides = [1, 1]} : vector<16x82xf32> to vector<16x64xf32>
    %575 = vector.extract_strided_slice %547 {offsets = [80, 0], sizes = [16, 16], strides = [1, 1]} : vector<144x16xbf16> to vector<16x16xbf16>
    %576 = arith.truncf %574 : vector<16x64xf32> to vector<16x64xbf16>
    %cst_126 = arith.constant dense<0.000000e+00> : vector<16x64xf32>
    %577 = tpu.matmul %575, %576, %cst_126 {dimension_numbers = #tpu.dot_dimension_numbers<[1], [0], [0], [1], [0, 0, 1, 1], [], []>} : vector<16x16xbf16>, vector<16x64xbf16>, vector<16x64xf32> -> vector<16x64xf32>
    %578 = arith.addf %573, %577 : vector<16x64xf32>
    %579 = vector.extract_strided_slice %546 {offsets = [0, 16], sizes = [16, 64], strides = [1, 1]} : vector<16x82xf32> to vector<16x64xf32>
    %580 = vector.extract_strided_slice %547 {offsets = [96, 0], sizes = [16, 16], strides = [1, 1]} : vector<144x16xbf16> to vector<16x16xbf16>
    %581 = arith.truncf %579 : vector<16x64xf32> to vector<16x64xbf16>
    %cst_127 = arith.constant dense<0.000000e+00> : vector<16x64xf32>
    %582 = tpu.matmul %580, %581, %cst_127 {dimension_numbers = #tpu.dot_dimension_numbers<[1], [0], [0], [1], [0, 0, 1, 1], [], []>} : vector<16x16xbf16>, vector<16x64xbf16>, vector<16x64xf32> -> vector<16x64xf32>
    %583 = arith.addf %578, %582 : vector<16x64xf32>
    %584 = vector.extract_strided_slice %540 {offsets = [0, 17], sizes = [16, 64], strides = [1, 1]} : vector<16x82xf32> to vector<16x64xf32>
    %585 = vector.extract_strided_slice %547 {offsets = [112, 0], sizes = [16, 16], strides = [1, 1]} : vector<144x16xbf16> to vector<16x16xbf16>
    %586 = arith.truncf %584 : vector<16x64xf32> to vector<16x64xbf16>
    %cst_128 = arith.constant dense<0.000000e+00> : vector<16x64xf32>
    %587 = tpu.matmul %585, %586, %cst_128 {dimension_numbers = #tpu.dot_dimension_numbers<[1], [0], [0], [1], [0, 0, 1, 1], [], []>} : vector<16x16xbf16>, vector<16x64xbf16>, vector<16x64xf32> -> vector<16x64xf32>
    %588 = arith.addf %583, %587 : vector<16x64xf32>
    %589 = vector.extract_strided_slice %543 {offsets = [0, 18], sizes = [16, 64], strides = [1, 1]} : vector<16x82xf32> to vector<16x64xf32>
    %590 = vector.extract_strided_slice %547 {offsets = [128, 0], sizes = [16, 16], strides = [1, 1]} : vector<144x16xbf16> to vector<16x16xbf16>
    %591 = arith.truncf %589 : vector<16x64xf32> to vector<16x64xbf16>
    %cst_129 = arith.constant dense<0.000000e+00> : vector<16x64xf32>
    %592 = tpu.matmul %590, %591, %cst_129 {dimension_numbers = #tpu.dot_dimension_numbers<[1], [0], [0], [1], [0, 0, 1, 1], [], []>} : vector<16x16xbf16>, vector<16x64xbf16>, vector<16x64xf32> -> vector<16x64xf32>
    %593 = arith.addf %588, %592 : vector<16x64xf32>
    %c160_130 = arith.constant 160 : index
    %c0_131 = arith.constant 0 : index
    %594 = vector.load %arg3[%c160_130, %c0_131] : memref<216x1xf32, #tpu.memory_space<vmem>>, vector<16x1xf32>
    %595 = vector.broadcast %594 : vector<16x1xf32> to vector<16x64xf32>
    %596 = arith.addf %593, %595 : vector<16x64xf32>
    %cst_132 = arith.constant 0.000000e+00 : f32
    %597 = vector.broadcast %cst_132 : f32 to vector<16x64xf32>
    %598 = arith.maximumf %596, %597 : vector<16x64xf32>
    %c1824 = arith.constant 1824 : index
    %c0_133 = arith.constant 0 : index
    %599 = vector.load %arg2[%c1824, %c0_133] : memref<2320x256xbf16, #tpu.memory_space<vmem>>, vector<64x16xbf16>
    %600 = arith.truncf %598 : vector<16x64xf32> to vector<16x64xbf16>
    %cst_134 = arith.constant dense<0.000000e+00> : vector<64x64xf32>
    %601 = tpu.matmul %599, %600, %cst_134 {dimension_numbers = #tpu.dot_dimension_numbers<[1], [0], [0], [1], [0, 0, 1, 1], [], []>} : vector<64x16xbf16>, vector<16x64xbf16>, vector<64x64xf32> -> vector<64x64xf32>
    %cst_135 = arith.constant 0.000000e+00 : f32
    %602 = vector.broadcast %cst_135 : f32 to vector<16x256xf32>
    %c1888 = arith.constant 1888 : index
    %c0_136 = arith.constant 0 : index
    %603 = vector.load %arg2[%c1888, %c0_136] : memref<2320x256xbf16, #tpu.memory_space<vmem>>, vector<64x256xbf16>
    %604 = vector.extract_strided_slice %601 {offsets = [0, 0], sizes = [16, 64], strides = [1, 1]} : vector<64x64xf32> to vector<16x64xf32>
    %605 = arith.truncf %604 : vector<16x64xf32> to vector<16x64xbf16>
    %cst_137 = arith.constant dense<0.000000e+00> : vector<16x256xf32>
    %606 = tpu.matmul %605, %603, %cst_137 {dimension_numbers = #tpu.dot_dimension_numbers<[1], [0], [0], [1], [0, 0, 1, 1], [], []>} : vector<16x64xbf16>, vector<64x256xbf16>, vector<16x256xf32> -> vector<16x256xf32>
    %607 = arith.addf %602, %606 : vector<16x256xf32>
    %c1952 = arith.constant 1952 : index
    %c0_138 = arith.constant 0 : index
    %608 = vector.load %arg2[%c1952, %c0_138] : memref<2320x256xbf16, #tpu.memory_space<vmem>>, vector<64x256xbf16>
    %609 = vector.extract_strided_slice %601 {offsets = [16, 0], sizes = [16, 64], strides = [1, 1]} : vector<64x64xf32> to vector<16x64xf32>
    %610 = arith.truncf %609 : vector<16x64xf32> to vector<16x64xbf16>
    %cst_139 = arith.constant dense<0.000000e+00> : vector<16x256xf32>
    %611 = tpu.matmul %610, %608, %cst_139 {dimension_numbers = #tpu.dot_dimension_numbers<[1], [0], [0], [1], [0, 0, 1, 1], [], []>} : vector<16x64xbf16>, vector<64x256xbf16>, vector<16x256xf32> -> vector<16x256xf32>
    %612 = arith.addf %607, %611 : vector<16x256xf32>
    %c2016 = arith.constant 2016 : index
    %c0_140 = arith.constant 0 : index
    %613 = vector.load %arg2[%c2016, %c0_140] : memref<2320x256xbf16, #tpu.memory_space<vmem>>, vector<64x256xbf16>
    %614 = vector.extract_strided_slice %601 {offsets = [32, 0], sizes = [16, 64], strides = [1, 1]} : vector<64x64xf32> to vector<16x64xf32>
    %615 = arith.truncf %614 : vector<16x64xf32> to vector<16x64xbf16>
    %cst_141 = arith.constant dense<0.000000e+00> : vector<16x256xf32>
    %616 = tpu.matmul %615, %613, %cst_141 {dimension_numbers = #tpu.dot_dimension_numbers<[1], [0], [0], [1], [0, 0, 1, 1], [], []>} : vector<16x64xbf16>, vector<64x256xbf16>, vector<16x256xf32> -> vector<16x256xf32>
    %617 = arith.addf %612, %616 : vector<16x256xf32>
    %c2080 = arith.constant 2080 : index
    %c0_142 = arith.constant 0 : index
    %618 = vector.load %arg2[%c2080, %c0_142] : memref<2320x256xbf16, #tpu.memory_space<vmem>>, vector<64x256xbf16>
    %619 = vector.extract_strided_slice %601 {offsets = [48, 0], sizes = [16, 64], strides = [1, 1]} : vector<64x64xf32> to vector<16x64xf32>
    %620 = arith.truncf %619 : vector<16x64xf32> to vector<16x64xbf16>
    %cst_143 = arith.constant dense<0.000000e+00> : vector<16x256xf32>
    %621 = tpu.matmul %620, %618, %cst_143 {dimension_numbers = #tpu.dot_dimension_numbers<[1], [0], [0], [1], [0, 0, 1, 1], [], []>} : vector<16x64xbf16>, vector<64x256xbf16>, vector<16x256xf32> -> vector<16x256xf32>
    %622 = arith.addf %617, %621 : vector<16x256xf32>
    %c176 = arith.constant 176 : index
    %c0_144 = arith.constant 0 : index
    %623 = vector.load %arg3[%c176, %c0_144] : memref<216x1xf32, #tpu.memory_space<vmem>>, vector<16x1xf32>
    %624 = vector.broadcast %623 : vector<16x1xf32> to vector<16x256xf32>
    %625 = arith.addf %622, %624 : vector<16x256xf32>
    %626 = tpu.concatenate %166, %625 in 0 : vector<8x256xf32>, vector<16x256xf32> -> vector<24x256xf32>
    %cst_145 = arith.constant 0.000000e+00 : f32
    %627 = vector.broadcast %cst_145 : f32 to vector<24x17xf32>
    %628 = tpu.concatenate %627, %626, %627 in 1 : vector<24x17xf32>, vector<24x256xf32>, vector<24x17xf32> -> vector<24x290xf32>
    %629 = vector.broadcast %8 : vector<1x256xf32> to vector<24x256xf32>
    %630 = arith.mulf %626, %629 : vector<24x256xf32>
    %631 = tpu.concatenate %627, %630, %627 in 1 : vector<24x17xf32>, vector<24x256xf32>, vector<24x17xf32> -> vector<24x290xf32>
    %632 = vector.broadcast %12 : vector<1x256xf32> to vector<24x256xf32>
    %633 = arith.mulf %626, %632 : vector<24x256xf32>
    %634 = tpu.concatenate %627, %633, %627 in 1 : vector<24x17xf32>, vector<24x256xf32>, vector<24x17xf32> -> vector<24x290xf32>
    %c2144 = arith.constant 2144 : index
    %c0_146 = arith.constant 0 : index
    %635 = vector.load %arg2[%c2144, %c0_146] : memref<2320x256xbf16, #tpu.memory_space<vmem>>, vector<72x24xbf16>
    %cst_147 = arith.constant 0.000000e+00 : f32
    %636 = vector.broadcast %cst_147 : f32 to vector<8x256xf32>
    %637 = vector.extract_strided_slice %634 {offsets = [0, 0], sizes = [24, 256], strides = [1, 1]} : vector<24x290xf32> to vector<24x256xf32>
    %638 = vector.extract_strided_slice %635 {offsets = [0, 0], sizes = [8, 24], strides = [1, 1]} : vector<72x24xbf16> to vector<8x24xbf16>
    %639 = arith.truncf %637 : vector<24x256xf32> to vector<24x256xbf16>
    %cst_148 = arith.constant dense<0.000000e+00> : vector<8x256xf32>
    %640 = tpu.matmul %638, %639, %cst_148 {dimension_numbers = #tpu.dot_dimension_numbers<[1], [0], [0], [1], [0, 0, 1, 1], [], []>} : vector<8x24xbf16>, vector<24x256xbf16>, vector<8x256xf32> -> vector<8x256xf32>
    %641 = arith.addf %636, %640 : vector<8x256xf32>
    %642 = vector.extract_strided_slice %628 {offsets = [0, 1], sizes = [24, 256], strides = [1, 1]} : vector<24x290xf32> to vector<24x256xf32>
    %643 = vector.extract_strided_slice %635 {offsets = [8, 0], sizes = [8, 24], strides = [1, 1]} : vector<72x24xbf16> to vector<8x24xbf16>
    %644 = arith.truncf %642 : vector<24x256xf32> to vector<24x256xbf16>
    %cst_149 = arith.constant dense<0.000000e+00> : vector<8x256xf32>
    %645 = tpu.matmul %643, %644, %cst_149 {dimension_numbers = #tpu.dot_dimension_numbers<[1], [0], [0], [1], [0, 0, 1, 1], [], []>} : vector<8x24xbf16>, vector<24x256xbf16>, vector<8x256xf32> -> vector<8x256xf32>
    %646 = arith.addf %641, %645 : vector<8x256xf32>
    %647 = vector.extract_strided_slice %631 {offsets = [0, 2], sizes = [24, 256], strides = [1, 1]} : vector<24x290xf32> to vector<24x256xf32>
    %648 = vector.extract_strided_slice %635 {offsets = [16, 0], sizes = [8, 24], strides = [1, 1]} : vector<72x24xbf16> to vector<8x24xbf16>
    %649 = arith.truncf %647 : vector<24x256xf32> to vector<24x256xbf16>
    %cst_150 = arith.constant dense<0.000000e+00> : vector<8x256xf32>
    %650 = tpu.matmul %648, %649, %cst_150 {dimension_numbers = #tpu.dot_dimension_numbers<[1], [0], [0], [1], [0, 0, 1, 1], [], []>} : vector<8x24xbf16>, vector<24x256xbf16>, vector<8x256xf32> -> vector<8x256xf32>
    %651 = arith.addf %646, %650 : vector<8x256xf32>
    %652 = vector.extract_strided_slice %634 {offsets = [0, 16], sizes = [24, 256], strides = [1, 1]} : vector<24x290xf32> to vector<24x256xf32>
    %653 = vector.extract_strided_slice %635 {offsets = [24, 0], sizes = [8, 24], strides = [1, 1]} : vector<72x24xbf16> to vector<8x24xbf16>
    %654 = arith.truncf %652 : vector<24x256xf32> to vector<24x256xbf16>
    %cst_151 = arith.constant dense<0.000000e+00> : vector<8x256xf32>
    %655 = tpu.matmul %653, %654, %cst_151 {dimension_numbers = #tpu.dot_dimension_numbers<[1], [0], [0], [1], [0, 0, 1, 1], [], []>} : vector<8x24xbf16>, vector<24x256xbf16>, vector<8x256xf32> -> vector<8x256xf32>
    %656 = arith.addf %651, %655 : vector<8x256xf32>
    %657 = vector.extract_strided_slice %628 {offsets = [0, 17], sizes = [24, 256], strides = [1, 1]} : vector<24x290xf32> to vector<24x256xf32>
    %658 = vector.extract_strided_slice %635 {offsets = [32, 0], sizes = [8, 24], strides = [1, 1]} : vector<72x24xbf16> to vector<8x24xbf16>
    %659 = arith.truncf %657 : vector<24x256xf32> to vector<24x256xbf16>
    %cst_152 = arith.constant dense<0.000000e+00> : vector<8x256xf32>
    %660 = tpu.matmul %658, %659, %cst_152 {dimension_numbers = #tpu.dot_dimension_numbers<[1], [0], [0], [1], [0, 0, 1, 1], [], []>} : vector<8x24xbf16>, vector<24x256xbf16>, vector<8x256xf32> -> vector<8x256xf32>
    %661 = arith.addf %656, %660 : vector<8x256xf32>
    %662 = vector.extract_strided_slice %631 {offsets = [0, 18], sizes = [24, 256], strides = [1, 1]} : vector<24x290xf32> to vector<24x256xf32>
    %663 = vector.extract_strided_slice %635 {offsets = [40, 0], sizes = [8, 24], strides = [1, 1]} : vector<72x24xbf16> to vector<8x24xbf16>
    %664 = arith.truncf %662 : vector<24x256xf32> to vector<24x256xbf16>
    %cst_153 = arith.constant dense<0.000000e+00> : vector<8x256xf32>
    %665 = tpu.matmul %663, %664, %cst_153 {dimension_numbers = #tpu.dot_dimension_numbers<[1], [0], [0], [1], [0, 0, 1, 1], [], []>} : vector<8x24xbf16>, vector<24x256xbf16>, vector<8x256xf32> -> vector<8x256xf32>
    %666 = arith.addf %661, %665 : vector<8x256xf32>
    %667 = vector.extract_strided_slice %634 {offsets = [0, 32], sizes = [24, 256], strides = [1, 1]} : vector<24x290xf32> to vector<24x256xf32>
    %668 = vector.extract_strided_slice %635 {offsets = [48, 0], sizes = [8, 24], strides = [1, 1]} : vector<72x24xbf16> to vector<8x24xbf16>
    %669 = arith.truncf %667 : vector<24x256xf32> to vector<24x256xbf16>
    %cst_154 = arith.constant dense<0.000000e+00> : vector<8x256xf32>
    %670 = tpu.matmul %668, %669, %cst_154 {dimension_numbers = #tpu.dot_dimension_numbers<[1], [0], [0], [1], [0, 0, 1, 1], [], []>} : vector<8x24xbf16>, vector<24x256xbf16>, vector<8x256xf32> -> vector<8x256xf32>
    %671 = arith.addf %666, %670 : vector<8x256xf32>
    %672 = vector.extract_strided_slice %628 {offsets = [0, 33], sizes = [24, 256], strides = [1, 1]} : vector<24x290xf32> to vector<24x256xf32>
    %673 = vector.extract_strided_slice %635 {offsets = [56, 0], sizes = [8, 24], strides = [1, 1]} : vector<72x24xbf16> to vector<8x24xbf16>
    %674 = arith.truncf %672 : vector<24x256xf32> to vector<24x256xbf16>
    %cst_155 = arith.constant dense<0.000000e+00> : vector<8x256xf32>
    %675 = tpu.matmul %673, %674, %cst_155 {dimension_numbers = #tpu.dot_dimension_numbers<[1], [0], [0], [1], [0, 0, 1, 1], [], []>} : vector<8x24xbf16>, vector<24x256xbf16>, vector<8x256xf32> -> vector<8x256xf32>
    %676 = arith.addf %671, %675 : vector<8x256xf32>
    %677 = vector.extract_strided_slice %631 {offsets = [0, 34], sizes = [24, 256], strides = [1, 1]} : vector<24x290xf32> to vector<24x256xf32>
    %678 = vector.extract_strided_slice %635 {offsets = [64, 0], sizes = [8, 24], strides = [1, 1]} : vector<72x24xbf16> to vector<8x24xbf16>
    %679 = arith.truncf %677 : vector<24x256xf32> to vector<24x256xbf16>
    %cst_156 = arith.constant dense<0.000000e+00> : vector<8x256xf32>
    %680 = tpu.matmul %678, %679, %cst_156 {dimension_numbers = #tpu.dot_dimension_numbers<[1], [0], [0], [1], [0, 0, 1, 1], [], []>} : vector<8x24xbf16>, vector<24x256xbf16>, vector<8x256xf32> -> vector<8x256xf32>
    %681 = arith.addf %676, %680 : vector<8x256xf32>
    %c192 = arith.constant 192 : index
    %c0_157 = arith.constant 0 : index
    %682 = vector.load %arg3[%c192, %c0_157] : memref<216x1xf32, #tpu.memory_space<vmem>>, vector<8x1xf32>
    %683 = vector.broadcast %682 : vector<8x1xf32> to vector<8x256xf32>
    %684 = arith.addf %681, %683 : vector<8x256xf32>
    %cst_158 = arith.constant 0.000000e+00 : f32
    %685 = vector.broadcast %cst_158 : f32 to vector<8x256xf32>
    %686 = arith.maximumf %684, %685 : vector<8x256xf32>
    %cst_159 = arith.constant 0.000000e+00 : f32
    %687 = vector.broadcast %cst_159 : f32 to vector<8x17xf32>
    %688 = tpu.concatenate %687, %686, %687 in 1 : vector<8x17xf32>, vector<8x256xf32>, vector<8x17xf32> -> vector<8x290xf32>
    %689 = vector.broadcast %8 : vector<1x256xf32> to vector<8x256xf32>
    %690 = arith.mulf %686, %689 : vector<8x256xf32>
    %691 = tpu.concatenate %687, %690, %687 in 1 : vector<8x17xf32>, vector<8x256xf32>, vector<8x17xf32> -> vector<8x290xf32>
    %692 = vector.broadcast %12 : vector<1x256xf32> to vector<8x256xf32>
    %693 = arith.mulf %686, %692 : vector<8x256xf32>
    %694 = tpu.concatenate %687, %693, %687 in 1 : vector<8x17xf32>, vector<8x256xf32>, vector<8x17xf32> -> vector<8x290xf32>
    %c2224 = arith.constant 2224 : index
    %c0_160 = arith.constant 0 : index
    %695 = vector.load %arg2[%c2224, %c0_160] : memref<2320x256xbf16, #tpu.memory_space<vmem>>, vector<72x8xbf16>
    %cst_161 = arith.constant 0.000000e+00 : f32
    %696 = vector.broadcast %cst_161 : f32 to vector<8x256xf32>
    %697 = vector.extract_strided_slice %694 {offsets = [0, 0], sizes = [8, 256], strides = [1, 1]} : vector<8x290xf32> to vector<8x256xf32>
    %698 = vector.extract_strided_slice %695 {offsets = [0, 0], sizes = [8, 8], strides = [1, 1]} : vector<72x8xbf16> to vector<8x8xbf16>
    %699 = arith.truncf %697 : vector<8x256xf32> to vector<8x256xbf16>
    %cst_162 = arith.constant dense<0.000000e+00> : vector<8x256xf32>
    %700 = tpu.matmul %698, %699, %cst_162 {dimension_numbers = #tpu.dot_dimension_numbers<[1], [0], [0], [1], [0, 0, 1, 1], [], []>} : vector<8x8xbf16>, vector<8x256xbf16>, vector<8x256xf32> -> vector<8x256xf32>
    %701 = arith.addf %696, %700 : vector<8x256xf32>
    %702 = vector.extract_strided_slice %688 {offsets = [0, 1], sizes = [8, 256], strides = [1, 1]} : vector<8x290xf32> to vector<8x256xf32>
    %703 = vector.extract_strided_slice %695 {offsets = [8, 0], sizes = [8, 8], strides = [1, 1]} : vector<72x8xbf16> to vector<8x8xbf16>
    %704 = arith.truncf %702 : vector<8x256xf32> to vector<8x256xbf16>
    %cst_163 = arith.constant dense<0.000000e+00> : vector<8x256xf32>
    %705 = tpu.matmul %703, %704, %cst_163 {dimension_numbers = #tpu.dot_dimension_numbers<[1], [0], [0], [1], [0, 0, 1, 1], [], []>} : vector<8x8xbf16>, vector<8x256xbf16>, vector<8x256xf32> -> vector<8x256xf32>
    %706 = arith.addf %701, %705 : vector<8x256xf32>
    %707 = vector.extract_strided_slice %691 {offsets = [0, 2], sizes = [8, 256], strides = [1, 1]} : vector<8x290xf32> to vector<8x256xf32>
    %708 = vector.extract_strided_slice %695 {offsets = [16, 0], sizes = [8, 8], strides = [1, 1]} : vector<72x8xbf16> to vector<8x8xbf16>
    %709 = arith.truncf %707 : vector<8x256xf32> to vector<8x256xbf16>
    %cst_164 = arith.constant dense<0.000000e+00> : vector<8x256xf32>
    %710 = tpu.matmul %708, %709, %cst_164 {dimension_numbers = #tpu.dot_dimension_numbers<[1], [0], [0], [1], [0, 0, 1, 1], [], []>} : vector<8x8xbf16>, vector<8x256xbf16>, vector<8x256xf32> -> vector<8x256xf32>
    %711 = arith.addf %706, %710 : vector<8x256xf32>
    %712 = vector.extract_strided_slice %694 {offsets = [0, 16], sizes = [8, 256], strides = [1, 1]} : vector<8x290xf32> to vector<8x256xf32>
    %713 = vector.extract_strided_slice %695 {offsets = [24, 0], sizes = [8, 8], strides = [1, 1]} : vector<72x8xbf16> to vector<8x8xbf16>
    %714 = arith.truncf %712 : vector<8x256xf32> to vector<8x256xbf16>
    %cst_165 = arith.constant dense<0.000000e+00> : vector<8x256xf32>
    %715 = tpu.matmul %713, %714, %cst_165 {dimension_numbers = #tpu.dot_dimension_numbers<[1], [0], [0], [1], [0, 0, 1, 1], [], []>} : vector<8x8xbf16>, vector<8x256xbf16>, vector<8x256xf32> -> vector<8x256xf32>
    %716 = arith.addf %711, %715 : vector<8x256xf32>
    %717 = vector.extract_strided_slice %688 {offsets = [0, 17], sizes = [8, 256], strides = [1, 1]} : vector<8x290xf32> to vector<8x256xf32>
    %718 = vector.extract_strided_slice %695 {offsets = [32, 0], sizes = [8, 8], strides = [1, 1]} : vector<72x8xbf16> to vector<8x8xbf16>
    %719 = arith.truncf %717 : vector<8x256xf32> to vector<8x256xbf16>
    %cst_166 = arith.constant dense<0.000000e+00> : vector<8x256xf32>
    %720 = tpu.matmul %718, %719, %cst_166 {dimension_numbers = #tpu.dot_dimension_numbers<[1], [0], [0], [1], [0, 0, 1, 1], [], []>} : vector<8x8xbf16>, vector<8x256xbf16>, vector<8x256xf32> -> vector<8x256xf32>
    %721 = arith.addf %716, %720 : vector<8x256xf32>
    %722 = vector.extract_strided_slice %691 {offsets = [0, 18], sizes = [8, 256], strides = [1, 1]} : vector<8x290xf32> to vector<8x256xf32>
    %723 = vector.extract_strided_slice %695 {offsets = [40, 0], sizes = [8, 8], strides = [1, 1]} : vector<72x8xbf16> to vector<8x8xbf16>
    %724 = arith.truncf %722 : vector<8x256xf32> to vector<8x256xbf16>
    %cst_167 = arith.constant dense<0.000000e+00> : vector<8x256xf32>
    %725 = tpu.matmul %723, %724, %cst_167 {dimension_numbers = #tpu.dot_dimension_numbers<[1], [0], [0], [1], [0, 0, 1, 1], [], []>} : vector<8x8xbf16>, vector<8x256xbf16>, vector<8x256xf32> -> vector<8x256xf32>
    %726 = arith.addf %721, %725 : vector<8x256xf32>
    %727 = vector.extract_strided_slice %694 {offsets = [0, 32], sizes = [8, 256], strides = [1, 1]} : vector<8x290xf32> to vector<8x256xf32>
    %728 = vector.extract_strided_slice %695 {offsets = [48, 0], sizes = [8, 8], strides = [1, 1]} : vector<72x8xbf16> to vector<8x8xbf16>
    %729 = arith.truncf %727 : vector<8x256xf32> to vector<8x256xbf16>
    %cst_168 = arith.constant dense<0.000000e+00> : vector<8x256xf32>
    %730 = tpu.matmul %728, %729, %cst_168 {dimension_numbers = #tpu.dot_dimension_numbers<[1], [0], [0], [1], [0, 0, 1, 1], [], []>} : vector<8x8xbf16>, vector<8x256xbf16>, vector<8x256xf32> -> vector<8x256xf32>
    %731 = arith.addf %726, %730 : vector<8x256xf32>
    %732 = vector.extract_strided_slice %688 {offsets = [0, 33], sizes = [8, 256], strides = [1, 1]} : vector<8x290xf32> to vector<8x256xf32>
    %733 = vector.extract_strided_slice %695 {offsets = [56, 0], sizes = [8, 8], strides = [1, 1]} : vector<72x8xbf16> to vector<8x8xbf16>
    %734 = arith.truncf %732 : vector<8x256xf32> to vector<8x256xbf16>
    %cst_169 = arith.constant dense<0.000000e+00> : vector<8x256xf32>
    %735 = tpu.matmul %733, %734, %cst_169 {dimension_numbers = #tpu.dot_dimension_numbers<[1], [0], [0], [1], [0, 0, 1, 1], [], []>} : vector<8x8xbf16>, vector<8x256xbf16>, vector<8x256xf32> -> vector<8x256xf32>
    %736 = arith.addf %731, %735 : vector<8x256xf32>
    %737 = vector.extract_strided_slice %691 {offsets = [0, 34], sizes = [8, 256], strides = [1, 1]} : vector<8x290xf32> to vector<8x256xf32>
    %738 = vector.extract_strided_slice %695 {offsets = [64, 0], sizes = [8, 8], strides = [1, 1]} : vector<72x8xbf16> to vector<8x8xbf16>
    %739 = arith.truncf %737 : vector<8x256xf32> to vector<8x256xbf16>
    %cst_170 = arith.constant dense<0.000000e+00> : vector<8x256xf32>
    %740 = tpu.matmul %738, %739, %cst_170 {dimension_numbers = #tpu.dot_dimension_numbers<[1], [0], [0], [1], [0, 0, 1, 1], [], []>} : vector<8x8xbf16>, vector<8x256xbf16>, vector<8x256xf32> -> vector<8x256xf32>
    %741 = arith.addf %736, %740 : vector<8x256xf32>
    %c200 = arith.constant 200 : index
    %c0_171 = arith.constant 0 : index
    %742 = vector.load %arg3[%c200, %c0_171] : memref<216x1xf32, #tpu.memory_space<vmem>>, vector<8x1xf32>
    %743 = vector.broadcast %742 : vector<8x1xf32> to vector<8x256xf32>
    %744 = arith.addf %741, %743 : vector<8x256xf32>
    %cst_172 = arith.constant 0.000000e+00 : f32
    %745 = vector.broadcast %cst_172 : f32 to vector<8x256xf32>
    %746 = arith.maximumf %744, %745 : vector<8x256xf32>
    %c2304 = arith.constant 2304 : index
    %c0_173 = arith.constant 0 : index
    %747 = vector.load %arg2[%c2304, %c0_173] : memref<2320x256xbf16, #tpu.memory_space<vmem>>, vector<2x8xbf16>
    %c208 = arith.constant 208 : index
    %c0_174 = arith.constant 0 : index
    %748 = vector.load %arg3[%c208, %c0_174] : memref<216x1xf32, #tpu.memory_space<vmem>>, vector<2x1xf32>
    %749 = arith.truncf %746 : vector<8x256xf32> to vector<8x256xbf16>
    %cst_175 = arith.constant dense<0.000000e+00> : vector<2x256xf32>
    %750 = tpu.matmul %747, %749, %cst_175 {dimension_numbers = #tpu.dot_dimension_numbers<[1], [0], [0], [1], [0, 0, 1, 1], [], []>} : vector<2x8xbf16>, vector<8x256xbf16>, vector<2x256xf32> -> vector<2x256xf32>
    %751 = vector.broadcast %748 : vector<2x1xf32> to vector<2x256xf32>
    %752 = arith.addf %750, %751 : vector<2x256xf32>
    %c0_176 = arith.constant 0 : index
    %c0_177 = arith.constant 0 : index
    %c0_178 = arith.constant 0 : index
    %753 = vector.load %arg4[%c0_176, %c0_177, %c0_178] : memref<1x2x256xf32, #tpu.memory_space<vmem>>, vector<1x2x256xf32>
    %754 = vector.shape_cast %753 : vector<1x2x256xf32> to vector<2x256xf32>
    %755 = vector.shape_cast %752 : vector<2x256xf32> to vector<1x2x256xf32>
    tpu.vector_store %arg4[%c0_176, %c0_177, %c0_178], %755 {strides = array<i32>} : memref<1x2x256xf32, #tpu.memory_space<vmem>>, vector<1x2x256xf32>,
    return
  }
  func.func @transform_0(%arg0: i32) -> (i32, i32, i32) {
    %c0_i32 = arith.constant 0 : i32
    %c0_i32_0 = arith.constant 0 : i32
    %c0_i32_1 = arith.constant 0 : i32
    return %arg0, %c0_i32, %c0_i32_0 : i32, i32, i32
  }
  func.func @transform_1(%arg0: i32) -> (i32, i32) {
    %c0_i32 = arith.constant 0 : i32
    %c0_i32_0 = arith.constant 0 : i32
    %c0_i32_1 = arith.constant 0 : i32
    return %c0_i32, %c0_i32_0 : i32, i32
  }
  func.func @transform_2(%arg0: i32) -> (i32, i32) {
    %c0_i32 = arith.constant 0 : i32
    %c0_i32_0 = arith.constant 0 : i32
    %c0_i32_1 = arith.constant 0 : i32
    return %c0_i32, %c0_i32_0 : i32, i32
  }
  func.func @transform_3(%arg0: i32) -> (i32, i32, i32) {
    %c0_i32 = arith.constant 0 : i32
    %c0_i32_0 = arith.constant 0 : i32
    %c0_i32_1 = arith.constant 0 : i32
    return %arg0, %c0_i32, %c0_i32_0 : i32, i32, i32
  }
}

</mosaic_0001>

<bundles_post_ra>
// kernel: forward.1
= control target key start
LH: loop header
LB: loop body
LE: loop exit
PB: predicated region body
PF: predicated region fallthrough
CT: control target
= control target key end

     0   :  { %8 = vsyncpa [#allocation3], 0  ;;  %s9477_s12 = smov 0   ;;  %s10726_s0 = inlined_call_operand.vmem [shape: f32[2,1,256], index: 0, kind: input, shape index: {}]   ;;  %s10727_s1 = inlined_call_operand.hbm [shape: bf16[2320,256], index: 1, kind: input, shape index: {}]   ;;  %s10728_s2 = inlined_call_operand.vmem [shape: f32[216,1], index: 2, kind: input, shape index: {}]   ;;  %s10729_s3 = inlined_call_operand.vmem [shape: f32[2,2,256], index: 3, kind: output, shape index: {}]  }
   0x1 LB: > { %s9483_s13 = sadd.s32 4294967295, %s9431_s12   ;;  %p7972_p0 = scmp.ge.s32.totalorder %s9431_s12, 1  ;;  %s9431_s12 = sphi %s9477_s12, %s14_s12  }
   0x2   : > { %p113_p1 = scmp.lt.s32.totalorder %s9431_s12, 3  ;;  %s9433_s14 = smov [#allocation2]  }
   0x3   : > { %s125_s15 = sshll.u32 %s9433_s14, 4  ;;  %p8973_p3 = scmp.eq.s32.totalorder %s9483_s13, 0  ;;  %s126_s15 = int_to_ptr.vmem [resolvable:$true] %s125_s15 }
   0x4   : > { %p9487_p2 = pnand %p7972_p0, %p113_p1  ;;  %s9406_s17 = scalar_lea.vmem %s126_s15, 37120 }
   0x5   : > { %p9407_p7 = scmp.ne.s32.totalorder %s126_s15, %s9406_s17  ;;  %p9414_p10 = scmp.lt.s32.totalorder %s126_s15, %s126_s15 }
   0x6   : > { %p8969_p4 = pneg %p9487_p2  ;;  %p9415_p11 = scmp.lt.s32.totalorder %s9406_s17, %s9406_s17 }
   0x8   : > { %p8970_p5 = pnand %p8973_p3, %p8969_p4  ;;  %p9416_p12 = por %p9415_p11, %p9414_p10 }
   0xa   : > { %p9397_p6 = pneg %p8970_p5 }
   0xc   : > { %p9409_p8 = pnand %p9407_p7, %p9397_p6 }
   0xe   : > { %p9410_p9 = pneg %p9409_p8 }
  0x10   : > { %p9417_p13 = pnand %p9416_p12, %p9410_p9 }
  0x12   : > { %9420 = shalt.err (!%p9417_p13)
}
  0x13   : > { %s9434_s18 = smov 128   ;;  %s9435_s19 = smov 8  }
  0x14   : > { %8972 = dma.hbm_to_vmem [thread:$0]  (!%p8970_p5), %s10727_s1, 37120, %s126_s15, [#allocation3], %s9434_s18, %s9434_s18, %s9435_s19  }
  0x15   : > { %151 = sbr.rel (%p9487_p2) target bundleno = 6716 (0x1a3c), region = 32 }
  0x1a   : > { %9426 = dma.done.wait (%p8973_p3), [#allocation3], 37120  }
  0x1b   : > { %9428 = vsyncadd (%p8973_p3), [#allocation3], 4294930176  ;;  %p174_p0 = scmp.lt.s32.totalorder %s9483_s13, 1  ;;  %v185_v0 = vlaneseq  ;;  %v9436_v1 = vmov 0   ;;  %v9437_v4 = vmov 1966171168  }
  0x1c   : > { %9012 = vset.pattern.permute.xlu1 %v9436_v1  ;;  %9018 = vset.pattern.permute.xlu0 %v9436_v1  ;;  %v226_v5 = vunpack.c.l.s4 %v9437_v4  ;;  %v299_v12 = vld [vmem:[#allocation2 + $0x8] ss:$16 sps:$4 sm:$0xff]   ;;  %v9438_v19 = vmov 0.0   ;;  %s9439_s26 = smov 17   ;;  %v302_v33 = vld [vmem:[#allocation2 + $0x10] ss:$16 sps:$4 sm:$0xff]  }
  0x1d   : > { %s10775_s13 = smov (!%p174_p0, %s9483_s13), 1  ;;  %v9511_v2 = vand.u32 127, %v185_v0  ;;  %v204_v3 = vshrl.u32 %v185_v0, 7  ;;  %690 = vmatprep.mubr.bf16.mxu0 %v9436_v1  ;;  %740 = vmatprep.mubr.bf16.mxu1 %v9436_v1  ;;  %v329_v14 = vunpack.c.l.bf16 %v299_v12  ;;  %v415_v18 = vunpack.c.h.bf16 %v299_v12  ;;  %v304_v40 = vld [vmem:[#allocation2 + $0x28] ss:$8 sps:$4 sm:$0xff]   ;;  %v571_v50 = vld [vmem:[%s10728_s2] sm:$0xff] }
  0x1e   : > { %s7977_s22 = sshll.u32 %s10775_s13, 1  ;;  %v227_v10 = vunpack.c.0.s8 %v226_v5  ;;  %v446_v41 = vunpack.c.h.bf16 %v302_v33  ;;  %v372_v42 = vunpack.c.l.bf16 %v302_v33  ;;  %v306_v43 = vld [vmem:[#allocation2 + $0x38] ss:$8 sps:$4 sm:$0xff]   ;;  %v496_v44 = vunpack.c.h.bf16 %v304_v40  ;;  %s9440_s29 = smov 127  }
  0x1f   : > { %v187_v6 = vadd.s32 128, %v9511_v2  ;;  %v188_v7 = vand.u32 15, %v9511_v2  ;;  %v9518_v8 = vsub.s32 0, %v204_v3  ;;  %v209_v9 = vsub.s32 1, %v204_v3  ;;  %s177_s25 = scalar_lea.vmem %s10726_s0, %s7977_s22  ;;  %338 = vperm.xlu1 %9012, %v329_v14   ;;  %v298_v47 = vld [vmem:[#allocation2] sm:$0xf] }
  0x20   : > { %v184_v13 = vld [vmem:[%s177_s25] sm:$0x3]  ;;  %v230_v17 = vsub.s32 %v227_v10, %v204_v3  ;;  %v471_v45 = vunpack.c.l.bf16 %v304_v40  ;;  %v546_v46 = vunpack.c.h.bf16 %v306_v43  ;;  %v521_v48 = vunpack.c.l.bf16 %v306_v43  ;;  %s9441_s30 = smov 111   ;;  %s9442_s4 = smov 95  }
  0x21   : > { %v189_v11 = vand.u32 15, %v187_v6  ;;  %vm196_vm0 = vcmp.ne.s32.totalorder %v188_v7, 15  ;;  %vm190_vm1 = vcmp.ne.s32.totalorder %v188_v7, 0  ;;  %v206_v15 = vrot.slane %v184_v13, %v9518_v8  ;;  %s9443_s5 = smov 126   ;;  %s9444_s6 = smov 112  }
  0x22   : > { %v210_v16 = vrot.slane %v184_v13, %v209_v9  ;;  %v9525_v20 = vsel %vm196_vm0, 1.0, %v9438_v19  ;;  %v9531_v23 = vsel %vm190_vm1, 1.0, %v9438_v19  ;;  %v307_v49 = vunpack.c.l.bf16 %v298_v47  ;;  %s9445_s7 = smov 110   ;;  %s9446_s8 = smov 96  }
  0x23   : > { %vm197_vm2 = vcmp.ne.s32.totalorder %v189_v11, 15  ;;  %vm191_vm3 = vcmp.ne.s32.totalorder %v189_v11, 0  ;;  %420 = vperm.xlu1 %9012, %v415_v18   ;;  %vm215_vm4 = vcmask 138240   ;;  %s9447_s9 = smov 94   ;;  %vm365_vm5 = vcmask 1039360   ;;  %s9448_s14 = smov 9  }
  0x24   : > { %v9007_v21 = vpack.i.bf16 %v210_v16, %v206_v15  ;;  %v9528_v22 = vsel %vm197_vm2, 1.0, %v9438_v19  ;;  %v9536_v25 = vsel %vm191_vm3, 1.0, %v9438_v19  ;;  %vm408_vm6 = vcmask 1031168   ;;  %s9450_s15 = smov 120   ;;  %s9451_s16 = smov 119  }
  0x25   : > { %v262_v24 = vcombine.low %v9525_v20, %v9528_v22  ;;  %v224_v26 = vcombine.low %v9531_v23, %v9536_v25  ;;  %vm439_vm7 = vcmask 916480   ;;  %vm464_vm8 = vcmask 908288   ;;  %s9452_s17 = smov 118   ;;  %s9453_s27 = smov 5  }
  0x26   : > { %9008 = vrot.lane.b32.xlu0 %v9007_v21, %s9439_s26  ;;  %vm10734_vm9 = vcmask 900096   ;;  %vm10733_vm10 = vcmask 785408   ;;  %vm10732_vm11 = vcmask 777216   ;;  %vm10731_vm12 = vcmask 769024   ;;  %s9454_s28 = smov 124   ;;  %s9455_s10 = smov 123  }
  0x27   : > { %v269_v27 = vrot.slane %v262_v24, %v230_v17  ;;  %v231_v28 = vrot.slane %v224_v26, %v230_v17  ;;  %vm651_vm13 = vcmask 1043456   ;;  %vm10730_vm14 = vcmask 64512   ;;  %s9456_s11 = smov 122  }
  0x28   : > { %vm9449_vm1 = vmmov 0   ;;  %vm1401_vm2 = vcmask 72704   ;;  %vm1403_vm3 = vcmask 596992  }
  0x29   : > { %v276_v29 = vrot.slane %v269_v27, %v230_v17  ;;  %v238_v30 = vrot.slane %v231_v28, %v230_v17 }
  0x2b   : > { %v278_v31 = vmul.f32 %v276_v29, %v184_v13  ;;  %v240_v32 = vmul.f32 %v238_v30, %v184_v13 }
  0x2d   : > { %v283_v34 = vrot.slane %v278_v31, %v9518_v8  ;;  %v287_v35 = vrot.slane %v278_v31, %v209_v9  ;;  %v245_v36 = vrot.slane %v240_v32, %v9518_v8  ;;  %v249_v37 = vrot.slane %v240_v32, %v209_v9 }
  0x2f   : > { %v9019_v38 = vpack.i.bf16 %v287_v35, %v283_v34  ;;  %v9013_v39 = vpack.i.bf16 %v249_v37, %v245_v36 }
  0x31   : > { %9020 = vrot.lane.b32.xlu1 %v9019_v38, %s9439_s26  ;;  %9014 = vrot.lane.b32.xlu0 %v9013_v39, %s9439_s26 }
  0x35   : > { %449 = vperm.xlu1 %9012, %v446_v41   ;;  %381 = vperm.xlu0 %9018, %v372_v42  }
  0x39   : > { %499 = vperm.xlu1 %9012, %v496_v44   ;;  %474 = vperm.xlu0 %9018, %v471_v45  }
  0x3d   : > { %549 = vperm.xlu1 %9012, %v546_v46   ;;  %524 = vperm.xlu0 %9018, %v521_v48  }
  0x41   : > { %314 = vperm.xlu0 %9018, %v307_v49  }
  0x45   : > { %574 = vperm.xlu0 %9018, %v571_v50  }
  0x98   : > { %v9009_v51 = vpop.permute.xlu0 %9008 }
  0x99   : > { %v9011_v52 = vunpack.i.h.bf16 %v9009_v51  ;;  %v9010_v53 = vunpack.i.l.bf16 %v9009_v51 }
  0x9a   : > { %v339_v3 = vpop.permute.xlu1 %338 }
  0x9b   : > { %v221_v54 = vsel %vm215_vm4, %v9011_v52, 0.0  ;;  %v216_v55 = vsel %vm215_vm4, %v9010_v53, %v9011_v52  ;;  %v220_v56 = vsel %vm215_vm4, 0.0, %v9010_v53 }
  0x9c   : > { %v332_v57 = vpack.c.bf16 %v221_v54, %v221_v54  ;;  %v330_v58 = vpack.c.bf16 %v220_v56, %v220_v56  ;;  %v331_v59 = vpack.c.bf16 %v216_v55, %v216_v55 }
  0x9e   : > { %v335_v60 = vunpack.c.l.bf16 %v332_v57  ;;  %v333_v61 = vunpack.c.l.bf16 %v330_v58  ;;  %v334_v62 = vunpack.c.l.bf16 %v331_v59  ;;  %v421_v9 = vpop.permute.xlu1 %420 }
  0xa0   : > { %v352_v63 = vrot.slane %v335_v60, %v9518_v8  ;;  %v344_v0 = vrot.slane %v333_v61, %v9518_v8  ;;  %v348_v4 = vrot.slane %v334_v62, %v9518_v8 }
  0xa2   : > { %v353_v5 = vmul.f32 %v344_v0, %v339_v3  ;;  %v354_v6 = vmul.f32 %v348_v4, %v339_v3  ;;  %v355_v7 = vmul.f32 %v352_v63, %v339_v3 }
  0xa3   : > { %v9015_v10 = vpop.permute.xlu0 %9014  ;;  %v9021_v11 = vpop.permute.xlu1 %9020 }
  0xa4   : > { %359 = vrot.lane.b32.xlu1 %v353_v5, %s9440_s29  ;;  %361 = vrot.lane.b32.xlu0 %v354_v6, %s9440_s29  ;;  %v9016_v12 = vunpack.i.l.bf16 %v9015_v10  ;;  %v9017_v14 = vunpack.i.h.bf16 %v9015_v10  ;;  %v9023_v21 = vunpack.i.h.bf16 %v9021_v11  ;;  %v9022_v24 = vunpack.i.l.bf16 %v9021_v11 }
  0xa6   : > { %v258_v15 = vsel %vm215_vm4, 0.0, %v9016_v12  ;;  %v259_v27 = vsel %vm215_vm4, %v9017_v14, 0.0  ;;  %v254_v28 = vsel %vm215_vm4, %v9016_v12, %v9017_v14  ;;  %v292_v31 = vsel %vm215_vm4, %v9022_v24, %v9023_v21 }
  0xa7   : > { %v373_v26 = vpack.c.bf16 %v258_v15, %v258_v15  ;;  %v296_v32 = vsel %vm215_vm4, 0.0, %v9022_v24  ;;  %v375_v33 = vpack.c.bf16 %v259_v27, %v259_v27  ;;  %v374_v34 = vpack.c.bf16 %v254_v28, %v254_v28 }
  0xa8   : > { %363 = vrot.lane.b32.xlu1 %v355_v7, %s9440_s29  ;;  %v297_v36 = vsel %vm215_vm4, %v9023_v21, 0.0  ;;  %v308_v38 = vpack.c.bf16 %v296_v32, %v296_v32  ;;  %v309_v39 = vpack.c.bf16 %v292_v31, %v292_v31 }
  0xa9   : > { %v376_v35 = vunpack.c.l.bf16 %v373_v26  ;;  %v378_v42 = vunpack.c.l.bf16 %v375_v33  ;;  %v377_v43 = vunpack.c.l.bf16 %v374_v34  ;;  %v416_v45 = vpack.c.bf16 %v297_v36, %v297_v36 }
  0xaa   : > { %v310_v46 = vunpack.c.l.bf16 %v308_v38  ;;  %v311_v47 = vunpack.c.l.bf16 %v309_v39 }
  0xab   : > { %v387_v44 = vrot.slane %v376_v35, %v9518_v8  ;;  %v395_v50 = vrot.slane %v378_v42, %v9518_v8  ;;  %v391_v51 = vrot.slane %v377_v43, %v9518_v8  ;;  %v417_v52 = vunpack.c.l.bf16 %v416_v45 }
  0xac   : > { %v320_v53 = vrot.slane %v310_v46, %v9518_v8  ;;  %v324_v54 = vrot.slane %v311_v47, %v9518_v8 }
  0xad   : > { %v426_v59 = vrot.slane %v417_v52, %v9518_v8 }
  0xae   : > { %v427_v57 = vmul.f32 %v421_v9, %v320_v53  ;;  %v428_v58 = vmul.f32 %v421_v9, %v324_v54 }
  0xaf   : > { %v429_v60 = vmul.f32 %v426_v59, %v421_v9 }
  0xb0   : > { %v450_v13 = vpop.permute.xlu1 %449  ;;  %v382_v16 = vpop.permute.xlu0 %381 }
  0xb1   : > { %v453_v17 = vmul.f32 %v450_v13, %v348_v4  ;;  %v452_v18 = vmul.f32 %v450_v13, %v344_v0  ;;  %v454_v30 = vmul.f32 %v450_v13, %v352_v63  ;;  %v396_v49 = vmul.f32 %v387_v44, %v382_v16 }
  0xb2   : > { %v397_v55 = vmul.f32 %v391_v51, %v382_v16  ;;  %v398_v56 = vmul.f32 %v395_v50, %v382_v16 }
  0xb3   : > { %460 = vrot.lane.b32.xlu1 %v453_v17, %s9441_s30  ;;  %458 = vrot.lane.b32.xlu0 %v452_v18, %s9441_s30 }
  0xb4   : > { %v475_v29 = vpop.permute.xlu0 %474  ;;  %v500_v62 = vpop.permute.xlu1 %499 }
  0xb5   : > { %v478_v61 = vmul.f32 %v475_v29, %v391_v51  ;;  %v479_v8 = vmul.f32 %v475_v29, %v395_v50  ;;  %v504_v3 = vmul.f32 %v500_v62, %v426_v59  ;;  %v503_v5 = vmul.f32 %v500_v62, %v324_v54 }
  0xb7   : > { %462 = vrot.lane.b32.xlu0 %v454_v30, %s9441_s30 }
  0xb8   : > { %v525_v37 = vpop.permute.xlu0 %524 }
  0xb9   : > { %v527_v40 = vmul.f32 %v525_v37, %v344_v0  ;;  %v528_v41 = vmul.f32 %v525_v37, %v348_v4  ;;  %v529_v48 = vmul.f32 %v525_v37, %v352_v63  ;;  %v477_v63 = vmul.f32 %v475_v29, %v387_v44  ;;  %v550_v4 = vpop.permute.xlu1 %549 }
  0xba   : > { %v502_v0 = vmul.f32 %v500_v62, %v320_v53  ;;  %v553_v6 = vmul.f32 %v550_v4, %v391_v51  ;;  %v552_v7 = vmul.f32 %v550_v4, %v387_v44  ;;  %v554_v9 = vmul.f32 %v550_v4, %v395_v50 }
  0xbb   : > { %533 = vrot.lane.b32.xlu1 %v527_v40, %s9442_s4  ;;  %535 = vrot.lane.b32.xlu0 %v528_v41, %s9442_s4 }
  0xbc   : > { %v315_v10 = vpop.permute.xlu0 %314 }
  0xbd   : > { %v325_v32 = vmul.f32 %v320_v53, %v315_v10  ;;  %v326_v37 = vmul.f32 %v324_v54, %v315_v10 }
  0xbf   : > { %537 = vrot.lane.b32.xlu1 %v529_v48, %s9442_s4  ;;  %402 = vrot.lane.b32.xlu0 %v396_v49, %s9443_s5 }
  0xc0   : > { %v9590_v11 = vpop.permute.xlu0 %574 }
  0xc3   : > { %404 = vrot.lane.b32.xlu1 %v397_v55, %s9443_s5  ;;  %406 = vrot.lane.b32.xlu0 %v398_v56, %s9443_s5 }
  0xc7   : > { %433 = vrot.lane.b32.xlu1 %v427_v57, %s9444_s6  ;;  %435 = vrot.lane.b32.xlu0 %v428_v58, %s9444_s6 }
  0xcb   : > { %437 = vrot.lane.b32.xlu1 %v429_v60, %s9444_s6  ;;  %485 = vrot.lane.b32.xlu0 %v478_v61, %s9445_s7 }
  0xcf   : > { %483 = vrot.lane.b32.xlu1 %v477_v63, %s9445_s7  ;;  %508 = vrot.lane.b32.xlu0 %v502_v0, %s9446_s8 }
  0xd3   : > { %487 = vrot.lane.b32.xlu1 %v479_v8, %s9445_s7  ;;  %512 = vrot.lane.b32.xlu0 %v504_v3, %s9446_s8 }
  0xd7   : > { %510 = vrot.lane.b32.xlu1 %v503_v5, %s9446_s8  ;;  %560 = vrot.lane.b32.xlu0 %v553_v6, %s9447_s9 }
  0xdb   : > { %558 = vrot.lane.b32.xlu1 %v552_v7, %s9447_s9 }
  0xdf   : > { %562 = vrot.lane.b32.xlu1 %v554_v9, %s9447_s9 }
 0x116   : > { %v360_v12 = vpop.permute.xlu1 %359  ;;  %v362_v13 = vpop.permute.xlu0 %361 }
 0x117   : > { %v366_v31 = vsel %vm365_vm5, %v360_v12, %v362_v13 }
 0x118   : > { %v370_v38 = vadd.f32 %v366_v31, %v325_v32 }
 0x11a   : > { %v364_v15 = vpop.permute.xlu1 %363 }
 0x11b   : > { %v367_v35 = vsel %vm365_vm5, %v362_v13, %v364_v15 }
 0x11c   : > { %v371_v41 = vadd.f32 %v367_v35, %v326_v37 }
 0x125   : > { %v459_v14 = vpop.permute.xlu0 %458  ;;  %v461_v17 = vpop.permute.xlu1 %460 }
 0x126   : > { %v465_v50 = vsel %vm464_vm8, %v459_v14, %v461_v17 }
 0x129   : > { %v463_v16 = vpop.permute.xlu0 %462 }
 0x12a   : > { %v466_v54 = vsel %vm464_vm8, %v461_v17, %v463_v16 }
 0x12d   : > { %v534_v18 = vpop.permute.xlu1 %533  ;;  %v536_v21 = vpop.permute.xlu0 %535 }
 0x12e   : > { %v540_v63 = vsel %vm10732_vm11, %v534_v18, %v536_v21 }
 0x131   : > { %v538_v24 = vpop.permute.xlu1 %537  ;;  %v403_v26 = vpop.permute.xlu0 %402 }
 0x132   : > { %v541_v7 = vsel %vm10732_vm11, %v536_v21, %v538_v24 }
 0x135   : > { %v405_v27 = vpop.permute.xlu1 %404  ;;  %v407_v28 = vpop.permute.xlu0 %406 }
 0x136   : > { %v409_v36 = vsel %vm408_vm6, %v403_v26, %v405_v27  ;;  %v410_v39 = vsel %vm408_vm6, %v405_v27, %v407_v28 }
 0x137   : > { %v413_v42 = vadd.f32 %v409_v36, %v370_v38  ;;  %v414_v46 = vadd.f32 %v410_v39, %v371_v41 }
 0x139   : > { %v434_v29 = vpop.permute.xlu1 %433  ;;  %v436_v30 = vpop.permute.xlu0 %435 }
 0x13a   : > { %v440_v40 = vsel %vm439_vm7, %v434_v29, %v436_v30 }
 0x13b   : > { %v444_v47 = vadd.f32 %v440_v40, %v413_v42 }
 0x13d   : > { %v438_v33 = vpop.permute.xlu1 %437  ;;  %v486_v34 = vpop.permute.xlu0 %485  ;;  %v469_v52 = vadd.f32 %v465_v50, %v444_v47  ;;  %v621_v47 = vld [vmem:[#allocation2 + $0x50] sm:$0xf] }
 0x13e   : > { %v441_v45 = vsel %vm439_vm7, %v436_v30, %v438_v33 }
 0x13f   : > { %v445_v48 = vadd.f32 %v441_v45, %v414_v46 }
 0x141   : > { %v484_v43 = vpop.permute.xlu1 %483  ;;  %v509_v44 = vpop.permute.xlu0 %508  ;;  %v470_v57 = vadd.f32 %v466_v54, %v445_v48 }
 0x142   : > { %v490_v51 = vsel %vm10734_vm9, %v484_v43, %v486_v34 }
 0x143   : > { %v494_v56 = vadd.f32 %v490_v51, %v469_v52 }
 0x145   : > { %v488_v49 = vpop.permute.xlu1 %487  ;;  %v513_v53 = vpop.permute.xlu0 %512 }
 0x146   : > { %v491_v55 = vsel %vm10734_vm9, %v486_v34, %v488_v49 }
 0x147   : > { %v495_v61 = vadd.f32 %v491_v55, %v470_v57 }
 0x149   : > { %v511_v58 = vpop.permute.xlu1 %510  ;;  %v561_v8 = vpop.permute.xlu0 %560 }
 0x14a   : > { %v515_v59 = vsel %vm10733_vm10, %v509_v44, %v511_v58  ;;  %v516_v60 = vsel %vm10733_vm10, %v511_v58, %v513_v53  ;;  %v1186_v58 = vld [vmem:[%s10728_s2 + $0x8] sm:$0xff] }
 0x14b   : > { %v519_v62 = vadd.f32 %v515_v59, %v494_v56  ;;  %v520_v0 = vadd.f32 %v516_v60, %v495_v61 }
 0x14d   : > { %v559_v3 = vpop.permute.xlu1 %558  ;;  %v544_v4 = vadd.f32 %v540_v63, %v519_v62  ;;  %v545_v12 = vadd.f32 %v541_v7, %v520_v0 }
 0x14e   : > { %v565_v5 = vsel %vm10731_vm12, %v559_v3, %v561_v8 }
 0x14f   : > { %v569_v6 = vadd.f32 %v565_v5, %v544_v4  ;;  %v622_v4 = vld [vmem:[#allocation2 + $0x58] sm:$0xf] }
 0x151   : > { %v577_v9 = vadd.f32 %v9590_v11, %v569_v6  ;;  %v563_v10 = vpop.permute.xlu1 %562 }
 0x152   : > { %v566_v13 = vsel %vm10731_vm12, %v561_v8, %v563_v10 }
 0x153   : > { %v570_v14 = vadd.f32 %v566_v13, %v545_v12  ;;  %v579_v15 = vmax.f32 %v577_v9, 0.0 }
 0x155   : > { %v578_v16 = vadd.f32 %v9590_v11, %v570_v14  ;;  %v593_v18 = vmul.f32 %v9531_v23, %v579_v15  ;;  %v607_v28 = vmul.f32 %v9525_v20, %v579_v15 }
 0x157   : > { %v580_v17 = vmax.f32 %v578_v16, 0.0 }
 0x159   : > { %v9024_v26 = vpack.i.bf16 %v580_v17, %v579_v15  ;;  %v594_v27 = vmul.f32 %v9536_v25, %v580_v17  ;;  %v608_v21 = vmul.f32 %v9528_v22, %v580_v17 }
 0x15b   : > { %9025 = vrot.lane.b32.xlu0 %v9024_v26, %s9439_s26  ;;  %v9029_v24 = vpack.i.bf16 %v594_v27, %v593_v18  ;;  %v9034_v29 = vpack.i.bf16 %v608_v21, %v607_v28  ;;  %v623_v26 = vld [vmem:[#allocation2 + $0x60] sm:$0xf] }
 0x15d   : > { %9030 = vrot.lane.b32.xlu1 %v9029_v24, %s9439_s26 }
 0x15f   : > { %9035 = vrot.lane.b32.xlu0 %v9034_v29, %s9439_s26 }
 0x1cd   : > { %v9026_v30 = vpop.permute.xlu0 %9025 }
 0x1ce   : > { %v9028_v11 = vunpack.i.h.bf16 %v9026_v30  ;;  %v9027_v31 = vunpack.i.l.bf16 %v9026_v30 }
 0x1cf   : > { %v9031_v45 = vpop.permute.xlu1 %9030 }
 0x1d0   : > { %v587_v32 = vsel %vm215_vm4, %v9027_v31, %v9028_v11  ;;  %v591_v33 = vsel %vm215_vm4, 0.0, %v9027_v31  ;;  %v592_v39 = vsel %vm215_vm4, %v9028_v11, 0.0  ;;  %v9032_v48 = vunpack.i.l.bf16 %v9031_v45  ;;  %v624_v31 = vld [vmem:[#allocation2 + $0x68] sm:$0xf] }
 0x1d1   : > { %v9036_v34 = vpop.permute.xlu0 %9035  ;;  %v633_v35 = vpack.c.bf16 %v587_v32, %v587_v32  ;;  %v632_v36 = vpack.c.bf16 %v591_v33, %v591_v33  ;;  %v634_v44 = vpack.c.bf16 %v592_v39, %v592_v39  ;;  %v9033_v49 = vunpack.i.h.bf16 %v9031_v45  ;;  %v625_v33 = vld [vmem:[#allocation2 + $0x70] sm:$0xf] }
 0x1d2   : > { %v9038_v37 = vunpack.i.h.bf16 %v9036_v34  ;;  %v9037_v38 = vunpack.i.l.bf16 %v9036_v34  ;;  %v605_v50 = vsel %vm215_vm4, 0.0, %v9032_v48 }
 0x1d3   : > { %640 = vrot.lane.b32.xlu0 %v633_v35, %s9440_s29  ;;  %638 = vrot.lane.b32.xlu1 %v632_v36, %s9440_s29  ;;  %v601_v51 = vsel %vm215_vm4, %v9032_v48, %v9033_v49  ;;  %v749_v52 = vpack.c.bf16 %v605_v50, %v605_v50  ;;  %v606_v54 = vsel %vm215_vm4, %v9033_v49, 0.0 }
 0x1d4   : > { %v615_v40 = vsel %vm215_vm4, %v9037_v38, %v9038_v37  ;;  %v619_v41 = vsel %vm215_vm4, 0.0, %v9037_v38  ;;  %v750_v53 = vpack.c.bf16 %v601_v51, %v601_v51  ;;  %v751_v55 = vpack.c.bf16 %v606_v54, %v606_v54 }
 0x1d5   : > { %v631_v42 = vpack.c.bf16 %v615_v40, %v615_v40  ;;  %v630_v43 = vpack.c.bf16 %v619_v41, %v619_v41  ;;  %v620_v56 = vsel %vm215_vm4, %v9038_v37, 0.0  ;;  %v626_v40 = vld [vmem:[#allocation2 + $0x78] sm:$0xf] }
 0x1d6   : > { %v816_v57 = vpack.c.bf16 %v620_v56, %v620_v56 }
 0x1d7   : > { %881 = vrot.lane.b32.xlu0 %v632_v36, %s9441_s30  ;;  %7986 = vmatprep.subr.msk.bf16.mxu1 %vm651_vm13, %v631_v42  ;;  %v703_v46 = vsel %vm651_vm13, %v630_v43, 0 }
 0x1d8   : > { %642 = vrot.lane.b32.xlu1 %v634_v44, %s9440_s29  ;;  %723 = vmatpush1.bf16.msra.mxu1 %v703_v46 }
 0x1db   : > { %885 = vrot.lane.b32.xlu0 %v634_v44, %s9441_s30  ;;  %7987 = vmatmul.mubr.msk.bf16.vlgmr.msra.gmra.mxu1 %vm10730_vm14, %v621_v47  ;;  %v627_v47 = vld [vmem:[#allocation2 + $0x80] sm:$0xf] }
 0x1dc   : > { %883 = vrot.lane.b32.xlu1 %v633_v35, %s9441_s30  ;;  %870 = vmatprep.mubr.bf16.mxu1 %v9436_v1 }
 0x1df   : > { %1066 = vrot.lane.b32.xlu0 %v633_v35, %s9442_s4 }
 0x1e0   : > { %1064 = vrot.lane.b32.xlu1 %v632_v36, %s9442_s4 }
 0x1e3   : > { %755 = vrot.lane.b32.xlu0 %v749_v52, %s9443_s5 }
 0x1e4   : > { %757 = vrot.lane.b32.xlu1 %v750_v53, %s9443_s5 }
 0x1e7   : > { %759 = vrot.lane.b32.xlu0 %v751_v55, %s9443_s5 }
 0x1e8   : > { %820 = vrot.lane.b32.xlu1 %v630_v43, %s9444_s6 }
 0x1eb   : > { %822 = vrot.lane.b32.xlu0 %v631_v42, %s9444_s6 }
 0x1ec   : > { %824 = vrot.lane.b32.xlu1 %v816_v57, %s9444_s6 }
 0x1ef   : > { %944 = vrot.lane.b32.xlu0 %v750_v53, %s9445_s7 }
 0x1f0   : > { %942 = vrot.lane.b32.xlu1 %v749_v52, %s9445_s7 }
 0x1f3   : > { %1003 = vrot.lane.b32.xlu0 %v630_v43, %s9446_s8 }
 0x1f4   : > { %946 = vrot.lane.b32.xlu1 %v751_v55, %s9445_s7 }
 0x1f7   : > { %1007 = vrot.lane.b32.xlu0 %v816_v57, %s9446_s8  ;;  %v629_v57 = vld [vmem:[#allocation2 + $0x90] sm:$0xf] }
 0x1f8   : > { %1005 = vrot.lane.b32.xlu1 %v631_v42, %s9446_s8 }
 0x1fb   : > { %1125 = vrot.lane.b32.xlu0 %v749_v52, %s9447_s9  ;;  %v628_v52 = vld [vmem:[#allocation2 + $0x88] sm:$0xf] }
 0x1fc   : > { %1068 = vrot.lane.b32.xlu1 %v634_v44, %s9442_s4 }
 0x1ff   : > { %1129 = vrot.lane.b32.xlu0 %v751_v55, %s9447_s9 }
 0x200   : > { %1127 = vrot.lane.b32.xlu1 %v750_v53, %s9447_s9 }
 0x204   : > { %1189 = vperm.xlu1 %9012, %v1186_v58  }
 0x245   : > { %v641_v59 = vpop.permute.xlu0 %640  ;;  %v639_v60 = vpop.permute.xlu1 %638 }
 0x246   : > { %v645_v62 = vsel %vm365_vm5, %v639_v60, %v641_v59 }
 0x247   : > { %v653_v8 = vsel %vm651_vm13, %v645_v62, 0 }
 0x249   : > { %v882_v61 = vpop.permute.xlu0 %881 }
 0x24a   : > { %v643_v63 = vpop.permute.xlu1 %642 }
 0x24b   : > { %v646_v0 = vsel %vm365_vm5, %v641_v59, %v643_v63 }
 0x24c   : > { %7984 = vmatprep.subr.msk.bf16.mxu0 %vm651_vm13, %v646_v0 }
 0x24d   : > { %673 = vmatpush1.bf16.msra.mxu0 %v653_v8  ;;  %v886_v3 = vpop.permute.xlu0 %885 }
 0x24e   : > { %v884_v5 = vpop.permute.xlu1 %883 }
 0x24f   : > { %v888_v17 = vsel %vm464_vm8, %v882_v61, %v884_v5  ;;  %v889_v18 = vsel %vm464_vm8, %v884_v5, %v886_v3 }
 0x250   : > { %7985 = vmatmul.mubr.msk.bf16.vlgmr.msra.gmra.mxu0 %vm10730_vm14, %v622_v4  ;;  %v894_v30 = vsel %vm651_vm13, %v888_v17, 0 }
 0x251   : > { %v1067_v6 = vpop.permute.xlu0 %1066  ;;  %805 = vmatprep.mubr.bf16.mxu0 %v9436_v1 }
 0x252   : > { %v1065_v7 = vpop.permute.xlu1 %1064 }
 0x253   : > { %v1071_v45 = vsel %vm10732_vm11, %v1065_v7, %v1067_v6 }
 0x254   : > { %v1077_v50 = vsel %vm651_vm13, %v1071_v45, 0 }
 0x255   : > { %v756_v9 = vpop.permute.xlu0 %755 }
 0x256   : > { %v758_v10 = vpop.permute.xlu1 %757 }
 0x257   : > { %v762_v12 = vsel %vm408_vm6, %v756_v9, %v758_v10 }
 0x258   : > { %v768_v16 = vsel %vm651_vm13, %v762_v12, 0 }
 0x259   : > { %v760_v13 = vpop.permute.xlu0 %759 }
 0x25a   : > { %v763_v14 = vsel %vm408_vm6, %v758_v10, %v760_v13  ;;  %v821_v15 = vpop.permute.xlu1 %820 }
 0x25b   : > { %7988 = vmatprep.subr.msk.bf16.mxu0 %vm651_vm13, %v763_v14 }
 0x25c   : > { %788 = vmatpush1.bf16.msra.mxu0 %v768_v16 }
 0x25d   : > { %v823_v27 = vpop.permute.xlu0 %822  ;;  %7992 = vmatprep.subr.msk.bf16.mxu0 %vm651_vm13, %v889_v18 }
 0x25e   : > { %v827_v28 = vsel %vm439_vm7, %v821_v15, %v823_v27  ;;  %v825_v21 = vpop.permute.xlu1 %824 }
 0x25f   : > { %v828_v24 = vsel %vm439_vm7, %v823_v27, %v825_v21  ;;  %7989 = vmatmul.mubr.msk.bf16.vlgmr.msra.gmra.mxu0 %vm10730_vm14, %v623_v26  ;;  %v833_v29 = vsel %vm651_vm13, %v827_v28, 0 }
 0x260   : > { %7990 = vmatprep.subr.msk.bf16.mxu1 %vm651_vm13, %v828_v24  ;;  %914 = vmatpush1.bf16.msra.mxu0 %v894_v30 }
 0x261   : > { %853 = vmatpush1.bf16.msra.mxu1 %v833_v29  ;;  %v945_v11 = vpop.permute.xlu0 %944  ;;  %931 = vmatprep.mubr.bf16.mxu0 %v9436_v1 }
 0x262   : > { %v943_v32 = vpop.permute.xlu1 %942 }
 0x263   : > { %v949_v34 = vsel %vm10734_vm9, %v943_v32, %v945_v11 }
 0x264   : > { %7991 = vmatmul.mubr.msk.bf16.vlgmr.msra.gmra.mxu1 %vm10730_vm14, %v624_v31  ;;  %v955_v38 = vsel %vm651_vm13, %v949_v34, 0 }
 0x265   : > { %v1004_v35 = vpop.permute.xlu0 %1003  ;;  %992 = vmatprep.mubr.bf16.mxu1 %v9436_v1 }
 0x266   : > { %v947_v36 = vpop.permute.xlu1 %946 }
 0x267   : > { %v950_v37 = vsel %vm10734_vm9, %v945_v11, %v947_v36  ;;  %7993 = vmatmul.mubr.msk.bf16.vlgmr.msra.gmra.mxu0 %vm10730_vm14, %v625_v33  ;;  %vm3519_vm9 = vcmask 261120  }
 0x268   : > { %7994 = vmatprep.subr.msk.bf16.mxu1 %vm651_vm13, %v950_v37  ;;  %1053 = vmatprep.mubr.bf16.mxu0 %v9436_v1 }
 0x269   : > { %975 = vmatpush1.bf16.msra.mxu1 %v955_v38  ;;  %v1008_v39 = vpop.permute.xlu0 %1007 }
 0x26a   : > { %v1006_v41 = vpop.permute.xlu1 %1005 }
 0x26b   : > { %v1010_v42 = vsel %vm10733_vm10, %v1004_v35, %v1006_v41  ;;  %v1011_v43 = vsel %vm10733_vm10, %v1006_v41, %v1008_v39 }
 0x26c   : > { %7995 = vmatmul.mubr.msk.bf16.vlgmr.msra.gmra.mxu1 %vm10730_vm14, %v626_v40  ;;  %7996 = vmatprep.subr.msk.bf16.mxu0 %vm651_vm13, %v1011_v43  ;;  %v1016_v44 = vsel %vm651_vm13, %v1010_v42, 0 }
 0x26d   : > { %1036 = vmatpush1.bf16.msra.mxu0 %v1016_v44  ;;  %v1126_v46 = vpop.permute.xlu0 %1125  ;;  %1114 = vmatprep.mubr.bf16.mxu1 %v9436_v1 }
 0x26e   : > { %v1069_v48 = vpop.permute.xlu1 %1068 }
 0x26f   : > { %v1072_v49 = vsel %vm10732_vm11, %v1067_v6, %v1069_v48  ;;  %vm2576_vm11 = vcmask 523264  }
 0x270   : > { %7997 = vmatmul.mubr.msk.bf16.vlgmr.msra.gmra.mxu0 %vm10730_vm14, %v627_v47  ;;  %7998 = vmatprep.subr.msk.bf16.mxu1 %vm651_vm13, %v1072_v49 }
 0x271   : > { %1097 = vmatpush1.bf16.msra.mxu1 %v1077_v50  ;;  %v1130_v51 = vpop.permute.xlu0 %1129  ;;  %1175 = vmatprep.mubr.bf16.mxu0 %v9436_v1 }
 0x272   : > { %v1128_v53 = vpop.permute.xlu1 %1127 }
 0x273   : > { %v1132_v54 = vsel %vm10731_vm12, %v1126_v46, %v1128_v53  ;;  %v1133_v55 = vsel %vm10731_vm12, %v1128_v53, %v1130_v51  ;;  %vm2538_vm12 = vcmask 457728  }
 0x274   : > { %7999 = vmatmul.mubr.msk.bf16.vlgmr.msra.gmra.mxu1 %vm10730_vm14, %v628_v52  ;;  %8000 = vmatprep.subr.msk.bf16.mxu0 %vm651_vm13, %v1133_v55  ;;  %v1138_v56 = vsel %vm651_vm13, %v1132_v54, 0  ;;  %v9239_v55 = vld [vmem:[#allocation2 + $0x190] ss:$8 sps:$4 sm:$0xff]  }
 0x275   : > { %1158 = vmatpush1.bf16.msra.mxu0 %v1138_v56  ;;  %v9240_v56 = vld [vmem:[#allocation2 + $0x110] ss:$8 sps:$4 sm:$0xff]   ;;  %8314 = vmatprep.subr.bf16.mxu1 %v9239_v55 }
 0x276   : > { %8521 = vmatprep.subr.bf16.mxu0 %v9438_v19  ;;  %8315 = vmatpush3.bf16.msra.mxu1 %v9240_v56 }
 0x278   : > { %8001 = vmatmul.mubr.msk.bf16.vlgmr.msra.gmra.mxu0 %vm10730_vm14, %v629_v57 }
 0x279   : > { %8523 = vmatprep.mubr.msk.bf16.mxu0 %vm9449_vm1, %v9438_v19 }
 0x27f   : > { %v1190_v46 = vpop.permute.xlu1 %1189 }
 0x29b   : > { %v742_v58 = vpop.f32.mrf.mxu1 }
 0x29d   : > { %v744_v59 = vpop.f32.mrf.mxu1 }
 0x29f   : > { %v746_v60 = vpop.f32.mrf.mxu1 }
 0x2a1   : > { %v747_v61 = vpop.f32.mrf.mxu1 }
 0x2a2   : > { %v9242_v61 = vld [vmem:[#allocation2 + $0x100] ss:$8 sps:$4 sm:$0xff]  }
 0x310   : > { %v692_v62 = vpop.f32.mrf.mxu0 }
 0x311   : > { %v743_v15 = vadd.f32 %v742_v58, %v692_v62  ;;  %v9241_v58 = vld [vmem:[#allocation2 + $0x180] ss:$8 sps:$4 sm:$0xff]  }
 0x312   : > { %v694_v63 = vpop.f32.mrf.mxu0  ;;  %8316 = vmatprep.subr.bf16.mxu1 %v9241_v58  ;;  %v1942_v58 = vld [vmem:[%s10728_s2 + $0x18] sm:$0xff] }
 0x313   : > { %v745_v18 = vadd.f32 %v744_v59, %v694_v63  ;;  %v9243_v63 = vld [vmem:[#allocation2 + $0x170] ss:$8 sps:$4 sm:$0xff]   ;;  %8317 = vmatpush3.bf16.msra.mxu1 %v9242_v61 }
 0x314   : > { %v696_v0 = vpop.f32.mrf.mxu0  ;;  %8318 = vmatprep.subr.bf16.mxu1 %v9243_v63  ;;  %v9255_v63 = vld [vmem:[#allocation2 + $0x1b0] ss:$8 sps:$4 sm:$0xff]  }
 0x315   : > { %v9244_v0 = vld [vmem:[#allocation2 + $0xf0] ss:$8 sps:$4 sm:$0xff]  }
 0x316   : > { %v697_v8 = vpop.f32.mrf.mxu0 }
 0x317   : > { %v9245_v8 = vld [vmem:[#allocation2 + $0x160] ss:$8 sps:$4 sm:$0xff]   ;;  %8319 = vmatpush3.bf16.msra.mxu1 %v9244_v0 }
 0x318   : > { %8320 = vmatprep.subr.bf16.mxu1 %v9245_v8 }
 0x31f   : > { %v807_v3 = vpop.f32.mrf.mxu0 }
 0x320   : > { %v814_v26 = vadd.f32 %v807_v3, %v743_v15  ;;  %v9246_v3 = vld [vmem:[#allocation2 + $0xe0] ss:$8 sps:$4 sm:$0xff]  }
 0x321   : > { %v809_v4 = vpop.f32.mrf.mxu0  ;;  %8321 = vmatpush3.bf16.msra.mxu1 %v9246_v3 }
 0x322   : > { %v815_v21 = vadd.f32 %v809_v4, %v745_v18  ;;  %v9247_v4 = vld [vmem:[#allocation2 + $0x150] ss:$8 sps:$4 sm:$0xff]  }
 0x323   : > { %v811_v5 = vpop.f32.mrf.mxu0  ;;  %8322 = vmatprep.subr.bf16.mxu1 %v9247_v4 }
 0x324   : > { %v872_v6 = vpop.f32.mrf.mxu1  ;;  %v9248_v5 = vld [vmem:[#allocation2 + $0xd0] ss:$8 sps:$4 sm:$0xff]  }
 0x325   : > { %v812_v7 = vpop.f32.mrf.mxu0  ;;  %v879_v24 = vadd.f32 %v872_v6, %v814_v26  ;;  %v9249_v6 = vld [vmem:[#allocation2 + $0x140] ss:$8 sps:$4 sm:$0xff]   ;;  %8323 = vmatpush3.bf16.msra.mxu1 %v9248_v5 }
 0x326   : > { %v874_v9 = vpop.f32.mrf.mxu1  ;;  %v9250_v7 = vld [vmem:[#allocation2 + $0xc0] ss:$8 sps:$4 sm:$0xff]   ;;  %8324 = vmatprep.subr.bf16.mxu1 %v9249_v6 }
 0x327   : > { %v933_v10 = vpop.f32.mrf.mxu0  ;;  %v880_v11 = vadd.f32 %v874_v9, %v815_v21  ;;  %v9251_v9 = vld [vmem:[#allocation2 + $0x130] ss:$8 sps:$4 sm:$0xff]   ;;  %v9256_v5 = vld [vmem:[#allocation2 + $0x1e0] ss:$8 sps:$4 sm:$0xff]  }
 0x328   : > { %v876_v12 = vpop.f32.mrf.mxu1  ;;  %v940_v31 = vadd.f32 %v933_v10, %v879_v24  ;;  %v9252_v10 = vld [vmem:[#allocation2 + $0xb0] ss:$8 sps:$4 sm:$0xff]   ;;  %v9257_v6 = vld [vmem:[#allocation2 + $0x1a0] ss:$8 sps:$4 sm:$0xff]  }
 0x329   : > { %v935_v13 = vpop.f32.mrf.mxu0  ;;  %8325 = vmatpush3.bf16.msra.mxu1 %v9250_v7  ;;  %v9253_v12 = vld [vmem:[#allocation2 + $0x120] ss:$8 sps:$4 sm:$0xff]  }
 0x32a   : > { %v877_v14 = vpop.f32.mrf.mxu1  ;;  %v941_v34 = vadd.f32 %v935_v13, %v880_v11  ;;  %8326 = vmatprep.subr.bf16.mxu1 %v9251_v9  ;;  %v9254_v13 = vld [vmem:[#allocation2 + $0xa0] ss:$8 sps:$4 sm:$0xff]  }
 0x32b   : > { %v937_v16 = vpop.f32.mrf.mxu0 }
 0x32c   : > { %v994_v17 = vpop.f32.mrf.mxu1 }
 0x32d   : > { %v938_v27 = vpop.f32.mrf.mxu0  ;;  %v1001_v35 = vadd.f32 %v994_v17, %v940_v31  ;;  %8327 = vmatpush3.bf16.msra.mxu1 %v9252_v10 }
 0x32e   : > { %v996_v28 = vpop.f32.mrf.mxu1  ;;  %8328 = vmatprep.subr.bf16.mxu1 %v9253_v12  ;;  %v9258_v12 = vld [vmem:[#allocation2 + $0x200] ss:$8 sps:$4 sm:$0xff]  }
 0x32f   : > { %v1002_v38 = vadd.f32 %v996_v28, %v941_v34 }
 0x330   : > { %v998_v29 = vpop.f32.mrf.mxu1  ;;  %v1055_v30 = vpop.f32.mrf.mxu0 }
 0x331   : > { %v1062_v39 = vadd.f32 %v1055_v30, %v1001_v35  ;;  %8329 = vmatpush3.bf16.msra.mxu1 %v9254_v13  ;;  %v1390_v35 = vand.u32 7, %v9511_v2 }
 0x332   : > { %v999_v32 = vpop.f32.mrf.mxu1  ;;  %v1057_v33 = vpop.f32.mrf.mxu0  ;;  %8545 = vmatprep.subr.bf16.mxu1 %v9438_v19 }
 0x333   : > { %v1063_v42 = vadd.f32 %v1057_v33, %v1002_v38  ;;  %vm1391_vm15 = vcmp.ne.s32.totalorder %v1390_v35, 0  ;;  %vm1394_vm0 = vcmp.ne.s32.totalorder %v1390_v35, 7 }
 0x334   : > { %v1059_v36 = vpop.f32.mrf.mxu0  ;;  %v1116_v37 = vpop.f32.mrf.mxu1 }
 0x335   : > { %v1123_v43 = vadd.f32 %v1116_v37, %v1062_v39  ;;  %v9721_v37 = vsel %vm1391_vm15, 1.0, %v9438_v19  ;;  %vm9819_vm15 = vmpackc.low %vm1403_vm3, %vm1403_vm3 }
 0x336   : > { %v1060_v40 = vpop.f32.mrf.mxu0  ;;  %v1118_v41 = vpop.f32.mrf.mxu1 }
 0x337   : > { %v1124_v47 = vadd.f32 %v1118_v41, %v1063_v42  ;;  %v9724_v40 = vsel %vm1394_vm0, 1.0, %v9438_v19  ;;  %vm2026_vm0 = vcmask 130048  }
 0x338   : > { %v1120_v44 = vpop.f32.mrf.mxu1  ;;  %v1177_v45 = vpop.f32.mrf.mxu0 }
 0x339   : > { %v1184_v48 = vadd.f32 %v1177_v45, %v1123_v43 }
 0x33a   : > { %v1121_v49 = vpop.f32.mrf.mxu1  ;;  %v1179_v50 = vpop.f32.mrf.mxu0 }
 0x33b   : > { %v1192_v51 = vadd.f32 %v1190_v46, %v1184_v48  ;;  %v1185_v52 = vadd.f32 %v1179_v50, %v1124_v47 }
 0x33c   : > { %v1181_v53 = vpop.f32.mrf.mxu0 }
 0x33d   : > { %v1193_v54 = vadd.f32 %v1190_v46, %v1185_v52  ;;  %v9704_v59 = vmax.f32 %v1192_v51, 0.0 }
 0x33e   : > { %v1182_v57 = vpop.f32.mrf.mxu0 }
 0x33f   : > { %v9706_v60 = vmax.f32 %v1193_v54, 0.0  ;;  %v1941_v57 = vld [vmem:[%s10728_s2 + $0x10] sm:$0xff] }
 0x341   : > { %v9039_v62 = vpack.i.bf16 %v9704_v59, %v9706_v60 }
 0x343   : > { %9040 = vrot.lane.b32.xlu0 %v9039_v62, %s9440_s29 }
 0x3b5   : > { %v9041_v14 = vpop.permute.xlu0 %9040 }
 0x3b6   : > { %v9043_v15 = vunpack.i.h.bf16 %v9041_v14  ;;  %v9042_v16 = vunpack.i.l.bf16 %v9041_v14  ;;  %v9259_v14 = vld [vmem:[#allocation2 + $0x1c0] ss:$8 sps:$4 sm:$0xff]  }
 0x3b8   : > { %v1205_v17 = vsel %vm365_vm5, %v9042_v16, 0.0  ;;  %v1202_v18 = vsel %vm365_vm5, %v9043_v15, %v9042_v16 }
 0x3b9   : > { %v1206_v26 = vmax.f32 %v9704_v59, %v1202_v18  ;;  %v1207_v27 = vmax.f32 %v9706_v60, %v1205_v17  ;;  %v9262_v18 = vld [vmem:[#allocation2 + $0x220] ss:$8 sps:$4 sm:$0xff]  }
 0x3bb   : > { %v9044_v28 = vpack.i.bf16 %v1206_v26, %v1207_v27 }
 0x3bd   : > { %9045 = vrot.lane.b32.xlu1 %v9044_v28, %s9444_s6 }
 0x42f   : > { %v9046_v21 = vpop.permute.xlu1 %9045 }
 0x430   : > { %v9048_v24 = vunpack.i.h.bf16 %v9046_v21  ;;  %v9047_v29 = vunpack.i.l.bf16 %v9046_v21  ;;  %v9261_v21 = vld [vmem:[#allocation2 + $0x1f0] ss:$8 sps:$4 sm:$0xff]  }
 0x432   : > { %v1214_v30 = vsel %vm439_vm7, %v9048_v24, %v9047_v29  ;;  %v1217_v11 = vsel %vm439_vm7, %v9047_v29, 0.0 }
 0x433   : > { %v1219_v31 = vmax.f32 %v1207_v27, %v1217_v11  ;;  %v1218_v32 = vmax.f32 %v1206_v26, %v1214_v30  ;;  %v9260_v26 = vld [vmem:[#allocation2 + $0x1d0] ss:$8 sps:$4 sm:$0xff]  }
 0x434   : > { %v9263_v30 = vld [vmem:[#allocation2 + $0x210] ss:$8 sps:$4 sm:$0xff]  }
 0x435   : > { %v1253_v33 = vpack.c.bf16 %v1219_v31, %v1219_v31  ;;  %v1252_v34 = vpack.c.bf16 %v1218_v32, %v1218_v32 }
 0x437   : > { %1382 = vmatprep.mubr.bf16.mxu1 %v1253_v33 }
 0x438   : > { %1383 = vmatmul.mubr.bf16.vlgmr.msra.gmra.mxu1 %v1252_v34 }
 0x439   : > { %8547 = vmatprep.mubr.msk.bf16.mxu1 %vm9449_vm1, %v9438_v19 }
 0x4f8   : > { %v8330_v36 = vpop.f32.mrf.mxu1 }
 0x4fa   : > { %v8331_v38 = vpop.f32.mrf.mxu1 }
 0x4fb   : > { %v8332_v39 = vadd.f32 %v8331_v38, %v8330_v36 }
 0x4fc   : > { %v8333_v41 = vpop.f32.mrf.mxu1 }
 0x4fd   : > { %1398 = vrot.lane.b32.xlu0 %v8332_v39, %s9448_s14  ;;  %v1405_v42 = vmul.f32 %v8332_v39, %v9721_v37  ;;  %v1412_v44 = vmul.f32 %v8332_v39, %v9724_v40 }
 0x4fe   : > { %v8334_v43 = vpop.f32.mrf.mxu1 }
 0x4ff   : > { %1407 = vrot.lane.b32.xlu1 %v1405_v42, %s9448_s14 }
 0x501   : > { %1414 = vrot.lane.b32.xlu0 %v1412_v44, %s9448_s14 }
 0x56f   : > { %v1399_v45 = vpop.permute.xlu0 %1398 }
 0x570   : > { %v1402_v46 = vsel %vm1401_vm2, 0.0, %v1399_v45 }
 0x571   : > { %v1404_v47 = vsel %vm1403_vm3, %v1402_v46, 0.0  ;;  %v1408_v48 = vpop.permute.xlu1 %1407 }
 0x572   : > { %v1438_v49 = vpack.c.bf16 %v1404_v47, %v1404_v47  ;;  %v1410_v50 = vsel %vm1401_vm2, 0.0, %v1408_v48 }
 0x573   : > { %v1411_v51 = vsel %vm1403_vm3, %v1410_v50, 0.0  ;;  %v1415_v52 = vpop.permute.xlu0 %1414 }
 0x574   : > { %v1546_v53 = vpack.c.bf16 %v1411_v51, %v1411_v51  ;;  %v1417_v54 = vsel %vm1401_vm2, 0.0, %v1415_v52  ;;  %1445 = vrot.lane.b32.xlu1 %v1438_v49, %s9440_s29 }
 0x575   : > { %v1418_v55 = vsel %vm1403_vm3, %v1417_v54, 0.0 }
 0x576   : > { %v1437_v56 = vpack.c.bf16 %v1418_v55, %v1418_v55  ;;  %1553 = vrot.lane.b32.xlu0 %v1546_v53, %s9443_s5 }
 0x578   : > { %1610 = vrot.lane.b32.xlu1 %v1437_v56, %s9450_s15  ;;  %v1503_v8 = vsel %vm651_vm13, %v1437_v56, 0 }
 0x57a   : > { %1666 = vrot.lane.b32.xlu0 %v1438_v49, %s9451_s16 }
 0x57c   : > { %1722 = vrot.lane.b32.xlu1 %v1546_v53, %s9452_s17 }
 0x57e   : > { %1778 = vrot.lane.b32.xlu0 %v1437_v56, %s9444_s6 }
 0x580   : > { %1834 = vrot.lane.b32.xlu1 %v1438_v49, %s9441_s30 }
 0x582   : > { %1890 = vrot.lane.b32.xlu0 %v1546_v53, %s9445_s7 }
 0x584   : > { %1945 = vperm.xlu1 %9012, %v1941_v57  }
 0x586   : > { %1950 = vperm.xlu0 %9018, %v1942_v58  }
 0x5e6   : > { %v1446_v61 = vpop.permute.xlu1 %1445 }
 0x5e7   : > { %v1451_v62 = vsel %vm651_vm13, %v1446_v61, 0 }
 0x5e8   : > { %v1554_v0 = vpop.permute.xlu0 %1553  ;;  %8522 = vmatpush3.bf16.msra.mxu0 %v1451_v62 }
 0x5e9   : > { %8527 = vmatprep.subr.bf16.mxu0 %v9438_v19  ;;  %v1559_v10 = vsel %vm651_vm13, %v1554_v0, 0 }
 0x5ea   : > { %v1611_v15 = vpop.permute.xlu1 %1610 }
 0x5eb   : > { %8524 = vmatmul.mubr.msk.bf16.vlgmr.msra.gmra.mxu0 %vm10730_vm14, %v9255_v63  ;;  %v1616_v17 = vsel %vm651_vm13, %v1611_v15, 0 }
 0x5ec   : > { %v1667_v3 = vpop.permute.xlu0 %1666  ;;  %8528 = vmatpush3.bf16.msra.mxu0 %v1503_v8  ;;  %8529 = vmatprep.mubr.msk.bf16.mxu0 %vm9449_vm1, %v9438_v19 }
 0x5ed   : > { %v1672_v4 = vsel %vm651_vm13, %v1667_v3, 0  ;;  %8533 = vmatprep.subr.bf16.mxu0 %v9438_v19 }
 0x5ee   : > { %8546 = vmatpush3.bf16.msra.mxu1 %v1672_v4  ;;  %v1723_v27 = vpop.permute.xlu1 %1722 }
 0x5ef   : > { %8557 = vmatprep.subr.bf16.mxu1 %v9438_v19  ;;  %v1728_v28 = vsel %vm651_vm13, %v1723_v27, 0 }
 0x5f0   : > { %v1779_v7 = vpop.permute.xlu0 %1778 }
 0x5f1   : > { %v1784_v9 = vsel %vm651_vm13, %v1779_v7, 0  ;;  %8548 = vmatmul.mubr.msk.bf16.vlgmr.msra.gmra.mxu1 %vm10730_vm14, %v9256_v5 }
 0x5f2   : > { %8558 = vmatpush3.bf16.msra.mxu1 %v1784_v9  ;;  %8559 = vmatprep.mubr.msk.bf16.mxu1 %vm9449_vm1, %v9438_v19  ;;  %v1835_v24 = vpop.permute.xlu1 %1834 }
 0x5f3   : > { %8530 = vmatmul.mubr.msk.bf16.vlgmr.msra.gmra.mxu0 %vm10730_vm14, %v9257_v6  ;;  %8569 = vmatprep.subr.bf16.mxu1 %v9438_v19  ;;  %v1840_v29 = vsel %vm651_vm13, %v1835_v24, 0 }
 0x5f4   : > { %8534 = vmatpush3.bf16.msra.mxu0 %v1559_v10  ;;  %8535 = vmatprep.mubr.msk.bf16.mxu0 %vm9449_vm1, %v9438_v19  ;;  %v1891_v13 = vpop.permute.xlu0 %1890 }
 0x5f5   : > { %8539 = vmatprep.subr.bf16.mxu0 %v9438_v19  ;;  %v1896_v16 = vsel %vm651_vm13, %v1891_v13, 0 }
 0x5f9   : > { %8560 = vmatmul.mubr.msk.bf16.vlgmr.msra.gmra.mxu1 %vm10730_vm14, %v9258_v12 }
 0x5fa   : > { %8570 = vmatpush3.bf16.msra.mxu1 %v1896_v16  ;;  %8571 = vmatprep.mubr.msk.bf16.mxu1 %vm9449_vm1, %v9438_v19 }
 0x5fb   : > { %8536 = vmatmul.mubr.msk.bf16.vlgmr.msra.gmra.mxu0 %vm10730_vm14, %v9259_v14  ;;  %8581 = vmatprep.subr.bf16.mxu1 %v9438_v19 }
 0x5fc   : > { %8540 = vmatpush3.bf16.msra.mxu0 %v1616_v17  ;;  %8541 = vmatprep.mubr.msk.bf16.mxu0 %vm9449_vm1, %v9438_v19 }
 0x5fd   : > { %8551 = vmatprep.subr.bf16.mxu0 %v9438_v19 }
 0x601   : > { %8572 = vmatmul.mubr.msk.bf16.vlgmr.msra.gmra.mxu1 %vm10730_vm14, %v9262_v18 }
 0x602   : > { %8583 = vmatprep.mubr.msk.bf16.mxu1 %vm9449_vm1, %v9438_v19 }
 0x603   : > { %8542 = vmatmul.mubr.msk.bf16.vlgmr.msra.gmra.mxu0 %vm10730_vm14, %v9260_v26 }
 0x604   : > { %8552 = vmatpush3.bf16.msra.mxu0 %v1728_v28  ;;  %8553 = vmatprep.mubr.msk.bf16.mxu0 %vm9449_vm1, %v9438_v19  ;;  %v1946_v28 = vpop.permute.xlu1 %1945 }
 0x605   : > { %8563 = vmatprep.subr.bf16.mxu0 %v9438_v19 }
 0x60b   : > { %8554 = vmatmul.mubr.msk.bf16.vlgmr.msra.gmra.mxu0 %vm10730_vm14, %v9261_v21 }
 0x60c   : > { %8564 = vmatpush3.bf16.msra.mxu0 %v1840_v29  ;;  %8565 = vmatprep.mubr.msk.bf16.mxu0 %vm9449_vm1, %v9438_v19 }
 0x60d   : > { %8575 = vmatprep.subr.bf16.mxu0 %v9438_v19 }
 0x613   : > { %8566 = vmatmul.mubr.msk.bf16.vlgmr.msra.gmra.mxu0 %vm10730_vm14, %v9263_v30  ;;  %vm2525_vm14 = vcmask 515072  }
 0x614   : > { %8577 = vmatprep.mubr.msk.bf16.mxu0 %vm9449_vm1, %v9438_v19 }
 0x6ab   : > { %v1487_v11 = vpop.f32.mrf.mxu0 }
 0x6ad   : > { %v8525_v31 = vpop.f32.mrf.mxu0 }
 0x6ae   : > { %v1951_v31 = vpop.permute.xlu0 %1950 }
 0x6af   : > { %v1490_v32 = vpop.f32.mrf.mxu0 }
 0x6b1   : > { %v8526_v33 = vpop.f32.mrf.mxu0  ;;  %v1708_v34 = vpop.f32.mrf.mxu1 }
 0x6b3   : > { %v1539_v35 = vpop.f32.mrf.mxu0  ;;  %v8549_v36 = vpop.f32.mrf.mxu1 }
 0x6b4   : > { %v1540_v55 = vadd.f32 %v1539_v35, %v1487_v11 }
 0x6b5   : > { %v8531_v38 = vpop.f32.mrf.mxu0  ;;  %v1711_v39 = vpop.f32.mrf.mxu1 }
 0x6b7   : > { %v1542_v41 = vpop.f32.mrf.mxu0  ;;  %v8550_v42 = vpop.f32.mrf.mxu1 }
 0x6b8   : > { %v1543_v63 = vadd.f32 %v1542_v41, %v1490_v32 }
 0x6b9   : > { %v8532_v43 = vpop.f32.mrf.mxu0  ;;  %v1820_v44 = vpop.f32.mrf.mxu1 }
 0x6bb   : > { %v1595_v45 = vpop.f32.mrf.mxu0  ;;  %v8561_v46 = vpop.f32.mrf.mxu1 }
 0x6bc   : > { %v1602_v58 = vadd.f32 %v1595_v45, %v1540_v55 }
 0x6bd   : > { %v8537_v47 = vpop.f32.mrf.mxu0  ;;  %v1823_v48 = vpop.f32.mrf.mxu1 }
 0x6bf   : > { %v1598_v49 = vpop.f32.mrf.mxu0  ;;  %v8562_v50 = vpop.f32.mrf.mxu1 }
 0x6c0   : > { %v1603_v3 = vadd.f32 %v1598_v49, %v1543_v63 }
 0x6c1   : > { %v8538_v51 = vpop.f32.mrf.mxu0  ;;  %v1932_v52 = vpop.f32.mrf.mxu1 }
 0x6c3   : > { %v1652_v53 = vpop.f32.mrf.mxu0  ;;  %v8573_v54 = vpop.f32.mrf.mxu1 }
 0x6c4   : > { %v1659_v0 = vadd.f32 %v1652_v53, %v1602_v58 }
 0x6c5   : > { %v8543_v56 = vpop.f32.mrf.mxu0  ;;  %v1935_v57 = vpop.f32.mrf.mxu1 }
 0x6c6   : > { %v1715_v6 = vadd.f32 %v1708_v34, %v1659_v0 }
 0x6c7   : > { %v1655_v61 = vpop.f32.mrf.mxu0  ;;  %v8574_v62 = vpop.f32.mrf.mxu1 }
 0x6c8   : > { %v1660_v5 = vadd.f32 %v1655_v61, %v1603_v3 }
 0x6c9   : > { %v8544_v8 = vpop.f32.mrf.mxu0 }
 0x6ca   : > { %v1716_v12 = vadd.f32 %v1711_v39, %v1660_v5 }
 0x6cb   : > { %v1764_v4 = vpop.f32.mrf.mxu0 }
 0x6cc   : > { %v1771_v9 = vadd.f32 %v1764_v4, %v1715_v6  ;;  %v5919_v4 = vld [vmem:[%s10728_s2 + $0xa0] sm:$0xff] }
 0x6cd   : > { %v8555_v7 = vpop.f32.mrf.mxu0 }
 0x6ce   : > { %v1827_v15 = vadd.f32 %v1820_v44, %v1771_v9 }
 0x6cf   : > { %v1767_v10 = vpop.f32.mrf.mxu0 }
 0x6d0   : > { %v1772_v14 = vadd.f32 %v1767_v10, %v1716_v12  ;;  %v9264_v10 = vld [vmem:[#allocation2 + $0x230] ss:$8 sps:$4 sm:$0xff]   ;;  %v2501_v12 = vld [vmem:[%s10728_s2 + $0x20] sm:$0xff] }
 0x6d1   : > { %v8556_v13 = vpop.f32.mrf.mxu0 }
 0x6d2   : > { %v1828_v27 = vadd.f32 %v1823_v48, %v1772_v14  ;;  %v2502_v13 = vld [vmem:[%s10728_s2 + $0x28] sm:$0xff] }
 0x6d3   : > { %v1876_v16 = vpop.f32.mrf.mxu0 }
 0x6d4   : > { %v1883_v17 = vadd.f32 %v1876_v16, %v1827_v15  ;;  %v9265_v15 = vld [vmem:[#allocation2 + $0x240] ss:$8 sps:$4 sm:$0xff]  }
 0x6d5   : > { %v8567_v18 = vpop.f32.mrf.mxu0 }
 0x6d6   : > { %v1939_v26 = vadd.f32 %v1932_v52, %v1883_v17  ;;  %v9266_v18 = vld [vmem:[#allocation2 + $0x260] ss:$8 sps:$4 sm:$0xff]  }
 0x6d7   : > { %v1879_v21 = vpop.f32.mrf.mxu0 }
 0x6d8   : > { %v1953_v24 = vadd.f32 %v1946_v28, %v1939_v26  ;;  %v1884_v29 = vadd.f32 %v1879_v21, %v1828_v27  ;;  %v9267_v27 = vld [vmem:[#allocation2 + $0x250] ss:$8 sps:$4 sm:$0xff]   ;;  %v9268_v21 = vld [vmem:[#allocation2 + $0x280] ss:$8 sps:$4 sm:$0xff]  }
 0x6d9   : > { %v8568_v30 = vpop.f32.mrf.mxu0 }
 0x6da   : > { %v1940_v11 = vadd.f32 %v1935_v57, %v1884_v29  ;;  %v1955_v32 = vmax.f32 %v1953_v24, 0.0  ;;  %v9269_v29 = vld [vmem:[#allocation2 + $0x270] ss:$8 sps:$4 sm:$0xff]  }
 0x6dc   : > { %v1954_v33 = vadd.f32 %v1951_v31, %v1940_v11  ;;  %v1969_v36 = vmul.f32 %v9721_v37, %v1955_v32  ;;  %v1983_v42 = vmul.f32 %v9724_v40, %v1955_v32  ;;  %v9271_v11 = vld [vmem:[#allocation2 + $0x2a0] ss:$8 sps:$4 sm:$0xff]   ;;  %v9270_v31 = vld [vmem:[#allocation2 + $0x290] ss:$8 sps:$4 sm:$0xff]  }
 0x6de   : > { %v1956_v34 = vmax.f32 %v1954_v33, 0.0  ;;  %v9272_v33 = vld [vmem:[#allocation2 + $0x2b0] ss:$8 sps:$4 sm:$0xff]  }
 0x6e0   : > { %v9049_v35 = vpack.i.bf16 %v1956_v34, %v1955_v32  ;;  %v1970_v38 = vmul.f32 %v9721_v37, %v1956_v34  ;;  %v1984_v39 = vmul.f32 %v9724_v40, %v1956_v34 }
 0x6e2   : > { %9050 = vrot.lane.b32.xlu1 %v9049_v35, %s9448_s14  ;;  %v9054_v41 = vpack.i.bf16 %v1970_v38, %v1969_v36  ;;  %v9059_v43 = vpack.i.bf16 %v1984_v39, %v1983_v42 }
 0x6e4   : > { %9055 = vrot.lane.b32.xlu0 %v9054_v41, %s9448_s14 }
 0x6e6   : > { %9060 = vrot.lane.b32.xlu1 %v9059_v43, %s9448_s14 }
 0x754   : > { %v9051_v44 = vpop.permute.xlu1 %9050 }
 0x755   : > { %v9053_v45 = vunpack.i.h.bf16 %v9051_v44  ;;  %v9052_v46 = vunpack.i.l.bf16 %v9051_v44 }
 0x756   : > { %v9056_v47 = vpop.permute.xlu0 %9055 }
 0x757   : > { %v1966_v48 = vsel %vm1401_vm2, 0.0, %v9053_v45  ;;  %v1965_v49 = vsel %vm1401_vm2, 0.0, %v9052_v46  ;;  %v9058_v50 = vunpack.i.h.bf16 %v9056_v47  ;;  %v9057_v51 = vunpack.i.l.bf16 %v9056_v47 }
 0x758   : > { %v9061_v52 = vpop.permute.xlu1 %9060  ;;  %v1967_v53 = vsel %vm1403_vm3, %v1965_v49, 0.0  ;;  %v1968_v54 = vsel %vm1403_vm3, %v1966_v48, 0.0 }
 0x759   : > { %v1980_v55 = vsel %vm1401_vm2, 0.0, %v9058_v50  ;;  %v1979_v56 = vsel %vm1401_vm2, 0.0, %v9057_v51  ;;  %v9063_v57 = vunpack.i.h.bf16 %v9061_v52  ;;  %v9062_v58 = vunpack.i.l.bf16 %v9061_v52 }
 0x75a   : > { %v2016_v61 = vpack.c.bf16 %v1968_v54, %v1967_v53  ;;  %v1981_v62 = vsel %vm1403_vm3, %v1979_v56, 0.0  ;;  %v1982_v63 = vsel %vm1403_vm3, %v1980_v55, 0.0 }
 0x75b   : > { %v1994_v0 = vsel %vm1401_vm2, 0.0, %v9063_v57  ;;  %v1993_v8 = vsel %vm1401_vm2, 0.0, %v9062_v58  ;;  %v2120_v3 = vpack.c.bf16 %v1982_v63, %v1981_v62 }
 0x75c   : > { %v8042_v5 = vpack.c.bf16 %v1994_v0, %v1993_v8  ;;  %2023 = vrot.lane.b32.xlu0 %v2016_v61, %s9440_s29  ;;  %v1995_v6 = vsel %vm1403_vm3, %v1993_v8, 0.0  ;;  %v1996_v7 = vsel %vm1403_vm3, %v1994_v0, 0.0 }
 0x75d   : > { %2127 = vrot.lane.b32.xlu1 %v2120_v3, %s9443_s5  ;;  %v2015_v9 = vpack.c.bf16 %v1996_v7, %v1995_v6 }
 0x75e   : > { %8582 = vmatpush3.bf16.msk.msra.mxu1 %vm9819_vm15, %v8042_v5 }
 0x75f   : > { %8593 = vmatprep.subr.bf16.mxu1 %v9438_v19 }
 0x760   : > { %2182 = vrot.lane.b32.xlu0 %v2015_v9, %s9450_s15 }
 0x761   : > { %2236 = vrot.lane.b32.xlu1 %v2016_v61, %s9451_s16  ;;  %8584 = vmatmul.mubr.msk.bf16.vlgmr.msra.gmra.mxu1 %vm2026_vm0, %v9264_v10 }
 0x762   : > { %8595 = vmatprep.mubr.msk.bf16.mxu1 %vm9449_vm1, %v9438_v19 }
 0x764   : > { %2290 = vrot.lane.b32.xlu0 %v2120_v3, %s9452_s17 }
 0x765   : > { %2344 = vrot.lane.b32.xlu1 %v2015_v9, %s9444_s6 }
 0x768   : > { %2398 = vrot.lane.b32.xlu0 %v2016_v61, %s9441_s30 }
 0x769   : > { %2452 = vrot.lane.b32.xlu1 %v2120_v3, %s9445_s7 }
 0x76c   : > { %2505 = vperm.xlu0 %9018, %v2501_v12  }
 0x76d   : > { %2510 = vperm.xlu1 %9012, %v2502_v13  }
 0x7ce   : > { %v2024_v14 = vpop.permute.xlu0 %2023 }
 0x7cf   : > { %8576 = vmatpush3.bf16.msra.mxu0 %v2024_v14  ;;  %v2128_v16 = vpop.permute.xlu1 %2127 }
 0x7d0   : > { %8587 = vmatprep.subr.bf16.mxu0 %v9438_v19 }
 0x7d2   : > { %8578 = vmatmul.mubr.msk.bf16.vlgmr.msra.gmra.mxu0 %vm2026_vm0, %v9265_v15  ;;  %v2183_v17 = vpop.permute.xlu0 %2182 }
 0x7d3   : > { %8588 = vmatpush3.bf16.msra.mxu0 %v2128_v16  ;;  %8594 = vmatpush3.bf16.msra.mxu1 %v2183_v17  ;;  %v2237_v28 = vpop.permute.xlu1 %2236 }
 0x7d4   : > { %8605 = vmatprep.subr.bf16.mxu1 %v9438_v19  ;;  %8589 = vmatprep.mubr.msk.bf16.mxu0 %vm9449_vm1, %v9438_v19 }
 0x7d5   : > { %8599 = vmatprep.subr.bf16.mxu0 %v9438_v19 }
 0x7d6   : > { %8596 = vmatmul.mubr.msk.bf16.vlgmr.msra.gmra.mxu1 %vm2026_vm0, %v9266_v18  ;;  %v2291_v26 = vpop.permute.xlu0 %2290 }
 0x7d7   : > { %8606 = vmatpush3.bf16.msra.mxu1 %v2291_v26  ;;  %8607 = vmatprep.mubr.msk.bf16.mxu1 %vm9449_vm1, %v9438_v19  ;;  %v2345_v30 = vpop.permute.xlu1 %2344 }
 0x7d8   : > { %8617 = vmatprep.subr.bf16.mxu1 %v9438_v19 }
 0x7da   : > { %8590 = vmatmul.mubr.msk.bf16.vlgmr.msra.gmra.mxu0 %vm2026_vm0, %v9267_v27  ;;  %v2399_v24 = vpop.permute.xlu0 %2398 }
 0x7db   : > { %8600 = vmatpush3.bf16.msra.mxu0 %v2237_v28  ;;  %8601 = vmatprep.mubr.msk.bf16.mxu0 %vm9449_vm1, %v9438_v19  ;;  %v2453_v32 = vpop.permute.xlu1 %2452 }
 0x7dc   : > { %8611 = vmatprep.subr.bf16.mxu0 %v9438_v19 }
 0x7de   : > { %8608 = vmatmul.mubr.msk.bf16.vlgmr.msra.gmra.mxu1 %vm2026_vm0, %v9268_v21 }
 0x7df   : > { %8618 = vmatpush3.bf16.msra.mxu1 %v2399_v24  ;;  %8619 = vmatprep.mubr.msk.bf16.mxu1 %vm9449_vm1, %v9438_v19 }
 0x7e0   : > { %8629 = vmatprep.subr.bf16.mxu1 %v9438_v19 }
 0x7e2   : > { %8602 = vmatmul.mubr.msk.bf16.vlgmr.msra.gmra.mxu0 %vm2026_vm0, %v9269_v29 }
 0x7e3   : > { %8612 = vmatpush3.bf16.msra.mxu0 %v2345_v30  ;;  %8613 = vmatprep.mubr.msk.bf16.mxu0 %vm9449_vm1, %v9438_v19 }
 0x7e4   : > { %8623 = vmatprep.subr.bf16.mxu0 %v9438_v19 }
 0x7e6   : > { %8620 = vmatmul.mubr.msk.bf16.vlgmr.msra.gmra.mxu1 %vm2026_vm0, %v9271_v11 }
 0x7e7   : > { %8637 = vmatprep.mubr.msk.bf16.mxu1 %vm9449_vm1, %v9438_v19 }
 0x7ea   : > { %8614 = vmatmul.mubr.msk.bf16.vlgmr.msra.gmra.mxu0 %vm2026_vm0, %v9270_v31  ;;  %v2506_v31 = vpop.permute.xlu0 %2505 }
 0x7eb   : > { %8624 = vmatpush3.bf16.msra.mxu0 %v2453_v32  ;;  %8625 = vmatprep.mubr.msk.bf16.mxu0 %vm9449_vm1, %v9438_v19 }
 0x7f2   : > { %8626 = vmatmul.mubr.msk.bf16.vlgmr.msra.gmra.mxu0 %vm2026_vm0, %v9272_v33 }
 0x821   : > { %v2113_v34 = vpop.f32.mrf.mxu1 }
 0x823   : > { %v8585_v35 = vpop.f32.mrf.mxu1 }
 0x824   : > { %v2511_v35 = vpop.permute.xlu1 %2510 }
 0x825   : > { %v2116_v36 = vpop.f32.mrf.mxu1 }
 0x827   : > { %v8586_v38 = vpop.f32.mrf.mxu1 }
 0x892   : > { %v2064_v39 = vpop.f32.mrf.mxu0 }
 0x893   : > { %v2114_v52 = vadd.f32 %v2113_v34, %v2064_v39  ;;  %v9273_v39 = vld [vmem:[#allocation2 + $0x2f0] ss:$8 sps:$4 sm:$0xff]  }
 0x894   : > { %v8579_v41 = vpop.f32.mrf.mxu0  ;;  %8630 = vmatpush3.bf16.msra.mxu1 %v9273_v39 }
 0x895   : > { %8631 = vmatprep.subr.bf16.mxu1 %v9438_v19 }
 0x896   : > { %v2067_v42 = vpop.f32.mrf.mxu0  ;;  %v2222_v43 = vpop.f32.mrf.mxu1 }
 0x897   : > { %v2117_v58 = vadd.f32 %v2116_v36, %v2067_v42 }
 0x898   : > { %v8580_v44 = vpop.f32.mrf.mxu0  ;;  %v8597_v45 = vpop.f32.mrf.mxu1 }
 0x899   : > { %v9275_v45 = vld [vmem:[#allocation2 + $0x2d0] ss:$8 sps:$4 sm:$0xff]  }
 0x89a   : > { %v2167_v46 = vpop.f32.mrf.mxu0  ;;  %v2225_v47 = vpop.f32.mrf.mxu1 }
 0x89b   : > { %v2174_v55 = vadd.f32 %v2167_v46, %v2114_v52  ;;  %v9276_v46 = vld [vmem:[#allocation2 + $0x2c0] ss:$8 sps:$4 sm:$0xff]  }
 0x89c   : > { %v8591_v48 = vpop.f32.mrf.mxu0  ;;  %v8598_v49 = vpop.f32.mrf.mxu1 }
 0x89d   : > { %v2229_v63 = vadd.f32 %v2222_v43, %v2174_v55  ;;  %v9274_v43 = vld [vmem:[#allocation2 + $0x2e0] ss:$8 sps:$4 sm:$0xff]  }
 0x89e   : > { %v2170_v50 = vpop.f32.mrf.mxu0  ;;  %v2330_v51 = vpop.f32.mrf.mxu1  ;;  %8632 = vmatpush3.bf16.msra.mxu1 %v9274_v43 }
 0x89f   : > { %v2175_v0 = vadd.f32 %v2170_v50, %v2117_v58  ;;  %8633 = vmatprep.subr.bf16.mxu1 %v9438_v19 }
 0x8a0   : > { %v8592_v53 = vpop.f32.mrf.mxu0  ;;  %v8609_v54 = vpop.f32.mrf.mxu1 }
 0x8a1   : > { %v2230_v9 = vadd.f32 %v2225_v47, %v2175_v0 }
 0x8a2   : > { %v2276_v56 = vpop.f32.mrf.mxu0  ;;  %v2333_v57 = vpop.f32.mrf.mxu1  ;;  %8634 = vmatpush3.bf16.msra.mxu1 %v9275_v45 }
 0x8a3   : > { %v2283_v5 = vadd.f32 %v2276_v56, %v2229_v63  ;;  %8635 = vmatprep.subr.bf16.mxu1 %v9438_v19 }
 0x8a4   : > { %v8603_v61 = vpop.f32.mrf.mxu0  ;;  %v8610_v62 = vpop.f32.mrf.mxu1 }
 0x8a5   : > { %v2337_v13 = vadd.f32 %v2330_v51, %v2283_v5 }
 0x8a6   : > { %v2279_v8 = vpop.f32.mrf.mxu0  ;;  %v2438_v3 = vpop.f32.mrf.mxu1  ;;  %8636 = vmatpush3.bf16.msra.mxu1 %v9276_v46 }
 0x8a7   : > { %v2284_v14 = vadd.f32 %v2279_v8, %v2230_v9  ;;  %v2621_v8 = vand.u32 3, %v9511_v2 }
 0x8a8   : > { %v8604_v6 = vpop.f32.mrf.mxu0  ;;  %v8621_v7 = vpop.f32.mrf.mxu1 }
 0x8a9   : > { %v2338_v26 = vadd.f32 %v2333_v57, %v2284_v14  ;;  %vm2625_vm10 = vcmp.ne.s32.totalorder %v2621_v8, 3 }
 0x8aa   : > { %v2384_v10 = vpop.f32.mrf.mxu0  ;;  %v2441_v12 = vpop.f32.mrf.mxu1  ;;  %v9896_v7 = vsel %vm2625_vm10, 1.0, %v9438_v19  ;;  %vm2636_vm10 = vcmask 39936  }
 0x8ab   : > { %v2391_v17 = vadd.f32 %v2384_v10, %v2337_v13 }
 0x8ac   : > { %v8615_v15 = vpop.f32.mrf.mxu0  ;;  %v8622_v16 = vpop.f32.mrf.mxu1 }
 0x8ad   : > { %v2445_v28 = vadd.f32 %v2438_v3, %v2391_v17 }
 0x8ae   : > { %v2387_v18 = vpop.f32.mrf.mxu0 }
 0x8af   : > { %v2392_v21 = vadd.f32 %v2387_v18, %v2338_v26  ;;  %v9277_v18 = vld [vmem:[#allocation2 + $0x320] ss:$8 sps:$4 sm:$0xff]  }
 0x8b0   : > { %v8616_v27 = vpop.f32.mrf.mxu0  ;;  %8643 = vmatprep.mubr.msk.bf16.mxu0 %vm2026_vm0, %v9277_v18  ;;  %v9279_v26 = vld [vmem:[#allocation2 + $0x340] ss:$8 sps:$4 sm:$0xff]   ;;  %v9288_v18 = vld [vmem:[#allocation2 + $0x3d0] ss:$8 sps:$4 sm:$0xff]  }
 0x8b1   : > { %v2446_v11 = vadd.f32 %v2441_v12, %v2392_v21 }
 0x8b2   : > { %v2492_v24 = vpop.f32.mrf.mxu0 }
 0x8b3   : > { %v2499_v29 = vadd.f32 %v2492_v24, %v2445_v28 }
 0x8b4   : > { %v8627_v30 = vpop.f32.mrf.mxu0 }
 0x8b5   : > { %v2513_v33 = vadd.f32 %v2506_v31, %v2499_v29 }
 0x8b6   : > { %v2495_v32 = vpop.f32.mrf.mxu0 }
 0x8b7   : > { %v2500_v34 = vadd.f32 %v2495_v32, %v2446_v11  ;;  %v9874_v41 = vmax.f32 %v2513_v33, 0.0 }
 0x8b8   : > { %v8628_v36 = vpop.f32.mrf.mxu0 }
 0x8b9   : > { %v2514_v38 = vadd.f32 %v2511_v35, %v2500_v34 }
 0x8bb   : > { %v9876_v42 = vmax.f32 %v2514_v38, 0.0 }
 0x8bd   : > { %v9881_v44 = vpack.i.bf16 %v9876_v42, %v9874_v41 }
 0x8bf   : > { %9065 = vrot.lane.b32.xlu0 %v9881_v44, %s9440_s29 }
 0x931   : > { %v9066_v47 = vpop.permute.xlu0 %9065 }
 0x932   : > { %v9068_v48 = vunpack.i.h.bf16 %v9066_v47  ;;  %v9067_v49 = vunpack.i.l.bf16 %v9066_v47 }
 0x934   : > { %v2527_v50 = vsel %vm2525_vm14, %v9068_v48, 0.0  ;;  %v2526_v51 = vsel %vm2525_vm14, %v9067_v49, 0.0  ;;  %vm2622_vm14 = vcmp.ne.s32.totalorder %v2621_v8, 0  ;;  %v9281_v8 = vld [vmem:[#allocation2 + $0x300] ss:$8 sps:$4 sm:$0xff]  }
 0x935   : > { %v2528_v52 = vmax.f32 %v9874_v41, %v2526_v51  ;;  %v2529_v53 = vmax.f32 %v9876_v42, %v2527_v50  ;;  %v9893_v5 = vsel %vm2622_vm14, 1.0, %v9438_v19 }
 0x937   : > { %v9069_v54 = vpack.i.bf16 %v2529_v53, %v2528_v52 }
 0x939   : > { %9070 = vrot.lane.b32.xlu1 %v9069_v54, %s9450_s15  ;;  %v3351_v54 = vld [vmem:[%s10728_s2 + $0x40] sm:$0xff] }
 0x9ab   : > { %v9071_v55 = vpop.permute.xlu1 %9070 }
 0x9ac   : > { %v9073_v56 = vunpack.i.h.bf16 %v9071_v55  ;;  %v9072_v57 = vunpack.i.l.bf16 %v9071_v55  ;;  %v3352_v55 = vld [vmem:[%s10728_s2 + $0x48] sm:$0xff] }
 0x9ae   : > { %v2540_v58 = vsel %vm2538_vm12, %v9073_v56, 0.0  ;;  %v2539_v61 = vsel %vm2538_vm12, %v9072_v57, 0.0  ;;  %vm2639_vm12 = vcmask 171008   ;;  %v3349_v56 = vld [vmem:[%s10728_s2 + $0x30] sm:$0xff]  ;;  %v3350_v57 = vld [vmem:[%s10728_s2 + $0x38] sm:$0xff] }
 0x9af   : > { %v2542_v62 = vmax.f32 %v2529_v53, %v2540_v58  ;;  %v2541_v63 = vmax.f32 %v2528_v52, %v2539_v61  ;;  %vm9941_vm14 = vmpackc.low %vm2639_vm12, %vm2639_vm12  ;;  %v4173_v61 = vld [vmem:[%s10728_s2 + $0x60] sm:$0xff] }
 0x9b1   : > { %v2551_v0 = vpack.c.bf16 %v2542_v62, %v2541_v63  ;;  %v9278_v63 = vld [vmem:[#allocation2 + $0x330] ss:$8 sps:$4 sm:$0xff]  }
 0x9b3   : > { %8638 = vmatmul.mubr.msk.bf16.vlgmr.msra.gmra.mxu1 %vm2576_vm11, %v2551_v0  ;;  %v9280_v0 = vld [vmem:[#allocation2 + $0x350] ss:$8 sps:$4 sm:$0xff]  }
 0x9b4   : > { %8655 = vmatprep.mubr.msk.bf16.mxu1 %vm2026_vm0, %v9279_v26  ;;  %v9289_v26 = vld [vmem:[#allocation2 + $0x3a0] ss:$8 sps:$4 sm:$0xff]  }
 0xa73   : > { %v2614_v3 = vpop.f32.mrf.mxu1 }
 0xa74   : > { %v2642_v10 = vmul.f32 %v9893_v5, %v2614_v3  ;;  %v2656_v2 = vmul.f32 %v9896_v7, %v2614_v3 }
 0xa75   : > { %v8639_v6 = vpop.f32.mrf.mxu1 }
 0xa76   : > { %v9283_v6 = vld [vmem:[#allocation2 + $0x380] ss:$8 sps:$4 sm:$0xff]  }
 0xa77   : > { %v2617_v9 = vpop.f32.mrf.mxu1 }
 0xa78   : > { %v9074_v12 = vpack.i.bf16 %v2617_v9, %v2614_v3  ;;  %v2643_v13 = vmul.f32 %v9893_v5, %v2617_v9  ;;  %v2657_v14 = vmul.f32 %v9896_v7, %v2617_v9 }
 0xa79   : > { %v8640_v15 = vpop.f32.mrf.mxu1 }
 0xa7a   : > { %9075 = vrot.lane.b32.xlu0 %v9074_v12, %s9453_s27  ;;  %v9079_v16 = vpack.i.bf16 %v2643_v13, %v2642_v10  ;;  %v9084_v17 = vpack.i.bf16 %v2657_v14, %v2656_v2  ;;  %v9282_v12 = vld [vmem:[#allocation2 + $0x310] ss:$8 sps:$4 sm:$0xff]   ;;  %v9285_v14 = vld [vmem:[#allocation2 + $0x360] ss:$8 sps:$4 sm:$0xff]  }
 0xa7b   : > { %v9284_v13 = vld [vmem:[#allocation2 + $0x390] ss:$8 sps:$4 sm:$0xff]   ;;  %v9287_v2 = vld [vmem:[#allocation2 + $0x3c0] ss:$8 sps:$4 sm:$0xff]  }
 0xa7c   : > { %9080 = vrot.lane.b32.xlu1 %v9079_v16, %s9453_s27 }
 0xa7e   : > { %9085 = vrot.lane.b32.xlu0 %v9084_v17, %s9453_s27  ;;  %v9286_v17 = vld [vmem:[#allocation2 + $0x370] ss:$8 sps:$4 sm:$0xff]  }
 0xaec   : > { %v9076_v27 = vpop.permute.xlu0 %9075 }
 0xaed   : > { %v9078_v28 = vunpack.i.h.bf16 %v9076_v27  ;;  %v9077_v21 = vunpack.i.l.bf16 %v9076_v27  ;;  %v9291_v27 = vld [vmem:[#allocation2 + $0x400] ss:$8 sps:$4 sm:$0xff]  }
 0xaee   : > { %v9081_v24 = vpop.permute.xlu1 %9080 }
 0xaef   : > { %v2638_v29 = vsel %vm2636_vm10, 0.0, %v9078_v28  ;;  %v2637_v30 = vsel %vm2636_vm10, 0.0, %v9077_v21  ;;  %v9083_v11 = vunpack.i.h.bf16 %v9081_v24  ;;  %v9082_v31 = vunpack.i.l.bf16 %v9081_v24  ;;  %v9290_v21 = vld [vmem:[#allocation2 + $0x3b0] ss:$8 sps:$4 sm:$0xff]  }
 0xaf0   : > { %v2641_v32 = vsel %vm2639_vm12, %v2638_v29, 0.0  ;;  %v2640_v33 = vsel %vm2639_vm12, %v2637_v30, 0.0  ;;  %v9086_v34 = vpop.permute.xlu0 %9085  ;;  %v9292_v24 = vld [vmem:[#allocation2 + $0x410] ss:$8 sps:$4 sm:$0xff]   ;;  %v9293_v29 = vld [vmem:[#allocation2 + $0x3e0] ss:$8 sps:$4 sm:$0xff]  }
 0xaf1   : > { %v2653_v35 = vsel %vm2636_vm10, 0.0, %v9083_v11  ;;  %v2652_v36 = vsel %vm2636_vm10, 0.0, %v9082_v31  ;;  %v9088_v38 = vunpack.i.h.bf16 %v9086_v34  ;;  %v9087_v39 = vunpack.i.l.bf16 %v9086_v34  ;;  %v9294_v30 = vld [vmem:[#allocation2 + $0x3f0] ss:$8 sps:$4 sm:$0xff]  }
 0xaf2   : > { %v2655_v43 = vsel %vm2639_vm12, %v2653_v35, 0.0  ;;  %v2654_v45 = vsel %vm2639_vm12, %v2652_v36, 0.0  ;;  %v2707_v46 = vpack.c.bf16 %v2641_v32, %v2640_v33 }
 0xaf3   : > { %v2667_v47 = vsel %vm2636_vm10, 0.0, %v9088_v38  ;;  %v2666_v48 = vsel %vm2636_vm10, 0.0, %v9087_v39  ;;  %v2842_v49 = vpack.c.bf16 %v2655_v43, %v2654_v45 }
 0xaf4   : > { %v2669_v50 = vsel %vm2639_vm12, %v2667_v47, 0.0  ;;  %v2668_v51 = vsel %vm2639_vm12, %v2666_v48, 0.0  ;;  %v8073_v52 = vpack.c.bf16 %v2667_v47, %v2666_v48  ;;  %2719 = vrot.lane.b32.xlu1 %v2707_v46, %s9440_s29 }
 0xaf5   : > { %2854 = vrot.lane.b32.xlu0 %v2842_v49, %s9443_s5  ;;  %v2706_v53 = vpack.c.bf16 %v2669_v50, %v2668_v51 }
 0xaf8   : > { %2927 = vrot.lane.b32.xlu1 %v2706_v53, %s9454_s28 }
 0xaf9   : > { %2999 = vrot.lane.b32.xlu0 %v2707_v46, %s9455_s10 }
 0xafc   : > { %3071 = vrot.lane.b32.xlu1 %v2842_v49, %s9456_s11 }
 0xafd   : > { %3143 = vrot.lane.b32.xlu0 %v2706_v53, %s9450_s15 }
 0xb00   : > { %3215 = vrot.lane.b32.xlu1 %v2707_v46, %s9451_s16 }
 0xb01   : > { %3287 = vrot.lane.b32.xlu0 %v2842_v49, %s9452_s17 }
 0xb04   : > { %3365 = vperm.xlu1 %9012, %v3351_v54  }
 0xb05   : > { %3370 = vperm.xlu0 %9018, %v3352_v55  }
 0xb08   : > { %3355 = vperm.xlu1 %9012, %v3349_v56  }
 0xb09   : > { %3360 = vperm.xlu0 %9018, %v3350_v57  }
 0xb66   : > { %v2720_v58 = vpop.permute.xlu1 %2719 }
 0xb67   : > { %8641 = vmatprep.subr.bf16.mxu0 %v2720_v58  ;;  %v2855_v62 = vpop.permute.xlu0 %2854 }
 0xb68   : > { %8642 = vmatpush3.bf16.msra.mxu0 %v2720_v58  ;;  %8653 = vmatprep.subr.bf16.mxu1 %v2855_v62 }
 0xb69   : > { %8647 = vmatprep.subr.msk.bf16.mxu0 %vm9941_vm14, %v8073_v52  ;;  %8654 = vmatpush3.bf16.msra.mxu1 %v2855_v62 }
 0xb6a   : > { %v2928_v9 = vpop.permute.xlu1 %2927 }
 0xb6b   : > { %8644 = vmatmul.mubr.msk.bf16.vlgmr.msra.gmra.mxu0 %vm2026_vm0, %v9278_v63  ;;  %v3000_v3 = vpop.permute.xlu0 %2999 }
 0xb6c   : > { %8648 = vmatpush3.bf16.msk.msra.mxu0 %vm9941_vm14, %v8073_v52  ;;  %8656 = vmatmul.mubr.msk.bf16.vlgmr.msra.gmra.mxu1 %vm2026_vm0, %v9280_v0 }
 0xb6d   : > { %8659 = vmatprep.subr.bf16.mxu0 %v2928_v9  ;;  %8665 = vmatprep.subr.bf16.mxu1 %v3000_v3 }
 0xb6e   : > { %8666 = vmatpush3.bf16.msra.mxu1 %v3000_v3  ;;  %8649 = vmatprep.mubr.msk.bf16.mxu0 %vm2026_vm0, %v9281_v8  ;;  %v3072_v16 = vpop.permute.xlu1 %3071 }
 0xb6f   : > { %v3144_v10 = vpop.permute.xlu0 %3143  ;;  %8667 = vmatprep.mubr.msk.bf16.mxu1 %vm2026_vm0, %v9283_v6 }
 0xb70   : > { %8677 = vmatprep.subr.bf16.mxu1 %v3144_v10 }
 0xb72   : > { %v3216_v28 = vpop.permute.xlu1 %3215 }
 0xb73   : > { %8650 = vmatmul.mubr.msk.bf16.vlgmr.msra.gmra.mxu0 %vm2026_vm0, %v9282_v12  ;;  %v3288_v15 = vpop.permute.xlu0 %3287 }
 0xb74   : > { %8660 = vmatpush3.bf16.msra.mxu0 %v2928_v9  ;;  %8668 = vmatmul.mubr.msk.bf16.vlgmr.msra.gmra.mxu1 %vm2026_vm0, %v9284_v13 }
 0xb75   : > { %8671 = vmatprep.subr.bf16.mxu0 %v3072_v16  ;;  %8678 = vmatpush3.bf16.msra.mxu1 %v3144_v10 }
 0xb76   : > { %8689 = vmatprep.subr.bf16.mxu1 %v3288_v15  ;;  %8661 = vmatprep.mubr.msk.bf16.mxu0 %vm2026_vm0, %v9285_v14 }
 0xb77   : > { %8679 = vmatprep.mubr.msk.bf16.mxu1 %vm2026_vm0, %v9287_v2 }
 0xb7b   : > { %8662 = vmatmul.mubr.msk.bf16.vlgmr.msra.gmra.mxu0 %vm2026_vm0, %v9286_v17 }
 0xb7c   : > { %8672 = vmatpush3.bf16.msra.mxu0 %v3072_v16  ;;  %8680 = vmatmul.mubr.msk.bf16.vlgmr.msra.gmra.mxu1 %vm2026_vm0, %v9288_v18 }
 0xb7d   : > { %8683 = vmatprep.subr.bf16.mxu0 %v3216_v28  ;;  %8690 = vmatpush3.bf16.msra.mxu1 %v3288_v15 }
 0xb7e   : > { %8673 = vmatprep.mubr.msk.bf16.mxu0 %vm2026_vm0, %v9289_v26  ;;  %8691 = vmatprep.mubr.msk.bf16.mxu1 %vm2026_vm0, %v9291_v27 }
 0xb83   : > { %8674 = vmatmul.mubr.msk.bf16.vlgmr.msra.gmra.mxu0 %vm2026_vm0, %v9290_v21 }
 0xb84   : > { %8684 = vmatpush3.bf16.msra.mxu0 %v3216_v28  ;;  %8692 = vmatmul.mubr.msk.bf16.vlgmr.msra.gmra.mxu1 %vm2026_vm0, %v9292_v24 }
 0xb85   : > { %8685 = vmatprep.mubr.msk.bf16.mxu0 %vm2026_vm0, %v9293_v29 }
 0xb8b   : > { %8686 = vmatmul.mubr.msk.bf16.vlgmr.msra.gmra.mxu0 %vm2026_vm0, %v9294_v30 }
 0xc2b   : > { %v8645_v11 = vpop.f32.mrf.mxu0 }
 0xc2c   : > { %v8657_v31 = vpop.f32.mrf.mxu1 }
 0xc2d   : > { %v2762_v32 = vpop.f32.mrf.mxu0 }
 0xc2e   : > { %v2897_v33 = vpop.f32.mrf.mxu1 }
 0xc2f   : > { %v8646_v34 = vpop.f32.mrf.mxu0 }
 0xc30   : > { %v8658_v35 = vpop.f32.mrf.mxu1 }
 0xc31   : > { %v2765_v36 = vpop.f32.mrf.mxu0 }
 0xc32   : > { %v2900_v38 = vpop.f32.mrf.mxu1 }
 0xc33   : > { %v8651_v39 = vpop.f32.mrf.mxu0 }
 0xc34   : > { %v8669_v43 = vpop.f32.mrf.mxu1  ;;  %v2836_v50 = vadd.f32 %v8651_v39, %v8645_v11  ;;  %v3366_v39 = vpop.permute.xlu1 %3365 }
 0xc35   : > { %v2827_v45 = vpop.f32.mrf.mxu0 }
 0xc36   : > { %v3042_v46 = vpop.f32.mrf.mxu1  ;;  %v2828_v53 = vadd.f32 %v2827_v45, %v2762_v32  ;;  %v2914_v57 = vadd.f32 %v8657_v31, %v2836_v50 }
 0xc37   : > { %v8652_v47 = vpop.f32.mrf.mxu0 }
 0xc38   : > { %v8670_v48 = vpop.f32.mrf.mxu1  ;;  %v2839_v56 = vadd.f32 %v8652_v47, %v8646_v34  ;;  %v2912_v8 = vadd.f32 %v2897_v33, %v2828_v53 }
 0xc39   : > { %v2830_v49 = vpop.f32.mrf.mxu0 }
 0xc3a   : > { %v3045_v51 = vpop.f32.mrf.mxu1  ;;  %v2831_v63 = vadd.f32 %v2830_v49, %v2765_v36  ;;  %v2915_v10 = vadd.f32 %v8658_v35, %v2839_v56 }
 0xc3b   : > { %v8663_v52 = vpop.f32.mrf.mxu0 }
 0xc3c   : > { %v8681_v54 = vpop.f32.mrf.mxu1  ;;  %v2987_v0 = vadd.f32 %v8663_v52, %v2914_v57  ;;  %v2913_v15 = vadd.f32 %v2900_v38, %v2831_v63  ;;  %v3356_v57 = vpop.permute.xlu1 %3355 }
 0xc3d   : > { %v2970_v55 = vpop.f32.mrf.mxu0 }
 0xc3e   : > { %v3186_v58 = vpop.f32.mrf.mxu1  ;;  %v2985_v9 = vadd.f32 %v2970_v55, %v2912_v8  ;;  %v3059_v2 = vadd.f32 %v8669_v43, %v2987_v0  ;;  %v3371_v43 = vpop.permute.xlu0 %3370 }
 0xc3f   : > { %v8664_v62 = vpop.f32.mrf.mxu0 }
 0xc40   : > { %v8682_v3 = vpop.f32.mrf.mxu1  ;;  %v2988_v14 = vadd.f32 %v8664_v62, %v2915_v10  ;;  %v3057_v26 = vadd.f32 %v3042_v46, %v2985_v9 }
 0xc41   : > { %v2973_v6 = vpop.f32.mrf.mxu0 }
 0xc42   : > { %v3189_v13 = vpop.f32.mrf.mxu1  ;;  %v2986_v17 = vadd.f32 %v2973_v6, %v2913_v15  ;;  %v3060_v24 = vadd.f32 %v8670_v48, %v2988_v14  ;;  %v3361_v8 = vpop.permute.xlu0 %3360 }
 0xc43   : > { %v8675_v12 = vpop.f32.mrf.mxu0 }
 0xc44   : > { %v3131_v18 = vadd.f32 %v8675_v12, %v3059_v2  ;;  %v8693_v28 = vpop.f32.mrf.mxu1  ;;  %v3058_v11 = vadd.f32 %v3045_v51, %v2986_v17 }
 0xc45   : > { %v3114_v16 = vpop.f32.mrf.mxu0 }
 0xc46   : > { %v3129_v21 = vadd.f32 %v3114_v16, %v3057_v26  ;;  %v3203_v31 = vadd.f32 %v8681_v54, %v3131_v18  ;;  %v3330_v32 = vpop.f32.mrf.mxu1 }
 0xc47   : > { %v8676_v27 = vpop.f32.mrf.mxu0 }
 0xc48   : > { %v3132_v30 = vadd.f32 %v8676_v27, %v3060_v24  ;;  %v3201_v36 = vadd.f32 %v3186_v58, %v3129_v21  ;;  %v8694_v46 = vpop.f32.mrf.mxu1 }
 0xc49   : > { %v3117_v29 = vpop.f32.mrf.mxu0 }
 0xc4a   : > { %v3130_v34 = vadd.f32 %v3117_v29, %v3058_v11  ;;  %v3204_v49 = vadd.f32 %v8682_v3, %v3132_v30  ;;  %v3333_v62 = vpop.f32.mrf.mxu1  ;;  %v9295_v11 = vld [vmem:[#allocation2 + $0x440] ss:$8 sps:$4 sm:$0xff]  }
 0xc4b   : > { %v8687_v33 = vpop.f32.mrf.mxu0  ;;  %8699 = vmatprep.mubr.msk.bf16.mxu0 %vm3519_vm9, %v9295_v11 }
 0xc4c   : > { %v3275_v35 = vadd.f32 %v8687_v33, %v3203_v31  ;;  %v3202_v48 = vadd.f32 %v3189_v13, %v3130_v34  ;;  %v9296_v31 = vld [vmem:[#allocation2 + $0x420] ss:$8 sps:$4 sm:$0xff]  }
 0xc4d   : > { %v3258_v38 = vpop.f32.mrf.mxu0  ;;  %8707 = vmatprep.mubr.msk.bf16.mxu1 %vm3519_vm9, %v9296_v31 }
 0xc4e   : > { %v3347_v45 = vadd.f32 %v8693_v28, %v3275_v35  ;;  %v3273_v47 = vadd.f32 %v3258_v38, %v3201_v36 }
 0xc4f   : > { %v8688_v50 = vpop.f32.mrf.mxu0 }
 0xc50   : > { %v3345_v52 = vadd.f32 %v3330_v32, %v3273_v47  ;;  %v3276_v53 = vadd.f32 %v8688_v50, %v3204_v49  ;;  %v3375_v56 = vadd.f32 %v3366_v39, %v3347_v45 }
 0xc51   : > { %v3261_v55 = vpop.f32.mrf.mxu0 }
 0xc52   : > { %v3348_v51 = vadd.f32 %v8694_v46, %v3276_v53  ;;  %v3274_v54 = vadd.f32 %v3261_v55, %v3202_v48  ;;  %v3373_v63 = vadd.f32 %v3356_v57, %v3345_v52  ;;  %v3379_v6 = vmax.f32 %v3375_v56, 0.0 }
 0xc54   : > { %v3376_v0 = vadd.f32 %v3371_v43, %v3348_v51  ;;  %v3346_v58 = vadd.f32 %v3333_v62, %v3274_v54  ;;  %v3377_v12 = vmax.f32 %v3373_v63, 0.0  ;;  %v3407_v2 = vmul.f32 %v9893_v5, %v3379_v6 }
 0xc55   : > { %v3435_v28 = vmul.f32 %v9896_v7, %v3379_v6 }
 0xc56   : > { %v3380_v9 = vmax.f32 %v3376_v0, 0.0  ;;  %v3374_v10 = vadd.f32 %v3361_v8, %v3346_v58  ;;  %v3405_v18 = vmul.f32 %v9893_v5, %v3377_v12  ;;  %v3433_v29 = vmul.f32 %v9896_v7, %v3377_v12 }
 0xc58   : > { %v3378_v3 = vmax.f32 %v3374_v10, 0.0  ;;  %v9089_v14 = vpack.i.bf16 %v3380_v9, %v3379_v6  ;;  %v3408_v15 = vmul.f32 %v9893_v5, %v3380_v9  ;;  %v3436_v26 = vmul.f32 %v9896_v7, %v3380_v9 }
 0xc5a   : > { %9090 = vrot.lane.b32.xlu1 %v9089_v14, %s9453_s27  ;;  %v9094_v13 = vpack.i.bf16 %v3378_v3, %v3377_v12  ;;  %v3406_v16 = vmul.f32 %v9893_v5, %v3378_v3  ;;  %v9099_v17 = vpack.i.bf16 %v3408_v15, %v3407_v2  ;;  %v3434_v21 = vmul.f32 %v9896_v7, %v3378_v3 }
 0xc5b   : > { %v9109_v24 = vpack.i.bf16 %v3436_v26, %v3435_v28 }
 0xc5c   : > { %9095 = vrot.lane.b32.xlu0 %v9094_v13, %s9453_s27  ;;  %v9104_v27 = vpack.i.bf16 %v3406_v16, %v3405_v18  ;;  %v9114_v30 = vpack.i.bf16 %v3434_v21, %v3433_v29 }
 0xc5e   : > { %9100 = vrot.lane.b32.xlu1 %v9099_v17, %s9453_s27 }
 0xc60   : > { %9105 = vrot.lane.b32.xlu0 %v9104_v27, %s9453_s27 }
 0xc62   : > { %9110 = vrot.lane.b32.xlu1 %v9109_v24, %s9453_s27 }
 0xc64   : > { %9115 = vrot.lane.b32.xlu0 %v9114_v30, %s9453_s27 }
 0xccc   : > { %v9091_v5 = vpop.permute.xlu1 %9090 }
 0xccd   : > { %v9093_v32 = vunpack.i.h.bf16 %v9091_v5  ;;  %v9092_v33 = vunpack.i.l.bf16 %v9091_v5 }
 0xcce   : > { %v9096_v34 = vpop.permute.xlu0 %9095 }
 0xccf   : > { %v3400_v35 = vsel %vm2636_vm10, 0.0, %v9093_v32  ;;  %v3399_v7 = vsel %vm2636_vm10, 0.0, %v9092_v33  ;;  %v9098_v36 = vunpack.i.h.bf16 %v9096_v34  ;;  %v9097_v39 = vunpack.i.l.bf16 %v9096_v34  ;;  %v9298_v32 = vld [vmem:[#allocation2 + $0x430] ss:$8 sps:$4 sm:$0xff]   ;;  %v9300_v33 = vld [vmem:[#allocation2 + $0x480] ss:$8 sps:$4 sm:$0xff]  }
 0xcd0   : > { %v3404_v38 = vsel %vm2639_vm12, %v3400_v35, 0.0  ;;  %v3403_v43 = vsel %vm2639_vm12, %v3399_v7, 0.0  ;;  %v9101_v45 = vpop.permute.xlu1 %9100  ;;  %v4174_v34 = vld [vmem:[%s10728_s2 + $0x68] sm:$0xff]  ;;  %v4171_v35 = vld [vmem:[%s10728_s2 + $0x50] sm:$0xff]  ;;  %v4172_v7 = vld [vmem:[%s10728_s2 + $0x58] sm:$0xff] }
 0xcd1   : > { %v3398_v47 = vsel %vm2636_vm10, 0.0, %v9098_v36  ;;  %v3397_v49 = vsel %vm2636_vm10, 0.0, %v9097_v39  ;;  %v9103_v46 = vunpack.i.h.bf16 %v9101_v45  ;;  %v9102_v50 = vunpack.i.l.bf16 %v9101_v45  ;;  %v4652_v36 = vld [vmem:[%s10728_s2 + $0x80] sm:$0xff]  ;;  %v4653_v39 = vld [vmem:[%s10728_s2 + $0x88] sm:$0xff] }
 0xcd2   : > { %v3402_v52 = vsel %vm2639_vm12, %v3398_v47, 0.0  ;;  %v3401_v53 = vsel %vm2639_vm12, %v3397_v49, 0.0  ;;  %v9106_v48 = vpop.permute.xlu0 %9105  ;;  %v3500_v55 = vpack.c.bf16 %v3404_v38, %v3403_v43  ;;  %v4650_v38 = vld [vmem:[%s10728_s2 + $0x70] sm:$0xff]  ;;  %v4651_v43 = vld [vmem:[%s10728_s2 + $0x78] sm:$0xff] }
 0xcd3   : > { %v3428_v56 = vsel %vm2636_vm10, 0.0, %v9103_v46  ;;  %v3427_v51 = vsel %vm2636_vm10, 0.0, %v9102_v50  ;;  %v9108_v54 = vunpack.i.h.bf16 %v9106_v48  ;;  %v9107_v57 = vunpack.i.l.bf16 %v9106_v48  ;;  %v9297_v46 = vld [vmem:[#allocation2 + $0x450] ss:$8 sps:$4 sm:$0xff]  }
 0xcd4   : > { %v3432_v62 = vsel %vm2639_vm12, %v3428_v56, 0.0  ;;  %v3431_v63 = vsel %vm2639_vm12, %v3427_v51, 0.0  ;;  %3515 = vrot.lane.b32.xlu1 %v3500_v55, %s9440_s29  ;;  %v9111_v0 = vpop.permute.xlu1 %9110  ;;  %v3499_v58 = vpack.c.bf16 %v3402_v52, %v3401_v53  ;;  %v9299_v52 = vld [vmem:[#allocation2 + $0x460] ss:$8 sps:$4 sm:$0xff]   ;;  %v9301_v56 = vld [vmem:[#allocation2 + $0x470] ss:$8 sps:$4 sm:$0xff]  }
 0xcd5   : > { %v3426_v8 = vsel %vm2636_vm10, 0.0, %v9108_v54  ;;  %v3425_v6 = vsel %vm2636_vm10, 0.0, %v9107_v57  ;;  %v9113_v9 = vunpack.i.h.bf16 %v9111_v0  ;;  %v9112_v10 = vunpack.i.l.bf16 %v9111_v0  ;;  %v9302_v51 = vld [vmem:[#allocation2 + $0x490] ss:$8 sps:$4 sm:$0xff]  }
 0xcd6   : > { %v3430_v12 = vsel %vm2639_vm12, %v3426_v8, 0.0  ;;  %v3429_v3 = vsel %vm2639_vm12, %v3425_v6, 0.0  ;;  %3513 = vrot.lane.b32.xlu0 %v3499_v58, %s9440_s29  ;;  %v9116_v14 = vpop.permute.xlu0 %9115  ;;  %v3641_v15 = vpack.c.bf16 %v3432_v62, %v3431_v63  ;;  %v9303_v62 = vld [vmem:[#allocation2 + $0x4c0] ss:$8 sps:$4 sm:$0xff]   ;;  %v9305_v8 = vld [vmem:[#allocation2 + $0x4b0] ss:$8 sps:$4 sm:$0xff]  }
 0xcd7   : > { %v3456_v13 = vsel %vm2636_vm10, 0.0, %v9113_v9  ;;  %v3455_v2 = vsel %vm2636_vm10, 0.0, %v9112_v10  ;;  %v9118_v16 = vunpack.i.h.bf16 %v9116_v14  ;;  %v9117_v17 = vunpack.i.l.bf16 %v9116_v14  ;;  %v9304_v63 = vld [vmem:[#allocation2 + $0x4a0] ss:$8 sps:$4 sm:$0xff]   ;;  %v9306_v9 = vld [vmem:[#allocation2 + $0x4d0] ss:$8 sps:$4 sm:$0xff]  }
 0xcd8   : > { %v3460_v18 = vsel %vm2639_vm12, %v3456_v13, 0.0  ;;  %v3459_v26 = vsel %vm2639_vm12, %v3455_v2, 0.0  ;;  %v8112_v27 = vpack.c.bf16 %v3456_v13, %v3455_v2  ;;  %3656 = vrot.lane.b32.xlu1 %v3641_v15, %s9443_s5  ;;  %v3640_v28 = vpack.c.bf16 %v3430_v12, %v3429_v3  ;;  %v9307_v12 = vld [vmem:[#allocation2 + $0x4e0] ss:$8 sps:$4 sm:$0xff]   ;;  %v9309_v13 = vld [vmem:[#allocation2 + $0x4f0] ss:$8 sps:$4 sm:$0xff]  }
 0xcd9   : > { %v3454_v21 = vsel %vm2636_vm10, 0.0, %v9118_v16  ;;  %v3453_v24 = vsel %vm2636_vm10, 0.0, %v9117_v17  ;;  %v3498_v29 = vpack.c.bf16 %v3460_v18, %v3459_v26  ;;  %v9308_v3 = vld [vmem:[#allocation2 + $0x500] ss:$8 sps:$4 sm:$0xff]   ;;  %v9310_v2 = vld [vmem:[#allocation2 + $0x510] ss:$8 sps:$4 sm:$0xff]  }
 0xcda   : > { %v8115_v30 = vpack.c.bf16 %v3454_v21, %v3453_v24  ;;  %3654 = vrot.lane.b32.xlu0 %v3640_v28, %s9443_s5  ;;  %8703 = vmatprep.subr.msk.bf16.mxu1 %vm9941_vm14, %v8112_v27  ;;  %v3458_v5 = vsel %vm2639_vm12, %v3454_v21, 0.0  ;;  %v3457_v11 = vsel %vm2639_vm12, %v3453_v24, 0.0  ;;  %v9311_v16 = vld [vmem:[#allocation2 + $0x520] ss:$8 sps:$4 sm:$0xff]   ;;  %v9312_v18 = vld [vmem:[#allocation2 + $0x530] ss:$8 sps:$4 sm:$0xff]  }
 0xcdb   : > { %8704 = vmatpush3.bf16.msk.msra.mxu1 %vm9941_vm14, %v8112_v27  ;;  %v3497_v31 = vpack.c.bf16 %v3458_v5, %v3457_v11  ;;  %v9313_v26 = vld [vmem:[#allocation2 + $0x540] ss:$8 sps:$4 sm:$0xff]   ;;  %vm10745_vm10 = vcmask 785408  }
 0xcdc   : > { %3733 = vrot.lane.b32.xlu1 %v3498_v29, %s9454_s28  ;;  %8705 = vmatprep.subr.msk.bf16.mxu1 %vm9941_vm14, %v8115_v30  ;;  %vm10746_vm12 = vmmov %vm10745_vm10 }
 0xcde   : > { %3808 = vrot.lane.b32.xlu0 %v3500_v55, %s9455_s10 }
 0xcdf   : > { %8706 = vmatpush3.bf16.msk.msra.mxu1 %vm9941_vm14, %v8115_v30 }
 0xce0   : > { %3731 = vrot.lane.b32.xlu1 %v3497_v31, %s9454_s28 }
 0xce2   : > { %3806 = vrot.lane.b32.xlu0 %v3499_v58, %s9455_s10  ;;  %8708 = vmatmul.mubr.msk.bf16.vlgmr.msra.gmra.mxu1 %vm3519_vm9, %v9298_v32 }
 0xce3   : > { %8723 = vmatprep.mubr.msk.bf16.mxu1 %vm3519_vm9, %v9300_v33 }
 0xce4   : > { %3883 = vrot.lane.b32.xlu1 %v3641_v15, %s9456_s11 }
 0xce6   : > { %3958 = vrot.lane.b32.xlu0 %v3498_v29, %s9450_s15 }
 0xce8   : > { %3881 = vrot.lane.b32.xlu1 %v3640_v28, %s9456_s11 }
 0xcea   : > { %3956 = vrot.lane.b32.xlu0 %v3497_v31, %s9450_s15 }
 0xcec   : > { %4033 = vrot.lane.b32.xlu1 %v3500_v55, %s9451_s16 }
 0xcee   : > { %4108 = vrot.lane.b32.xlu0 %v3641_v15, %s9452_s17 }
 0xcf0   : > { %4031 = vrot.lane.b32.xlu1 %v3499_v58, %s9451_s16 }
 0xcf2   : > { %4106 = vrot.lane.b32.xlu0 %v3640_v28, %s9452_s17 }
 0xcf4   : > { %4187 = vperm.xlu1 %9012, %v4173_v61  }
 0xcf6   : > { %4192 = vperm.xlu0 %9018, %v4174_v34  }
 0xcf8   : > { %4177 = vperm.xlu1 %9012, %v4171_v35  }
 0xcfa   : > { %4182 = vperm.xlu0 %9018, %v4172_v7  }
 0xcfc   : > { %4666 = vperm.xlu1 %9012, %v4652_v36  }
 0xcfe   : > { %4671 = vperm.xlu0 %9018, %v4653_v39  }
 0xd00   : > { %4656 = vperm.xlu1 %9012, %v4650_v38  }
 0xd02   : > { %4661 = vperm.xlu0 %9018, %v4651_v43  }
 0xd46   : > { %v3516_v45 = vpop.permute.xlu1 %3515 }
 0xd47   : > { %8695 = vmatprep.subr.bf16.mxu0 %v3516_v45 }
 0xd48   : > { %8696 = vmatpush3.bf16.msra.mxu0 %v3516_v45  ;;  %v3514_v47 = vpop.permute.xlu0 %3513 }
 0xd49   : > { %8697 = vmatprep.subr.bf16.mxu0 %v3514_v47 }
 0xd4a   : > { %v3657_v49 = vpop.permute.xlu1 %3656 }
 0xd4c   : > { %8698 = vmatpush3.bf16.msra.mxu0 %v3514_v47  ;;  %v3655_v50 = vpop.permute.xlu0 %3654 }
 0xd4d   : > { %8711 = vmatprep.subr.bf16.mxu0 %v3657_v49 }
 0xd4e   : > { %v3734_v53 = vpop.permute.xlu1 %3733 }
 0xd4f   : > { %8700 = vmatmul.mubr.msk.bf16.vlgmr.msra.gmra.mxu0 %vm3519_vm9, %v9297_v46  ;;  %8719 = vmatprep.subr.bf16.mxu1 %v3734_v53 }
 0xd50   : > { %8712 = vmatpush3.bf16.msra.mxu0 %v3657_v49  ;;  %8720 = vmatpush3.bf16.msra.mxu1 %v3734_v53  ;;  %v3809_v48 = vpop.permute.xlu0 %3808 }
 0xd51   : > { %8713 = vmatprep.subr.bf16.mxu0 %v3655_v50  ;;  %8715 = vmatprep.mubr.msk.bf16.mxu0 %vm3519_vm9, %v9299_v52 }
 0xd52   : > { %v3732_v55 = vpop.permute.xlu1 %3731 }
 0xd53   : > { %8721 = vmatprep.subr.bf16.mxu1 %v3732_v55 }
 0xd54   : > { %8714 = vmatpush3.bf16.msra.mxu0 %v3655_v50  ;;  %8722 = vmatpush3.bf16.msra.mxu1 %v3732_v55  ;;  %v3807_v54 = vpop.permute.xlu0 %3806 }
 0xd55   : > { %8727 = vmatprep.subr.bf16.mxu0 %v3809_v48 }
 0xd56   : > { %v3884_v57 = vpop.permute.xlu1 %3883 }
 0xd57   : > { %8716 = vmatmul.mubr.msk.bf16.vlgmr.msra.gmra.mxu0 %vm3519_vm9, %v9301_v56  ;;  %8724 = vmatmul.mubr.msk.bf16.vlgmr.msra.gmra.mxu1 %vm3519_vm9, %v9302_v51 }
 0xd58   : > { %8735 = vmatprep.subr.bf16.mxu1 %v3884_v57  ;;  %8728 = vmatpush3.bf16.msra.mxu0 %v3809_v48  ;;  %v3959_v0 = vpop.permute.xlu0 %3958 }
 0xd59   : > { %8736 = vmatpush3.bf16.msra.mxu1 %v3884_v57  ;;  %8729 = vmatprep.subr.bf16.mxu0 %v3807_v54 }
 0xd5a   : > { %v3882_v58 = vpop.permute.xlu1 %3881  ;;  %8739 = vmatprep.mubr.msk.bf16.mxu1 %vm3519_vm9, %v9303_v62  ;;  %8731 = vmatprep.mubr.msk.bf16.mxu0 %vm3519_vm9, %v9304_v63 }
 0xd5b   : > { %8737 = vmatprep.subr.bf16.mxu1 %v3882_v58 }
 0xd5c   : > { %8730 = vmatpush3.bf16.msra.mxu0 %v3807_v54  ;;  %v3957_v6 = vpop.permute.xlu0 %3956 }
 0xd5d   : > { %8738 = vmatpush3.bf16.msra.mxu1 %v3882_v58  ;;  %8743 = vmatprep.subr.bf16.mxu0 %v3959_v0 }
 0xd5e   : > { %v4034_v10 = vpop.permute.xlu1 %4033 }
 0xd5f   : > { %8732 = vmatmul.mubr.msk.bf16.vlgmr.msra.gmra.mxu0 %vm3519_vm9, %v9305_v8  ;;  %8751 = vmatprep.subr.bf16.mxu1 %v4034_v10 }
 0xd60   : > { %8740 = vmatmul.mubr.msk.bf16.vlgmr.msra.gmra.mxu1 %vm3519_vm9, %v9306_v9  ;;  %8744 = vmatpush3.bf16.msra.mxu0 %v3959_v0  ;;  %v4109_v14 = vpop.permute.xlu0 %4108 }
 0xd61   : > { %8752 = vmatpush3.bf16.msra.mxu1 %v4034_v10  ;;  %8745 = vmatprep.subr.bf16.mxu0 %v3957_v6 }
 0xd62   : > { %v4032_v15 = vpop.permute.xlu1 %4031  ;;  %8747 = vmatprep.mubr.msk.bf16.mxu0 %vm3519_vm9, %v9307_v12  ;;  %8755 = vmatprep.mubr.msk.bf16.mxu1 %vm3519_vm9, %v9308_v3 }
 0xd63   : > { %8753 = vmatprep.subr.bf16.mxu1 %v4032_v15 }
 0xd64   : > { %8746 = vmatpush3.bf16.msra.mxu0 %v3957_v6  ;;  %v4107_v17 = vpop.permute.xlu0 %4106 }
 0xd65   : > { %8754 = vmatpush3.bf16.msra.mxu1 %v4032_v15  ;;  %8759 = vmatprep.subr.bf16.mxu0 %v4109_v14 }
 0xd67   : > { %8748 = vmatmul.mubr.msk.bf16.vlgmr.msra.gmra.mxu0 %vm3519_vm9, %v9309_v13 }
 0xd68   : > { %8756 = vmatmul.mubr.msk.bf16.vlgmr.msra.gmra.mxu1 %vm3519_vm9, %v9310_v2  ;;  %8760 = vmatpush3.bf16.msra.mxu0 %v4109_v14 }
 0xd69   : > { %8761 = vmatprep.subr.bf16.mxu0 %v4107_v17  ;;  %8763 = vmatprep.mubr.msk.bf16.mxu0 %vm3519_vm9, %v9311_v16 }
 0xd6a   : > { %8771 = vmatprep.mubr.msk.bf16.mxu1 %vm3519_vm9, %v9313_v26 }
 0xd6c   : > { %8762 = vmatpush3.bf16.msra.mxu0 %v4107_v17 }
 0xd6f   : > { %8764 = vmatmul.mubr.msk.bf16.vlgmr.msra.gmra.mxu0 %vm3519_vm9, %v9312_v18 }
 0xda2   : > { %v8709_v27 = vpop.f32.mrf.mxu1 }
 0xda4   : > { %v3625_v28 = vpop.f32.mrf.mxu1 }
 0xda6   : > { %v8710_v24 = vpop.f32.mrf.mxu1 }
 0xda8   : > { %v3628_v5 = vpop.f32.mrf.mxu1 }
 0xe0f   : > { %v8701_v21 = vpop.f32.mrf.mxu0 }
 0xe10   : > { %v3634_v7 = vadd.f32 %v8709_v27, %v8701_v21 }
 0xe11   : > { %v3560_v29 = vpop.f32.mrf.mxu0 }
 0xe12   : > { %v3626_v38 = vadd.f32 %v3625_v28, %v3560_v29  ;;  %v4188_v28 = vpop.permute.xlu1 %4187 }
 0xe13   : > { %v8702_v30 = vpop.f32.mrf.mxu0 }
 0xe14   : > { %v3637_v47 = vadd.f32 %v8710_v24, %v8702_v30 }
 0xe15   : > { %v3563_v11 = vpop.f32.mrf.mxu0 }
 0xe16   : > { %v3629_v52 = vadd.f32 %v3628_v5, %v3563_v11 }
 0xe17   : > { %v8717_v31 = vpop.f32.mrf.mxu0  ;;  %v8725_v32 = vpop.f32.mrf.mxu1 }
 0xe18   : > { %v3717_v43 = vadd.f32 %v8717_v31, %v3634_v7 }
 0xe19   : > { %v3700_v33 = vpop.f32.mrf.mxu0  ;;  %v3777_v61 = vpop.f32.mrf.mxu1 }
 0xe1a   : > { %v3715_v49 = vadd.f32 %v3700_v33, %v3626_v38  ;;  %v3794_v53 = vadd.f32 %v8725_v32, %v3717_v43  ;;  %v4193_v33 = vpop.permute.xlu0 %4192 }
 0xe1b   : > { %v8718_v34 = vpop.f32.mrf.mxu0  ;;  %v8726_v35 = vpop.f32.mrf.mxu1 }
 0xe1c   : > { %v3718_v48 = vadd.f32 %v8718_v34, %v3637_v47  ;;  %v3792_v51 = vadd.f32 %v3777_v61, %v3715_v49 }
 0xe1d   : > { %v3703_v36 = vpop.f32.mrf.mxu0  ;;  %v3780_v39 = vpop.f32.mrf.mxu1 }
 0xe1e   : > { %v3716_v54 = vadd.f32 %v3703_v36, %v3629_v52  ;;  %v3795_v0 = vadd.f32 %v8726_v35, %v3718_v48  ;;  %v4183_v52 = vpop.permute.xlu0 %4182 }
 0xe1f   : > { %v8733_v45 = vpop.f32.mrf.mxu0 }
 0xe20   : > { %v8741_v46 = vpop.f32.mrf.mxu1  ;;  %v3869_v57 = vadd.f32 %v8733_v45, %v3794_v53  ;;  %v3793_v9 = vadd.f32 %v3780_v39, %v3716_v54  ;;  %v4178_v45 = vpop.permute.xlu1 %4177 }
 0xe21   : > { %v3852_v50 = vpop.f32.mrf.mxu0 }
 0xe22   : > { %v3927_v55 = vpop.f32.mrf.mxu1  ;;  %v3867_v58 = vadd.f32 %v3852_v50, %v3792_v51  ;;  %v3944_v10 = vadd.f32 %v8741_v46, %v3869_v57 }
 0xe23   : > { %v8734_v56 = vpop.f32.mrf.mxu0 }
 0xe24   : > { %v8742_v62 = vpop.f32.mrf.mxu1  ;;  %v3870_v12 = vadd.f32 %v8734_v56, %v3795_v0  ;;  %v3942_v15 = vadd.f32 %v3927_v55, %v3867_v58  ;;  %v9316_v0 = vld [vmem:[#allocation2 + $0x570] ss:$8 sps:$4 sm:$0xff]   ;;  %v9317_v58 = vld [vmem:[#allocation2 + $0x580] ss:$8 sps:$4 sm:$0xff]  }
 0xe25   : > { %v3855_v63 = vpop.f32.mrf.mxu0 }
 0xe26   : > { %v3930_v8 = vpop.f32.mrf.mxu1  ;;  %v3868_v13 = vadd.f32 %v3855_v63, %v3793_v9  ;;  %v3945_v18 = vadd.f32 %v8742_v62, %v3870_v12  ;;  %v9314_v62 = vld [vmem:[#allocation2 + $0x550] ss:$8 sps:$4 sm:$0xff]   ;;  %v9315_v63 = vld [vmem:[#allocation2 + $0x560] ss:$8 sps:$4 sm:$0xff]  }
 0xe27   : > { %v8749_v6 = vpop.f32.mrf.mxu0  ;;  %v9320_v9 = vld [vmem:[#allocation2 + $0x5b0] ss:$8 sps:$4 sm:$0xff]   ;;  %v9322_v12 = vld [vmem:[#allocation2 + $0x5c0] ss:$8 sps:$4 sm:$0xff]  }
 0xe28   : > { %v8757_v3 = vpop.f32.mrf.mxu1  ;;  %v4019_v2 = vadd.f32 %v8749_v6, %v3944_v10  ;;  %v3943_v21 = vadd.f32 %v3930_v8, %v3868_v13  ;;  %v9318_v8 = vld [vmem:[#allocation2 + $0x590] ss:$8 sps:$4 sm:$0xff]   ;;  %v9319_v6 = vld [vmem:[#allocation2 + $0x5a0] ss:$8 sps:$4 sm:$0xff]  }
 0xe29   : > { %v4002_v14 = vpop.f32.mrf.mxu0  ;;  %v9321_v10 = vld [vmem:[#allocation2 + $0x5d0] ss:$8 sps:$4 sm:$0xff]  }
 0xe2a   : > { %v4077_v16 = vpop.f32.mrf.mxu1  ;;  %v4017_v26 = vadd.f32 %v4002_v14, %v3942_v15  ;;  %v4094_v24 = vadd.f32 %v8757_v3, %v4019_v2  ;;  %8787 = vmatprep.subr.bf16.mxu0 %v9321_v10 }
 0xe2b   : > { %v8750_v17 = vpop.f32.mrf.mxu0  ;;  %8788 = vmatpush3.bf16.msra.mxu0 %v9321_v10 }
 0xe2c   : > { %v4020_v29 = vadd.f32 %v8750_v17, %v3945_v18  ;;  %v8758_v30 = vpop.f32.mrf.mxu1  ;;  %v4092_v11 = vadd.f32 %v4077_v16, %v4017_v26  ;;  %8793 = vmatprep.subr.bf16.mxu0 %v9322_v12 }
 0xe2d   : > { %v4005_v27 = vpop.f32.mrf.mxu0 }
 0xe2e   : > { %v4018_v31 = vadd.f32 %v4005_v27, %v3943_v21  ;;  %v4095_v34 = vadd.f32 %v8758_v30, %v4020_v29  ;;  %v4080_v7 = vpop.f32.mrf.mxu1  ;;  %v9323_v21 = vld [vmem:[#allocation2 + $0x5e0] ss:$8 sps:$4 sm:$0xff]  }
 0xe2f   : > { %v8765_v5 = vpop.f32.mrf.mxu0 }
 0xe30   : > { %v4169_v32 = vadd.f32 %v8765_v5, %v4094_v24  ;;  %v4093_v39 = vadd.f32 %v4080_v7, %v4018_v31 }
 0xe31   : > { %v4152_v61 = vpop.f32.mrf.mxu0 }
 0xe32   : > { %v4167_v35 = vadd.f32 %v4152_v61, %v4092_v11  ;;  %v4197_v38 = vadd.f32 %v4188_v28, %v4169_v32 }
 0xe33   : > { %v8766_v36 = vpop.f32.mrf.mxu0 }
 0xe34   : > { %v4170_v43 = vadd.f32 %v8766_v36, %v4095_v34  ;;  %v4195_v49 = vadd.f32 %v4178_v45, %v4167_v35  ;;  %v4201_v53 = vmax.f32 %v4197_v38, 0.0 }
 0xe35   : > { %v4155_v47 = vpop.f32.mrf.mxu0 }
 0xe36   : > { %v4198_v46 = vadd.f32 %v4193_v33, %v4170_v43  ;;  %v4168_v50 = vadd.f32 %v4155_v47, %v4093_v39  ;;  %v4199_v56 = vmax.f32 %v4195_v49, 0.0  ;;  %v9324_v33 = vld [vmem:[#allocation2 + $0x5f0] ss:$8 sps:$4 sm:$0xff]  }
 0xe38   : > { %v4202_v48 = vmax.f32 %v4198_v46, 0.0  ;;  %v4196_v55 = vadd.f32 %v4183_v52, %v4168_v50 }
 0xe3a   : > { %v4200_v51 = vmax.f32 %v4196_v55, 0.0  ;;  %v4220_v54 = vpack.c.bf16 %v4202_v48, %v4201_v53 }
 0xe3c   : > { %8767 = vmatprep.subr.bf16.mxu1 %v4220_v54  ;;  %v4219_v57 = vpack.c.bf16 %v4200_v51, %v4199_v56 }
 0xe3d   : > { %8768 = vmatpush3.bf16.msra.mxu1 %v4220_v54 }
 0xe3e   : > { %8769 = vmatprep.subr.bf16.mxu1 %v4219_v57 }
 0xe41   : > { %8770 = vmatpush3.bf16.msra.mxu1 %v4219_v57  ;;  %v4667_v57 = vpop.permute.xlu1 %4666 }
 0xe42   : > { %8811 = vmatprep.subr.bf16.mxu1 %v9438_v19 }
 0xe44   : > { %8772 = vmatmul.mubr.msk.bf16.vlgmr.msra.gmra.mxu1 %vm3519_vm9, %v9314_v62 }
 0xe45   : > { %8775 = vmatprep.mubr.msk.bf16.mxu1 %vm3519_vm9, %v9315_v63 }
 0xe4c   : > { %8776 = vmatmul.mubr.msk.bf16.gmra.mxu1 %vm3519_vm9, %v9316_v0 }
 0xe4d   : > { %8779 = vmatprep.mubr.msk.bf16.mxu1 %vm3519_vm9, %v9317_v58  ;;  %v4672_v58 = vpop.permute.xlu0 %4671 }
 0xe54   : > { %8780 = vmatmul.mubr.msk.bf16.gmra.mxu1 %vm3519_vm9, %v9318_v8 }
 0xe55   : > { %8783 = vmatprep.mubr.msk.bf16.mxu1 %vm3519_vm9, %v9319_v6 }
 0xe5c   : > { %8784 = vmatmul.mubr.msk.bf16.gmra.mxu1 %vm3519_vm9, %v9320_v9  ;;  %vm4837_vm9 = vcmask 392192  }
 0xe5d   : > { %8817 = vmatprep.mubr.msk.bf16.mxu1 %vm9449_vm1, %v9438_v19 }
 0xf04   : > { %v8773_v3 = vpop.f32.mrf.mxu1 }
 0xf06   : > { %v4319_v14 = vpop.f32.mrf.mxu1 }
 0xf08   : > { %v8774_v15 = vpop.f32.mrf.mxu1 }
 0xf09   : > { %v4385_v31 = vpack.c.bf16 %v8774_v15, %v8773_v3 }
 0xf0a   : > { %v4322_v13 = vpop.f32.mrf.mxu1 }
 0xf0b   : > { %v4384_v24 = vpack.c.bf16 %v4322_v13, %v4319_v14 }
 0xf0c   : > { %v8777_v2 = vpop.f32.mrf.mxu1 }
 0xf0e   : > { %v4335_v16 = vpop.f32.mrf.mxu1 }
 0xf10   : > { %v8778_v17 = vpop.f32.mrf.mxu1 }
 0xf11   : > { %v4389_v27 = vpack.c.bf16 %v8778_v17, %v8777_v2 }
 0xf12   : > { %v4338_v18 = vpop.f32.mrf.mxu1 }
 0xf13   : > { %v4388_v26 = vpack.c.bf16 %v4338_v18, %v4335_v16 }
 0xf14   : > { %v8781_v28 = vpop.f32.mrf.mxu1 }
 0xf15   : > { %8789 = vmatprep.mubr.msk.bf16.mxu0 %vm2026_vm0, %v4388_v26  ;;  %v4657_v26 = vpop.permute.xlu1 %4656 }
 0xf16   : > { %8790 = vmatmul.mubr.msk.bf16.vlgmr.msra.gmra.mxu0 %vm2026_vm0, %v4389_v27  ;;  %v4351_v29 = vpop.f32.mrf.mxu1  ;;  %v4662_v27 = vpop.permute.xlu0 %4661 }
 0xf17   : > { %8795 = vmatprep.mubr.msk.bf16.mxu0 %vm2026_vm0, %v4384_v24  ;;  %8794 = vmatpush3.bf16.msra.mxu0 %v9322_v12 }
 0xf18   : > { %v8782_v30 = vpop.f32.mrf.mxu1  ;;  %8799 = vmatprep.subr.bf16.mxu0 %v9323_v21 }
 0xf19   : > { %v4515_v36 = vpack.c.bf16 %v8782_v30, %v8781_v28 }
 0xf1a   : > { %v4354_v5 = vpop.f32.mrf.mxu1 }
 0xf1b   : > { %v4514_v11 = vpack.c.bf16 %v4354_v5, %v4351_v29 }
 0xf1c   : > { %v8785_v32 = vpop.f32.mrf.mxu1 }
 0xf1e   : > { %8796 = vmatmul.mubr.msk.bf16.vlgmr.msra.gmra.mxu0 %vm2026_vm0, %v4385_v31  ;;  %v4367_v61 = vpop.f32.mrf.mxu1 }
 0xf1f   : > { %8801 = vmatprep.mubr.msk.bf16.mxu0 %vm2026_vm0, %v4514_v11  ;;  %8800 = vmatpush3.bf16.msra.mxu0 %v9323_v21 }
 0xf20   : > { %v8786_v34 = vpop.f32.mrf.mxu1  ;;  %8805 = vmatprep.subr.bf16.mxu0 %v9324_v33 }
 0xf21   : > { %v4584_v39 = vpack.c.bf16 %v8786_v34, %v8785_v32 }
 0xf22   : > { %v4370_v35 = vpop.f32.mrf.mxu1 }
 0xf23   : > { %v4583_v7 = vpack.c.bf16 %v4370_v35, %v4367_v61  ;;  %v4712_v35 = vmul.f32 %v9721_v37, %v9874_v41 }
 0xf26   : > { %8802 = vmatmul.mubr.msk.bf16.vlgmr.msra.gmra.mxu0 %vm2026_vm0, %v4515_v36 }
 0xf27   : > { %8807 = vmatprep.mubr.msk.bf16.mxu0 %vm2026_vm0, %v4583_v7  ;;  %8806 = vmatpush3.bf16.msra.mxu0 %v9324_v33  ;;  %v4713_v33 = vmul.f32 %v9721_v37, %v9876_v42 }
 0xf28   : > { %8821 = vmatprep.subr.bf16.mxu0 %v9438_v19 }
 0xf2e   : > { %8808 = vmatmul.mubr.msk.bf16.vlgmr.msra.gmra.mxu0 %vm2026_vm0, %v4584_v39  ;;  %v9144_v39 = vpack.i.bf16 %v4713_v33, %v4712_v35 }
 0xf2f   : > { %8827 = vmatprep.mubr.msk.bf16.mxu0 %vm9449_vm1, %v9438_v19 }
 0xfd6   : > { %v8791_v38 = vpop.f32.mrf.mxu0 }
 0xfd8   : > { %v4436_v43 = vpop.f32.mrf.mxu0 }
 0xfda   : > { %v8792_v45 = vpop.f32.mrf.mxu0 }
 0xfdc   : > { %v4439_v47 = vpop.f32.mrf.mxu0 }
 0xfde   : > { %v8797_v49 = vpop.f32.mrf.mxu0 }
 0xfdf   : > { %v4506_v51 = vadd.f32 %v8797_v49, %v8791_v38 }
 0xfe0   : > { %v4497_v46 = vpop.f32.mrf.mxu0 }
 0xfe1   : > { %v4498_v62 = vadd.f32 %v4497_v46, %v4436_v43  ;;  %v4755_v43 = vmul.f32 %v9724_v40, %v9876_v42 }
 0xfe2   : > { %v8798_v50 = vpop.f32.mrf.mxu0 }
 0xfe3   : > { %v4509_v63 = vadd.f32 %v8798_v50, %v8792_v45 }
 0xfe4   : > { %v4500_v52 = vpop.f32.mrf.mxu0 }
 0xfe5   : > { %v4501_v6 = vadd.f32 %v4500_v52, %v4439_v47  ;;  %v4754_v47 = vmul.f32 %v9724_v40, %v9874_v41 }
 0xfe6   : > { %v8803_v53 = vpop.f32.mrf.mxu0 }
 0xfe7   : > { %v4579_v0 = vadd.f32 %v8803_v53, %v4506_v51  ;;  %v9159_v49 = vpack.i.bf16 %v4755_v43, %v4754_v47 }
 0xfe8   : > { %v4562_v48 = vpop.f32.mrf.mxu0 }
 0xfe9   : > { %v4577_v9 = vadd.f32 %v4562_v48, %v4498_v62 }
 0xfea   : > { %v8804_v55 = vpop.f32.mrf.mxu0 }
 0xfeb   : > { %v4580_v10 = vadd.f32 %v8804_v55, %v4509_v63 }
 0xfec   : > { %v4565_v56 = vpop.f32.mrf.mxu0 }
 0xfed   : > { %v4578_v14 = vadd.f32 %v4565_v56, %v4501_v6 }
 0xfee   : > { %v8809_v54 = vpop.f32.mrf.mxu0 }
 0xfef   : > { %v4648_v12 = vadd.f32 %v8809_v54, %v4579_v0 }
 0xff0   : > { %v4631_v8 = vpop.f32.mrf.mxu0 }
 0xff1   : > { %v4646_v15 = vadd.f32 %v4631_v8, %v4577_v9  ;;  %v4676_v16 = vadd.f32 %v4667_v57, %v4648_v12 }
 0xff2   : > { %v8810_v3 = vpop.f32.mrf.mxu0 }
 0xff3   : > { %v4649_v13 = vadd.f32 %v8810_v3, %v4580_v10  ;;  %v4674_v28 = vadd.f32 %v4657_v26, %v4646_v15  ;;  %v4716_v5 = vmul.f32 %v9721_v37, %v4676_v16  ;;  %v4758_v7 = vmul.f32 %v9724_v40, %v4676_v16 }
 0xff4   : > { %v4634_v2 = vpop.f32.mrf.mxu0 }
 0xff5   : > { %v4677_v17 = vadd.f32 %v4672_v58, %v4649_v13  ;;  %v4647_v18 = vadd.f32 %v4634_v2, %v4578_v14  ;;  %v4714_v31 = vmul.f32 %v9721_v37, %v4674_v28 }
 0xff7   : > { %v9119_v21 = vpack.i.bf16 %v4677_v17, %v4676_v16  ;;  %v4675_v24 = vadd.f32 %v4662_v27, %v4647_v18  ;;  %v4717_v29 = vmul.f32 %v9721_v37, %v4677_v17  ;;  %v4759_v61 = vmul.f32 %v9724_v40, %v4677_v17 }
 0xff9   : > { %v9124_v30 = vpack.i.bf16 %v4675_v24, %v4674_v28  ;;  %9120 = vrot.lane.b32.xlu1 %v9119_v21, %s9448_s14  ;;  %v4715_v11 = vmul.f32 %v9721_v37, %v4675_v24  ;;  %v9134_v32 = vpack.i.bf16 %v4717_v29, %v4716_v5  ;;  %v4757_v36 = vmul.f32 %v9724_v40, %v4675_v24 }
 0xffa   : > { %v9149_v38 = vpack.i.bf16 %v4759_v61, %v4758_v7 }
 0xffb   : > { %9125 = vrot.lane.b32.xlu0 %v9124_v30, %s9448_s14  ;;  %v9139_v34 = vpack.i.bf16 %v4715_v11, %v4714_v31 }
 0xffd   : > { %9130 = vrot.lane.b32.xlu1 %v9881_v44, %s9448_s14  ;;  %v4756_v44 = vmul.f32 %v9724_v40, %v4674_v28 }
 0xfff   : > { %9135 = vrot.lane.b32.xlu0 %v9134_v32, %s9448_s14  ;;  %v9154_v45 = vpack.i.bf16 %v4757_v36, %v4756_v44 }
0x1001   : > { %9140 = vrot.lane.b32.xlu1 %v9139_v34, %s9448_s14 }
0x1003   : > { %9145 = vrot.lane.b32.xlu0 %v9144_v39, %s9448_s14 }
0x1005   : > { %9150 = vrot.lane.b32.xlu1 %v9149_v38, %s9448_s14 }
0x1007   : > { %9155 = vrot.lane.b32.xlu0 %v9154_v45, %s9448_s14 }
0x1009   : > { %9160 = vrot.lane.b32.xlu1 %v9159_v49, %s9448_s14 }
0x106b   : > { %v9121_v46 = vpop.permute.xlu1 %9120 }
0x106c   : > { %v9123_v50 = vunpack.i.h.bf16 %v9121_v46  ;;  %v9122_v52 = vunpack.i.l.bf16 %v9121_v46 }
0x106d   : > { %v9126_v53 = vpop.permute.xlu0 %9125 }
0x106e   : > { %v4705_v48 = vsel %vm1401_vm2, 0.0, %v9123_v50  ;;  %v4704_v55 = vsel %vm1401_vm2, 0.0, %v9122_v52  ;;  %v9128_v42 = vunpack.i.h.bf16 %v9126_v53  ;;  %v9127_v56 = vunpack.i.l.bf16 %v9126_v53 }
0x106f   : > { %v4711_v51 = vsel %vm1403_vm3, %v4705_v48, 0.0  ;;  %v4710_v54 = vsel %vm1403_vm3, %v4704_v55, 0.0  ;;  %v9131_v41 = vpop.permute.xlu1 %9130 }
0x1070   : > { %v4703_v57 = vsel %vm1401_vm2, 0.0, %v9128_v42  ;;  %v4702_v62 = vsel %vm1401_vm2, 0.0, %v9127_v56  ;;  %v9133_v63 = vunpack.i.h.bf16 %v9131_v41  ;;  %v9132_v0 = vunpack.i.l.bf16 %v9131_v41 }
0x1071   : > { %v4709_v58 = vsel %vm1403_vm3, %v4703_v57, 0.0  ;;  %v4708_v8 = vsel %vm1403_vm3, %v4702_v62, 0.0  ;;  %v9136_v6 = vpop.permute.xlu0 %9135  ;;  %v10125_v9 = vpack.c.bf16 %v4711_v51, %v4710_v54 }
0x1072   : > { %v4701_v10 = vsel %vm1401_vm2, 0.0, %v9133_v63  ;;  %v4700_v12 = vsel %vm1401_vm2, 0.0, %v9132_v0  ;;  %v9138_v3 = vunpack.i.h.bf16 %v9136_v6  ;;  %v9137_v14 = vunpack.i.l.bf16 %v9136_v6 }
0x1073   : > { %v4707_v15 = vsel %vm1403_vm3, %v4701_v10, 0.0  ;;  %v4706_v13 = vsel %vm1403_vm3, %v4700_v12, 0.0  ;;  %4832 = vrot.lane.b32.xlu0 %v10125_v9, %s9440_s29  ;;  %v9141_v2 = vpop.permute.xlu1 %9140  ;;  %v10133_v16 = vpack.c.bf16 %v4709_v58, %v4708_v8 }
0x1074   : > { %v4747_v17 = vsel %vm1401_vm2, 0.0, %v9138_v3  ;;  %v4746_v18 = vsel %vm1401_vm2, 0.0, %v9137_v14  ;;  %v9143_v26 = vunpack.i.h.bf16 %v9141_v2  ;;  %v9142_v27 = vunpack.i.l.bf16 %v9141_v2  ;;  %v9326_v14 = vld [vmem:[#allocation2 + $0x600] ss:$8 sps:$4 sm:$0xff]  }
0x1075   : > { %v4753_v28 = vsel %vm1403_vm3, %v4747_v17, 0.0  ;;  %v4752_v21 = vsel %vm1403_vm3, %v4746_v18, 0.0  ;;  %4830 = vrot.lane.b32.xlu1 %v10133_v16, %s9440_s29  ;;  %v9146_v24 = vpop.permute.xlu0 %9145  ;;  %v10141_v29 = vpack.c.bf16 %v4707_v15, %v4706_v13  ;;  %v5360_v13 = vld [vmem:[%s10728_s2 + $0x90] sm:$0xff] }
0x1076   : > { %v4745_v30 = vsel %vm1401_vm2, 0.0, %v9143_v26  ;;  %v4744_v5 = vsel %vm1401_vm2, 0.0, %v9142_v27  ;;  %v9148_v11 = vunpack.i.h.bf16 %v9146_v24  ;;  %v9147_v31 = vunpack.i.l.bf16 %v9146_v24  ;;  %v9325_v27 = vld [vmem:[#allocation2 + $0x610] ss:$8 sps:$4 sm:$0xff]  }
0x1077   : > { %v4751_v32 = vsel %vm1403_vm3, %v4745_v30, 0.0  ;;  %v4750_v33 = vsel %vm1403_vm3, %v4744_v5, 0.0  ;;  %4828 = vrot.lane.b32.xlu0 %v10141_v29, %s9440_s29  ;;  %v9151_v61 = vpop.permute.xlu1 %9150  ;;  %v4933_v34 = vpack.c.bf16 %v4753_v28, %v4752_v21 }
0x1078   : > { %v4743_v35 = vsel %vm1401_vm2, 0.0, %v9148_v11  ;;  %v4742_v7 = vsel %vm1401_vm2, 0.0, %v9147_v31  ;;  %v9153_v36 = vunpack.i.h.bf16 %v9151_v61  ;;  %v9152_v39 = vunpack.i.l.bf16 %v9151_v61  ;;  %v9327_v11 = vld [vmem:[#allocation2 + $0x620] ss:$8 sps:$4 sm:$0xff]   ;;  %v9328_v31 = vld [vmem:[#allocation2 + $0x630] ss:$8 sps:$4 sm:$0xff]  }
0x1079   : > { %v4749_v44 = vsel %vm1403_vm3, %v4743_v35, 0.0  ;;  %v4748_v38 = vsel %vm1403_vm3, %v4742_v7, 0.0  ;;  %4946 = vrot.lane.b32.xlu1 %v4933_v34, %s9443_s5  ;;  %v9156_v43 = vpop.permute.xlu0 %9155  ;;  %v4932_v45 = vpack.c.bf16 %v4751_v32, %v4750_v33 }
0x107a   : > { %v4789_v47 = vsel %vm1401_vm2, 0.0, %v9153_v36  ;;  %v4788_v49 = vsel %vm1401_vm2, 0.0, %v9152_v39  ;;  %v9158_v46 = vunpack.i.h.bf16 %v9156_v43  ;;  %v9157_v50 = vunpack.i.l.bf16 %v9156_v43  ;;  %v9329_v36 = vld [vmem:[#allocation2 + $0x640] ss:$8 sps:$4 sm:$0xff]   ;;  %v9330_v39 = vld [vmem:[#allocation2 + $0x650] ss:$8 sps:$4 sm:$0xff]  }
0x107b   : > { %v4795_v52 = vsel %vm1403_vm3, %v4789_v47, 0.0  ;;  %v4794_v53 = vsel %vm1403_vm3, %v4788_v49, 0.0  ;;  %v8179_v48 = vpack.c.bf16 %v4789_v47, %v4788_v49  ;;  %4944 = vrot.lane.b32.xlu0 %v4932_v45, %s9443_s5  ;;  %v9161_v55 = vpop.permute.xlu1 %9160  ;;  %v4931_v42 = vpack.c.bf16 %v4749_v44, %v4748_v38  ;;  %v9331_v49 = vld [vmem:[#allocation2 + $0x660] ss:$8 sps:$4 sm:$0xff]  }
0x107c   : > { %v4787_v56 = vsel %vm1401_vm2, 0.0, %v9158_v46  ;;  %v4786_v51 = vsel %vm1401_vm2, 0.0, %v9157_v50  ;;  %v9163_v54 = vunpack.i.h.bf16 %v9161_v55  ;;  %v9162_v41 = vunpack.i.l.bf16 %v9161_v55  ;;  %v9332_v46 = vld [vmem:[#allocation2 + $0x670] ss:$8 sps:$4 sm:$0xff]  }
0x107d   : > { %4942 = vrot.lane.b32.xlu1 %v4931_v42, %s9443_s5  ;;  %8822 = vmatpush3.bf16.msk.msra.mxu0 %vm9819_vm15, %v8179_v48  ;;  %v4816_v57 = vpack.c.bf16 %v4795_v52, %v4794_v53  ;;  %v4793_v62 = vsel %vm1403_vm3, %v4787_v56, 0.0  ;;  %v4792_v63 = vsel %vm1403_vm3, %v4786_v51, 0.0  ;;  %v8182_v0 = vpack.c.bf16 %v4787_v56, %v4786_v51  ;;  %v9333_v53 = vld [vmem:[#allocation2 + $0x680] ss:$8 sps:$4 sm:$0xff]  }
0x107e   : > { %8823 = vmatprep.subr.bf16.mxu0 %v9438_v19  ;;  %v4785_v58 = vsel %vm1401_vm2, 0.0, %v9163_v54  ;;  %v4784_v8 = vsel %vm1401_vm2, 0.0, %v9162_v41  ;;  %v4815_v6 = vpack.c.bf16 %v4793_v62, %v4792_v63 }
0x107f   : > { %5009 = vrot.lane.b32.xlu0 %v4816_v57, %s9450_s15  ;;  %v4791_v10 = vsel %vm1403_vm3, %v4785_v58, 0.0  ;;  %v4790_v12 = vsel %vm1403_vm3, %v4784_v8, 0.0  ;;  %v8185_v3 = vpack.c.bf16 %v4785_v58, %v4784_v8 }
0x1080   : > { %v4814_v15 = vpack.c.bf16 %v4791_v10, %v4790_v12 }
0x1081   : > { %5069 = vrot.lane.b32.xlu1 %v10125_v9, %s9451_s16  ;;  %8824 = vmatpush3.bf16.msk.msra.mxu0 %vm9819_vm15, %v8182_v0 }
0x1082   : > { %8825 = vmatprep.subr.bf16.mxu0 %v9438_v19 }
0x1083   : > { %5007 = vrot.lane.b32.xlu0 %v4815_v6, %s9450_s15 }
0x1085   : > { %5067 = vrot.lane.b32.xlu1 %v10133_v16, %s9451_s16  ;;  %8826 = vmatpush3.bf16.msk.msra.mxu0 %vm9819_vm15, %v8185_v3 }
0x1086   : > { %8841 = vmatprep.subr.bf16.mxu0 %v9438_v19 }
0x1087   : > { %5005 = vrot.lane.b32.xlu0 %v4814_v15, %s9450_s15 }
0x1088   : > { %8828 = vmatmul.mubr.msk.bf16.vlgmr.msra.gmra.mxu0 %vm4837_vm9, %v9326_v14 }
0x1089   : > { %5065 = vrot.lane.b32.xlu1 %v10141_v29, %s9451_s16  ;;  %8847 = vmatprep.mubr.msk.bf16.mxu0 %vm9449_vm1, %v9438_v19 }
0x108b   : > { %5129 = vrot.lane.b32.xlu0 %v4933_v34, %s9452_s17 }
0x108d   : > { %5189 = vrot.lane.b32.xlu1 %v4816_v57, %s9444_s6 }
0x108f   : > { %5127 = vrot.lane.b32.xlu0 %v4932_v45, %s9452_s17 }
0x1091   : > { %5187 = vrot.lane.b32.xlu1 %v4815_v6, %s9444_s6 }
0x1093   : > { %5125 = vrot.lane.b32.xlu0 %v4931_v42, %s9452_s17 }
0x1095   : > { %5185 = vrot.lane.b32.xlu1 %v4814_v15, %s9444_s6 }
0x1097   : > { %5249 = vrot.lane.b32.xlu0 %v10125_v9, %s9441_s30  ;;  %v5361_v9 = vld [vmem:[%s10728_s2 + $0x98] sm:$0xff] }
0x1099   : > { %5309 = vrot.lane.b32.xlu1 %v4933_v34, %s9445_s7 }
0x109b   : > { %5247 = vrot.lane.b32.xlu0 %v10133_v16, %s9441_s30 }
0x109d   : > { %5307 = vrot.lane.b32.xlu1 %v4932_v45, %s9445_s7 }
0x109f   : > { %5245 = vrot.lane.b32.xlu0 %v10141_v29, %s9441_s30 }
0x10a1   : > { %5305 = vrot.lane.b32.xlu1 %v4931_v42, %s9445_s7 }
0x10a3   : > { %5364 = vperm.xlu0 %9018, %v5360_v13  }
0x10a5   : > { %5369 = vperm.xlu1 %9012, %v5361_v9  }
0x10e5   : > { %v4833_v2 = vpop.permute.xlu0 %4832 }
0x10e6   : > { %8812 = vmatpush3.bf16.msra.mxu1 %v4833_v2 }
0x10e7   : > { %v4831_v16 = vpop.permute.xlu1 %4830  ;;  %8813 = vmatprep.subr.bf16.mxu1 %v9438_v19 }
0x10e9   : > { %v4829_v17 = vpop.permute.xlu0 %4828 }
0x10ea   : > { %8814 = vmatpush3.bf16.msra.mxu1 %v4831_v16 }
0x10eb   : > { %v4947_v18 = vpop.permute.xlu1 %4946  ;;  %8815 = vmatprep.subr.bf16.mxu1 %v9438_v19 }
0x10ed   : > { %v4945_v26 = vpop.permute.xlu0 %4944 }
0x10ee   : > { %8816 = vmatpush3.bf16.msra.mxu1 %v4829_v17 }
0x10ef   : > { %v4943_v28 = vpop.permute.xlu1 %4942  ;;  %8831 = vmatprep.subr.bf16.mxu1 %v9438_v19 }
0x10f1   : > { %v5010_v21 = vpop.permute.xlu0 %5009  ;;  %8818 = vmatmul.mubr.msk.bf16.vlgmr.msra.gmra.mxu1 %vm4837_vm9, %v9325_v27 }
0x10f2   : > { %8832 = vmatpush3.bf16.msra.mxu1 %v4947_v18  ;;  %8842 = vmatpush3.bf16.msra.mxu0 %v5010_v21 }
0x10f3   : > { %v5070_v24 = vpop.permute.xlu1 %5069  ;;  %8833 = vmatprep.subr.bf16.mxu1 %v9438_v19  ;;  %8843 = vmatprep.subr.bf16.mxu0 %v9438_v19 }
0x10f4   : > { %8837 = vmatprep.mubr.msk.bf16.mxu1 %vm9449_vm1, %v9438_v19 }
0x10f5   : > { %v5008_v29 = vpop.permute.xlu0 %5007 }
0x10f6   : > { %8834 = vmatpush3.bf16.msra.mxu1 %v4945_v26  ;;  %8844 = vmatpush3.bf16.msra.mxu0 %v5008_v29 }
0x10f7   : > { %v5068_v30 = vpop.permute.xlu1 %5067  ;;  %8835 = vmatprep.subr.bf16.mxu1 %v9438_v19  ;;  %8845 = vmatprep.subr.bf16.mxu0 %v9438_v19 }
0x10f9   : > { %v5006_v5 = vpop.permute.xlu0 %5005 }
0x10fa   : > { %8836 = vmatpush3.bf16.msra.mxu1 %v4943_v28  ;;  %8846 = vmatpush3.bf16.msra.mxu0 %v5006_v5 }
0x10fb   : > { %v5066_v32 = vpop.permute.xlu1 %5065  ;;  %8861 = vmatprep.subr.bf16.mxu0 %v9438_v19  ;;  %8851 = vmatprep.subr.bf16.mxu1 %v9438_v19 }
0x10fd   : > { %v5130_v33 = vpop.permute.xlu0 %5129  ;;  %8838 = vmatmul.mubr.msk.bf16.vlgmr.msra.gmra.mxu1 %vm4837_vm9, %v9327_v11  ;;  %8848 = vmatmul.mubr.msk.bf16.vlgmr.msra.gmra.mxu0 %vm4837_vm9, %v9328_v31 }
0x10fe   : > { %8852 = vmatpush3.bf16.msra.mxu1 %v5070_v24  ;;  %8862 = vmatpush3.bf16.msra.mxu0 %v5130_v33 }
0x10ff   : > { %v5190_v61 = vpop.permute.xlu1 %5189  ;;  %8863 = vmatprep.subr.bf16.mxu0 %v9438_v19  ;;  %8853 = vmatprep.subr.bf16.mxu1 %v9438_v19 }
0x1100   : > { %8857 = vmatprep.mubr.msk.bf16.mxu1 %vm9449_vm1, %v9438_v19  ;;  %8867 = vmatprep.mubr.msk.bf16.mxu0 %vm9449_vm1, %v9438_v19 }
0x1101   : > { %v5128_v34 = vpop.permute.xlu0 %5127 }
0x1102   : > { %8854 = vmatpush3.bf16.msra.mxu1 %v5068_v30  ;;  %8864 = vmatpush3.bf16.msra.mxu0 %v5128_v34 }
0x1103   : > { %8865 = vmatprep.subr.bf16.mxu0 %v9438_v19  ;;  %8855 = vmatprep.subr.bf16.mxu1 %v9438_v19  ;;  %v5188_v35 = vpop.permute.xlu1 %5187 }
0x1105   : > { %v5126_v7 = vpop.permute.xlu0 %5125 }
0x1106   : > { %8856 = vmatpush3.bf16.msra.mxu1 %v5066_v32  ;;  %8866 = vmatpush3.bf16.msra.mxu0 %v5126_v7 }
0x1107   : > { %8881 = vmatprep.subr.bf16.mxu0 %v9438_v19  ;;  %8871 = vmatprep.subr.bf16.mxu1 %v9438_v19  ;;  %v5186_v38 = vpop.permute.xlu1 %5185 }
0x1109   : > { %v5250_v44 = vpop.permute.xlu0 %5249  ;;  %8858 = vmatmul.mubr.msk.bf16.vlgmr.msra.gmra.mxu1 %vm4837_vm9, %v9329_v36  ;;  %8868 = vmatmul.mubr.msk.bf16.vlgmr.msra.gmra.mxu0 %vm4837_vm9, %v9330_v39 }
0x110a   : > { %8872 = vmatpush3.bf16.msra.mxu1 %v5190_v61  ;;  %8882 = vmatpush3.bf16.msra.mxu0 %v5250_v44 }
0x110b   : > { %8883 = vmatprep.subr.bf16.mxu0 %v9438_v19  ;;  %8873 = vmatprep.subr.bf16.mxu1 %v9438_v19  ;;  %v5310_v45 = vpop.permute.xlu1 %5309 }
0x110c   : > { %8877 = vmatprep.mubr.msk.bf16.mxu1 %vm9449_vm1, %v9438_v19  ;;  %8887 = vmatprep.mubr.msk.bf16.mxu0 %vm9449_vm1, %v9438_v19 }
0x110d   : > { %v5248_v43 = vpop.permute.xlu0 %5247 }
0x110e   : > { %8874 = vmatpush3.bf16.msra.mxu1 %v5188_v35  ;;  %8884 = vmatpush3.bf16.msra.mxu0 %v5248_v43 }
0x110f   : > { %8885 = vmatprep.subr.bf16.mxu0 %v9438_v19  ;;  %8875 = vmatprep.subr.bf16.mxu1 %v9438_v19  ;;  %v5308_v50 = vpop.permute.xlu1 %5307 }
0x1111   : > { %v5246_v47 = vpop.permute.xlu0 %5245 }
0x1112   : > { %8876 = vmatpush3.bf16.msra.mxu1 %v5186_v38  ;;  %8886 = vmatpush3.bf16.msra.mxu0 %v5246_v47 }
0x1113   : > { %8891 = vmatprep.subr.bf16.mxu1 %v9438_v19  ;;  %8901 = vmatprep.subr.bf16.mxu0 %v9438_v19  ;;  %v5306_v52 = vpop.permute.xlu1 %5305 }
0x1115   : > { %8878 = vmatmul.mubr.msk.bf16.vlgmr.msra.gmra.mxu1 %vm4837_vm9, %v9331_v49  ;;  %8888 = vmatmul.mubr.msk.bf16.vlgmr.msra.gmra.mxu0 %vm4837_vm9, %v9332_v46 }
0x1116   : > { %8892 = vmatpush3.bf16.msra.mxu1 %v5310_v45  ;;  %8897 = vmatprep.mubr.msk.bf16.mxu1 %vm9449_vm1, %v9438_v19 }
0x1117   : > { %8893 = vmatprep.subr.bf16.mxu1 %v9438_v19  ;;  %8903 = vmatprep.mubr.msk.bf16.mxu0 %vm9449_vm1, %v9438_v19 }
0x111a   : > { %8894 = vmatpush3.bf16.msra.mxu1 %v5308_v50 }
0x111b   : > { %8895 = vmatprep.subr.bf16.mxu1 %v9438_v19 }
0x111e   : > { %8896 = vmatpush3.bf16.msra.mxu1 %v5306_v52  ;;  %v5365_v47 = vpop.permute.xlu0 %5364 }
0x111f   : > { %8907 = vmatprep.subr.bf16.mxu1 %v9438_v19 }
0x1121   : > { %8898 = vmatmul.mubr.msk.bf16.vlgmr.msra.gmra.mxu1 %vm4837_vm9, %v9333_v53  ;;  %vm10748_vm9 = vmmov %vm10745_vm10 }
0x1122   : > { %8909 = vmatprep.mubr.msk.bf16.mxu1 %vm9449_vm1, %v9438_v19 }
0x1148   : > { %v4924_v48 = vpop.f32.mrf.mxu0 }
0x114a   : > { %v8829_v55 = vpop.f32.mrf.mxu0 }
0x114c   : > { %v4927_v42 = vpop.f32.mrf.mxu0 }
0x114e   : > { %v8830_v56 = vpop.f32.mrf.mxu0 }
0x11b1   : > { %v4875_v51 = vpop.f32.mrf.mxu1 }
0x11b2   : > { %v4925_v16 = vadd.f32 %v4924_v48, %v4875_v51  ;;  %v5370_v48 = vpop.permute.xlu1 %5369 }
0x11b3   : > { %v8819_v54 = vpop.f32.mrf.mxu1 }
0x11b5   : > { %v4878_v41 = vpop.f32.mrf.mxu1 }
0x11b6   : > { %v4928_v27 = vadd.f32 %v4927_v42, %v4878_v41 }
0x11b7   : > { %v8820_v57 = vpop.f32.mrf.mxu1 }
0x11bd   : > { %v4988_v62 = vpop.f32.mrf.mxu1  ;;  %v5051_v63 = vpop.f32.mrf.mxu0 }
0x11be   : > { %v4995_v26 = vadd.f32 %v4988_v62, %v4925_v16 }
0x11bf   : > { %v8839_v0 = vpop.f32.mrf.mxu1  ;;  %v8849_v58 = vpop.f32.mrf.mxu0 }
0x11c0   : > { %v5058_v28 = vadd.f32 %v5051_v63, %v4995_v26 }
0x11c1   : > { %v4991_v8 = vpop.f32.mrf.mxu1  ;;  %v5054_v6 = vpop.f32.mrf.mxu0 }
0x11c2   : > { %v4996_v21 = vadd.f32 %v4991_v8, %v4928_v27 }
0x11c3   : > { %v8840_v10 = vpop.f32.mrf.mxu1  ;;  %v8850_v12 = vpop.f32.mrf.mxu0 }
0x11c4   : > { %v5059_v31 = vadd.f32 %v5054_v6, %v4996_v21 }
0x11c9   : > { %v5111_v3 = vpop.f32.mrf.mxu1  ;;  %v5171_v14 = vpop.f32.mrf.mxu0 }
0x11ca   : > { %v5118_v30 = vadd.f32 %v5111_v3, %v5058_v28 }
0x11cb   : > { %v8859_v15 = vpop.f32.mrf.mxu1  ;;  %v8869_v13 = vpop.f32.mrf.mxu0 }
0x11cc   : > { %v5178_v61 = vadd.f32 %v5171_v14, %v5118_v30 }
0x11cd   : > { %v5114_v9 = vpop.f32.mrf.mxu1  ;;  %v5174_v2 = vpop.f32.mrf.mxu0 }
0x11ce   : > { %v5119_v34 = vadd.f32 %v5114_v9, %v5059_v31 }
0x11cf   : > { %v8860_v17 = vpop.f32.mrf.mxu1  ;;  %v8870_v18 = vpop.f32.mrf.mxu0 }
0x11d0   : > { %v5179_v39 = vadd.f32 %v5174_v2, %v5119_v34  ;;  %v6429_v34 = vld [vmem:[%s10728_s2 + $0xb0] sm:$0xff] }
0x11d5   : > { %v5231_v24 = vpop.f32.mrf.mxu1  ;;  %v5291_v29 = vpop.f32.mrf.mxu0 }
0x11d6   : > { %v5238_v36 = vadd.f32 %v5231_v24, %v5178_v61  ;;  %v6430_v61 = vld [vmem:[%s10728_s2 + $0xb8] sm:$0xff] }
0x11d7   : > { %v8879_v5 = vpop.f32.mrf.mxu1  ;;  %v8889_v11 = vpop.f32.mrf.mxu0 }
0x11d8   : > { %v5298_v44 = vadd.f32 %v5291_v29, %v5238_v36 }
0x11d9   : > { %v5234_v32 = vpop.f32.mrf.mxu1  ;;  %v5294_v33 = vpop.f32.mrf.mxu0 }
0x11da   : > { %v5239_v38 = vadd.f32 %v5234_v32, %v5179_v39  ;;  %v9334_v32 = vld [vmem:[#allocation2 + $0x690] ss:$8 sps:$4 sm:$0xff]   ;;  %v9179_v39 = vpack.i.bf16 %v9706_v60, %v9704_v59 }
0x11db   : > { %v8880_v35 = vpop.f32.mrf.mxu1  ;;  %v8890_v7 = vpop.f32.mrf.mxu0 }
0x11dc   : > { %v5299_v46 = vadd.f32 %v5294_v33, %v5239_v38  ;;  %v5920_v33 = vld [vmem:[%s10728_s2 + $0xa8] sm:$0xff]  ;;  %v6480_v35 = vmul.f32 %v9536_v25, %v9706_v60  ;;  %v6479_v7 = vmul.f32 %v9531_v23, %v9704_v59  ;;  %v6521_v38 = vmul.f32 %v9525_v20, %v9704_v59 }
0x11de   : > { %v9184_v36 = vpack.i.bf16 %v6480_v35, %v6479_v7 }
0x11e1   : > { %v5351_v43 = vpop.f32.mrf.mxu1 }
0x11e2   : > { %v5358_v45 = vadd.f32 %v5351_v43, %v5298_v44  ;;  %v6522_v44 = vmul.f32 %v9528_v22, %v9706_v60  ;;  %v9336_v60 = vld [vmem:[#allocation2 + $0x6c0] ss:$8 sps:$4 sm:$0xff]  }
0x11e3   : > { %v8899_v49 = vpop.f32.mrf.mxu1 }
0x11e4   : > { %v5372_v50 = vadd.f32 %v5365_v47, %v5358_v45  ;;  %v9189_v43 = vpack.i.bf16 %v6522_v44, %v6521_v38  ;;  %v9335_v47 = vld [vmem:[#allocation2 + $0x6a0] ss:$8 sps:$4 sm:$0xff]  }
0x11e5   : > { %v5354_v52 = vpop.f32.mrf.mxu1 }
0x11e6   : > { %v5359_v53 = vadd.f32 %v5354_v52, %v5299_v46  ;;  %v5374_v42 = vmax.f32 %v5372_v50, 0.0  ;;  %v9337_v50 = vld [vmem:[#allocation2 + $0x6b0] ss:$8 sps:$4 sm:$0xff]  }
0x11e7   : > { %v8900_v55 = vpop.f32.mrf.mxu1 }
0x11e8   : > { %v5373_v56 = vadd.f32 %v5370_v48, %v5359_v53  ;;  %v5388_v54 = vmul.f32 %v9721_v37, %v5374_v42  ;;  %v5402_v63 = vmul.f32 %v9724_v40, %v5374_v42  ;;  %v9338_v53 = vld [vmem:[#allocation2 + $0x6e0] ss:$8 sps:$4 sm:$0xff]   ;;  %v9339_v55 = vld [vmem:[#allocation2 + $0x6d0] ss:$8 sps:$4 sm:$0xff]  }
0x11ea   : > { %v5375_v51 = vmax.f32 %v5373_v56, 0.0  ;;  %v9341_v56 = vld [vmem:[#allocation2 + $0x700] ss:$8 sps:$4 sm:$0xff]  }
0x11ec   : > { %v5389_v41 = vmul.f32 %v9721_v37, %v5375_v51  ;;  %v5403_v57 = vmul.f32 %v9724_v40, %v5375_v51  ;;  %v9164_v62 = vpack.i.bf16 %v5375_v51, %v5374_v42  ;;  %v9340_v51 = vld [vmem:[#allocation2 + $0x6f0] ss:$8 sps:$4 sm:$0xff]  }
0x11ee   : > { %9165 = vrot.lane.b32.xlu0 %v9164_v62, %s9448_s14  ;;  %v9169_v0 = vpack.i.bf16 %v5389_v41, %v5388_v54  ;;  %v9174_v58 = vpack.i.bf16 %v5403_v57, %v5402_v63  ;;  %v9342_v41 = vld [vmem:[#allocation2 + $0x710] ss:$8 sps:$4 sm:$0xff]  }
0x11f0   : > { %9170 = vrot.lane.b32.xlu1 %v9169_v0, %s9448_s14 }
0x11f2   : > { %9175 = vrot.lane.b32.xlu0 %v9174_v58, %s9448_s14  ;;  %v9343_v58 = vld [vmem:[#allocation2 + $0x720] ss:$8 sps:$4 sm:$0xff]  }
0x1260   : > { %v9166_v8 = vpop.permute.xlu0 %9165 }
0x1261   : > { %v9168_v6 = vunpack.i.h.bf16 %v9166_v8  ;;  %v9167_v10 = vunpack.i.l.bf16 %v9166_v8  ;;  %v9347_v8 = vld [vmem:[#allocation2 + $0x7d0] ss:$8 sps:$4 sm:$0xff]  }
0x1262   : > { %v9171_v12 = vpop.permute.xlu1 %9170 }
0x1263   : > { %v5385_v3 = vsel %vm1401_vm2, 0.0, %v9168_v6  ;;  %v5384_v37 = vsel %vm1401_vm2, 0.0, %v9167_v10  ;;  %v9173_v14 = vunpack.i.h.bf16 %v9171_v12  ;;  %v9172_v15 = vunpack.i.l.bf16 %v9171_v12  ;;  %v9349_v6 = vld [vmem:[#allocation2 + $0x7d4] ss:$8 sps:$4 sm:$0xff]   ;;  %v9355_v10 = vld [vmem:[#allocation2 + $0x7c4] ss:$8 sps:$4 sm:$0xff]  }
0x1264   : > { %v5387_v40 = vsel %vm1403_vm3, %v5385_v3, 0.0  ;;  %v5386_v13 = vsel %vm1403_vm3, %v5384_v37, 0.0  ;;  %v9176_v9 = vpop.permute.xlu0 %9175  ;;  %v9353_v12 = vld [vmem:[#allocation2 + $0x7c0] ss:$8 sps:$4 sm:$0xff]   ;;  %v9359_v3 = vld [vmem:[#allocation2 + $0x7b0] ss:$8 sps:$4 sm:$0xff]  }
0x1265   : > { %v5399_v2 = vsel %vm1401_vm2, 0.0, %v9173_v14  ;;  %v5398_v16 = vsel %vm1401_vm2, 0.0, %v9172_v15  ;;  %v9178_v17 = vunpack.i.h.bf16 %v9176_v9  ;;  %v9177_v18 = vunpack.i.l.bf16 %v9176_v9 }
0x1266   : > { %v5401_v26 = vsel %vm1403_vm3, %v5399_v2, 0.0  ;;  %v5400_v27 = vsel %vm1403_vm3, %v5398_v16, 0.0  ;;  %v5435_v28 = vpack.c.bf16 %v5387_v40, %v5386_v13 }
0x1267   : > { %v5413_v21 = vsel %vm1401_vm2, 0.0, %v9178_v17  ;;  %v5412_v24 = vsel %vm1401_vm2, 0.0, %v9177_v18  ;;  %v5538_v29 = vpack.c.bf16 %v5401_v26, %v5400_v27  ;;  %vm6606_vm2 = vcmask 195584  }
0x1268   : > { %v5415_v30 = vsel %vm1403_vm3, %v5413_v21, 0.0  ;;  %v5414_v5 = vsel %vm1403_vm3, %v5412_v24, 0.0  ;;  %v8206_v11 = vpack.c.bf16 %v5413_v21, %v5412_v24  ;;  %5442 = vrot.lane.b32.xlu1 %v5435_v28, %s9440_s29  ;;  %vm10742_vm3 = vcmask 900096  }
0x1269   : > { %5545 = vrot.lane.b32.xlu0 %v5538_v29, %s9443_s5  ;;  %v5434_v31 = vpack.c.bf16 %v5415_v30, %v5414_v5 }
0x126a   : > { %8908 = vmatpush3.bf16.msk.msra.mxu1 %vm9819_vm15, %v8206_v11  ;;  %vm10743_vm15 = vmmov %vm10742_vm3 }
0x126b   : > { %8919 = vmatprep.subr.bf16.mxu1 %v9438_v19 }
0x126c   : > { %5600 = vrot.lane.b32.xlu1 %v5434_v31, %s9450_s15 }
0x126d   : > { %5654 = vrot.lane.b32.xlu0 %v5435_v28, %s9451_s16  ;;  %8910 = vmatmul.mubr.msk.bf16.vlgmr.msra.gmra.mxu1 %vm2026_vm0, %v9334_v32 }
0x126e   : > { %8921 = vmatprep.mubr.msk.bf16.mxu1 %vm9449_vm1, %v9438_v19 }
0x1270   : > { %5708 = vrot.lane.b32.xlu1 %v5538_v29, %s9452_s17 }
0x1271   : > { %5762 = vrot.lane.b32.xlu0 %v5434_v31, %s9444_s6 }
0x1274   : > { %5816 = vrot.lane.b32.xlu1 %v5435_v28, %s9441_s30 }
0x1275   : > { %5870 = vrot.lane.b32.xlu0 %v5538_v29, %s9445_s7 }
0x1278   : > { %5923 = vperm.xlu1 %9012, %v5919_v4  }
0x1279   : > { %5928 = vperm.xlu0 %9018, %v5920_v33  }
0x127c   : > { %6438 = vperm.xlu1 %9012, %v6430_v61  }
0x127d   : > { %6433 = vperm.xlu0 %9018, %v6429_v34  }
0x1280   : > { %9185 = vrot.lane.b32.xlu1 %v9184_v36, %s9439_s26 }
0x1281   : > { %9180 = vrot.lane.b32.xlu0 %v9179_v39, %s9439_s26 }
0x1285   : > { %9190 = vrot.lane.b32.xlu0 %v9189_v43, %s9439_s26 }
0x12da   : > { %v5443_v45 = vpop.permute.xlu1 %5442 }
0x12db   : > { %8902 = vmatpush3.bf16.msra.mxu0 %v5443_v45  ;;  %v5546_v49 = vpop.permute.xlu0 %5545 }
0x12dc   : > { %8913 = vmatprep.subr.bf16.mxu0 %v9438_v19 }
0x12de   : > { %8904 = vmatmul.mubr.msk.bf16.vlgmr.msra.gmra.mxu0 %vm2026_vm0, %v9335_v47  ;;  %v5601_v46 = vpop.permute.xlu1 %5600 }
0x12df   : > { %8914 = vmatpush3.bf16.msra.mxu0 %v5546_v49  ;;  %8920 = vmatpush3.bf16.msra.mxu1 %v5601_v46  ;;  %v5655_v52 = vpop.permute.xlu0 %5654 }
0x12e0   : > { %8931 = vmatprep.subr.bf16.mxu1 %v9438_v19  ;;  %8915 = vmatprep.mubr.msk.bf16.mxu0 %vm9449_vm1, %v9438_v19 }
0x12e1   : > { %8925 = vmatprep.subr.bf16.mxu0 %v9438_v19 }
0x12e2   : > { %8922 = vmatmul.mubr.msk.bf16.vlgmr.msra.gmra.mxu1 %vm2026_vm0, %v9336_v60  ;;  %v5709_v59 = vpop.permute.xlu1 %5708 }
0x12e3   : > { %8932 = vmatpush3.bf16.msra.mxu1 %v5709_v59  ;;  %8933 = vmatprep.mubr.msk.bf16.mxu1 %vm9449_vm1, %v9438_v19  ;;  %v5763_v42 = vpop.permute.xlu0 %5762 }
0x12e4   : > { %8943 = vmatprep.subr.bf16.mxu1 %v9438_v19 }
0x12e6   : > { %8916 = vmatmul.mubr.msk.bf16.vlgmr.msra.gmra.mxu0 %vm2026_vm0, %v9337_v50  ;;  %v5817_v48 = vpop.permute.xlu1 %5816 }
0x12e7   : > { %8926 = vmatpush3.bf16.msra.mxu0 %v5655_v52  ;;  %8927 = vmatprep.mubr.msk.bf16.mxu0 %vm9449_vm1, %v9438_v19  ;;  %v5871_v54 = vpop.permute.xlu0 %5870 }
0x12e8   : > { %8937 = vmatprep.subr.bf16.mxu0 %v9438_v19 }
0x12ea   : > { %8934 = vmatmul.mubr.msk.bf16.vlgmr.msra.gmra.mxu1 %vm2026_vm0, %v9338_v53 }
0x12eb   : > { %8944 = vmatpush3.bf16.msra.mxu1 %v5817_v48  ;;  %8945 = vmatprep.mubr.msk.bf16.mxu1 %vm9449_vm1, %v9438_v19 }
0x12ee   : > { %8928 = vmatmul.mubr.msk.bf16.vlgmr.msra.gmra.mxu0 %vm2026_vm0, %v9339_v55 }
0x12ef   : > { %8938 = vmatpush3.bf16.msra.mxu0 %v5763_v42  ;;  %8939 = vmatprep.mubr.msk.bf16.mxu0 %vm9449_vm1, %v9438_v19 }
0x12f0   : > { %8949 = vmatprep.subr.bf16.mxu0 %v9438_v19 }
0x12f2   : > { %8946 = vmatmul.mubr.msk.bf16.vlgmr.msra.gmra.mxu1 %vm2026_vm0, %v9341_v56 }
0x12f3   : > { %8957 = vmatprep.mubr.msk.bf16.mxu1 %vm2026_vm0, %v9343_v58 }
0x12f6   : > { %8940 = vmatmul.mubr.msk.bf16.vlgmr.msra.gmra.mxu0 %vm2026_vm0, %v9340_v51  ;;  %v5924_v51 = vpop.permute.xlu1 %5923 }
0x12f7   : > { %8950 = vmatpush3.bf16.msra.mxu0 %v5871_v54  ;;  %8951 = vmatprep.mubr.msk.bf16.mxu0 %vm9449_vm1, %v9438_v19  ;;  %v9361_v19 = vld [vmem:[#allocation2 + $0x7b4] ss:$8 sps:$4 sm:$0xff]  }
0x12f8   : > { %6110 = vmatprep.subr.bf16.mxu0 %v9349_v6 }
0x12fe   : > { %8952 = vmatmul.mubr.msk.bf16.vlgmr.msra.gmra.mxu0 %vm2026_vm0, %v9342_v41 }
0x12ff   : > { %6134 = vmatprep.mubr.bf16.mxu0 %v9436_v1  ;;  %6111 = vmatpush1.bf16.msra.mxu0 %v9347_v8 }
0x1300   : > { %6112 = vmatprep.subr.bf16.mxu0 %v9355_v10  ;;  %v9352_v10 = vld [vmem:[#allocation2 + $0x794] ss:$8 sps:$4 sm:$0xff]  }
0x1303   : > { %6113 = vmatpush1.bf16.msra.mxu0 %v9353_v12  ;;  %v9344_v12 = vld [vmem:[#allocation2 + $0x730] ss:$8 sps:$4 sm:$0xff]  }
0x1304   : > { %6114 = vmatprep.subr.bf16.mxu0 %v9361_v19  ;;  %v9345_v19 = vld [vmem:[#allocation2 + $0x740] ss:$8 sps:$4 sm:$0xff]  }
0x1307   : > { %6115 = vmatpush1.bf16.msra.mxu0 %v9359_v3  ;;  %v9350_v3 = vld [vmem:[#allocation2 + $0x790] ss:$8 sps:$4 sm:$0xff]  }
0x132d   : > { %v5531_v57 = vpop.f32.mrf.mxu1 }
0x132f   : > { %v8911_v62 = vpop.f32.mrf.mxu1 }
0x1330   : > { %v5929_v62 = vpop.permute.xlu0 %5928 }
0x1331   : > { %v5534_v63 = vpop.f32.mrf.mxu1 }
0x1333   : > { %v8912_v0 = vpop.f32.mrf.mxu1 }
0x139e   : > { %v5482_v37 = vpop.f32.mrf.mxu0 }
0x139f   : > { %v5532_v28 = vadd.f32 %v5531_v57, %v5482_v37  ;;  %v9358_v37 = vld [vmem:[#allocation2 + $0x784] ss:$8 sps:$4 sm:$0xff]  }
0x13a0   : > { %v8905_v14 = vpop.f32.mrf.mxu0 }
0x13a1   : > { %v9356_v14 = vld [vmem:[#allocation2 + $0x780] ss:$8 sps:$4 sm:$0xff]  }
0x13a2   : > { %v5485_v15 = vpop.f32.mrf.mxu0  ;;  %v5640_v40 = vpop.f32.mrf.mxu1 }
0x13a3   : > { %v5535_v11 = vadd.f32 %v5534_v63, %v5485_v15  ;;  %v9346_v15 = vld [vmem:[#allocation2 + $0x750] ss:$8 sps:$4 sm:$0xff]  }
0x13a4   : > { %v8906_v13 = vpop.f32.mrf.mxu0  ;;  %v8923_v9 = vpop.f32.mrf.mxu1 }
0x13a5   : > { %v9362_v13 = vld [vmem:[#allocation2 + $0x770] ss:$8 sps:$4 sm:$0xff]   ;;  %v9367_v9 = vld [vmem:[#allocation2 + $0x7a4] ss:$8 sps:$4 sm:$0xff]  }
0x13a6   : > { %v5585_v2 = vpop.f32.mrf.mxu0  ;;  %v5643_v16 = vpop.f32.mrf.mxu1  ;;  %6116 = vmatprep.subr.bf16.mxu0 %v9367_v9 }
0x13a7   : > { %v5592_v29 = vadd.f32 %v5585_v2, %v5532_v28  ;;  %v9365_v2 = vld [vmem:[#allocation2 + $0x7a0] ss:$8 sps:$4 sm:$0xff]  }
0x13a8   : > { %v8917_v17 = vpop.f32.mrf.mxu0  ;;  %v8924_v18 = vpop.f32.mrf.mxu1  ;;  %6117 = vmatpush1.bf16.msra.mxu0 %v9365_v2 }
0x13a9   : > { %v5647_v4 = vadd.f32 %v5640_v40, %v5592_v29  ;;  %v9364_v40 = vld [vmem:[#allocation2 + $0x774] ss:$8 sps:$4 sm:$0xff]   ;;  %v9368_v17 = vld [vmem:[#allocation2 + $0x760] ss:$8 sps:$4 sm:$0xff]  }
0x13aa   : > { %v5588_v26 = vpop.f32.mrf.mxu0  ;;  %v5748_v27 = vpop.f32.mrf.mxu1  ;;  %v9373_v18 = vld [vmem:[#allocation2 + $0x814] ss:$8 sps:$4 sm:$0xff]  }
0x13ab   : > { %v5593_v33 = vadd.f32 %v5588_v26, %v5535_v11  ;;  %6291 = vmatprep.subr.bf16.mxu0 %v9373_v18  ;;  %v9376_v26 = vld [vmem:[#allocation2 + $0x854] ss:$8 sps:$4 sm:$0xff]   ;;  %v9374_v11 = vld [vmem:[#allocation2 + $0x850] ss:$8 sps:$4 sm:$0xff]   ;;  %v6439_v18 = vpop.permute.xlu1 %6438 }
0x13ac   : > { %v8918_v21 = vpop.f32.mrf.mxu0  ;;  %v8935_v24 = vpop.f32.mrf.mxu1 }
0x13ad   : > { %v5648_v39 = vadd.f32 %v5643_v16, %v5593_v33  ;;  %v9370_v16 = vld [vmem:[#allocation2 + $0x764] ss:$8 sps:$4 sm:$0xff]   ;;  %v9371_v24 = vld [vmem:[#allocation2 + $0x810] ss:$8 sps:$4 sm:$0xff]  }
0x13ae   : > { %v5694_v30 = vpop.f32.mrf.mxu0  ;;  %v5751_v5 = vpop.f32.mrf.mxu1 }
0x13af   : > { %v5701_v35 = vadd.f32 %v5694_v30, %v5647_v4  ;;  %v9379_v30 = vld [vmem:[#allocation2 + $0x804] ss:$8 sps:$4 sm:$0xff]   ;;  %v9377_v4 = vld [vmem:[#allocation2 + $0x800] ss:$8 sps:$4 sm:$0xff]  }
0x13b0   : > { %v8929_v31 = vpop.f32.mrf.mxu0  ;;  %v8936_v32 = vpop.f32.mrf.mxu1 }
0x13b1   : > { %v5755_v43 = vadd.f32 %v5748_v27, %v5701_v35  ;;  %v9382_v32 = vld [vmem:[#allocation2 + $0x844] ss:$8 sps:$4 sm:$0xff]  }
0x13b2   : > { %v5697_v61 = vpop.f32.mrf.mxu0  ;;  %v5856_v34 = vpop.f32.mrf.mxu1 }
0x13b3   : > { %v5702_v45 = vadd.f32 %v5697_v61, %v5648_v39  ;;  %v9385_v61 = vld [vmem:[#allocation2 + $0x7f4] ss:$8 sps:$4 sm:$0xff]   ;;  %v9391_v39 = vld [vmem:[#allocation2 + $0x7e4] ss:$8 sps:$4 sm:$0xff]  }
0x13b4   : > { %v8930_v7 = vpop.f32.mrf.mxu0  ;;  %v8947_v36 = vpop.f32.mrf.mxu1 }
0x13b5   : > { %v5756_v59 = vadd.f32 %v5751_v5, %v5702_v45  ;;  %v9388_v7 = vld [vmem:[#allocation2 + $0x834] ss:$8 sps:$4 sm:$0xff]   ;;  %v9383_v36 = vld [vmem:[#allocation2 + $0x7f0] ss:$8 sps:$4 sm:$0xff]   ;;  %v9389_v45 = vld [vmem:[#allocation2 + $0x7e0] ss:$8 sps:$4 sm:$0xff]  }
0x13b6   : > { %v5802_v44 = vpop.f32.mrf.mxu0  ;;  %v5859_v38 = vpop.f32.mrf.mxu1 }
0x13b7   : > { %v5809_v46 = vadd.f32 %v5802_v44, %v5755_v43  ;;  %v9386_v44 = vld [vmem:[#allocation2 + $0x830] ss:$8 sps:$4 sm:$0xff]   ;;  %v9394_v43 = vld [vmem:[#allocation2 + $0x824] ss:$8 sps:$4 sm:$0xff]  }
0x13b8   : > { %v8941_v47 = vpop.f32.mrf.mxu0  ;;  %v8948_v49 = vpop.f32.mrf.mxu1 }
0x13b9   : > { %v5863_v52 = vadd.f32 %v5856_v34, %v5809_v46  ;;  %v9380_v34 = vld [vmem:[#allocation2 + $0x840] ss:$8 sps:$4 sm:$0xff]  }
0x13ba   : > { %v5805_v60 = vpop.f32.mrf.mxu0  ;;  %v9392_v49 = vld [vmem:[#allocation2 + $0x820] ss:$8 sps:$4 sm:$0xff]  }
0x13bb   : > { %v5810_v53 = vadd.f32 %v5805_v60, %v5756_v59 }
0x13bc   : > { %v8942_v50 = vpop.f32.mrf.mxu0 }
0x13bd   : > { %v5864_v56 = vadd.f32 %v5859_v38, %v5810_v53 }
0x13be   : > { %v5910_v48 = vpop.f32.mrf.mxu0 }
0x13bf   : > { %v5917_v55 = vadd.f32 %v5910_v48, %v5863_v52 }
0x13c0   : > { %v8953_v42 = vpop.f32.mrf.mxu0 }
0x13c1   : > { %v5931_v41 = vadd.f32 %v5924_v51, %v5917_v55 }
0x13c2   : > { %v5913_v54 = vpop.f32.mrf.mxu0 }
0x13c3   : > { %v5918_v57 = vadd.f32 %v5913_v54, %v5864_v56  ;;  %v5933_v58 = vmax.f32 %v5931_v41, 0.0 }
0x13c4   : > { %v8954_v63 = vpop.f32.mrf.mxu0 }
0x13c5   : > { %v5932_v0 = vadd.f32 %v5929_v62, %v5918_v57 }
0x13c7   : > { %v5934_v8 = vmax.f32 %v5932_v0, 0.0  ;;  %v6434_v0 = vpop.permute.xlu0 %6433 }
0x13c9   : > { %v5943_v6 = vpack.c.bf16 %v5934_v8, %v5933_v58 }
0x13cb   : > { %8955 = vmatprep.subr.bf16.mxu1 %v5943_v6 }
0x13cc   : > { %8956 = vmatpush3.bf16.msra.mxu1 %v5943_v6 }
0x13cd   : > { %6196 = vmatprep.subr.bf16.mxu1 %v9352_v10 }
0x13cf   : > { %8958 = vmatmul.mubr.msk.bf16.vlgmr.msra.gmra.mxu1 %vm2026_vm0, %v9344_v12 }
0x13d0   : > { %8961 = vmatprep.mubr.msk.bf16.mxu1 %vm2026_vm0, %v9345_v19  ;;  %6197 = vmatpush1.bf16.msra.mxu1 %v9350_v3 }
0x13d1   : > { %6198 = vmatprep.subr.bf16.mxu1 %v9358_v37 }
0x13d4   : > { %6199 = vmatpush1.bf16.msra.mxu1 %v9356_v14 }
0x13d5   : > { %6200 = vmatprep.subr.bf16.mxu1 %v9364_v40 }
0x13d7   : > { %8962 = vmatmul.mubr.msk.bf16.gmra.mxu1 %vm2026_vm0, %v9346_v15  ;;  %vm10744_vm0 = vmmov %vm10742_vm3 }
0x13d8   : > { %6220 = vmatprep.mubr.bf16.mxu1 %v9436_v1  ;;  %6201 = vmatpush1.bf16.msra.mxu1 %v9362_v13  ;;  %vm10747_vm14 = vmmov %vm10744_vm0 }
0x13d9   : > { %6202 = vmatprep.subr.bf16.mxu1 %v9370_v16 }
0x13dc   : > { %6203 = vmatpush1.bf16.msra.mxu1 %v9368_v17 }
0x13dd   : > { %6390 = vmatprep.subr.bf16.mxu1 %v9376_v26 }
0x148f   : > { %v8959_v27 = vpop.f32.mrf.mxu1 }
0x1491   : > { %v6010_v28 = vpop.f32.mrf.mxu1 }
0x1493   : > { %v8960_v21 = vpop.f32.mrf.mxu1 }
0x1494   : > { %v6058_v29 = vpack.c.bf16 %v8960_v21, %v8959_v27 }
0x1495   : > { %v6013_v5 = vpop.f32.mrf.mxu1 }
0x1496   : > { %v6049_v31 = vpack.c.bf16 %v6013_v5, %v6010_v28  ;;  %8239 = vmatmul.mubr.msk.bf16.vlgmr.msra.gmra.mxu0 %vm2576_vm11, %v6058_v29 }
0x1497   : > { %6292 = vmatpush1.bf16.msra.mxu0 %v9371_v24  ;;  %v8963_v33 = vpop.f32.mrf.mxu1  ;;  %6315 = vmatprep.mubr.bf16.mxu0 %v9436_v1 }
0x1498   : > { %8248 = vmatmul.mubr.msk.bf16.vlgmr.msra.gmra.mxu1 %vm2576_vm11, %v6049_v31  ;;  %6293 = vmatprep.subr.bf16.mxu0 %v9379_v30 }
0x1499   : > { %6391 = vmatpush1.bf16.msra.mxu1 %v9374_v11  ;;  %v6026_v35 = vpop.f32.mrf.mxu1  ;;  %6414 = vmatprep.mubr.bf16.mxu1 %v9436_v1 }
0x149a   : > { %6392 = vmatprep.subr.bf16.mxu1 %v9382_v32 }
0x149b   : > { %6294 = vmatpush1.bf16.msra.mxu0 %v9377_v4  ;;  %v8964_v38 = vpop.f32.mrf.mxu1 }
0x149c   : > { %6295 = vmatprep.subr.bf16.mxu0 %v9385_v61  ;;  %v6338_v60 = vpack.c.bf16 %v8964_v38, %v8963_v33 }
0x149d   : > { %6393 = vmatpush1.bf16.msra.mxu1 %v9380_v34  ;;  %v6029_v47 = vpop.f32.mrf.mxu1 }
0x149e   : > { %6394 = vmatprep.subr.bf16.mxu1 %v9388_v7  ;;  %v6239_v46 = vpack.c.bf16 %v6029_v47, %v6026_v35  ;;  %v9181_v7 = vpop.permute.xlu0 %9180 }
0x149f   : > { %6296 = vmatpush1.bf16.msra.mxu0 %v9383_v36  ;;  %v10370_v36 = vpop.permute.xlu1 %9185 }
0x14a0   : > { %6297 = vmatprep.subr.bf16.mxu0 %v9391_v39  ;;  %v9183_v39 = vunpack.i.h.bf16 %v9181_v7 }
0x14a1   : > { %6395 = vmatpush1.bf16.msra.mxu1 %v9386_v44  ;;  %v9182_v44 = vunpack.i.l.bf16 %v9181_v7 }
0x14a2   : > { %6396 = vmatprep.subr.bf16.mxu1 %v9394_v43  ;;  %v10372_v38 = vpop.permute.xlu0 %9190 }
0x14a3   : > { %6298 = vmatpush1.bf16.msra.mxu0 %v9389_v45 }
0x14a5   : > { %6397 = vmatpush1.bf16.msra.mxu1 %v9392_v49  ;;  %v6476_v49 = vsel %vm215_vm4, %v9183_v39, 0.0 }
0x14a6   : > { %8257 = vmatmul.mubr.msk.bf16.vlgmr.msra.gmra.mxu0 %vm2576_vm11, %v6239_v46  ;;  %v6473_v46 = vsel %vm215_vm4, 0.0, %v9182_v44 }
0x14a7   : > { %6648 = vmatprep.mubr.bf16.mxu0 %v9436_v1 }
0x14a8   : > { %8266 = vmatmul.mubr.msk.bf16.vlgmr.msra.gmra.mxu1 %vm2576_vm11, %v6338_v60  ;;  %v9192_v60 = vunpack.i.l.bf16 %v10372_v38  ;;  %vm10423_vm11 = vmneg %vm215_vm4 }
0x14a9   : > { %6698 = vmatprep.mubr.bf16.mxu1 %v9436_v1  ;;  %vm8272_vm1 = vmpackc.low %vm10423_vm11, %vm10423_vm11  ;;  %vm10749_vm11 = vcmask 777216  }
0x1556   : > { %v6136_v59 = vpop.f32.mrf.mxu0 }
0x1558   : > { %v6222_v50 = vpop.f32.mrf.mxu1  ;;  %v6138_v52 = vpop.f32.mrf.mxu0 }
0x1559   : > { %v6223_v56 = vadd.f32 %v6222_v50, %v6136_v59 }
0x155a   : > { %v6224_v53 = vpop.f32.mrf.mxu1  ;;  %v6140_v48 = vpop.f32.mrf.mxu0 }
0x155b   : > { %v6225_v41 = vadd.f32 %v6224_v53, %v6138_v52 }
0x155c   : > { %v6226_v55 = vpop.f32.mrf.mxu1  ;;  %v6142_v42 = vpop.f32.mrf.mxu0 }
0x155d   : > { %v6227_v58 = vadd.f32 %v6226_v55, %v6140_v48 }
0x155e   : > { %v6228_v51 = vpop.f32.mrf.mxu1 }
0x155f   : > { %v6229_v19 = vadd.f32 %v6228_v51, %v6142_v42 }
0x1566   : > { %v6317_v54 = vpop.f32.mrf.mxu0 }
0x1567   : > { %v6326_v57 = vadd.f32 %v6317_v54, %v6223_v56  ;;  %v6557_v56 = vsel %vm215_vm4, 0.0, %v9192_v60 }
0x1568   : > { %v6319_v62 = vpop.f32.mrf.mxu0  ;;  %v6416_v63 = vpop.f32.mrf.mxu1 }
0x1569   : > { %v6327_v8 = vadd.f32 %v6319_v62, %v6225_v41  ;;  %v6425_v6 = vadd.f32 %v6416_v63, %v6326_v57  ;;  %v9187_v63 = vunpack.i.l.bf16 %v10370_v36 }
0x156a   : > { %v6321_v10 = vpop.f32.mrf.mxu0  ;;  %v6418_v12 = vpop.f32.mrf.mxu1 }
0x156b   : > { %v6441_v3 = vadd.f32 %v6434_v0, %v6425_v6  ;;  %v6328_v37 = vadd.f32 %v6321_v10, %v6227_v58  ;;  %v6426_v14 = vadd.f32 %v6418_v12, %v6327_v8  ;;  %v9193_v8 = vunpack.i.h.bf16 %v10372_v38 }
0x156c   : > { %v6323_v15 = vpop.f32.mrf.mxu0  ;;  %v6420_v40 = vpop.f32.mrf.mxu1 }
0x156d   : > { %v6442_v13 = vadd.f32 %v6434_v0, %v6426_v14  ;;  %v6329_v9 = vadd.f32 %v6323_v15, %v6229_v19  ;;  %v6481_v2 = vmul.f32 %v9531_v23, %v6441_v3  ;;  %v6427_v16 = vadd.f32 %v6420_v40, %v6328_v37 }
0x156e   : > { %v6422_v17 = vpop.f32.mrf.mxu1  ;;  %v6523_v29 = vmul.f32 %v9525_v20, %v6441_v3  ;;  %v6461_v0 = vsel %vm215_vm4, %v9182_v44, %v9183_v39  ;;  %v6515_v14 = vsel %vm215_vm4, 0.0, %v9187_v63 }
0x156f   : > { %v6482_v26 = vmul.f32 %v9536_v25, %v6442_v13  ;;  %v6524_v27 = vmul.f32 %v9528_v22, %v6442_v13  ;;  %v9194_v28 = vpack.i.bf16 %v6442_v13, %v6441_v3  ;;  %v6428_v21 = vadd.f32 %v6422_v17, %v6329_v9 }
0x1570   : > { %v6443_v24 = vadd.f32 %v6439_v18, %v6427_v16 }
0x1571   : > { %v6444_v30 = vadd.f32 %v6439_v18, %v6428_v21  ;;  %9195 = vrot.lane.b32.xlu1 %v9194_v28, %s9439_s26  ;;  %v9199_v5 = vpack.i.bf16 %v6482_v26, %v6481_v2  ;;  %v9204_v32 = vpack.i.bf16 %v6524_v27, %v6523_v29  ;;  %v6545_v26 = vsel %vm215_vm4, %v9192_v60, %v9193_v8 }
0x1572   : > { %v6483_v11 = vmul.f32 %v9531_v23, %v6443_v24  ;;  %v6525_v34 = vmul.f32 %v9525_v20, %v6443_v24 }
0x1573   : > { %v6484_v31 = vmul.f32 %v9536_v25, %v6444_v30  ;;  %9200 = vrot.lane.b32.xlu0 %v9199_v5, %s9439_s26  ;;  %v6526_v33 = vmul.f32 %v9528_v22, %v6444_v30  ;;  %v9209_v61 = vpack.i.bf16 %v6444_v30, %v6443_v24  ;;  %v9188_v24 = vunpack.i.h.bf16 %v10370_v36 }
0x1575   : > { %9205 = vrot.lane.b32.xlu1 %v9204_v32, %s9439_s26  ;;  %v9214_v4 = vpack.i.bf16 %v6484_v31, %v6483_v11  ;;  %v9219_v35 = vpack.i.bf16 %v6526_v33, %v6525_v34  ;;  %v6518_v11 = vsel %vm215_vm4, %v9188_v24, 0.0  ;;  %v6560_v34 = vsel %vm215_vm4, %v9193_v8, 0.0 }
0x1577   : > { %9215 = vrot.lane.b32.xlu0 %v9214_v4, %s9439_s26  ;;  %v6503_v4 = vsel %vm215_vm4, %v9187_v63, %v9188_v24 }
0x1579   : > { %9210 = vrot.lane.b32.xlu1 %v9209_v61, %s9439_s26 }
0x157d   : > { %9220 = vrot.lane.b32.xlu1 %v9219_v35, %s9439_s26 }
0x15e3   : > { %v9196_v43 = vpop.permute.xlu1 %9195 }
0x15e4   : > { %v9198_v45 = vunpack.i.h.bf16 %v9196_v43  ;;  %v9197_v47 = vunpack.i.l.bf16 %v9196_v43 }
0x15e5   : > { %v9201_v42 = vpop.permute.xlu0 %9200 }
0x15e6   : > { %v6477_v59 = vsel %vm215_vm4, %v9198_v45, 0.0  ;;  %v6474_v50 = vsel %vm215_vm4, 0.0, %v9197_v47  ;;  %v6462_v57 = vsel %vm215_vm4, %v9197_v47, %v9198_v45  ;;  %v9202_v62 = vunpack.i.l.bf16 %v9201_v42 }
0x15e7   : > { %v10379_v52 = vpack.c.bf16 %v6477_v59, %v6476_v49  ;;  %v10381_v53 = vpack.c.bf16 %v6474_v50, %v6473_v46  ;;  %v9206_v48 = vpop.permute.xlu1 %9205  ;;  %v10398_v6 = vpack.c.bf16 %v6462_v57, %v6461_v0  ;;  %v9203_v17 = vunpack.i.h.bf16 %v9201_v42  ;;  %v6563_v46 = vld [vmem:[#allocation2 + $0x860] sm:$0xf] }
0x15e8   : > { %v9207_v55 = vunpack.i.l.bf16 %v9206_v48  ;;  %v9208_v58 = vunpack.i.h.bf16 %v9206_v48  ;;  %v6516_v12 = vsel %vm215_vm4, 0.0, %v9202_v62 }
0x15e9   : > { %6592 = vrot.lane.b32.xlu0 %v10379_v52, %s9440_s29  ;;  %6588 = vrot.lane.b32.xlu1 %v10381_v53, %s9440_s29  ;;  %v10416_v9 = vpack.c.bf16 %v6516_v12, %v6515_v14  ;;  %v6519_v30 = vsel %vm215_vm4, %v9203_v17, 0.0  ;;  %v6504_v32 = vsel %vm215_vm4, %v9202_v62, %v9203_v17  ;;  %v9216_v36 = vpop.permute.xlu0 %9215 }
0x15ea   : > { %v6558_v51 = vsel %vm215_vm4, 0.0, %v9207_v55  ;;  %v6546_v13 = vsel %vm215_vm4, %v9207_v55, %v9208_v58  ;;  %v8273_v5 = vpack.c.bf16 %v9207_v55, %v9192_v60  ;;  %v6709_v31 = vpack.c.bf16 %v6519_v30, %v6518_v11 }
0x15eb   : > { %v6572_v54 = vpack.c.bf16 %v6558_v51, %v6557_v56  ;;  %v10389_v41 = vpop.permute.xlu1 %9210  ;;  %v6573_v21 = vpack.c.bf16 %v6546_v13, %v6545_v26  ;;  %v6708_v33 = vpack.c.bf16 %v6504_v32, %v6503_v4  ;;  %v6561_v61 = vsel %vm215_vm4, %v9208_v58, 0.0  ;;  %v7217_v51 = vld [vmem:[%s10728_s2 + $0xc0] sm:$0xff] }
0x15ec   : > { %v9212_v19 = vunpack.i.l.bf16 %v10389_v41  ;;  %v6789_v35 = vpack.c.bf16 %v6561_v61, %v6560_v34  ;;  %v9213_v7 = vunpack.i.h.bf16 %v10389_v41  ;;  %v9217_v39 = vunpack.i.l.bf16 %v9216_v36 }
0x15ed   : > { %6797 = vrot.lane.b32.xlu0 %v6572_v54, %s9444_s6  ;;  %6867 = vrot.lane.b32.xlu1 %v10381_v53, %s9441_s30  ;;  %v9218_v60 = vunpack.i.h.bf16 %v9216_v36 }
0x15ee   : > { %v6475_v18 = vsel %vm215_vm4, 0.0, %v9212_v19  ;;  %v6478_v44 = vsel %vm215_vm4, %v9213_v7, 0.0  ;;  %v6517_v43 = vsel %vm215_vm4, 0.0, %v9217_v39  ;;  %v6463_v45 = vsel %vm215_vm4, %v9212_v19, %v9213_v7 }
0x15ef   : > { %v10400_v10 = vpop.permute.xlu1 %9220  ;;  %v6579_v29 = vpack.c.bf16 %v6475_v18, %v6475_v18  ;;  %v6581_v38 = vpack.c.bf16 %v6478_v44, %v6478_v44  ;;  %v6710_v47 = vpack.c.bf16 %v6517_v43, %v6517_v43  ;;  %v6580_v49 = vpack.c.bf16 %v6463_v45, %v6463_v45 }
0x15f0   : > { %v9223_v3 = vunpack.i.h.bf16 %v10400_v10  ;;  %v9222_v37 = vunpack.i.l.bf16 %v10400_v10  ;;  %v6505_v59 = vsel %vm215_vm4, %v9217_v39, %v9218_v60  ;;  %v6520_v50 = vsel %vm215_vm4, %v9218_v60, 0.0 }
0x15f1   : > { %6871 = vrot.lane.b32.xlu0 %v10379_v52, %s9441_s30  ;;  %6590 = vrot.lane.b32.xlu1 %v10398_v6, %s9440_s29  ;;  %v6711_v48 = vpack.c.bf16 %v6505_v59, %v6505_v59  ;;  %v6712_v55 = vpack.c.bf16 %v6520_v50, %v6520_v50  ;;  %v6565_v59 = vld [vmem:[#allocation2 + $0x870] sm:$0xf] }
0x15f2   : > { %v6547_v15 = vsel %vm215_vm4, %v9222_v37, %v9223_v3  ;;  %v6559_v40 = vsel %vm215_vm4, 0.0, %v9222_v37  ;;  %v6562_v42 = vsel %vm215_vm4, %v9223_v3, 0.0 }
0x15f3   : > { %v6574_v2 = vpack.c.bf16 %v6559_v40, %v6559_v40  ;;  %v10418_v16 = vpack.c.bf16 %v6547_v15, %v6547_v15  ;;  %v6790_v56 = vpack.c.bf16 %v6562_v42, %v6562_v42 }
0x15f5   : > { %8269 = vmatprep.subr.msk.bf16.mxu1 %vm651_vm13, %v10418_v16  ;;  %6937 = vrot.lane.b32.xlu0 %v10416_v9, %s9445_s7  ;;  %v6661_v28 = vsel %vm651_vm13, %v6574_v2, 0 }
0x15f6   : > { %6719 = vrot.lane.b32.xlu1 %v10416_v9, %s9443_s5  ;;  %6679 = vmatpush1.bf16.msra.mxu1 %v6661_v28 }
0x15f7   : > { %6680 = vmatprep.subr.bf16.mxu1 %v6573_v21 }
0x15f9   : > { %6594 = vrot.lane.b32.xlu0 %v6579_v29, %s9440_s29 }
0x15fa   : > { %6869 = vrot.lane.b32.xlu1 %v10398_v6, %s9441_s30  ;;  %8274 = vmatpush1.bf16.msk.msra.mxu1 %vm8272_vm1, %v8273_v5  ;;  %v6564_v5 = vld [vmem:[#allocation2 + $0x868] sm:$0xf]  ;;  %vm10750_vm1 = vmmov %vm10749_vm11 }
0x15fd   : > { %6723 = vrot.lane.b32.xlu0 %v6709_v31, %s9443_s5  ;;  %8275 = vmatmul.mubr.msk.bf16.vlgmr.msra.gmra.mxu1 %vm6606_vm2, %v6563_v46 }
0x15fe   : > { %7007 = vrot.lane.b32.xlu1 %v6572_v54, %s9446_s8  ;;  %6856 = vmatprep.mubr.bf16.mxu1 %v9436_v1 }
0x1601   : > { %6799 = vrot.lane.b32.xlu0 %v6573_v21, %s9444_s6 }
0x1602   : > { %6721 = vrot.lane.b32.xlu1 %v6708_v33, %s9443_s5 }
0x1605   : > { %6939 = vrot.lane.b32.xlu0 %v6708_v33, %s9445_s7 }
0x1606   : > { %6873 = vrot.lane.b32.xlu1 %v6579_v29, %s9441_s30 }
0x1609   : > { %7011 = vrot.lane.b32.xlu0 %v6789_v35, %s9446_s8 }
0x160a   : > { %6801 = vrot.lane.b32.xlu1 %v6789_v35, %s9444_s6 }
0x160d   : > { %7083 = vrot.lane.b32.xlu0 %v6579_v29, %s9442_s4 }
0x160e   : > { %6941 = vrot.lane.b32.xlu1 %v6709_v31, %s9445_s7 }
0x1611   : > { %6598 = vrot.lane.b32.xlu0 %v6581_v38, %s9440_s29 }
0x1612   : > { %7009 = vrot.lane.b32.xlu1 %v6573_v21, %s9446_s8 }
0x1615   : > { %6725 = vrot.lane.b32.xlu0 %v6710_v47, %s9443_s5 }
0x1616   : > { %6596 = vrot.lane.b32.xlu1 %v6580_v49, %s9440_s29 }
0x1619   : > { %6803 = vrot.lane.b32.xlu0 %v6574_v2, %s9444_s6 }
0x161a   : > { %6877 = vrot.lane.b32.xlu1 %v6581_v38, %s9441_s30 }
0x161d   : > { %6875 = vrot.lane.b32.xlu0 %v6580_v49, %s9441_s30 }
0x161e   : > { %7013 = vrot.lane.b32.xlu1 %v6574_v2, %s9446_s8 }
0x1621   : > { %6943 = vrot.lane.b32.xlu0 %v6710_v47, %s9445_s7 }
0x1622   : > { %7085 = vrot.lane.b32.xlu1 %v6580_v49, %s9442_s4 }
0x1625   : > { %7087 = vrot.lane.b32.xlu0 %v6581_v38, %s9442_s4 }
0x1626   : > { %6727 = vrot.lane.b32.xlu1 %v6711_v48, %s9443_s5 }
0x1629   : > { %6729 = vrot.lane.b32.xlu0 %v6712_v55, %s9443_s5 }
0x162a   : > { %7153 = vrot.lane.b32.xlu1 %v6710_v47, %s9447_s9 }
0x162d   : > { %6807 = vrot.lane.b32.xlu0 %v6790_v56, %s9444_s6 }
0x162e   : > { %6805 = vrot.lane.b32.xlu1 %v10418_v16, %s9444_s6 }
0x1631   : > { %7079 = vrot.lane.b32.xlu0 %v10398_v6, %s9442_s4 }
0x1632   : > { %6945 = vrot.lane.b32.xlu1 %v6711_v48, %s9445_s7 }
0x1635   : > { %6947 = vrot.lane.b32.xlu0 %v6712_v55, %s9445_s7 }
0x1636   : > { %7017 = vrot.lane.b32.xlu1 %v6790_v56, %s9446_s8 }
0x1639   : > { %7015 = vrot.lane.b32.xlu0 %v10418_v16, %s9446_s8 }
0x163a   : > { %7081 = vrot.lane.b32.xlu1 %v10379_v52, %s9442_s4 }
0x163d   : > { %7077 = vrot.lane.b32.xlu0 %v10381_v53, %s9442_s4 }
0x163e   : > { %7157 = vrot.lane.b32.xlu1 %v6712_v55, %s9447_s9 }
0x1641   : > { %7155 = vrot.lane.b32.xlu0 %v6711_v48, %s9447_s9 }
0x1642   : > { %7149 = vrot.lane.b32.xlu1 %v6708_v33, %s9447_s9 }
0x1645   : > { %7151 = vrot.lane.b32.xlu0 %v6709_v31, %s9447_s9 }
0x1646   : > { %7147 = vrot.lane.b32.xlu1 %v10416_v9, %s9447_s9 }
0x1649   : > { %7220 = vperm.xlu0 %9018, %v7217_v51  }
0x165b   : > { %v6593_v52 = vpop.permute.xlu0 %6592  ;;  %v6589_v54 = vpop.permute.xlu1 %6588 }
0x165f   : > { %v10505_v41 = vpop.permute.xlu0 %6797  ;;  %v10507_v53 = vpop.permute.xlu1 %6867 }
0x1663   : > { %v10509_v57 = vpop.permute.xlu0 %6871  ;;  %v6591_v62 = vpop.permute.xlu1 %6590 }
0x1664   : > { %v6601_v21 = vsel %vm365_vm5, %v6591_v62, %v6593_v52  ;;  %v6600_v29 = vsel %vm365_vm5, %v6589_v54, %v6591_v62  ;;  %v6566_v62 = vld [vmem:[#allocation2 + $0x878] sm:$0xf] }
0x1667   : > { %v10511_v63 = vpop.permute.xlu0 %6937 }
0x1668   : > { %v6720_v0 = vpop.permute.xlu1 %6719 }
0x166b   : > { %v6595_v58 = vpop.permute.xlu0 %6594 }
0x166c   : > { %v10513_v8 = vpop.permute.xlu1 %6869 }
0x166d   : > { %v6880_v51 = vsel %vm464_vm8, %v10513_v8, %v10509_v57  ;;  %v6567_v57 = vld [vmem:[#allocation2 + $0x880] sm:$0xf] }
0x166f   : > { %v6724_v6 = vpop.permute.xlu0 %6723 }
0x1670   : > { %v10515_v10 = vpop.permute.xlu1 %7007 }
0x1673   : > { %v6800_v12 = vpop.permute.xlu0 %6799 }
0x1674   : > { %v6722_v19 = vpop.permute.xlu1 %6721  ;;  %v6809_v56 = vsel %vm439_vm7, %v10505_v41, %v6800_v12  ;;  %v6879_v41 = vsel %vm464_vm8, %v10507_v53, %v10513_v8 }
0x1675   : > { %v6732_v39 = vsel %vm408_vm6, %v6722_v19, %v6724_v6  ;;  %v6731_v43 = vsel %vm408_vm6, %v6720_v0, %v6722_v19 }
0x1677   : > { %v10517_v3 = vpop.permute.xlu0 %6939 }
0x1678   : > { %v6874_v37 = vpop.permute.xlu1 %6873 }
0x167b   : > { %v10519_v14 = vpop.permute.xlu0 %7011 }
0x167c   : > { %v6802_v15 = vpop.permute.xlu1 %6801 }
0x167d   : > { %v6810_v48 = vsel %vm439_vm7, %v6800_v12, %v6802_v15 }
0x167f   : > { %v10521_v40 = vpop.permute.xlu0 %7083 }
0x1680   : > { %v10523_v13 = vpop.permute.xlu1 %6941 }
0x1681   : > { %v6950_v19 = vsel %vm10744_vm0, %v10517_v3, %v10523_v13  ;;  %vm10753_vm0 = vcmask 769024  }
0x1683   : > { %v6599_v9 = vpop.permute.xlu0 %6598 }
0x1684   : > { %v10525_v2 = vpop.permute.xlu1 %7009 }
0x1685   : > { %v7020_v13 = vsel %vm10748_vm9, %v10525_v2, %v10519_v14 }
0x1687   : > { %v6726_v16 = vpop.permute.xlu0 %6725 }
0x1688   : > { %v6597_v17 = vpop.permute.xlu1 %6596 }
0x1689   : > { %v6602_v18 = vsel %vm365_vm5, %v6595_v58, %v6597_v17  ;;  %v6603_v26 = vsel %vm365_vm5, %v6597_v17, %v6599_v9  ;;  %v6949_v9 = vsel %vm10747_vm14, %v10511_v63, %v10517_v3  ;;  %vm10756_vm14 = vmmov %vm10753_vm0 }
0x168a   : > { %v6611_v27 = vsel %vm651_vm13, %v6602_v18, 0  ;;  %8267 = vmatprep.subr.msk.bf16.mxu0 %vm651_vm13, %v6603_v26  ;;  %v6568_v26 = vld [vmem:[#allocation2 + $0x888] sm:$0xf] }
0x168b   : > { %6629 = vmatpush1.bf16.msra.mxu0 %v6611_v27  ;;  %v6804_v28 = vpop.permute.xlu0 %6803 }
0x168c   : > { %6630 = vmatprep.subr.bf16.mxu0 %v6601_v21  ;;  %v6878_v24 = vpop.permute.xlu1 %6877 }
0x168f   : > { %6631 = vmatpush1.bf16.msra.mxu0 %v6600_v29  ;;  %v6876_v30 = vpop.permute.xlu0 %6875 }
0x1690   : > { %v7014_v11 = vpop.permute.xlu1 %7013  ;;  %v6881_v49 = vsel %vm464_vm8, %v6874_v37, %v6876_v30  ;;  %v6882_v46 = vsel %vm464_vm8, %v6876_v30, %v6878_v24 }
0x1691   : > { %v6889_v42 = vsel %vm651_vm13, %v6881_v49, 0 }
0x1692   : > { %8268 = vmatmul.mubr.msk.bf16.vlgmr.msra.gmra.mxu0 %vm6606_vm2, %v6564_v5  ;;  %v6570_v5 = vld [vmem:[#allocation2 + $0x898] sm:$0xf] }
0x1693   : > { %v6944_v31 = vpop.permute.xlu0 %6943  ;;  %6778 = vmatprep.mubr.bf16.mxu0 %v9436_v1 }
0x1694   : > { %v10535_v32 = vpop.permute.xlu1 %7085 }
0x1697   : > { %v10537_v4 = vpop.permute.xlu0 %7087 }
0x1698   : > { %v6728_v33 = vpop.permute.xlu1 %6727  ;;  %v7092_v17 = vsel %vm10750_vm1, %v10535_v32, %v10537_v4  ;;  %v6571_v4 = vld [vmem:[#allocation2 + $0x8a0] sm:$0xf] }
0x1699   : > { %v6733_v61 = vsel %vm408_vm6, %v6726_v16, %v6728_v33  ;;  %v7091_v16 = vsel %vm10749_vm11, %v10521_v40, %v10535_v32  ;;  %v6569_v40 = vld [vmem:[#allocation2 + $0x890] sm:$0xf] }
0x169a   : > { %v6741_v36 = vsel %vm651_vm13, %v6733_v61, 0  ;;  %v7099_v14 = vsel %vm651_vm13, %v7091_v16, 0 }
0x169b   : > { %v6730_v34 = vpop.permute.xlu0 %6729 }
0x169c   : > { %v6734_v35 = vsel %vm408_vm6, %v6728_v33, %v6730_v34  ;;  %v10541_v7 = vpop.permute.xlu1 %7153 }
0x169d   : > { %8276 = vmatprep.subr.msk.bf16.mxu0 %vm651_vm13, %v6734_v35 }
0x169e   : > { %6759 = vmatpush1.bf16.msra.mxu0 %v6741_v36 }
0x169f   : > { %v6808_v44 = vpop.permute.xlu0 %6807  ;;  %6760 = vmatprep.subr.bf16.mxu0 %v6732_v39 }
0x16a0   : > { %v6806_v38 = vpop.permute.xlu1 %6805 }
0x16a1   : > { %v6811_v45 = vsel %vm439_vm7, %v6804_v28, %v6806_v38  ;;  %v6812_v47 = vsel %vm439_vm7, %v6806_v38, %v6808_v44 }
0x16a2   : > { %v6819_v60 = vsel %vm651_vm13, %v6811_v45, 0  ;;  %8278 = vmatprep.subr.msk.bf16.mxu1 %vm651_vm13, %v6812_v47  ;;  %6761 = vmatpush1.bf16.msra.mxu0 %v6731_v43 }
0x16a3   : > { %6837 = vmatpush1.bf16.msra.mxu1 %v6819_v60  ;;  %v10553_v50 = vpop.permute.xlu0 %7079  ;;  %8280 = vmatprep.subr.msk.bf16.mxu0 %vm651_vm13, %v6882_v46 }
0x16a4   : > { %6838 = vmatprep.subr.bf16.mxu1 %v6810_v48  ;;  %v6946_v55 = vpop.permute.xlu1 %6945 }
0x16a5   : > { %8277 = vmatmul.mubr.msk.bf16.vlgmr.msra.gmra.mxu0 %vm6606_vm2, %v6565_v59  ;;  %v6951_v52 = vsel %vm10742_vm3, %v6944_v31, %v6946_v55  ;;  %vm10751_vm3 = vmmov %vm10748_vm9 }
0x16a6   : > { %6907 = vmatpush1.bf16.msra.mxu0 %v6889_v42  ;;  %6926 = vmatprep.mubr.bf16.mxu0 %v9436_v1  ;;  %v6959_v6 = vsel %vm651_vm13, %v6951_v52, 0  ;;  %v7019_v3 = vsel %vm10751_vm3, %v10515_v10, %v10525_v2  ;;  %vm10757_vm9 = vmmov %vm10753_vm0 }
0x16a7   : > { %6839 = vmatpush1.bf16.msra.mxu1 %v6809_v56  ;;  %v6948_v54 = vpop.permute.xlu0 %6947  ;;  %6908 = vmatprep.subr.bf16.mxu0 %v6880_v51 }
0x16a8   : > { %v6952_v0 = vsel %vm10743_vm15, %v6946_v55, %v6948_v54  ;;  %v7018_v58 = vpop.permute.xlu1 %7017  ;;  %vm10752_vm15 = vmmov %vm10750_vm1 }
0x16a9   : > { %8282 = vmatprep.subr.msk.bf16.mxu1 %vm651_vm13, %v6952_v0 }
0x16aa   : > { %8279 = vmatmul.mubr.msk.bf16.vlgmr.msra.gmra.mxu1 %vm6606_vm2, %v6566_v62  ;;  %6909 = vmatpush1.bf16.msra.mxu0 %v6879_v41 }
0x16ab   : > { %6977 = vmatpush1.bf16.msra.mxu1 %v6959_v6  ;;  %v7016_v12 = vpop.permute.xlu0 %7015  ;;  %6996 = vmatprep.mubr.bf16.mxu1 %v9436_v1 }
0x16ac   : > { %v7021_v37 = vsel %vm10745_vm10, %v7014_v11, %v7016_v12  ;;  %v7022_v53 = vsel %vm10746_vm12, %v7016_v12, %v7018_v58  ;;  %6978 = vmatprep.subr.bf16.mxu1 %v6950_v19  ;;  %v7082_v8 = vpop.permute.xlu1 %7081  ;;  %vm10754_vm10 = vmmov %vm10753_vm0 }
0x16ad   : > { %v7029_v15 = vsel %vm651_vm13, %v7021_v37, 0  ;;  %8281 = vmatmul.mubr.msk.bf16.vlgmr.msra.gmra.mxu0 %vm6606_vm2, %v6567_v57  ;;  %8284 = vmatprep.subr.msk.bf16.mxu0 %vm651_vm13, %v7022_v53  ;;  %v7090_v28 = vsel %vm10752_vm15, %v10553_v50, %v7082_v8  ;;  %vm10755_vm12 = vmmov %vm10750_vm1 }
0x16ae   : > { %7047 = vmatpush1.bf16.msra.mxu0 %v7029_v15  ;;  %7066 = vmatprep.mubr.bf16.mxu0 %v9436_v1  ;;  %vm10765_vm1 = vmmov %vm10751_vm3 }
0x16af   : > { %6979 = vmatpush1.bf16.msra.mxu1 %v6949_v9  ;;  %v7078_v18 = vpop.permute.xlu0 %7077  ;;  %7048 = vmatprep.subr.bf16.mxu0 %v7020_v13  ;;  %vm10766_vm3 = vmmov %vm10765_vm1 }
0x16b0   : > { %8286 = vmatprep.subr.msk.bf16.mxu1 %vm651_vm13, %v7092_v17  ;;  %v7158_v63 = vpop.permute.xlu1 %7157  ;;  %v7089_v29 = vsel %vm10755_vm12, %v7078_v18, %v10553_v50 }
0x16b2   : > { %8283 = vmatmul.mubr.msk.bf16.vlgmr.msra.gmra.mxu1 %vm6606_vm2, %v6568_v26  ;;  %7049 = vmatpush1.bf16.msra.mxu0 %v7019_v3 }
0x16b3   : > { %7117 = vmatpush1.bf16.msra.mxu1 %v7099_v14  ;;  %v7156_v27 = vpop.permute.xlu0 %7155  ;;  %7136 = vmatprep.mubr.bf16.mxu1 %v9436_v1 }
0x16b4   : > { %v7161_v21 = vsel %vm10753_vm0, %v10541_v7, %v7156_v27  ;;  %v7162_v24 = vsel %vm10754_vm10, %v7156_v27, %v7158_v63  ;;  %7118 = vmatprep.subr.bf16.mxu1 %v7090_v28  ;;  %v7150_v10 = vpop.permute.xlu1 %7149  ;;  %vm10768_vm0 = vmmov %vm10755_vm12 }
0x16b5   : > { %v7169_v2 = vsel %vm651_vm13, %v7161_v21, 0  ;;  %8285 = vmatmul.mubr.msk.bf16.vlgmr.msra.gmra.mxu0 %vm6606_vm2, %v6569_v40  ;;  %8288 = vmatprep.subr.msk.bf16.mxu0 %vm651_vm13, %v7162_v24  ;;  %vm10769_vm10 = vmmov %vm10768_vm0 }
0x16b6   : > { %7187 = vmatpush1.bf16.msra.mxu0 %v7169_v2  ;;  %7206 = vmatprep.mubr.bf16.mxu0 %v9436_v1 }
0x16b7   : > { %7119 = vmatpush1.bf16.msra.mxu1 %v7089_v29  ;;  %v7152_v30 = vpop.permute.xlu0 %7151 }
0x16b8   : > { %v7148_v11 = vpop.permute.xlu1 %7147  ;;  %v7160_v31 = vsel %vm10756_vm14, %v7150_v10, %v7152_v30  ;;  %vm10771_vm14 = vmmov %vm10757_vm9 }
0x16b9   : > { %v7159_v32 = vsel %vm10757_vm9, %v7148_v11, %v7150_v10  ;;  %7188 = vmatprep.subr.bf16.mxu0 %v7160_v31 }
0x16ba   : > { %8287 = vmatmul.mubr.msk.bf16.vlgmr.msra.gmra.mxu1 %vm6606_vm2, %v6570_v5  ;;  %7189 = vmatpush1.bf16.msra.mxu0 %v7159_v32 }
0x16bb   : > { %7333 = vmatprep.mubr.bf16.mxu1 %v9436_v1 }
0x16bd   : > { %8289 = vmatmul.mubr.msk.bf16.vlgmr.msra.gmra.mxu0 %vm6606_vm2, %v6571_v4  ;;  %v6700_v33 = vpop.f32.mrf.mxu1  ;;  %vm10758_vm2 = vcmask 64512  }
0x16be   : > { %7383 = vmatprep.mubr.bf16.mxu0 %v9436_v1  ;;  %vm10764_vm11 = vmmov %vm10758_vm2 }
0x16bf   : > { %v6702_v61 = vpop.f32.mrf.mxu1  ;;  %vm10767_vm15 = vmmov %vm10758_vm2 }
0x16c0   : > { %vm10770_vm12 = vmmov %vm10758_vm2 }
0x16c1   : > { %v6704_v34 = vpop.f32.mrf.mxu1 }
0x16c3   : > { %v6705_v35 = vpop.f32.mrf.mxu1 }
0x16c4   : > { %v7221_v28 = vpop.permute.xlu0 %7220 }
0x1752   : > { %v6650_v7 = vpop.f32.mrf.mxu0 }
0x1753   : > { %v6701_v48 = vadd.f32 %v6700_v33, %v6650_v7 }
0x1754   : > { %v6652_v36 = vpop.f32.mrf.mxu0 }
0x1755   : > { %v6703_v56 = vadd.f32 %v6702_v61, %v6652_v36 }
0x1756   : > { %v6654_v39 = vpop.f32.mrf.mxu0 }
0x1758   : > { %v6655_v44 = vpop.f32.mrf.mxu0 }
0x1765   : > { %v6780_v38 = vpop.f32.mrf.mxu0 }
0x1766   : > { %v6787_v51 = vadd.f32 %v6780_v38, %v6701_v48 }
0x1767   : > { %v6782_v43 = vpop.f32.mrf.mxu0 }
0x1768   : > { %v6788_v62 = vadd.f32 %v6782_v43, %v6703_v56 }
0x1769   : > { %v6784_v45 = vpop.f32.mrf.mxu0 }
0x176a   : > { %v6858_v47 = vpop.f32.mrf.mxu1 }
0x176b   : > { %v6785_v49 = vpop.f32.mrf.mxu0  ;;  %v6865_v0 = vadd.f32 %v6858_v47, %v6787_v51 }
0x176c   : > { %v6860_v46 = vpop.f32.mrf.mxu1 }
0x176d   : > { %v6928_v60 = vpop.f32.mrf.mxu0  ;;  %v6866_v6 = vadd.f32 %v6860_v46, %v6788_v62 }
0x176e   : > { %v6862_v59 = vpop.f32.mrf.mxu1  ;;  %v6935_v57 = vadd.f32 %v6928_v60, %v6865_v0 }
0x176f   : > { %v6930_v50 = vpop.f32.mrf.mxu0 }
0x1770   : > { %v6863_v55 = vpop.f32.mrf.mxu1  ;;  %v6936_v37 = vadd.f32 %v6930_v50, %v6866_v6 }
0x1771   : > { %v6932_v42 = vpop.f32.mrf.mxu0 }
0x1772   : > { %v6998_v52 = vpop.f32.mrf.mxu1 }
0x1773   : > { %v6933_v54 = vpop.f32.mrf.mxu0  ;;  %v7005_v53 = vadd.f32 %v6998_v52, %v6935_v57  ;;  %v7267_v52 = vld [vmem:[#allocation2 + $0x8b0] sm:$0xf] }
0x1774   : > { %v7000_v58 = vpop.f32.mrf.mxu1 }
0x1775   : > { %v7068_v41 = vpop.f32.mrf.mxu0  ;;  %v7006_v9 = vadd.f32 %v7000_v58, %v6936_v37 }
0x1776   : > { %v7002_v12 = vpop.f32.mrf.mxu1  ;;  %v7075_v13 = vadd.f32 %v7068_v41, %v7005_v53 }
0x1777   : > { %v7070_v19 = vpop.f32.mrf.mxu0  ;;  %v7833_v12 = vld [vmem:[%s10728_s2 + $0xd0] sm:$0x3] }
0x1778   : > { %v7003_v8 = vpop.f32.mrf.mxu1  ;;  %v7076_v18 = vadd.f32 %v7070_v19, %v7006_v9  ;;  %v7822_v19 = vld [vmem:[%s10728_s2 + $0xc8] sm:$0xff] }
0x1779   : > { %v7072_v15 = vpop.f32.mrf.mxu0 }
0x177a   : > { %v7138_v16 = vpop.f32.mrf.mxu1 }
0x177b   : > { %v7073_v17 = vpop.f32.mrf.mxu0  ;;  %v7145_v26 = vadd.f32 %v7138_v16, %v7075_v13 }
0x177c   : > { %v7140_v63 = vpop.f32.mrf.mxu1 }
0x177d   : > { %v7208_v3 = vpop.f32.mrf.mxu0  ;;  %v7146_v14 = vadd.f32 %v7140_v63, %v7076_v18  ;;  %v7268_v18 = vld [vmem:[#allocation2 + $0x8b8] sm:$0xf] }
0x177e   : > { %v7215_v40 = vadd.f32 %v7208_v3, %v7145_v26  ;;  %v7142_v27 = vpop.f32.mrf.mxu1 }
0x177f   : > { %v7210_v21 = vpop.f32.mrf.mxu0 }
0x1780   : > { %v7223_v24 = vadd.f32 %v7221_v28, %v7215_v40  ;;  %v7216_v10 = vadd.f32 %v7210_v21, %v7146_v14  ;;  %v7143_v2 = vpop.f32.mrf.mxu1 }
0x1781   : > { %v7212_v29 = vpop.f32.mrf.mxu0 }
0x1782   : > { %v7225_v30 = vmax.f32 %v7223_v24, 0.0  ;;  %v7224_v5 = vadd.f32 %v7221_v28, %v7216_v10 }
0x1783   : > { %v7213_v11 = vpop.f32.mrf.mxu0 }
0x1784   : > { %v7226_v31 = vmax.f32 %v7224_v5, 0.0  ;;  %v7239_v32 = vmul.f32 %v9531_v23, %v7225_v30  ;;  %v7253_v34 = vmul.f32 %v9525_v20, %v7225_v30  ;;  %v7269_v5 = vld [vmem:[#allocation2 + $0x8c0] sm:$0xf] }
0x1786   : > { %v7240_v4 = vmul.f32 %v9536_v25, %v7226_v31  ;;  %v7254_v33 = vmul.f32 %v9528_v22, %v7226_v31  ;;  %v9224_v61 = vpack.i.bf16 %v7226_v31, %v7225_v30 }
0x1788   : > { %9225 = vrot.lane.b32.xlu1 %v9224_v61, %s9439_s26  ;;  %v9229_v35 = vpack.i.bf16 %v7240_v4, %v7239_v32  ;;  %v9234_v7 = vpack.i.bf16 %v7254_v33, %v7253_v34  ;;  %v7270_v34 = vld [vmem:[#allocation2 + $0x8c8] sm:$0xf] }
0x178a   : > { %9230 = vrot.lane.b32.xlu0 %v9229_v35, %s9439_s26 }
0x178c   : > { %9235 = vrot.lane.b32.xlu1 %v9234_v7, %s9439_s26 }
0x17fa   : > { %v9226_v36 = vpop.permute.xlu1 %9225 }
0x17fb   : > { %v9228_v39 = vunpack.i.h.bf16 %v9226_v36  ;;  %v9227_v44 = vunpack.i.l.bf16 %v9226_v36  ;;  %v7271_v36 = vld [vmem:[#allocation2 + $0x8d0] sm:$0xf] }
0x17fc   : > { %v9231_v38 = vpop.permute.xlu0 %9230 }
0x17fd   : > { %v7237_v23 = vsel %vm215_vm4, 0.0, %v9227_v44  ;;  %v7233_v22 = vsel %vm215_vm4, %v9227_v44, %v9228_v39  ;;  %v9232_v45 = vunpack.i.l.bf16 %v9231_v38  ;;  %v7238_v49 = vsel %vm215_vm4, %v9228_v39, 0.0 }
0x17fe   : > { %v7278_v25 = vpack.c.bf16 %v7237_v23, %v7237_v23  ;;  %v9236_v43 = vpop.permute.xlu1 %9235  ;;  %v7279_v60 = vpack.c.bf16 %v7233_v22, %v7233_v22  ;;  %v7280_v48 = vpack.c.bf16 %v7238_v49, %v7238_v49  ;;  %v9233_v54 = vunpack.i.h.bf16 %v9231_v38 }
0x17ff   : > { %v9238_v20 = vunpack.i.h.bf16 %v9236_v43  ;;  %v9237_v47 = vunpack.i.l.bf16 %v9236_v43  ;;  %v7251_v55 = vsel %vm215_vm4, 0.0, %v9232_v45  ;;  %v7272_v43 = vld [vmem:[#allocation2 + $0x8d8] sm:$0xf] }
0x1800   : > { %7522 = vrot.lane.b32.xlu1 %v7278_v25, %s9441_s30  ;;  %7284 = vrot.lane.b32.xlu0 %v7278_v25, %s9440_s29  ;;  %v7392_v51 = vpack.c.bf16 %v7251_v55, %v7251_v55  ;;  %v7252_v62 = vsel %vm215_vm4, %v9233_v54, 0.0  ;;  %v7247_v0 = vsel %vm215_vm4, %v9232_v45, %v9233_v54 }
0x1801   : > { %v7261_v46 = vsel %vm215_vm4, %v9237_v47, %v9238_v20  ;;  %v7265_v59 = vsel %vm215_vm4, 0.0, %v9237_v47  ;;  %v7394_v58 = vpack.c.bf16 %v7252_v62, %v7252_v62  ;;  %v7393_v41 = vpack.c.bf16 %v7247_v0, %v7247_v0  ;;  %v7275_v62 = vld [vmem:[#allocation2 + $0x8f0] sm:$0xf] }
0x1802   : > { %v7277_v50 = vpack.c.bf16 %v7261_v46, %v7261_v46  ;;  %v7276_v42 = vpack.c.bf16 %v7265_v59, %v7265_v59  ;;  %v7266_v6 = vsel %vm215_vm4, %v9238_v20, 0.0  ;;  %vm10759_vm4 = vmmov %vm10758_vm2 }
0x1803   : > { %v7458_v57 = vpack.c.bf16 %v7266_v6, %v7266_v6 }
0x1804   : > { %7286 = vrot.lane.b32.xlu1 %v7279_v60, %s9440_s29  ;;  %8292 = vmatprep.subr.msk.bf16.mxu0 %vm651_vm13, %v7277_v50  ;;  %v7346_v56 = vsel %vm651_vm13, %v7276_v42, 0 }
0x1805   : > { %7288 = vrot.lane.b32.xlu0 %v7280_v48, %s9440_s29  ;;  %7366 = vmatpush1.bf16.msra.mxu0 %v7346_v56 }
0x1808   : > { %7398 = vrot.lane.b32.xlu1 %v7392_v51, %s9443_s5  ;;  %8293 = vmatmul.mubr.msk.bf16.vlgmr.msra.gmra.mxu0 %vm10758_vm2, %v7267_v52 }
0x1809   : > { %7462 = vrot.lane.b32.xlu0 %v7276_v42, %s9444_s6  ;;  %7511 = vmatprep.mubr.bf16.mxu0 %v9436_v1 }
0x180c   : > { %7526 = vrot.lane.b32.xlu1 %v7280_v48, %s9441_s30 }
0x180d   : > { %7524 = vrot.lane.b32.xlu0 %v7279_v60, %s9441_s30 }
0x1810   : > { %7642 = vrot.lane.b32.xlu1 %v7276_v42, %s9446_s8  ;;  %v7274_v42 = vld [vmem:[#allocation2 + $0x8e8] sm:$0xf] }
0x1811   : > { %7582 = vrot.lane.b32.xlu0 %v7392_v51, %s9445_s7 }
0x1814   : > { %7402 = vrot.lane.b32.xlu1 %v7394_v58, %s9443_s5 }
0x1815   : > { %7400 = vrot.lane.b32.xlu0 %v7393_v41, %s9443_s5 }
0x1818   : > { %7464 = vrot.lane.b32.xlu1 %v7277_v50, %s9444_s6 }
0x1819   : > { %7466 = vrot.lane.b32.xlu0 %v7458_v57, %s9444_s6 }
0x181c   : > { %7704 = vrot.lane.b32.xlu1 %v7279_v60, %s9442_s4  ;;  %v7273_v60 = vld [vmem:[#allocation2 + $0x8e0] sm:$0xf] }
0x181d   : > { %7702 = vrot.lane.b32.xlu0 %v7278_v25, %s9442_s4 }
0x1820   : > { %7584 = vrot.lane.b32.xlu1 %v7393_v41, %s9445_s7 }
0x1821   : > { %7586 = vrot.lane.b32.xlu0 %v7394_v58, %s9445_s7 }
0x1824   : > { %7646 = vrot.lane.b32.xlu1 %v7458_v57, %s9446_s8 }
0x1825   : > { %7644 = vrot.lane.b32.xlu0 %v7277_v50, %s9446_s8 }
0x1828   : > { %7762 = vrot.lane.b32.xlu1 %v7392_v51, %s9447_s9 }
0x1829   : > { %7706 = vrot.lane.b32.xlu0 %v7280_v48, %s9442_s4  ;;  %s8313_s4 = sshll.u32 %s10775_s13, 2 }
0x182a   : > { %s182_s8 = scalar_lea.vmem %s10729_s3, %s8313_s4 }
0x182c   : > { %7766 = vrot.lane.b32.xlu1 %v7394_v58, %s9447_s9 }
0x182d   : > { %7764 = vrot.lane.b32.xlu0 %v7393_v41, %s9447_s9 }
0x1830   : > { %7838 = vperm.xlu1 %9012, %v7833_v12  }
0x1831   : > { %7825 = vperm.xlu0 %9018, %v7822_v19  }
0x1872   : > { %v7523_v37 = vpop.permute.xlu1 %7522  ;;  %v7285_v53 = vpop.permute.xlu0 %7284 }
0x1876   : > { %v7287_v8 = vpop.permute.xlu1 %7286 }
0x1877   : > { %v7290_v15 = vsel %vm365_vm5, %v7285_v53, %v7287_v8  ;;  %v7289_v9 = vpop.permute.xlu0 %7288 }
0x1878   : > { %v7296_v13 = vsel %vm651_vm13, %v7290_v15, 0  ;;  %v7291_v16 = vsel %vm365_vm5, %v7287_v8, %v7289_v9  ;;  %vm10760_vm5 = vmmov %vm10758_vm2 }
0x1879   : > { %8290 = vmatprep.subr.msk.bf16.mxu1 %vm651_vm13, %v7291_v16 }
0x187a   : > { %7316 = vmatpush1.bf16.msra.mxu1 %v7296_v13  ;;  %v7399_v17 = vpop.permute.xlu1 %7398 }
0x187b   : > { %v7463_v26 = vpop.permute.xlu0 %7462 }
0x187d   : > { %8291 = vmatmul.mubr.msk.bf16.vlgmr.msra.gmra.mxu1 %vm10759_vm4, %v7268_v18  ;;  %vm10772_vm4 = vmmov %vm10758_vm2 }
0x187e   : > { %v7527_v63 = vpop.permute.xlu1 %7526  ;;  %7447 = vmatprep.mubr.bf16.mxu1 %v9436_v1 }
0x187f   : > { %v7525_v3 = vpop.permute.xlu0 %7524 }
0x1880   : > { %v7528_v2 = vsel %vm464_vm8, %v7523_v37, %v7525_v3  ;;  %v7529_v29 = vsel %vm464_vm8, %v7525_v3, %v7527_v63 }
0x1881   : > { %v7534_v33 = vsel %vm651_vm13, %v7528_v2, 0 }
0x1882   : > { %v7643_v14 = vpop.permute.xlu1 %7642 }
0x1883   : > { %v7583_v40 = vpop.permute.xlu0 %7582 }
0x1886   : > { %v7403_v27 = vpop.permute.xlu1 %7402 }
0x1887   : > { %v7401_v28 = vpop.permute.xlu0 %7400 }
0x1888   : > { %v7404_v21 = vsel %vm408_vm6, %v7399_v17, %v7401_v28  ;;  %v7405_v24 = vsel %vm408_vm6, %v7401_v28, %v7403_v27  ;;  %vm10761_vm6 = vmmov %vm10758_vm2 }
0x1889   : > { %v7410_v10 = vsel %vm651_vm13, %v7404_v21, 0  ;;  %8294 = vmatprep.subr.msk.bf16.mxu1 %vm651_vm13, %v7405_v24 }
0x188a   : > { %7430 = vmatpush1.bf16.msra.mxu1 %v7410_v10  ;;  %v7465_v30 = vpop.permute.xlu1 %7464 }
0x188b   : > { %v7468_v11 = vsel %vm439_vm7, %v7463_v26, %v7465_v30  ;;  %8298 = vmatprep.subr.msk.bf16.mxu1 %vm651_vm13, %v7529_v29  ;;  %v7467_v31 = vpop.permute.xlu0 %7466 }
0x188c   : > { %v7474_v32 = vsel %vm651_vm13, %v7468_v11, 0  ;;  %v7469_v4 = vsel %vm439_vm7, %v7465_v30, %v7467_v31  ;;  %vm10762_vm7 = vcmask 900096  }
0x188d   : > { %8295 = vmatmul.mubr.msk.bf16.vlgmr.msra.gmra.mxu1 %vm10760_vm5, %v7269_v5  ;;  %8296 = vmatprep.subr.msk.bf16.mxu0 %vm651_vm13, %v7469_v4  ;;  %vm10763_vm8 = vmmov %vm10762_vm7 }
0x188e   : > { %7494 = vmatpush1.bf16.msra.mxu0 %v7474_v32  ;;  %7554 = vmatpush1.bf16.msra.mxu1 %v7534_v33  ;;  %v7705_v61 = vpop.permute.xlu1 %7704  ;;  %vm10773_vm5 = vmmov %vm10758_vm2 }
0x188f   : > { %v7703_v35 = vpop.permute.xlu0 %7702  ;;  %7571 = vmatprep.mubr.bf16.mxu1 %v9436_v1 }
0x1890   : > { %v7708_v49 = vsel %vm10768_vm0, %v7703_v35, %v7705_v61 }
0x1891   : > { %8297 = vmatmul.mubr.msk.bf16.vlgmr.msra.gmra.mxu0 %vm10761_vm6, %v7270_v34  ;;  %v7714_v48 = vsel %vm651_vm13, %v7708_v49, 0 }
0x1892   : > { %v7585_v7 = vpop.permute.xlu1 %7584  ;;  %7631 = vmatprep.mubr.bf16.mxu0 %v9436_v1 }
0x1893   : > { %v7588_v39 = vsel %vm10762_vm7, %v7583_v40, %v7585_v7  ;;  %v7587_v44 = vpop.permute.xlu0 %7586 }
0x1894   : > { %v7594_v38 = vsel %vm651_vm13, %v7588_v39, 0  ;;  %v7589_v23 = vsel %vm10763_vm8, %v7585_v7, %v7587_v44 }
0x1895   : > { %8299 = vmatmul.mubr.msk.bf16.vlgmr.msra.gmra.mxu1 %vm10764_vm11, %v7271_v36  ;;  %8300 = vmatprep.subr.msk.bf16.mxu0 %vm651_vm13, %v7589_v23 }
0x1896   : > { %7614 = vmatpush1.bf16.msra.mxu0 %v7594_v38  ;;  %v7647_v25 = vpop.permute.xlu1 %7646  ;;  %7691 = vmatprep.mubr.bf16.mxu1 %v9436_v1 }
0x1897   : > { %v7645_v22 = vpop.permute.xlu0 %7644 }
0x1898   : > { %v7648_v45 = vsel %vm10765_vm1, %v7643_v14, %v7645_v22  ;;  %v7649_v20 = vsel %vm10766_vm3, %v7645_v22, %v7647_v25 }
0x1899   : > { %v7654_v47 = vsel %vm651_vm13, %v7648_v45, 0  ;;  %8301 = vmatmul.mubr.msk.bf16.vlgmr.msra.gmra.mxu0 %vm10767_vm15, %v7272_v43  ;;  %8302 = vmatprep.subr.msk.bf16.mxu1 %vm651_vm13, %v7649_v20 }
0x189a   : > { %7674 = vmatpush1.bf16.msra.mxu1 %v7654_v47  ;;  %v7763_v46 = vpop.permute.xlu1 %7762  ;;  %7751 = vmatprep.mubr.bf16.mxu0 %v9436_v1 }
0x189b   : > { %v7707_v59 = vpop.permute.xlu0 %7706 }
0x189c   : > { %v7709_v50 = vsel %vm10769_vm10, %v7705_v61, %v7707_v59 }
0x189d   : > { %8303 = vmatmul.mubr.msk.bf16.vlgmr.msra.gmra.mxu1 %vm10770_vm12, %v7273_v60  ;;  %8304 = vmatprep.subr.msk.bf16.mxu0 %vm651_vm13, %v7709_v50 }
0x189e   : > { %7734 = vmatpush1.bf16.msra.mxu0 %v7714_v48  ;;  %v7767_v55 = vpop.permute.xlu1 %7766  ;;  %7811 = vmatprep.mubr.bf16.mxu1 %v9436_v1 }
0x189f   : > { %v7765_v56 = vpop.permute.xlu0 %7764 }
0x18a0   : > { %v7768_v51 = vsel %vm10771_vm14, %v7763_v46, %v7765_v56  ;;  %v7769_v52 = vsel %vm10757_vm9, %v7765_v56, %v7767_v55 }
0x18a1   : > { %v7774_v54 = vsel %vm651_vm13, %v7768_v51, 0  ;;  %8305 = vmatmul.mubr.msk.bf16.vlgmr.msra.gmra.mxu0 %vm10758_vm2, %v7274_v42  ;;  %8306 = vmatprep.subr.msk.bf16.mxu1 %vm651_vm13, %v7769_v52  ;;  %v7832_v51 = vld [vmem:[#allocation2 + $0x900] sm:$0x1] }
0x18a2   : > { %7794 = vmatpush1.bf16.msra.mxu1 %v7774_v54  ;;  %7882 = vmatprep.mubr.bf16.mxu0 %v9436_v1 }
0x18a5   : > { %8307 = vmatmul.mubr.msk.bf16.vlgmr.msra.gmra.mxu1 %vm10772_vm4, %v7275_v62 }
0x18ab   : > { %v7839_v54 = vpop.permute.xlu1 %7838 }
0x18ac   : > { %v7826_v25 = vpop.permute.xlu0 %7825 }
0x18c8   : > { %v7385_v0 = vpop.f32.mrf.mxu0 }
0x18ca   : > { %v7387_v58 = vpop.f32.mrf.mxu0 }
0x18cc   : > { %v7389_v41 = vpop.f32.mrf.mxu0 }
0x18ce   : > { %v7390_v6 = vpop.f32.mrf.mxu0 }
0x193d   : > { %v7335_v57 = vpop.f32.mrf.mxu1 }
0x193e   : > { %v7386_v63 = vadd.f32 %v7385_v0, %v7335_v57 }
0x193f   : > { %v7337_v12 = vpop.f32.mrf.mxu1 }
0x1940   : > { %v7388_v40 = vadd.f32 %v7387_v58, %v7337_v12 }
0x1941   : > { %v7339_v19 = vpop.f32.mrf.mxu1 }
0x1943   : > { %v7340_v37 = vpop.f32.mrf.mxu1 }
0x194d   : > { %v7449_v53 = vpop.f32.mrf.mxu1 }
0x194e   : > { %v7456_v27 = vadd.f32 %v7449_v53, %v7386_v63 }
0x194f   : > { %v7451_v8 = vpop.f32.mrf.mxu1 }
0x1950   : > { %v7457_v24 = vadd.f32 %v7451_v8, %v7388_v40 }
0x1951   : > { %v7453_v15 = vpop.f32.mrf.mxu1  ;;  %v7513_v9 = vpop.f32.mrf.mxu0 }
0x1952   : > { %v7520_v10 = vadd.f32 %v7513_v9, %v7456_v27 }
0x1953   : > { %v7454_v13 = vpop.f32.mrf.mxu1  ;;  %v7515_v16 = vpop.f32.mrf.mxu0 }
0x1954   : > { %v7521_v30 = vadd.f32 %v7515_v16, %v7457_v24 }
0x1955   : > { %v7517_v17 = vpop.f32.mrf.mxu0  ;;  %v7573_v18 = vpop.f32.mrf.mxu1 }
0x1956   : > { %v7580_v5 = vadd.f32 %v7573_v18, %v7520_v10 }
0x1957   : > { %v7518_v26 = vpop.f32.mrf.mxu0  ;;  %v7575_v1 = vpop.f32.mrf.mxu1 }
0x1958   : > { %v7581_v32 = vadd.f32 %v7575_v1, %v7521_v30 }
0x1959   : > { %v7577_v3 = vpop.f32.mrf.mxu1  ;;  %v7633_v14 = vpop.f32.mrf.mxu0 }
0x195a   : > { %v7640_v4 = vadd.f32 %v7633_v14, %v7580_v5 }
0x195b   : > { %v7578_v28 = vpop.f32.mrf.mxu1  ;;  %v7635_v21 = vpop.f32.mrf.mxu0 }
0x195c   : > { %v7641_v34 = vadd.f32 %v7635_v21, %v7581_v32 }
0x195d   : > { %v7637_v2 = vpop.f32.mrf.mxu0  ;;  %v7693_v29 = vpop.f32.mrf.mxu1 }
0x195e   : > { %v7700_v35 = vadd.f32 %v7693_v29, %v7640_v4 }
0x195f   : > { %v7638_v11 = vpop.f32.mrf.mxu0  ;;  %v7695_v31 = vpop.f32.mrf.mxu1 }
0x1960   : > { %v7701_v39 = vadd.f32 %v7695_v31, %v7641_v34 }
0x1961   : > { %v7697_v33 = vpop.f32.mrf.mxu1  ;;  %v7753_v61 = vpop.f32.mrf.mxu0 }
0x1962   : > { %v7760_v44 = vadd.f32 %v7753_v61, %v7700_v35 }
0x1963   : > { %v7698_v7 = vpop.f32.mrf.mxu1  ;;  %v7755_v36 = vpop.f32.mrf.mxu0 }
0x1964   : > { %v7761_v43 = vadd.f32 %v7755_v36, %v7701_v39 }
0x1965   : > { %v7813_v38 = vpop.f32.mrf.mxu1  ;;  %v7757_v23 = vpop.f32.mrf.mxu0 }
0x1966   : > { %v7820_v22 = vadd.f32 %v7813_v38, %v7760_v44 }
0x1967   : > { %v7815_v45 = vpop.f32.mrf.mxu1  ;;  %v7758_v20 = vpop.f32.mrf.mxu0 }
0x1968   : > { %v7828_v47 = vadd.f32 %v7826_v25, %v7820_v22  ;;  %v7821_v49 = vadd.f32 %v7815_v45, %v7761_v43 }
0x1969   : > { %v7817_v46 = vpop.f32.mrf.mxu1 }
0x196a   : > { %v7830_v60 = vmax.f32 %v7828_v47, 0.0  ;;  %v7829_v59 = vadd.f32 %v7826_v25, %v7821_v49 }
0x196b   : > { %v7818_v50 = vpop.f32.mrf.mxu1 }
0x196c   : > { %v7834_v48 = vpack.c.bf16 %v7830_v60, %v7830_v60  ;;  %v7831_v55 = vmax.f32 %v7829_v59, 0.0 }
0x196e   : > { %v7835_v42 = vpack.c.bf16 %v7831_v55, %v7831_v55  ;;  %v7845_v56 = vsel %vm651_vm13, %v7834_v48, 0 }
0x1970   : > { %8308 = vmatprep.subr.msk.bf16.mxu0 %vm651_vm13, %v7835_v42 }
0x1971   : > { %7865 = vmatpush1.bf16.msra.mxu0 %v7845_v56 }
0x1974   : > { %8309 = vmatmul.mubr.msk.bf16.vlgmr.msra.gmra.mxu0 %vm10773_vm5, %v7832_v51 }
0x1a34   : > { %v7884_v52 = vpop.f32.mrf.mxu0 }
0x1a35   : > { %v7885_v0 = vadd.f32 %v7884_v52, %v7839_v54 }
0x1a36   : > { %v7886_v62 = vpop.f32.mrf.mxu0 }
0x1a37   : > { %v7887_v58 = vadd.f32 %v7886_v62, %v7839_v54 }
0x1a38   : > { %v7888_v41 = vpop.f32.mrf.mxu0 }
0x1a39   : > { %v7893_v6 = vcombine.low %v7885_v0, %v7887_v58 }
0x1a3a   : > { %v7889_v57 = vpop.f32.mrf.mxu0 }
0x1a3b   : > { %8310 = vst.sshfl [vmem:[%s182_s8] sm:$0x33 pattern:$0x76325410] %v7893_v6 }
0x1a3c PF: > { %s14_s12 = sadd.s32 1, %s9431_s12  }
0x1a3d   : > { %p11_p1 = scmp.ge.s32.totalorder %s14_s12, 4  }
0x1a3f   :  { %13 = sbr.rel (!%p11_p1) target bundleno = 1 (0x1), region = 67 }
0x1a44   :  { %7924 = vsyncpa [#allocation3], 1 }
0x1a45   :  { %7926 = vsyncpa [#allocation3 + $0x1], 1 }

</bundles_post_ra>
